<compile_context>
chip_gen: v6e
topology: v6e:2x2x1
jax: 0.10.0
libtpu: 0.0.40
codegen_flags: <defaults>
</compile_context>

<pallas_src>
import numpy as np
import jax
import jax.numpy as jnp
from jax import lax
from jax.experimental import pallas as pl
from jax.experimental.pallas import tpu as pltpu


# --------------------------------------------------------------------------
# activations
# --------------------------------------------------------------------------
def _hard_swish(x):
    return x * jnp.clip(x + 3.0, 0.0, 6.0) * (1.0 / 6.0)


def _hard_sigmoid(x):
    return jnp.clip(x + 3.0, 0.0, 6.0) * (1.0 / 6.0)


def _apply_act(x, act):
    if act == "relu":
        return jnp.maximum(x, 0.0)
    if act == "hard_swish":
        return _hard_swish(x)
    return x


# --------------------------------------------------------------------------
# model configuration (MobileNetV3-large) & deterministic parameter init
# --------------------------------------------------------------------------
LARGE_CFG = [
    # k, exp, out, use_se, act, stride
    [3, 16, 16, False, "relu", 1],
    [3, 64, 24, False, "relu", 2],
    [3, 72, 24, False, "relu", 1],
    [5, 72, 40, True, "relu", 2],
    [5, 120, 40, True, "relu", 1],
    [5, 120, 40, True, "relu", 1],
    [3, 240, 80, False, "hard_swish", 2],
    [3, 200, 80, False, "hard_swish", 1],
    [3, 184, 80, False, "hard_swish", 1],
    [3, 184, 80, False, "hard_swish", 1],
    [3, 480, 112, True, "hard_swish", 1],
    [3, 672, 112, True, "hard_swish", 1],
    [5, 672, 160, True, "hard_swish", 2],
    [5, 960, 160, True, "hard_swish", 1],
    [5, 960, 160, True, "hard_swish", 1],
]
CLS_CH_SQUEEZE = 960


def make_divisible(v, divisor=8, min_value=None):
    if min_value is None:
        min_value = divisor
    new_v = max(min_value, int(v + divisor / 2) // divisor * divisor)
    if new_v < 0.9 * v:
        new_v += divisor
    return new_v


class _ParamGen:
    def __init__(self, seed=0):
        self._key = jax.random.PRNGKey(seed)
        self._n = 0

    def normal(self, shape, std=0.1):
        self._n += 1
        k = jax.random.fold_in(self._key, self._n)
        return std * jax.random.normal(k, shape, jnp.float32)


def _bn_fold(gen, c, eps=1e-5):
    gamma = 1.0 + gen.normal((c,))
    beta = gen.normal((c,))
    mean = gen.normal((c,))
    var = 1.0 + jnp.abs(gen.normal((c,)))
    scale = gamma / jnp.sqrt(var + eps)
    bias = beta - mean * scale
    return scale.reshape(1, c), bias.reshape(1, c)


def _tap_matrix(h, w, k, stride, pad):
    """0/1 selection matrix.  Row (t*Ho*Wo + oh*Wo + ow), with t = dy*k + dx,
    selects input pixel (oh*stride + dy - pad, ow*stride + dx - pad); rows
    falling into the zero padding are all-zero (implicit zero padding)."""
    ho = (h + 2 * pad - k) // stride + 1
    wo = (w + 2 * pad - k) // stride + 1
    mat = np.zeros((k * k * ho * wo, h * w), np.float32)
    for dy in range(k):
        for dx in range(k):
            t = dy * k + dx
            for oh in range(ho):
                for ow in range(wo):
                    ih = oh * stride + dy - pad
                    iw = ow * stride + dx - pad
                    if 0 <= ih < h and 0 <= iw < w:
                        mat[t * ho * wo + oh * wo + ow, ih * w + iw] = 1.0
    return mat, ho, wo


class _Packer:
    """Packs all 2-D params into two lane-aligned bf16 slabs (width 128/512)."""

    def __init__(self):
        self._chunks = {0: [], 1: []}
        self._rows = {0: 0, 1: 0}
        self._width = {0: 128, 1: 512}

    def add(self, arr):
        arr = np.asarray(arr, np.float32)
        r, c = arr.shape
        sid = 0 if c <= 128 else 1
        width = self._width[sid]
        assert c <= width, (c, width)
        rp = ((r + 15) // 16) * 16            # bf16 sublane-tile aligned rows
        buf = np.zeros((rp, width), np.float32)
        buf[:r, :c] = arr
        off = self._rows[sid]
        self._chunks[sid].append(buf)
        self._rows[sid] += rp
        return (sid, off, r, c)

    def finalize(self):
        slabs = []
        for sid in (0, 1):
            if self._chunks[sid]:
                slabs.append(jnp.asarray(np.concatenate(self._chunks[sid], 0),
                                         jnp.bfloat16))
            else:
                slabs.append(jnp.zeros((16, self._width[sid]), jnp.bfloat16))
        return tuple(slabs)


def build_mobilenet_v3(in_channels=3, scale=0.5, seed=0, in_hw=(16, 16)):
    """Returns (slabs: (slabA, slabB) bf16 arrays, plan: static python config)."""
    gen = _ParamGen(seed)
    pk = _Packer()
    h, w = in_hw

    # ---- stem: 3x3 / s2 conv + BN + hard_swish (im2col done in the wrapper) --
    inplanes = make_divisible(16 * scale)
    ho = (h + 2 - 3) // 2 + 1
    wo = (w + 2 - 3) // 2 + 1
    w_s = gen.normal((3 * 3 * in_channels, inplanes))
    s_s, b_s = _bn_fold(gen, inplanes)
    stem = dict(pack=pk.add(jnp.concatenate([w_s * s_s, b_s], axis=0)),
                k=3, cin=3 * 3 * in_channels, cout=inplanes, po=ho * wo)
    h, w = ho, wo
    cur_c = inplanes

    # ---- inverted residual blocks --------------------------------------------
    blocks, emit_after, out_meta = [], {}, []
    n_out = 0
    for i, (k, exp, out_c, use_se, act, stride) in enumerate(LARGE_CFG):
        if stride == 2 and i > 2:
            emit_after[i - 1] = n_out          # stage output (after block i-1)
            out_meta.append((h, w, cur_c))
            n_out += 1

        mid = make_divisible(scale * exp)
        out = make_divisible(scale * out_c)
        pad = (k - 1) // 2

        # 1x1 expand (BN scale folded into weight columns)
        w_e = gen.normal((cur_c, mid))
        s_e, b_e = _bn_fold(gen, mid)
        pw0 = pk.add(jnp.concatenate([w_e * s_e, b_e], axis=0))     # [cur_c+1, mid]

        # depthwise kxk (BN scale folded)
        w_d = gen.normal((k, k, mid)).reshape(k * k, mid)
        s_d, b_d = _bn_fold(gen, mid)
        dwp = pk.add(jnp.concatenate([w_d * s_d, b_d], axis=0))     # [k*k+1, mid]

        pin = h * w
        if pin > 1:
            t_np, ho, wo = _tap_matrix(h, w, k, stride, pad)
            T = pk.add(t_np)
        else:                                   # 1x1 spatial -> centre tap only
            ho, wo = 1, 1
            T = None

        se = None
        if use_se:
            nm = mid // 4
            w1 = gen.normal((mid, nm))
            bb1 = gen.normal((1, nm))
            w2 = gen.normal((nm, mid))
            bb2 = gen.normal((1, mid))
            se = (pk.add(jnp.concatenate([w1, bb1], axis=0)),       # [mid+1, nm]
                  pk.add(jnp.concatenate([w2, bb2], axis=0)))       # [nm+1, mid]

        # 1x1 project (linear, BN scale folded)
        w_p = gen.normal((mid, out))
        s_p, b_p = _bn_fold(gen, out)
        pw2 = pk.add(jnp.concatenate([w_p * s_p, b_p], axis=0))     # [mid+1, out]

        blocks.append(dict(pw0=pw0, dwp=dwp, T=T, pw2=pw2, se=se,
                           k=k, stride=stride, pad=pad, act=act,
                           cin=cur_c, mid=mid, out=out, pin=pin, po=ho * wo,
                           not_add=(cur_c != out) or (stride != 1)))
        cur_c, h, w = out, ho, wo

    emit_after[len(LARGE_CFG) - 1] = n_out       # last stage (gets final conv)

    # ---- final 1x1 conv + BN + hard_swish ------------------------------------
    c_sq = make_divisible(scale * CLS_CH_SQUEEZE)
    w_f = gen.normal((cur_c, c_sq))
    s_f, b_f = _bn_fold(gen, c_sq)
    final = dict(pack=pk.add(jnp.concatenate([w_f * s_f, b_f], axis=0)),
                 cin=cur_c, cout=c_sq)
    out_meta.append((h, w, c_sq))

    slabs = pk.finalize()
    plan = dict(stem=stem, blocks=blocks, final=final, emit_after=emit_after,
                out_meta=out_meta, in_hw=in_hw, in_channels=in_channels)
    return slabs, plan


# --------------------------------------------------------------------------
# the single fused Pallas kernel
# --------------------------------------------------------------------------
def _make_fused_kernel(plan):
    stem, blocks, final = plan["stem"], plan["blocks"], plan["final"]
    emit_after = plan["emit_after"]
    n_outs = len(plan["out_meta"])

    def kernel(x_ref, slab_a_ref, slab_b_ref, *out_refs):
        slabs = (slab_a_ref, slab_b_ref)

        def fetch(meta):                         # static slice of a packed slab
            sid, off, r, c = meta
            return slabs[sid][off:off + r, 0:c]  # bf16

        def bf16(v):
            return v.astype(jnp.bfloat16)

        # ---- stem: im2col patches @ packed weight ---------------------------
        patches = bf16(x_ref[0])                 # [Po_stem, 3*3*Cin]
        pack = fetch(stem["pack"])
        cin = stem["cin"]
        y = jnp.dot(patches, pack[:cin, :], preferred_element_type=jnp.float32)
        cur = _hard_swish(y + pack[cin:cin + 1, :])

        # ---- inverted residual blocks ---------------------------------------
        for bi, blk in enumerate(blocks):
            act = blk["act"]
            cin_b, mid, k2, po = blk["cin"], blk["mid"], blk["k"] ** 2, blk["po"]
            inp = cur

            # 1x1 expand + BN + act
            pw0 = fetch(blk["pw0"])
            y = jnp.dot(bf16(cur), pw0[:cin_b, :],
                        preferred_element_type=jnp.float32)
            y = _apply_act(y + pw0[cin_b:cin_b + 1, :], act)

            # depthwise kxk (stride/pad baked into tap matrix) + BN + act
            dwp = fetch(blk["dwp"])
            if blk["pin"] == 1:
                centre = blk["pad"] * blk["k"] + blk["pad"]
                y = y * dwp[centre:centre + 1, :]
            else:
                T = fetch(blk["T"])              # [k2*Po, pin] bf16 0/1
                z = jnp.dot(T, bf16(y), preferred_element_type=jnp.float32)
                if po % 8 == 0:
                    # vectorized tap scale + reduce (one multiply + one sum)
                    zt = z.reshape(k2, po, mid) * dwp[0:k2, :].reshape(k2, 1, mid)
                    y = jnp.sum(zt, axis=0)
                else:
                    y = z[0:po, :] * dwp[0:1, :]
                    for t in range(1, k2):
                        y = y + z[t * po:(t + 1) * po, :] * dwp[t:t + 1, :]
            y = _apply_act(y + dwp[k2:k2 + 1, :], act)

            # squeeze-excite (fused epilogue, stays in VMEM)
            if blk["se"] is not None:
                nm = mid // 4
                se1 = fetch(blk["se"][0])
                se2 = fetch(blk["se"][1])
                pooled = jnp.mean(y, axis=0, keepdims=True)          # [1, mid]
                a = jnp.dot(bf16(pooled), se1[:mid, :],
                            preferred_element_type=jnp.float32)
                a = jnp.maximum(a + se1[mid:mid + 1, :], 0.0)
                g = jnp.dot(bf16(a), se2[:nm, :],
                            preferred_element_type=jnp.float32)
                g = _hard_sigmoid(g + se2[nm:nm + 1, :])
                y = y * g

            # 1x1 project + BN (+ fused residual)
            pw2 = fetch(blk["pw2"])
            y = jnp.dot(bf16(y), pw2[:mid, :], preferred_element_type=jnp.float32)
            y = y + pw2[mid:mid + 1, :]
            if not blk["not_add"]:
                y = y + inp
            cur = y

            slot = emit_after.get(bi)
            if slot is not None and slot != n_outs - 1:
                out_refs[slot][0] = cur

        # ---- final 1x1 conv + BN + hard_swish on the last stage output -------
        fpack = fetch(final["pack"])
        cf = final["cin"]
        y = jnp.dot(bf16(cur), fpack[:cf, :], preferred_element_type=jnp.float32)
        out_refs[n_outs - 1][0] = _hard_swish(y + fpack[cf:cf + 1, :])

    return kernel


# --------------------------------------------------------------------------
# wrapper: im2col of the stem input + single fused pallas_call
# --------------------------------------------------------------------------
def _im2col_stem(x_nchw):
    n, c, h, w = x_nchw.shape
    x = jnp.transpose(x_nchw, (0, 2, 3, 1))                # NHWC
    xp = jnp.pad(x, ((0, 0), (1, 1), (1, 1), (0, 0)))
    ho = (h + 2 - 3) // 2 + 1
    wo = (w + 2 - 3) // 2 + 1
    cols = []
    for dy in range(3):
        for dx in range(3):
            cols.append(xp[:, dy:dy + 2 * ho:2, dx:dx + 2 * wo:2, :])
    patches = jnp.concatenate(cols, axis=-1)               # [N,Ho,Wo,9*C]
    return patches.reshape(n, ho * wo, 9 * c)


def _estimate_cost(plan, n, patch_bytes, slab_bytes, out_bytes):
    st = plan["stem"]
    flops = 2 * st["po"] * st["cin"] * st["cout"]
    for blk in plan["blocks"]:
        k2 = blk["k"] ** 2
        flops += 2 * blk["pin"] * blk["cin"] * blk["mid"]
        if blk["pin"] > 1:
            flops += 2 * (k2 * blk["po"]) * blk["pin"] * blk["mid"]
        flops += 2 * k2 * blk["po"] * blk["mid"]
        if blk["se"] is not None:
            nm = blk["mid"] // 4
            flops += 4 * blk["mid"] * nm + blk["po"] * blk["mid"]
        flops += 2 * blk["po"] * blk["mid"] * blk["out"]
    hh, ww, _ = plan["out_meta"][-1]
    flops += 2 * hh * ww * plan["final"]["cin"] * plan["final"]["cout"]
    return pl.CostEstimate(flops=int(flops * n), transcendentals=0,
                           bytes_accessed=int(patch_bytes + slab_bytes + out_bytes))


def mobilenet_v3_forward(x_nchw, slabs, plan):
    n = x_nchw.shape[0]
    patches = _im2col_stem(x_nchw)                         # [N, Po_stem, 9*Cin]
    slab_a, slab_b = slabs
    out_meta = plan["out_meta"]

    out_shape = tuple(jax.ShapeDtypeStruct((n, hh * ww, cc), jnp.float32)
                      for (hh, ww, cc) in out_meta)
    in_specs = [
        pl.BlockSpec((1, patches.shape[1], patches.shape[2]), lambda b: (b, 0, 0)),
        pl.BlockSpec(slab_a.shape, lambda b: (0, 0)),      # constant -> single DMA
        pl.BlockSpec(slab_b.shape, lambda b: (0, 0)),
    ]
    out_specs = tuple(pl.BlockSpec((1, hh * ww, cc), lambda b: (b, 0, 0))
                      for (hh, ww, cc) in out_meta)

    out_bytes = sum(4 * n * hh * ww * cc for (hh, ww, cc) in out_meta)
    cost = _estimate_cost(plan, n, patches.size * 4,
                          2 * (slab_a.size + slab_b.size), out_bytes)

    fused = pl.pallas_call(
        _make_fused_kernel(plan),
        out_shape=out_shape,
        grid=(n,),
        in_specs=in_specs,
        out_specs=out_specs,
        compiler_params=pltpu.CompilerParams(
            dimension_semantics=("parallel",),             # batch across TCs on v7x
            vmem_limit_bytes=32 * 1024 * 1024,
        ),
        cost_estimate=cost,
    )(patches, slab_a, slab_b)

    result = []
    for o, (hh, ww, cc) in zip(fused, out_meta):
        result.append(jnp.transpose(o.reshape(n, hh, ww, cc), (0, 3, 1, 2)))
    return tuple(result)


# --------------------------------------------------------------------------
# pure-JAX reference (lax.conv / einsum) for correctness cross-checking.
# Matmul inputs are rounded to bf16 (q) exactly where the kernel rounds them.
# --------------------------------------------------------------------------
def mobilenet_v3_reference(x_nchw, slabs, plan):
    hp = lax.Precision.HIGHEST
    dn = ("NHWC", "HWIO", "NHWC")

    def fetch(meta):
        sid, off, r, c = meta
        return slabs[sid][off:off + r, :c].astype(jnp.float32)

    def q(v):
        return v.astype(jnp.bfloat16).astype(jnp.float32)

    st = plan["stem"]
    k, cin_img, co = st["k"], plan["in_channels"], st["cout"]
    pack = fetch(st["pack"])
    w = pack[:k * k * cin_img].reshape(k, k, cin_img, co)
    x = q(jnp.transpose(x_nchw, (0, 2, 3, 1)))
    x = _hard_swish(
        lax.conv_general_dilated(x, w, (2, 2), [(1, 1), (1, 1)],
                                 dimension_numbers=dn, precision=hp)
        + pack[k * k * cin_img])

    outs = []
    for bi, blk in enumerate(plan["blocks"]):
        act, kk, mid, pad = blk["act"], blk["k"], blk["mid"], blk["pad"]
        inp = x
        pw0 = fetch(blk["pw0"])
        y = _apply_act(jnp.einsum("nhwc,cm->nhwm", q(x), pw0[:blk["cin"]],
                                  precision=hp) + pw0[blk["cin"]], act)
        dwp = fetch(blk["dwp"])
        wd = dwp[:kk * kk].reshape(kk, kk, 1, mid)
        y_in = q(y) if blk["pin"] > 1 else y     # kernel only rounds when it matmuls
        y = _apply_act(
            lax.conv_general_dilated(y_in, wd, (blk["stride"],) * 2,
                                     [(pad, pad), (pad, pad)],
                                     dimension_numbers=dn,
                                     feature_group_count=mid,
                                     precision=hp) + dwp[kk * kk], act)
        if blk["se"] is not None:
            nm = mid // 4
            se1, se2 = fetch(blk["se"][0]), fetch(blk["se"][1])
            pooled = jnp.mean(y, axis=(1, 2), keepdims=True)
            a = jnp.maximum(jnp.einsum("nhwc,cm->nhwm", q(pooled), se1[:mid],
                                       precision=hp) + se1[mid], 0.0)
            g = _hard_sigmoid(jnp.einsum("nhwm,mc->nhwc", q(a), se2[:nm],
                                         precision=hp) + se2[nm])
            y = y * g
        pw2 = fetch(blk["pw2"])
        y = jnp.einsum("nhwm,mo->nhwo", q(y), pw2[:mid], precision=hp) + pw2[mid]
        if not blk["not_add"]:
            y = y + inp
        x = y
        if bi in plan["emit_after"]:
            outs.append(x)

    fin = plan["final"]
    fpack = fetch(fin["pack"])
    outs[-1] = _hard_swish(jnp.einsum("nhwc,co->nhwo", q(outs[-1]),
                                      fpack[:fin["cin"]], precision=hp)
                           + fpack[fin["cin"]])
    return tuple(jnp.transpose(o, (0, 3, 1, 2)) for o in outs)


# --------------------------------------------------------------------------
if __name__ == "__main__":
    slabs, plan = build_mobilenet_v3(in_channels=3, scale=0.5, seed=0,
                                     in_hw=(16, 16))
    x = jax.random.normal(jax.random.PRNGKey(0), (2, 3, 16, 16), jnp.float32)

    run = jax.jit(lambda inp: mobilenet_v3_forward(inp, slabs, plan))
    outs = jax.block_until_ready(run(x))

    expected = [(2, 16, 4, 4), (2, 24, 2, 2), (2, 56, 1, 1), (2, 480, 1, 1)]
    assert [tuple(o.shape) for o in outs] == expected, \
        [tuple(o.shape) for o in outs]
    assert all(bool(jnp.all(jnp.isfinite(o))) for o in outs)

    # cross-check the fused Pallas kernel against a plain-JAX reference
    refs = jax.block_until_ready(mobilenet_v3_reference(x, slabs, plan))
    for o, r in zip(outs, refs):
        err = float(jnp.max(jnp.abs(o - r)))
        ref_scale = float(jnp.max(jnp.abs(r))) + 1e-6
        assert err <= 2e-2 * ref_scale + 1e-3, (err, ref_scale)

    print("KERNEL_OK")
</pallas_src>

<mosaic_0001>
module attributes {stable_mosaic.version = 11 : i64} {
  func.func @kernel(%arg0: i32, %arg1: memref<1x64x27xf32, #tpu.memory_space<vmem>>, %arg2: memref<6768x128xbf16, #tpu.memory_space<vmem>>, %arg3: memref<1104x512xbf16, #tpu.memory_space<vmem>>, %arg4: memref<1x16x16xf32, #tpu.memory_space<vmem>>, %arg5: memref<1x4x24xf32, #tpu.memory_space<vmem>>, %arg6: memref<1x1x56xf32, #tpu.memory_space<vmem>>, %arg7: memref<1x1x480xf32, #tpu.memory_space<vmem>>) attributes {dimension_semantics = [#tpu.dimension_semantics<parallel>], iteration_bounds = array<i64: 2>, scalar_prefetch = 0 : i64, scratch_operands = 0 : i64, tpu.core_type = #tpu.core_type<tc>, window_params = [{transform_indices = @transform_0, window_bounds = array<i64: 1, 64, 27>}, {pipeline_mode = #tpu.pipeline_mode<synchronous>, transform_indices = @transform_1, window_bounds = array<i64: 6768, 128>}, {pipeline_mode = #tpu.pipeline_mode<synchronous>, transform_indices = @transform_2, window_bounds = array<i64: 1104, 512>}, {transform_indices = @transform_3, window_bounds = array<i64: 1, 16, 16>}, {transform_indices = @transform_4, window_bounds = array<i64: 1, 4, 24>}, {transform_indices = @transform_5, window_bounds = array<i64: 1, 1, 56>}, {transform_indices = @transform_6, window_bounds = array<i64: 1, 1, 480>}]} {
    %c0 = arith.constant 0 : index
    %c0_0 = arith.constant 0 : index
    %c0_1 = arith.constant 0 : index
    %0 = vector.load %arg1[%c0, %c0_0, %c0_1] : memref<1x64x27xf32, #tpu.memory_space<vmem>>, vector<1x64x27xf32>
    %1 = vector.shape_cast %0 : vector<1x64x27xf32> to vector<64x27xf32>
    %2 = arith.truncf %1 : vector<64x27xf32> to vector<64x27xbf16>
    %c0_2 = arith.constant 0 : index
    %c0_3 = arith.constant 0 : index
    %3 = vector.load %arg2[%c0_2, %c0_3] : memref<6768x128xbf16, #tpu.memory_space<vmem>>, vector<28x8xbf16>
    %4 = vector.extract_strided_slice %3 {offsets = [0, 0], sizes = [27, 8], strides = [1, 1]} : vector<28x8xbf16> to vector<27x8xbf16>
    %cst = arith.constant dense<0.000000e+00> : vector<64x8xf32>
    %5 = tpu.matmul %2, %4, %cst {dimension_numbers = #tpu.dot_dimension_numbers<[1], [0], [0], [1], [0, 0, 1, 1], [], []>} : vector<64x27xbf16>, vector<27x8xbf16>, vector<64x8xf32> -> vector<64x8xf32>
    %6 = vector.extract_strided_slice %3 {offsets = [27, 0], sizes = [1, 8], strides = [1, 1]} : vector<28x8xbf16> to vector<1x8xbf16>
    %7 = arith.extf %6 : vector<1x8xbf16> to vector<1x8xf32>
    %8 = vector.broadcast %7 : vector<1x8xf32> to vector<64x8xf32>
    %9 = arith.addf %5, %8 : vector<64x8xf32>
    %cst_4 = arith.constant 3.000000e+00 : f32
    %10 = vector.broadcast %cst_4 : f32 to vector<64x8xf32>
    %11 = arith.addf %9, %10 : vector<64x8xf32>
    %cst_5 = arith.constant 0.000000e+00 : f32
    %cst_6 = arith.constant 6.000000e+00 : f32
    %12 = vector.broadcast %cst_5 : f32 to vector<64x8xf32>
    %13 = arith.maximumf %12, %11 : vector<64x8xf32>
    %14 = vector.broadcast %cst_6 : f32 to vector<64x8xf32>
    %15 = arith.minimumf %14, %13 : vector<64x8xf32>
    %16 = arith.mulf %9, %15 : vector<64x8xf32>
    %cst_7 = arith.constant 0.166666672 : f32
    %17 = vector.broadcast %cst_7 : f32 to vector<64x8xf32>
    %18 = arith.mulf %16, %17 : vector<64x8xf32>
    %c32 = arith.constant 32 : index
    %c0_8 = arith.constant 0 : index
    %19 = vector.load %arg2[%c32, %c0_8] : memref<6768x128xbf16, #tpu.memory_space<vmem>>, vector<9x8xbf16>
    %20 = arith.truncf %18 : vector<64x8xf32> to vector<64x8xbf16>
    %21 = vector.extract_strided_slice %19 {offsets = [0, 0], sizes = [8, 8], strides = [1, 1]} : vector<9x8xbf16> to vector<8x8xbf16>
    %cst_9 = arith.constant dense<0.000000e+00> : vector<64x8xf32>
    %22 = tpu.matmul %20, %21, %cst_9 {dimension_numbers = #tpu.dot_dimension_numbers<[1], [0], [0], [1], [0, 0, 1, 1], [], []>} : vector<64x8xbf16>, vector<8x8xbf16>, vector<64x8xf32> -> vector<64x8xf32>
    %23 = vector.extract_strided_slice %19 {offsets = [8, 0], sizes = [1, 8], strides = [1, 1]} : vector<9x8xbf16> to vector<1x8xbf16>
    %24 = arith.extf %23 : vector<1x8xbf16> to vector<1x8xf32>
    %25 = vector.broadcast %24 : vector<1x8xf32> to vector<64x8xf32>
    %26 = arith.addf %22, %25 : vector<64x8xf32>
    %cst_10 = arith.constant 0.000000e+00 : f32
    %27 = vector.broadcast %cst_10 : f32 to vector<64x8xf32>
    %28 = arith.maximumf %26, %27 : vector<64x8xf32>
    %c48 = arith.constant 48 : index
    %c0_11 = arith.constant 0 : index
    %29 = vector.load %arg2[%c48, %c0_11] : memref<6768x128xbf16, #tpu.memory_space<vmem>>, vector<10x8xbf16>
    %c64 = arith.constant 64 : index
    %c0_12 = arith.constant 0 : index
    %30 = vector.load %arg2[%c64, %c0_12] : memref<6768x128xbf16, #tpu.memory_space<vmem>>, vector<576x64xbf16>
    %31 = arith.truncf %28 : vector<64x8xf32> to vector<64x8xbf16>
    %cst_13 = arith.constant dense<0.000000e+00> : vector<576x8xf32>
    %32 = tpu.matmul %30, %31, %cst_13 {dimension_numbers = #tpu.dot_dimension_numbers<[1], [0], [0], [1], [0, 0, 1, 1], [], []>} : vector<576x64xbf16>, vector<64x8xbf16>, vector<576x8xf32> -> vector<576x8xf32>
    %33 = vector.shape_cast %32 : vector<576x8xf32> to vector<9x64x8xf32>
    %34 = vector.extract_strided_slice %29 {offsets = [0, 0], sizes = [9, 8], strides = [1, 1]} : vector<10x8xbf16> to vector<9x8xbf16>
    %35 = vector.shape_cast %34 : vector<9x8xbf16> to vector<9x1x8xbf16>
    %36 = arith.extf %35 : vector<9x1x8xbf16> to vector<9x1x8xf32>
    %37 = vector.broadcast %36 : vector<9x1x8xf32> to vector<9x64x8xf32>
    %38 = arith.mulf %33, %37 : vector<9x64x8xf32>
    %cst_14 = arith.constant dense<0.000000e+00> : vector<64x8xf32>
    %39 = vector.multi_reduction <add>, %38, %cst_14 [0] : vector<9x64x8xf32> to vector<64x8xf32>
    %40 = vector.extract_strided_slice %29 {offsets = [9, 0], sizes = [1, 8], strides = [1, 1]} : vector<10x8xbf16> to vector<1x8xbf16>
    %41 = arith.extf %40 : vector<1x8xbf16> to vector<1x8xf32>
    %42 = vector.broadcast %41 : vector<1x8xf32> to vector<64x8xf32>
    %43 = arith.addf %39, %42 : vector<64x8xf32>
    %cst_15 = arith.constant 0.000000e+00 : f32
    %44 = vector.broadcast %cst_15 : f32 to vector<64x8xf32>
    %45 = arith.maximumf %43, %44 : vector<64x8xf32>
    %c640 = arith.constant 640 : index
    %c0_16 = arith.constant 0 : index
    %46 = vector.load %arg2[%c640, %c0_16] : memref<6768x128xbf16, #tpu.memory_space<vmem>>, vector<9x8xbf16>
    %47 = arith.truncf %45 : vector<64x8xf32> to vector<64x8xbf16>
    %48 = vector.extract_strided_slice %46 {offsets = [0, 0], sizes = [8, 8], strides = [1, 1]} : vector<9x8xbf16> to vector<8x8xbf16>
    %cst_17 = arith.constant dense<0.000000e+00> : vector<64x8xf32>
    %49 = tpu.matmul %47, %48, %cst_17 {dimension_numbers = #tpu.dot_dimension_numbers<[1], [0], [0], [1], [0, 0, 1, 1], [], []>} : vector<64x8xbf16>, vector<8x8xbf16>, vector<64x8xf32> -> vector<64x8xf32>
    %50 = vector.extract_strided_slice %46 {offsets = [8, 0], sizes = [1, 8], strides = [1, 1]} : vector<9x8xbf16> to vector<1x8xbf16>
    %51 = arith.extf %50 : vector<1x8xbf16> to vector<1x8xf32>
    %52 = vector.broadcast %51 : vector<1x8xf32> to vector<64x8xf32>
    %53 = arith.addf %49, %52 : vector<64x8xf32>
    %54 = arith.addf %53, %18 : vector<64x8xf32>
    %c656 = arith.constant 656 : index
    %c0_18 = arith.constant 0 : index
    %55 = vector.load %arg2[%c656, %c0_18] : memref<6768x128xbf16, #tpu.memory_space<vmem>>, vector<9x32xbf16>
    %56 = arith.truncf %54 : vector<64x8xf32> to vector<64x8xbf16>
    %57 = vector.extract_strided_slice %55 {offsets = [0, 0], sizes = [8, 32], strides = [1, 1]} : vector<9x32xbf16> to vector<8x32xbf16>
    %cst_19 = arith.constant dense<0.000000e+00> : vector<64x32xf32>
    %58 = tpu.matmul %56, %57, %cst_19 {dimension_numbers = #tpu.dot_dimension_numbers<[1], [0], [0], [1], [0, 0, 1, 1], [], []>} : vector<64x8xbf16>, vector<8x32xbf16>, vector<64x32xf32> -> vector<64x32xf32>
    %59 = vector.extract_strided_slice %55 {offsets = [8, 0], sizes = [1, 32], strides = [1, 1]} : vector<9x32xbf16> to vector<1x32xbf16>
    %60 = arith.extf %59 : vector<1x32xbf16> to vector<1x32xf32>
    %61 = vector.broadcast %60 : vector<1x32xf32> to vector<64x32xf32>
    %62 = arith.addf %58, %61 : vector<64x32xf32>
    %cst_20 = arith.constant 0.000000e+00 : f32
    %63 = vector.broadcast %cst_20 : f32 to vector<64x32xf32>
    %64 = arith.maximumf %62, %63 : vector<64x32xf32>
    %c672 = arith.constant 672 : index
    %c0_21 = arith.constant 0 : index
    %65 = vector.load %arg2[%c672, %c0_21] : memref<6768x128xbf16, #tpu.memory_space<vmem>>, vector<10x32xbf16>
    %c688 = arith.constant 688 : index
    %c0_22 = arith.constant 0 : index
    %66 = vector.load %arg2[%c688, %c0_22] : memref<6768x128xbf16, #tpu.memory_space<vmem>>, vector<144x64xbf16>
    %67 = arith.truncf %64 : vector<64x32xf32> to vector<64x32xbf16>
    %cst_23 = arith.constant dense<0.000000e+00> : vector<144x32xf32>
    %68 = tpu.matmul %66, %67, %cst_23 {dimension_numbers = #tpu.dot_dimension_numbers<[1], [0], [0], [1], [0, 0, 1, 1], [], []>} : vector<144x64xbf16>, vector<64x32xbf16>, vector<144x32xf32> -> vector<144x32xf32>
    %69 = vector.shape_cast %68 : vector<144x32xf32> to vector<9x16x32xf32>
    %70 = vector.extract_strided_slice %65 {offsets = [0, 0], sizes = [9, 32], strides = [1, 1]} : vector<10x32xbf16> to vector<9x32xbf16>
    %71 = vector.shape_cast %70 : vector<9x32xbf16> to vector<9x1x32xbf16>
    %72 = arith.extf %71 : vector<9x1x32xbf16> to vector<9x1x32xf32>
    %73 = vector.broadcast %72 : vector<9x1x32xf32> to vector<9x16x32xf32>
    %74 = arith.mulf %69, %73 : vector<9x16x32xf32>
    %cst_24 = arith.constant dense<0.000000e+00> : vector<16x32xf32>
    %75 = vector.multi_reduction <add>, %74, %cst_24 [0] : vector<9x16x32xf32> to vector<16x32xf32>
    %76 = vector.extract_strided_slice %65 {offsets = [9, 0], sizes = [1, 32], strides = [1, 1]} : vector<10x32xbf16> to vector<1x32xbf16>
    %77 = arith.extf %76 : vector<1x32xbf16> to vector<1x32xf32>
    %78 = vector.broadcast %77 : vector<1x32xf32> to vector<16x32xf32>
    %79 = arith.addf %75, %78 : vector<16x32xf32>
    %cst_25 = arith.constant 0.000000e+00 : f32
    %80 = vector.broadcast %cst_25 : f32 to vector<16x32xf32>
    %81 = arith.maximumf %79, %80 : vector<16x32xf32>
    %c832 = arith.constant 832 : index
    %c0_26 = arith.constant 0 : index
    %82 = vector.load %arg2[%c832, %c0_26] : memref<6768x128xbf16, #tpu.memory_space<vmem>>, vector<33x16xbf16>
    %83 = arith.truncf %81 : vector<16x32xf32> to vector<16x32xbf16>
    %84 = vector.extract_strided_slice %82 {offsets = [0, 0], sizes = [32, 16], strides = [1, 1]} : vector<33x16xbf16> to vector<32x16xbf16>
    %cst_27 = arith.constant dense<0.000000e+00> : vector<16x16xf32>
    %85 = tpu.matmul %83, %84, %cst_27 {dimension_numbers = #tpu.dot_dimension_numbers<[1], [0], [0], [1], [0, 0, 1, 1], [], []>} : vector<16x32xbf16>, vector<32x16xbf16>, vector<16x16xf32> -> vector<16x16xf32>
    %86 = vector.extract_strided_slice %82 {offsets = [32, 0], sizes = [1, 16], strides = [1, 1]} : vector<33x16xbf16> to vector<1x16xbf16>
    %87 = arith.extf %86 : vector<1x16xbf16> to vector<1x16xf32>
    %88 = vector.broadcast %87 : vector<1x16xf32> to vector<16x16xf32>
    %89 = arith.addf %85, %88 : vector<16x16xf32>
    %c880 = arith.constant 880 : index
    %c0_28 = arith.constant 0 : index
    %90 = vector.load %arg2[%c880, %c0_28] : memref<6768x128xbf16, #tpu.memory_space<vmem>>, vector<17x40xbf16>
    %91 = arith.truncf %89 : vector<16x16xf32> to vector<16x16xbf16>
    %92 = vector.extract_strided_slice %90 {offsets = [0, 0], sizes = [16, 40], strides = [1, 1]} : vector<17x40xbf16> to vector<16x40xbf16>
    %cst_29 = arith.constant dense<0.000000e+00> : vector<16x40xf32>
    %93 = tpu.matmul %91, %92, %cst_29 {dimension_numbers = #tpu.dot_dimension_numbers<[1], [0], [0], [1], [0, 0, 1, 1], [], []>} : vector<16x16xbf16>, vector<16x40xbf16>, vector<16x40xf32> -> vector<16x40xf32>
    %94 = vector.extract_strided_slice %90 {offsets = [16, 0], sizes = [1, 40], strides = [1, 1]} : vector<17x40xbf16> to vector<1x40xbf16>
    %95 = arith.extf %94 : vector<1x40xbf16> to vector<1x40xf32>
    %96 = vector.broadcast %95 : vector<1x40xf32> to vector<16x40xf32>
    %97 = arith.addf %93, %96 : vector<16x40xf32>
    %cst_30 = arith.constant 0.000000e+00 : f32
    %98 = vector.broadcast %cst_30 : f32 to vector<16x40xf32>
    %99 = arith.maximumf %97, %98 : vector<16x40xf32>
    %c912 = arith.constant 912 : index
    %c0_31 = arith.constant 0 : index
    %100 = vector.load %arg2[%c912, %c0_31] : memref<6768x128xbf16, #tpu.memory_space<vmem>>, vector<10x40xbf16>
    %c928 = arith.constant 928 : index
    %c0_32 = arith.constant 0 : index
    %101 = vector.load %arg2[%c928, %c0_32] : memref<6768x128xbf16, #tpu.memory_space<vmem>>, vector<144x16xbf16>
    %102 = arith.truncf %99 : vector<16x40xf32> to vector<16x40xbf16>
    %cst_33 = arith.constant dense<0.000000e+00> : vector<144x40xf32>
    %103 = tpu.matmul %101, %102, %cst_33 {dimension_numbers = #tpu.dot_dimension_numbers<[1], [0], [0], [1], [0, 0, 1, 1], [], []>} : vector<144x16xbf16>, vector<16x40xbf16>, vector<144x40xf32> -> vector<144x40xf32>
    %104 = vector.shape_cast %103 : vector<144x40xf32> to vector<9x16x40xf32>
    %105 = vector.extract_strided_slice %100 {offsets = [0, 0], sizes = [9, 40], strides = [1, 1]} : vector<10x40xbf16> to vector<9x40xbf16>
    %106 = vector.shape_cast %105 : vector<9x40xbf16> to vector<9x1x40xbf16>
    %107 = arith.extf %106 : vector<9x1x40xbf16> to vector<9x1x40xf32>
    %108 = vector.broadcast %107 : vector<9x1x40xf32> to vector<9x16x40xf32>
    %109 = arith.mulf %104, %108 : vector<9x16x40xf32>
    %cst_34 = arith.constant dense<0.000000e+00> : vector<16x40xf32>
    %110 = vector.multi_reduction <add>, %109, %cst_34 [0] : vector<9x16x40xf32> to vector<16x40xf32>
    %111 = vector.extract_strided_slice %100 {offsets = [9, 0], sizes = [1, 40], strides = [1, 1]} : vector<10x40xbf16> to vector<1x40xbf16>
    %112 = arith.extf %111 : vector<1x40xbf16> to vector<1x40xf32>
    %113 = vector.broadcast %112 : vector<1x40xf32> to vector<16x40xf32>
    %114 = arith.addf %110, %113 : vector<16x40xf32>
    %cst_35 = arith.constant 0.000000e+00 : f32
    %115 = vector.broadcast %cst_35 : f32 to vector<16x40xf32>
    %116 = arith.maximumf %114, %115 : vector<16x40xf32>
    %c1072 = arith.constant 1072 : index
    %c0_36 = arith.constant 0 : index
    %117 = vector.load %arg2[%c1072, %c0_36] : memref<6768x128xbf16, #tpu.memory_space<vmem>>, vector<41x16xbf16>
    %118 = arith.truncf %116 : vector<16x40xf32> to vector<16x40xbf16>
    %119 = vector.extract_strided_slice %117 {offsets = [0, 0], sizes = [40, 16], strides = [1, 1]} : vector<41x16xbf16> to vector<40x16xbf16>
    %cst_37 = arith.constant dense<0.000000e+00> : vector<16x16xf32>
    %120 = tpu.matmul %118, %119, %cst_37 {dimension_numbers = #tpu.dot_dimension_numbers<[1], [0], [0], [1], [0, 0, 1, 1], [], []>} : vector<16x40xbf16>, vector<40x16xbf16>, vector<16x16xf32> -> vector<16x16xf32>
    %121 = vector.extract_strided_slice %117 {offsets = [40, 0], sizes = [1, 16], strides = [1, 1]} : vector<41x16xbf16> to vector<1x16xbf16>
    %122 = arith.extf %121 : vector<1x16xbf16> to vector<1x16xf32>
    %123 = vector.broadcast %122 : vector<1x16xf32> to vector<16x16xf32>
    %124 = arith.addf %120, %123 : vector<16x16xf32>
    %125 = arith.addf %124, %89 : vector<16x16xf32>
    %c0_38 = arith.constant 0 : index
    %c0_39 = arith.constant 0 : index
    %c0_40 = arith.constant 0 : index
    %126 = vector.load %arg4[%c0_38, %c0_39, %c0_40] : memref<1x16x16xf32, #tpu.memory_space<vmem>>, vector<1x16x16xf32>
    %127 = vector.shape_cast %126 : vector<1x16x16xf32> to vector<16x16xf32>
    %128 = vector.shape_cast %125 : vector<16x16xf32> to vector<1x16x16xf32>
    tpu.vector_store %arg4[%c0_38, %c0_39, %c0_40], %128 {strides = array<i32>} : memref<1x16x16xf32, #tpu.memory_space<vmem>>, vector<1x16x16xf32>,
    %c1120 = arith.constant 1120 : index
    %c0_41 = arith.constant 0 : index
    %129 = vector.load %arg2[%c1120, %c0_41] : memref<6768x128xbf16, #tpu.memory_space<vmem>>, vector<17x40xbf16>
    %130 = arith.truncf %125 : vector<16x16xf32> to vector<16x16xbf16>
    %131 = vector.extract_strided_slice %129 {offsets = [0, 0], sizes = [16, 40], strides = [1, 1]} : vector<17x40xbf16> to vector<16x40xbf16>
    %cst_42 = arith.constant dense<0.000000e+00> : vector<16x40xf32>
    %132 = tpu.matmul %130, %131, %cst_42 {dimension_numbers = #tpu.dot_dimension_numbers<[1], [0], [0], [1], [0, 0, 1, 1], [], []>} : vector<16x16xbf16>, vector<16x40xbf16>, vector<16x40xf32> -> vector<16x40xf32>
    %133 = vector.extract_strided_slice %129 {offsets = [16, 0], sizes = [1, 40], strides = [1, 1]} : vector<17x40xbf16> to vector<1x40xbf16>
    %134 = arith.extf %133 : vector<1x40xbf16> to vector<1x40xf32>
    %135 = vector.broadcast %134 : vector<1x40xf32> to vector<16x40xf32>
    %136 = arith.addf %132, %135 : vector<16x40xf32>
    %cst_43 = arith.constant 0.000000e+00 : f32
    %137 = vector.broadcast %cst_43 : f32 to vector<16x40xf32>
    %138 = arith.maximumf %136, %137 : vector<16x40xf32>
    %c1152 = arith.constant 1152 : index
    %c0_44 = arith.constant 0 : index
    %139 = vector.load %arg2[%c1152, %c0_44] : memref<6768x128xbf16, #tpu.memory_space<vmem>>, vector<26x40xbf16>
    %c1184 = arith.constant 1184 : index
    %c0_45 = arith.constant 0 : index
    %140 = vector.load %arg2[%c1184, %c0_45] : memref<6768x128xbf16, #tpu.memory_space<vmem>>, vector<100x16xbf16>
    %141 = arith.truncf %138 : vector<16x40xf32> to vector<16x40xbf16>
    %cst_46 = arith.constant dense<0.000000e+00> : vector<100x40xf32>
    %142 = tpu.matmul %140, %141, %cst_46 {dimension_numbers = #tpu.dot_dimension_numbers<[1], [0], [0], [1], [0, 0, 1, 1], [], []>} : vector<100x16xbf16>, vector<16x40xbf16>, vector<100x40xf32> -> vector<100x40xf32>
    %143 = vector.extract_strided_slice %142 {offsets = [0, 0], sizes = [4, 40], strides = [1, 1]} : vector<100x40xf32> to vector<4x40xf32>
    %144 = vector.extract_strided_slice %139 {offsets = [0, 0], sizes = [1, 40], strides = [1, 1]} : vector<26x40xbf16> to vector<1x40xbf16>
    %145 = arith.extf %144 : vector<1x40xbf16> to vector<1x40xf32>
    %146 = vector.broadcast %145 : vector<1x40xf32> to vector<4x40xf32>
    %147 = arith.mulf %143, %146 : vector<4x40xf32>
    %148 = vector.extract_strided_slice %142 {offsets = [4, 0], sizes = [4, 40], strides = [1, 1]} : vector<100x40xf32> to vector<4x40xf32>
    %149 = vector.extract_strided_slice %139 {offsets = [1, 0], sizes = [1, 40], strides = [1, 1]} : vector<26x40xbf16> to vector<1x40xbf16>
    %150 = arith.extf %149 : vector<1x40xbf16> to vector<1x40xf32>
    %151 = vector.broadcast %150 : vector<1x40xf32> to vector<4x40xf32>
    %152 = arith.mulf %148, %151 : vector<4x40xf32>
    %153 = arith.addf %147, %152 : vector<4x40xf32>
    %154 = vector.extract_strided_slice %142 {offsets = [8, 0], sizes = [4, 40], strides = [1, 1]} : vector<100x40xf32> to vector<4x40xf32>
    %155 = vector.extract_strided_slice %139 {offsets = [2, 0], sizes = [1, 40], strides = [1, 1]} : vector<26x40xbf16> to vector<1x40xbf16>
    %156 = arith.extf %155 : vector<1x40xbf16> to vector<1x40xf32>
    %157 = vector.broadcast %156 : vector<1x40xf32> to vector<4x40xf32>
    %158 = arith.mulf %154, %157 : vector<4x40xf32>
    %159 = arith.addf %153, %158 : vector<4x40xf32>
    %160 = vector.extract_strided_slice %142 {offsets = [12, 0], sizes = [4, 40], strides = [1, 1]} : vector<100x40xf32> to vector<4x40xf32>
    %161 = vector.extract_strided_slice %139 {offsets = [3, 0], sizes = [1, 40], strides = [1, 1]} : vector<26x40xbf16> to vector<1x40xbf16>
    %162 = arith.extf %161 : vector<1x40xbf16> to vector<1x40xf32>
    %163 = vector.broadcast %162 : vector<1x40xf32> to vector<4x40xf32>
    %164 = arith.mulf %160, %163 : vector<4x40xf32>
    %165 = arith.addf %159, %164 : vector<4x40xf32>
    %166 = vector.extract_strided_slice %142 {offsets = [16, 0], sizes = [4, 40], strides = [1, 1]} : vector<100x40xf32> to vector<4x40xf32>
    %167 = vector.extract_strided_slice %139 {offsets = [4, 0], sizes = [1, 40], strides = [1, 1]} : vector<26x40xbf16> to vector<1x40xbf16>
    %168 = arith.extf %167 : vector<1x40xbf16> to vector<1x40xf32>
    %169 = vector.broadcast %168 : vector<1x40xf32> to vector<4x40xf32>
    %170 = arith.mulf %166, %169 : vector<4x40xf32>
    %171 = arith.addf %165, %170 : vector<4x40xf32>
    %172 = vector.extract_strided_slice %142 {offsets = [20, 0], sizes = [4, 40], strides = [1, 1]} : vector<100x40xf32> to vector<4x40xf32>
    %173 = vector.extract_strided_slice %139 {offsets = [5, 0], sizes = [1, 40], strides = [1, 1]} : vector<26x40xbf16> to vector<1x40xbf16>
    %174 = arith.extf %173 : vector<1x40xbf16> to vector<1x40xf32>
    %175 = vector.broadcast %174 : vector<1x40xf32> to vector<4x40xf32>
    %176 = arith.mulf %172, %175 : vector<4x40xf32>
    %177 = arith.addf %171, %176 : vector<4x40xf32>
    %178 = vector.extract_strided_slice %142 {offsets = [24, 0], sizes = [4, 40], strides = [1, 1]} : vector<100x40xf32> to vector<4x40xf32>
    %179 = vector.extract_strided_slice %139 {offsets = [6, 0], sizes = [1, 40], strides = [1, 1]} : vector<26x40xbf16> to vector<1x40xbf16>
    %180 = arith.extf %179 : vector<1x40xbf16> to vector<1x40xf32>
    %181 = vector.broadcast %180 : vector<1x40xf32> to vector<4x40xf32>
    %182 = arith.mulf %178, %181 : vector<4x40xf32>
    %183 = arith.addf %177, %182 : vector<4x40xf32>
    %184 = vector.extract_strided_slice %142 {offsets = [28, 0], sizes = [4, 40], strides = [1, 1]} : vector<100x40xf32> to vector<4x40xf32>
    %185 = vector.extract_strided_slice %139 {offsets = [7, 0], sizes = [1, 40], strides = [1, 1]} : vector<26x40xbf16> to vector<1x40xbf16>
    %186 = arith.extf %185 : vector<1x40xbf16> to vector<1x40xf32>
    %187 = vector.broadcast %186 : vector<1x40xf32> to vector<4x40xf32>
    %188 = arith.mulf %184, %187 : vector<4x40xf32>
    %189 = arith.addf %183, %188 : vector<4x40xf32>
    %190 = vector.extract_strided_slice %142 {offsets = [32, 0], sizes = [4, 40], strides = [1, 1]} : vector<100x40xf32> to vector<4x40xf32>
    %191 = vector.extract_strided_slice %139 {offsets = [8, 0], sizes = [1, 40], strides = [1, 1]} : vector<26x40xbf16> to vector<1x40xbf16>
    %192 = arith.extf %191 : vector<1x40xbf16> to vector<1x40xf32>
    %193 = vector.broadcast %192 : vector<1x40xf32> to vector<4x40xf32>
    %194 = arith.mulf %190, %193 : vector<4x40xf32>
    %195 = arith.addf %189, %194 : vector<4x40xf32>
    %196 = vector.extract_strided_slice %142 {offsets = [36, 0], sizes = [4, 40], strides = [1, 1]} : vector<100x40xf32> to vector<4x40xf32>
    %197 = vector.extract_strided_slice %139 {offsets = [9, 0], sizes = [1, 40], strides = [1, 1]} : vector<26x40xbf16> to vector<1x40xbf16>
    %198 = arith.extf %197 : vector<1x40xbf16> to vector<1x40xf32>
    %199 = vector.broadcast %198 : vector<1x40xf32> to vector<4x40xf32>
    %200 = arith.mulf %196, %199 : vector<4x40xf32>
    %201 = arith.addf %195, %200 : vector<4x40xf32>
    %202 = vector.extract_strided_slice %142 {offsets = [40, 0], sizes = [4, 40], strides = [1, 1]} : vector<100x40xf32> to vector<4x40xf32>
    %203 = vector.extract_strided_slice %139 {offsets = [10, 0], sizes = [1, 40], strides = [1, 1]} : vector<26x40xbf16> to vector<1x40xbf16>
    %204 = arith.extf %203 : vector<1x40xbf16> to vector<1x40xf32>
    %205 = vector.broadcast %204 : vector<1x40xf32> to vector<4x40xf32>
    %206 = arith.mulf %202, %205 : vector<4x40xf32>
    %207 = arith.addf %201, %206 : vector<4x40xf32>
    %208 = vector.extract_strided_slice %142 {offsets = [44, 0], sizes = [4, 40], strides = [1, 1]} : vector<100x40xf32> to vector<4x40xf32>
    %209 = vector.extract_strided_slice %139 {offsets = [11, 0], sizes = [1, 40], strides = [1, 1]} : vector<26x40xbf16> to vector<1x40xbf16>
    %210 = arith.extf %209 : vector<1x40xbf16> to vector<1x40xf32>
    %211 = vector.broadcast %210 : vector<1x40xf32> to vector<4x40xf32>
    %212 = arith.mulf %208, %211 : vector<4x40xf32>
    %213 = arith.addf %207, %212 : vector<4x40xf32>
    %214 = vector.extract_strided_slice %142 {offsets = [48, 0], sizes = [4, 40], strides = [1, 1]} : vector<100x40xf32> to vector<4x40xf32>
    %215 = vector.extract_strided_slice %139 {offsets = [12, 0], sizes = [1, 40], strides = [1, 1]} : vector<26x40xbf16> to vector<1x40xbf16>
    %216 = arith.extf %215 : vector<1x40xbf16> to vector<1x40xf32>
    %217 = vector.broadcast %216 : vector<1x40xf32> to vector<4x40xf32>
    %218 = arith.mulf %214, %217 : vector<4x40xf32>
    %219 = arith.addf %213, %218 : vector<4x40xf32>
    %220 = vector.extract_strided_slice %142 {offsets = [52, 0], sizes = [4, 40], strides = [1, 1]} : vector<100x40xf32> to vector<4x40xf32>
    %221 = vector.extract_strided_slice %139 {offsets = [13, 0], sizes = [1, 40], strides = [1, 1]} : vector<26x40xbf16> to vector<1x40xbf16>
    %222 = arith.extf %221 : vector<1x40xbf16> to vector<1x40xf32>
    %223 = vector.broadcast %222 : vector<1x40xf32> to vector<4x40xf32>
    %224 = arith.mulf %220, %223 : vector<4x40xf32>
    %225 = arith.addf %219, %224 : vector<4x40xf32>
    %226 = vector.extract_strided_slice %142 {offsets = [56, 0], sizes = [4, 40], strides = [1, 1]} : vector<100x40xf32> to vector<4x40xf32>
    %227 = vector.extract_strided_slice %139 {offsets = [14, 0], sizes = [1, 40], strides = [1, 1]} : vector<26x40xbf16> to vector<1x40xbf16>
    %228 = arith.extf %227 : vector<1x40xbf16> to vector<1x40xf32>
    %229 = vector.broadcast %228 : vector<1x40xf32> to vector<4x40xf32>
    %230 = arith.mulf %226, %229 : vector<4x40xf32>
    %231 = arith.addf %225, %230 : vector<4x40xf32>
    %232 = vector.extract_strided_slice %142 {offsets = [60, 0], sizes = [4, 40], strides = [1, 1]} : vector<100x40xf32> to vector<4x40xf32>
    %233 = vector.extract_strided_slice %139 {offsets = [15, 0], sizes = [1, 40], strides = [1, 1]} : vector<26x40xbf16> to vector<1x40xbf16>
    %234 = arith.extf %233 : vector<1x40xbf16> to vector<1x40xf32>
    %235 = vector.broadcast %234 : vector<1x40xf32> to vector<4x40xf32>
    %236 = arith.mulf %232, %235 : vector<4x40xf32>
    %237 = arith.addf %231, %236 : vector<4x40xf32>
    %238 = vector.extract_strided_slice %142 {offsets = [64, 0], sizes = [4, 40], strides = [1, 1]} : vector<100x40xf32> to vector<4x40xf32>
    %239 = vector.extract_strided_slice %139 {offsets = [16, 0], sizes = [1, 40], strides = [1, 1]} : vector<26x40xbf16> to vector<1x40xbf16>
    %240 = arith.extf %239 : vector<1x40xbf16> to vector<1x40xf32>
    %241 = vector.broadcast %240 : vector<1x40xf32> to vector<4x40xf32>
    %242 = arith.mulf %238, %241 : vector<4x40xf32>
    %243 = arith.addf %237, %242 : vector<4x40xf32>
    %244 = vector.extract_strided_slice %142 {offsets = [68, 0], sizes = [4, 40], strides = [1, 1]} : vector<100x40xf32> to vector<4x40xf32>
    %245 = vector.extract_strided_slice %139 {offsets = [17, 0], sizes = [1, 40], strides = [1, 1]} : vector<26x40xbf16> to vector<1x40xbf16>
    %246 = arith.extf %245 : vector<1x40xbf16> to vector<1x40xf32>
    %247 = vector.broadcast %246 : vector<1x40xf32> to vector<4x40xf32>
    %248 = arith.mulf %244, %247 : vector<4x40xf32>
    %249 = arith.addf %243, %248 : vector<4x40xf32>
    %250 = vector.extract_strided_slice %142 {offsets = [72, 0], sizes = [4, 40], strides = [1, 1]} : vector<100x40xf32> to vector<4x40xf32>
    %251 = vector.extract_strided_slice %139 {offsets = [18, 0], sizes = [1, 40], strides = [1, 1]} : vector<26x40xbf16> to vector<1x40xbf16>
    %252 = arith.extf %251 : vector<1x40xbf16> to vector<1x40xf32>
    %253 = vector.broadcast %252 : vector<1x40xf32> to vector<4x40xf32>
    %254 = arith.mulf %250, %253 : vector<4x40xf32>
    %255 = arith.addf %249, %254 : vector<4x40xf32>
    %256 = vector.extract_strided_slice %142 {offsets = [76, 0], sizes = [4, 40], strides = [1, 1]} : vector<100x40xf32> to vector<4x40xf32>
    %257 = vector.extract_strided_slice %139 {offsets = [19, 0], sizes = [1, 40], strides = [1, 1]} : vector<26x40xbf16> to vector<1x40xbf16>
    %258 = arith.extf %257 : vector<1x40xbf16> to vector<1x40xf32>
    %259 = vector.broadcast %258 : vector<1x40xf32> to vector<4x40xf32>
    %260 = arith.mulf %256, %259 : vector<4x40xf32>
    %261 = arith.addf %255, %260 : vector<4x40xf32>
    %262 = vector.extract_strided_slice %142 {offsets = [80, 0], sizes = [4, 40], strides = [1, 1]} : vector<100x40xf32> to vector<4x40xf32>
    %263 = vector.extract_strided_slice %139 {offsets = [20, 0], sizes = [1, 40], strides = [1, 1]} : vector<26x40xbf16> to vector<1x40xbf16>
    %264 = arith.extf %263 : vector<1x40xbf16> to vector<1x40xf32>
    %265 = vector.broadcast %264 : vector<1x40xf32> to vector<4x40xf32>
    %266 = arith.mulf %262, %265 : vector<4x40xf32>
    %267 = arith.addf %261, %266 : vector<4x40xf32>
    %268 = vector.extract_strided_slice %142 {offsets = [84, 0], sizes = [4, 40], strides = [1, 1]} : vector<100x40xf32> to vector<4x40xf32>
    %269 = vector.extract_strided_slice %139 {offsets = [21, 0], sizes = [1, 40], strides = [1, 1]} : vector<26x40xbf16> to vector<1x40xbf16>
    %270 = arith.extf %269 : vector<1x40xbf16> to vector<1x40xf32>
    %271 = vector.broadcast %270 : vector<1x40xf32> to vector<4x40xf32>
    %272 = arith.mulf %268, %271 : vector<4x40xf32>
    %273 = arith.addf %267, %272 : vector<4x40xf32>
    %274 = vector.extract_strided_slice %142 {offsets = [88, 0], sizes = [4, 40], strides = [1, 1]} : vector<100x40xf32> to vector<4x40xf32>
    %275 = vector.extract_strided_slice %139 {offsets = [22, 0], sizes = [1, 40], strides = [1, 1]} : vector<26x40xbf16> to vector<1x40xbf16>
    %276 = arith.extf %275 : vector<1x40xbf16> to vector<1x40xf32>
    %277 = vector.broadcast %276 : vector<1x40xf32> to vector<4x40xf32>
    %278 = arith.mulf %274, %277 : vector<4x40xf32>
    %279 = arith.addf %273, %278 : vector<4x40xf32>
    %280 = vector.extract_strided_slice %142 {offsets = [92, 0], sizes = [4, 40], strides = [1, 1]} : vector<100x40xf32> to vector<4x40xf32>
    %281 = vector.extract_strided_slice %139 {offsets = [23, 0], sizes = [1, 40], strides = [1, 1]} : vector<26x40xbf16> to vector<1x40xbf16>
    %282 = arith.extf %281 : vector<1x40xbf16> to vector<1x40xf32>
    %283 = vector.broadcast %282 : vector<1x40xf32> to vector<4x40xf32>
    %284 = arith.mulf %280, %283 : vector<4x40xf32>
    %285 = arith.addf %279, %284 : vector<4x40xf32>
    %286 = vector.extract_strided_slice %142 {offsets = [96, 0], sizes = [4, 40], strides = [1, 1]} : vector<100x40xf32> to vector<4x40xf32>
    %287 = vector.extract_strided_slice %139 {offsets = [24, 0], sizes = [1, 40], strides = [1, 1]} : vector<26x40xbf16> to vector<1x40xbf16>
    %288 = arith.extf %287 : vector<1x40xbf16> to vector<1x40xf32>
    %289 = vector.broadcast %288 : vector<1x40xf32> to vector<4x40xf32>
    %290 = arith.mulf %286, %289 : vector<4x40xf32>
    %291 = arith.addf %285, %290 : vector<4x40xf32>
    %292 = vector.extract_strided_slice %139 {offsets = [25, 0], sizes = [1, 40], strides = [1, 1]} : vector<26x40xbf16> to vector<1x40xbf16>
    %293 = arith.extf %292 : vector<1x40xbf16> to vector<1x40xf32>
    %294 = vector.broadcast %293 : vector<1x40xf32> to vector<4x40xf32>
    %295 = arith.addf %291, %294 : vector<4x40xf32>
    %cst_47 = arith.constant 0.000000e+00 : f32
    %296 = vector.broadcast %cst_47 : f32 to vector<4x40xf32>
    %297 = arith.maximumf %295, %296 : vector<4x40xf32>
    %c1296 = arith.constant 1296 : index
    %c0_48 = arith.constant 0 : index
    %298 = vector.load %arg2[%c1296, %c0_48] : memref<6768x128xbf16, #tpu.memory_space<vmem>>, vector<41x10xbf16>
    %c1344 = arith.constant 1344 : index
    %c0_49 = arith.constant 0 : index
    %299 = vector.load %arg2[%c1344, %c0_49] : memref<6768x128xbf16, #tpu.memory_space<vmem>>, vector<11x40xbf16>
    %cst_50 = arith.constant dense<0.000000e+00> : vector<40xf32>
    %300 = vector.multi_reduction <add>, %297, %cst_50 [0] : vector<4x40xf32> to vector<40xf32>
    %301 = vector.shape_cast %300 : vector<40xf32> to vector<1x40xf32>
    %cst_51 = arith.constant 4.000000e+00 : f32
    %302 = vector.broadcast %cst_51 : f32 to vector<1x40xf32>
    %303 = arith.divf %301, %302 : vector<1x40xf32>
    %304 = arith.truncf %303 : vector<1x40xf32> to vector<1x40xbf16>
    %305 = vector.extract_strided_slice %298 {offsets = [0, 0], sizes = [40, 10], strides = [1, 1]} : vector<41x10xbf16> to vector<40x10xbf16>
    %cst_52 = arith.constant dense<0.000000e+00> : vector<1x10xf32>
    %306 = tpu.matmul %304, %305, %cst_52 {dimension_numbers = #tpu.dot_dimension_numbers<[1], [0], [0], [1], [0, 0, 1, 1], [], []>} : vector<1x40xbf16>, vector<40x10xbf16>, vector<1x10xf32> -> vector<1x10xf32>
    %307 = vector.extract_strided_slice %298 {offsets = [40, 0], sizes = [1, 10], strides = [1, 1]} : vector<41x10xbf16> to vector<1x10xbf16>
    %308 = arith.extf %307 : vector<1x10xbf16> to vector<1x10xf32>
    %309 = arith.addf %306, %308 : vector<1x10xf32>
    %cst_53 = arith.constant 0.000000e+00 : f32
    %310 = vector.broadcast %cst_53 : f32 to vector<1x10xf32>
    %311 = arith.maximumf %309, %310 : vector<1x10xf32>
    %312 = arith.truncf %311 : vector<1x10xf32> to vector<1x10xbf16>
    %313 = vector.extract_strided_slice %299 {offsets = [0, 0], sizes = [10, 40], strides = [1, 1]} : vector<11x40xbf16> to vector<10x40xbf16>
    %cst_54 = arith.constant dense<0.000000e+00> : vector<1x40xf32>
    %314 = tpu.matmul %312, %313, %cst_54 {dimension_numbers = #tpu.dot_dimension_numbers<[1], [0], [0], [1], [0, 0, 1, 1], [], []>} : vector<1x10xbf16>, vector<10x40xbf16>, vector<1x40xf32> -> vector<1x40xf32>
    %315 = vector.extract_strided_slice %299 {offsets = [10, 0], sizes = [1, 40], strides = [1, 1]} : vector<11x40xbf16> to vector<1x40xbf16>
    %316 = arith.extf %315 : vector<1x40xbf16> to vector<1x40xf32>
    %317 = arith.addf %314, %316 : vector<1x40xf32>
    %cst_55 = arith.constant 3.000000e+00 : f32
    %318 = vector.broadcast %cst_55 : f32 to vector<1x40xf32>
    %319 = arith.addf %317, %318 : vector<1x40xf32>
    %cst_56 = arith.constant 0.000000e+00 : f32
    %cst_57 = arith.constant 6.000000e+00 : f32
    %320 = vector.broadcast %cst_56 : f32 to vector<1x40xf32>
    %321 = arith.maximumf %320, %319 : vector<1x40xf32>
    %322 = vector.broadcast %cst_57 : f32 to vector<1x40xf32>
    %323 = arith.minimumf %322, %321 : vector<1x40xf32>
    %cst_58 = arith.constant 0.166666672 : f32
    %324 = vector.broadcast %cst_58 : f32 to vector<1x40xf32>
    %325 = arith.mulf %323, %324 : vector<1x40xf32>
    %326 = vector.broadcast %325 : vector<1x40xf32> to vector<4x40xf32>
    %327 = arith.mulf %297, %326 : vector<4x40xf32>
    %c1360 = arith.constant 1360 : index
    %c0_59 = arith.constant 0 : index
    %328 = vector.load %arg2[%c1360, %c0_59] : memref<6768x128xbf16, #tpu.memory_space<vmem>>, vector<41x24xbf16>
    %329 = arith.truncf %327 : vector<4x40xf32> to vector<4x40xbf16>
    %330 = vector.extract_strided_slice %328 {offsets = [0, 0], sizes = [40, 24], strides = [1, 1]} : vector<41x24xbf16> to vector<40x24xbf16>
    %cst_60 = arith.constant dense<0.000000e+00> : vector<4x24xf32>
    %331 = tpu.matmul %329, %330, %cst_60 {dimension_numbers = #tpu.dot_dimension_numbers<[1], [0], [0], [1], [0, 0, 1, 1], [], []>} : vector<4x40xbf16>, vector<40x24xbf16>, vector<4x24xf32> -> vector<4x24xf32>
    %332 = vector.extract_strided_slice %328 {offsets = [40, 0], sizes = [1, 24], strides = [1, 1]} : vector<41x24xbf16> to vector<1x24xbf16>
    %333 = arith.extf %332 : vector<1x24xbf16> to vector<1x24xf32>
    %334 = vector.broadcast %333 : vector<1x24xf32> to vector<4x24xf32>
    %335 = arith.addf %331, %334 : vector<4x24xf32>
    %c1408 = arith.constant 1408 : index
    %c0_61 = arith.constant 0 : index
    %336 = vector.load %arg2[%c1408, %c0_61] : memref<6768x128xbf16, #tpu.memory_space<vmem>>, vector<25x64xbf16>
    %337 = arith.truncf %335 : vector<4x24xf32> to vector<4x24xbf16>
    %338 = vector.extract_strided_slice %336 {offsets = [0, 0], sizes = [24, 64], strides = [1, 1]} : vector<25x64xbf16> to vector<24x64xbf16>
    %cst_62 = arith.constant dense<0.000000e+00> : vector<4x64xf32>
    %339 = tpu.matmul %337, %338, %cst_62 {dimension_numbers = #tpu.dot_dimension_numbers<[1], [0], [0], [1], [0, 0, 1, 1], [], []>} : vector<4x24xbf16>, vector<24x64xbf16>, vector<4x64xf32> -> vector<4x64xf32>
    %340 = vector.extract_strided_slice %336 {offsets = [24, 0], sizes = [1, 64], strides = [1, 1]} : vector<25x64xbf16> to vector<1x64xbf16>
    %341 = arith.extf %340 : vector<1x64xbf16> to vector<1x64xf32>
    %342 = vector.broadcast %341 : vector<1x64xf32> to vector<4x64xf32>
    %343 = arith.addf %339, %342 : vector<4x64xf32>
    %cst_63 = arith.constant 0.000000e+00 : f32
    %344 = vector.broadcast %cst_63 : f32 to vector<4x64xf32>
    %345 = arith.maximumf %343, %344 : vector<4x64xf32>
    %c1440 = arith.constant 1440 : index
    %c0_64 = arith.constant 0 : index
    %346 = vector.load %arg2[%c1440, %c0_64] : memref<6768x128xbf16, #tpu.memory_space<vmem>>, vector<26x64xbf16>
    %c1472 = arith.constant 1472 : index
    %c0_65 = arith.constant 0 : index
    %347 = vector.load %arg2[%c1472, %c0_65] : memref<6768x128xbf16, #tpu.memory_space<vmem>>, vector<100x4xbf16>
    %348 = arith.truncf %345 : vector<4x64xf32> to vector<4x64xbf16>
    %cst_66 = arith.constant dense<0.000000e+00> : vector<100x64xf32>
    %349 = tpu.matmul %347, %348, %cst_66 {dimension_numbers = #tpu.dot_dimension_numbers<[1], [0], [0], [1], [0, 0, 1, 1], [], []>} : vector<100x4xbf16>, vector<4x64xbf16>, vector<100x64xf32> -> vector<100x64xf32>
    %350 = vector.extract_strided_slice %349 {offsets = [0, 0], sizes = [4, 64], strides = [1, 1]} : vector<100x64xf32> to vector<4x64xf32>
    %351 = vector.extract_strided_slice %346 {offsets = [0, 0], sizes = [1, 64], strides = [1, 1]} : vector<26x64xbf16> to vector<1x64xbf16>
    %352 = arith.extf %351 : vector<1x64xbf16> to vector<1x64xf32>
    %353 = vector.broadcast %352 : vector<1x64xf32> to vector<4x64xf32>
    %354 = arith.mulf %350, %353 : vector<4x64xf32>
    %355 = vector.extract_strided_slice %349 {offsets = [4, 0], sizes = [4, 64], strides = [1, 1]} : vector<100x64xf32> to vector<4x64xf32>
    %356 = vector.extract_strided_slice %346 {offsets = [1, 0], sizes = [1, 64], strides = [1, 1]} : vector<26x64xbf16> to vector<1x64xbf16>
    %357 = arith.extf %356 : vector<1x64xbf16> to vector<1x64xf32>
    %358 = vector.broadcast %357 : vector<1x64xf32> to vector<4x64xf32>
    %359 = arith.mulf %355, %358 : vector<4x64xf32>
    %360 = arith.addf %354, %359 : vector<4x64xf32>
    %361 = vector.extract_strided_slice %349 {offsets = [8, 0], sizes = [4, 64], strides = [1, 1]} : vector<100x64xf32> to vector<4x64xf32>
    %362 = vector.extract_strided_slice %346 {offsets = [2, 0], sizes = [1, 64], strides = [1, 1]} : vector<26x64xbf16> to vector<1x64xbf16>
    %363 = arith.extf %362 : vector<1x64xbf16> to vector<1x64xf32>
    %364 = vector.broadcast %363 : vector<1x64xf32> to vector<4x64xf32>
    %365 = arith.mulf %361, %364 : vector<4x64xf32>
    %366 = arith.addf %360, %365 : vector<4x64xf32>
    %367 = vector.extract_strided_slice %349 {offsets = [12, 0], sizes = [4, 64], strides = [1, 1]} : vector<100x64xf32> to vector<4x64xf32>
    %368 = vector.extract_strided_slice %346 {offsets = [3, 0], sizes = [1, 64], strides = [1, 1]} : vector<26x64xbf16> to vector<1x64xbf16>
    %369 = arith.extf %368 : vector<1x64xbf16> to vector<1x64xf32>
    %370 = vector.broadcast %369 : vector<1x64xf32> to vector<4x64xf32>
    %371 = arith.mulf %367, %370 : vector<4x64xf32>
    %372 = arith.addf %366, %371 : vector<4x64xf32>
    %373 = vector.extract_strided_slice %349 {offsets = [16, 0], sizes = [4, 64], strides = [1, 1]} : vector<100x64xf32> to vector<4x64xf32>
    %374 = vector.extract_strided_slice %346 {offsets = [4, 0], sizes = [1, 64], strides = [1, 1]} : vector<26x64xbf16> to vector<1x64xbf16>
    %375 = arith.extf %374 : vector<1x64xbf16> to vector<1x64xf32>
    %376 = vector.broadcast %375 : vector<1x64xf32> to vector<4x64xf32>
    %377 = arith.mulf %373, %376 : vector<4x64xf32>
    %378 = arith.addf %372, %377 : vector<4x64xf32>
    %379 = vector.extract_strided_slice %349 {offsets = [20, 0], sizes = [4, 64], strides = [1, 1]} : vector<100x64xf32> to vector<4x64xf32>
    %380 = vector.extract_strided_slice %346 {offsets = [5, 0], sizes = [1, 64], strides = [1, 1]} : vector<26x64xbf16> to vector<1x64xbf16>
    %381 = arith.extf %380 : vector<1x64xbf16> to vector<1x64xf32>
    %382 = vector.broadcast %381 : vector<1x64xf32> to vector<4x64xf32>
    %383 = arith.mulf %379, %382 : vector<4x64xf32>
    %384 = arith.addf %378, %383 : vector<4x64xf32>
    %385 = vector.extract_strided_slice %349 {offsets = [24, 0], sizes = [4, 64], strides = [1, 1]} : vector<100x64xf32> to vector<4x64xf32>
    %386 = vector.extract_strided_slice %346 {offsets = [6, 0], sizes = [1, 64], strides = [1, 1]} : vector<26x64xbf16> to vector<1x64xbf16>
    %387 = arith.extf %386 : vector<1x64xbf16> to vector<1x64xf32>
    %388 = vector.broadcast %387 : vector<1x64xf32> to vector<4x64xf32>
    %389 = arith.mulf %385, %388 : vector<4x64xf32>
    %390 = arith.addf %384, %389 : vector<4x64xf32>
    %391 = vector.extract_strided_slice %349 {offsets = [28, 0], sizes = [4, 64], strides = [1, 1]} : vector<100x64xf32> to vector<4x64xf32>
    %392 = vector.extract_strided_slice %346 {offsets = [7, 0], sizes = [1, 64], strides = [1, 1]} : vector<26x64xbf16> to vector<1x64xbf16>
    %393 = arith.extf %392 : vector<1x64xbf16> to vector<1x64xf32>
    %394 = vector.broadcast %393 : vector<1x64xf32> to vector<4x64xf32>
    %395 = arith.mulf %391, %394 : vector<4x64xf32>
    %396 = arith.addf %390, %395 : vector<4x64xf32>
    %397 = vector.extract_strided_slice %349 {offsets = [32, 0], sizes = [4, 64], strides = [1, 1]} : vector<100x64xf32> to vector<4x64xf32>
    %398 = vector.extract_strided_slice %346 {offsets = [8, 0], sizes = [1, 64], strides = [1, 1]} : vector<26x64xbf16> to vector<1x64xbf16>
    %399 = arith.extf %398 : vector<1x64xbf16> to vector<1x64xf32>
    %400 = vector.broadcast %399 : vector<1x64xf32> to vector<4x64xf32>
    %401 = arith.mulf %397, %400 : vector<4x64xf32>
    %402 = arith.addf %396, %401 : vector<4x64xf32>
    %403 = vector.extract_strided_slice %349 {offsets = [36, 0], sizes = [4, 64], strides = [1, 1]} : vector<100x64xf32> to vector<4x64xf32>
    %404 = vector.extract_strided_slice %346 {offsets = [9, 0], sizes = [1, 64], strides = [1, 1]} : vector<26x64xbf16> to vector<1x64xbf16>
    %405 = arith.extf %404 : vector<1x64xbf16> to vector<1x64xf32>
    %406 = vector.broadcast %405 : vector<1x64xf32> to vector<4x64xf32>
    %407 = arith.mulf %403, %406 : vector<4x64xf32>
    %408 = arith.addf %402, %407 : vector<4x64xf32>
    %409 = vector.extract_strided_slice %349 {offsets = [40, 0], sizes = [4, 64], strides = [1, 1]} : vector<100x64xf32> to vector<4x64xf32>
    %410 = vector.extract_strided_slice %346 {offsets = [10, 0], sizes = [1, 64], strides = [1, 1]} : vector<26x64xbf16> to vector<1x64xbf16>
    %411 = arith.extf %410 : vector<1x64xbf16> to vector<1x64xf32>
    %412 = vector.broadcast %411 : vector<1x64xf32> to vector<4x64xf32>
    %413 = arith.mulf %409, %412 : vector<4x64xf32>
    %414 = arith.addf %408, %413 : vector<4x64xf32>
    %415 = vector.extract_strided_slice %349 {offsets = [44, 0], sizes = [4, 64], strides = [1, 1]} : vector<100x64xf32> to vector<4x64xf32>
    %416 = vector.extract_strided_slice %346 {offsets = [11, 0], sizes = [1, 64], strides = [1, 1]} : vector<26x64xbf16> to vector<1x64xbf16>
    %417 = arith.extf %416 : vector<1x64xbf16> to vector<1x64xf32>
    %418 = vector.broadcast %417 : vector<1x64xf32> to vector<4x64xf32>
    %419 = arith.mulf %415, %418 : vector<4x64xf32>
    %420 = arith.addf %414, %419 : vector<4x64xf32>
    %421 = vector.extract_strided_slice %349 {offsets = [48, 0], sizes = [4, 64], strides = [1, 1]} : vector<100x64xf32> to vector<4x64xf32>
    %422 = vector.extract_strided_slice %346 {offsets = [12, 0], sizes = [1, 64], strides = [1, 1]} : vector<26x64xbf16> to vector<1x64xbf16>
    %423 = arith.extf %422 : vector<1x64xbf16> to vector<1x64xf32>
    %424 = vector.broadcast %423 : vector<1x64xf32> to vector<4x64xf32>
    %425 = arith.mulf %421, %424 : vector<4x64xf32>
    %426 = arith.addf %420, %425 : vector<4x64xf32>
    %427 = vector.extract_strided_slice %349 {offsets = [52, 0], sizes = [4, 64], strides = [1, 1]} : vector<100x64xf32> to vector<4x64xf32>
    %428 = vector.extract_strided_slice %346 {offsets = [13, 0], sizes = [1, 64], strides = [1, 1]} : vector<26x64xbf16> to vector<1x64xbf16>
    %429 = arith.extf %428 : vector<1x64xbf16> to vector<1x64xf32>
    %430 = vector.broadcast %429 : vector<1x64xf32> to vector<4x64xf32>
    %431 = arith.mulf %427, %430 : vector<4x64xf32>
    %432 = arith.addf %426, %431 : vector<4x64xf32>
    %433 = vector.extract_strided_slice %349 {offsets = [56, 0], sizes = [4, 64], strides = [1, 1]} : vector<100x64xf32> to vector<4x64xf32>
    %434 = vector.extract_strided_slice %346 {offsets = [14, 0], sizes = [1, 64], strides = [1, 1]} : vector<26x64xbf16> to vector<1x64xbf16>
    %435 = arith.extf %434 : vector<1x64xbf16> to vector<1x64xf32>
    %436 = vector.broadcast %435 : vector<1x64xf32> to vector<4x64xf32>
    %437 = arith.mulf %433, %436 : vector<4x64xf32>
    %438 = arith.addf %432, %437 : vector<4x64xf32>
    %439 = vector.extract_strided_slice %349 {offsets = [60, 0], sizes = [4, 64], strides = [1, 1]} : vector<100x64xf32> to vector<4x64xf32>
    %440 = vector.extract_strided_slice %346 {offsets = [15, 0], sizes = [1, 64], strides = [1, 1]} : vector<26x64xbf16> to vector<1x64xbf16>
    %441 = arith.extf %440 : vector<1x64xbf16> to vector<1x64xf32>
    %442 = vector.broadcast %441 : vector<1x64xf32> to vector<4x64xf32>
    %443 = arith.mulf %439, %442 : vector<4x64xf32>
    %444 = arith.addf %438, %443 : vector<4x64xf32>
    %445 = vector.extract_strided_slice %349 {offsets = [64, 0], sizes = [4, 64], strides = [1, 1]} : vector<100x64xf32> to vector<4x64xf32>
    %446 = vector.extract_strided_slice %346 {offsets = [16, 0], sizes = [1, 64], strides = [1, 1]} : vector<26x64xbf16> to vector<1x64xbf16>
    %447 = arith.extf %446 : vector<1x64xbf16> to vector<1x64xf32>
    %448 = vector.broadcast %447 : vector<1x64xf32> to vector<4x64xf32>
    %449 = arith.mulf %445, %448 : vector<4x64xf32>
    %450 = arith.addf %444, %449 : vector<4x64xf32>
    %451 = vector.extract_strided_slice %349 {offsets = [68, 0], sizes = [4, 64], strides = [1, 1]} : vector<100x64xf32> to vector<4x64xf32>
    %452 = vector.extract_strided_slice %346 {offsets = [17, 0], sizes = [1, 64], strides = [1, 1]} : vector<26x64xbf16> to vector<1x64xbf16>
    %453 = arith.extf %452 : vector<1x64xbf16> to vector<1x64xf32>
    %454 = vector.broadcast %453 : vector<1x64xf32> to vector<4x64xf32>
    %455 = arith.mulf %451, %454 : vector<4x64xf32>
    %456 = arith.addf %450, %455 : vector<4x64xf32>
    %457 = vector.extract_strided_slice %349 {offsets = [72, 0], sizes = [4, 64], strides = [1, 1]} : vector<100x64xf32> to vector<4x64xf32>
    %458 = vector.extract_strided_slice %346 {offsets = [18, 0], sizes = [1, 64], strides = [1, 1]} : vector<26x64xbf16> to vector<1x64xbf16>
    %459 = arith.extf %458 : vector<1x64xbf16> to vector<1x64xf32>
    %460 = vector.broadcast %459 : vector<1x64xf32> to vector<4x64xf32>
    %461 = arith.mulf %457, %460 : vector<4x64xf32>
    %462 = arith.addf %456, %461 : vector<4x64xf32>
    %463 = vector.extract_strided_slice %349 {offsets = [76, 0], sizes = [4, 64], strides = [1, 1]} : vector<100x64xf32> to vector<4x64xf32>
    %464 = vector.extract_strided_slice %346 {offsets = [19, 0], sizes = [1, 64], strides = [1, 1]} : vector<26x64xbf16> to vector<1x64xbf16>
    %465 = arith.extf %464 : vector<1x64xbf16> to vector<1x64xf32>
    %466 = vector.broadcast %465 : vector<1x64xf32> to vector<4x64xf32>
    %467 = arith.mulf %463, %466 : vector<4x64xf32>
    %468 = arith.addf %462, %467 : vector<4x64xf32>
    %469 = vector.extract_strided_slice %349 {offsets = [80, 0], sizes = [4, 64], strides = [1, 1]} : vector<100x64xf32> to vector<4x64xf32>
    %470 = vector.extract_strided_slice %346 {offsets = [20, 0], sizes = [1, 64], strides = [1, 1]} : vector<26x64xbf16> to vector<1x64xbf16>
    %471 = arith.extf %470 : vector<1x64xbf16> to vector<1x64xf32>
    %472 = vector.broadcast %471 : vector<1x64xf32> to vector<4x64xf32>
    %473 = arith.mulf %469, %472 : vector<4x64xf32>
    %474 = arith.addf %468, %473 : vector<4x64xf32>
    %475 = vector.extract_strided_slice %349 {offsets = [84, 0], sizes = [4, 64], strides = [1, 1]} : vector<100x64xf32> to vector<4x64xf32>
    %476 = vector.extract_strided_slice %346 {offsets = [21, 0], sizes = [1, 64], strides = [1, 1]} : vector<26x64xbf16> to vector<1x64xbf16>
    %477 = arith.extf %476 : vector<1x64xbf16> to vector<1x64xf32>
    %478 = vector.broadcast %477 : vector<1x64xf32> to vector<4x64xf32>
    %479 = arith.mulf %475, %478 : vector<4x64xf32>
    %480 = arith.addf %474, %479 : vector<4x64xf32>
    %481 = vector.extract_strided_slice %349 {offsets = [88, 0], sizes = [4, 64], strides = [1, 1]} : vector<100x64xf32> to vector<4x64xf32>
    %482 = vector.extract_strided_slice %346 {offsets = [22, 0], sizes = [1, 64], strides = [1, 1]} : vector<26x64xbf16> to vector<1x64xbf16>
    %483 = arith.extf %482 : vector<1x64xbf16> to vector<1x64xf32>
    %484 = vector.broadcast %483 : vector<1x64xf32> to vector<4x64xf32>
    %485 = arith.mulf %481, %484 : vector<4x64xf32>
    %486 = arith.addf %480, %485 : vector<4x64xf32>
    %487 = vector.extract_strided_slice %349 {offsets = [92, 0], sizes = [4, 64], strides = [1, 1]} : vector<100x64xf32> to vector<4x64xf32>
    %488 = vector.extract_strided_slice %346 {offsets = [23, 0], sizes = [1, 64], strides = [1, 1]} : vector<26x64xbf16> to vector<1x64xbf16>
    %489 = arith.extf %488 : vector<1x64xbf16> to vector<1x64xf32>
    %490 = vector.broadcast %489 : vector<1x64xf32> to vector<4x64xf32>
    %491 = arith.mulf %487, %490 : vector<4x64xf32>
    %492 = arith.addf %486, %491 : vector<4x64xf32>
    %493 = vector.extract_strided_slice %349 {offsets = [96, 0], sizes = [4, 64], strides = [1, 1]} : vector<100x64xf32> to vector<4x64xf32>
    %494 = vector.extract_strided_slice %346 {offsets = [24, 0], sizes = [1, 64], strides = [1, 1]} : vector<26x64xbf16> to vector<1x64xbf16>
    %495 = arith.extf %494 : vector<1x64xbf16> to vector<1x64xf32>
    %496 = vector.broadcast %495 : vector<1x64xf32> to vector<4x64xf32>
    %497 = arith.mulf %493, %496 : vector<4x64xf32>
    %498 = arith.addf %492, %497 : vector<4x64xf32>
    %499 = vector.extract_strided_slice %346 {offsets = [25, 0], sizes = [1, 64], strides = [1, 1]} : vector<26x64xbf16> to vector<1x64xbf16>
    %500 = arith.extf %499 : vector<1x64xbf16> to vector<1x64xf32>
    %501 = vector.broadcast %500 : vector<1x64xf32> to vector<4x64xf32>
    %502 = arith.addf %498, %501 : vector<4x64xf32>
    %cst_67 = arith.constant 0.000000e+00 : f32
    %503 = vector.broadcast %cst_67 : f32 to vector<4x64xf32>
    %504 = arith.maximumf %502, %503 : vector<4x64xf32>
    %c1584 = arith.constant 1584 : index
    %c0_68 = arith.constant 0 : index
    %505 = vector.load %arg2[%c1584, %c0_68] : memref<6768x128xbf16, #tpu.memory_space<vmem>>, vector<65x16xbf16>
    %c1664 = arith.constant 1664 : index
    %c0_69 = arith.constant 0 : index
    %506 = vector.load %arg2[%c1664, %c0_69] : memref<6768x128xbf16, #tpu.memory_space<vmem>>, vector<17x64xbf16>
    %cst_70 = arith.constant dense<0.000000e+00> : vector<64xf32>
    %507 = vector.multi_reduction <add>, %504, %cst_70 [0] : vector<4x64xf32> to vector<64xf32>
    %508 = vector.shape_cast %507 : vector<64xf32> to vector<1x64xf32>
    %cst_71 = arith.constant 4.000000e+00 : f32
    %509 = vector.broadcast %cst_71 : f32 to vector<1x64xf32>
    %510 = arith.divf %508, %509 : vector<1x64xf32>
    %511 = arith.truncf %510 : vector<1x64xf32> to vector<1x64xbf16>
    %512 = vector.extract_strided_slice %505 {offsets = [0, 0], sizes = [64, 16], strides = [1, 1]} : vector<65x16xbf16> to vector<64x16xbf16>
    %cst_72 = arith.constant dense<0.000000e+00> : vector<1x16xf32>
    %513 = tpu.matmul %511, %512, %cst_72 {dimension_numbers = #tpu.dot_dimension_numbers<[1], [0], [0], [1], [0, 0, 1, 1], [], []>} : vector<1x64xbf16>, vector<64x16xbf16>, vector<1x16xf32> -> vector<1x16xf32>
    %514 = vector.extract_strided_slice %505 {offsets = [64, 0], sizes = [1, 16], strides = [1, 1]} : vector<65x16xbf16> to vector<1x16xbf16>
    %515 = arith.extf %514 : vector<1x16xbf16> to vector<1x16xf32>
    %516 = arith.addf %513, %515 : vector<1x16xf32>
    %cst_73 = arith.constant 0.000000e+00 : f32
    %517 = vector.broadcast %cst_73 : f32 to vector<1x16xf32>
    %518 = arith.maximumf %516, %517 : vector<1x16xf32>
    %519 = arith.truncf %518 : vector<1x16xf32> to vector<1x16xbf16>
    %520 = vector.extract_strided_slice %506 {offsets = [0, 0], sizes = [16, 64], strides = [1, 1]} : vector<17x64xbf16> to vector<16x64xbf16>
    %cst_74 = arith.constant dense<0.000000e+00> : vector<1x64xf32>
    %521 = tpu.matmul %519, %520, %cst_74 {dimension_numbers = #tpu.dot_dimension_numbers<[1], [0], [0], [1], [0, 0, 1, 1], [], []>} : vector<1x16xbf16>, vector<16x64xbf16>, vector<1x64xf32> -> vector<1x64xf32>
    %522 = vector.extract_strided_slice %506 {offsets = [16, 0], sizes = [1, 64], strides = [1, 1]} : vector<17x64xbf16> to vector<1x64xbf16>
    %523 = arith.extf %522 : vector<1x64xbf16> to vector<1x64xf32>
    %524 = arith.addf %521, %523 : vector<1x64xf32>
    %cst_75 = arith.constant 3.000000e+00 : f32
    %525 = vector.broadcast %cst_75 : f32 to vector<1x64xf32>
    %526 = arith.addf %524, %525 : vector<1x64xf32>
    %cst_76 = arith.constant 0.000000e+00 : f32
    %cst_77 = arith.constant 6.000000e+00 : f32
    %527 = vector.broadcast %cst_76 : f32 to vector<1x64xf32>
    %528 = arith.maximumf %527, %526 : vector<1x64xf32>
    %529 = vector.broadcast %cst_77 : f32 to vector<1x64xf32>
    %530 = arith.minimumf %529, %528 : vector<1x64xf32>
    %cst_78 = arith.constant 0.166666672 : f32
    %531 = vector.broadcast %cst_78 : f32 to vector<1x64xf32>
    %532 = arith.mulf %530, %531 : vector<1x64xf32>
    %533 = vector.broadcast %532 : vector<1x64xf32> to vector<4x64xf32>
    %534 = arith.mulf %504, %533 : vector<4x64xf32>
    %c1696 = arith.constant 1696 : index
    %c0_79 = arith.constant 0 : index
    %535 = vector.load %arg2[%c1696, %c0_79] : memref<6768x128xbf16, #tpu.memory_space<vmem>>, vector<65x24xbf16>
    %536 = arith.truncf %534 : vector<4x64xf32> to vector<4x64xbf16>
    %537 = vector.extract_strided_slice %535 {offsets = [0, 0], sizes = [64, 24], strides = [1, 1]} : vector<65x24xbf16> to vector<64x24xbf16>
    %cst_80 = arith.constant dense<0.000000e+00> : vector<4x24xf32>
    %538 = tpu.matmul %536, %537, %cst_80 {dimension_numbers = #tpu.dot_dimension_numbers<[1], [0], [0], [1], [0, 0, 1, 1], [], []>} : vector<4x64xbf16>, vector<64x24xbf16>, vector<4x24xf32> -> vector<4x24xf32>
    %539 = vector.extract_strided_slice %535 {offsets = [64, 0], sizes = [1, 24], strides = [1, 1]} : vector<65x24xbf16> to vector<1x24xbf16>
    %540 = arith.extf %539 : vector<1x24xbf16> to vector<1x24xf32>
    %541 = vector.broadcast %540 : vector<1x24xf32> to vector<4x24xf32>
    %542 = arith.addf %538, %541 : vector<4x24xf32>
    %543 = arith.addf %542, %335 : vector<4x24xf32>
    %c1776 = arith.constant 1776 : index
    %c0_81 = arith.constant 0 : index
    %544 = vector.load %arg2[%c1776, %c0_81] : memref<6768x128xbf16, #tpu.memory_space<vmem>>, vector<25x64xbf16>
    %545 = arith.truncf %543 : vector<4x24xf32> to vector<4x24xbf16>
    %546 = vector.extract_strided_slice %544 {offsets = [0, 0], sizes = [24, 64], strides = [1, 1]} : vector<25x64xbf16> to vector<24x64xbf16>
    %cst_82 = arith.constant dense<0.000000e+00> : vector<4x64xf32>
    %547 = tpu.matmul %545, %546, %cst_82 {dimension_numbers = #tpu.dot_dimension_numbers<[1], [0], [0], [1], [0, 0, 1, 1], [], []>} : vector<4x24xbf16>, vector<24x64xbf16>, vector<4x64xf32> -> vector<4x64xf32>
    %548 = vector.extract_strided_slice %544 {offsets = [24, 0], sizes = [1, 64], strides = [1, 1]} : vector<25x64xbf16> to vector<1x64xbf16>
    %549 = arith.extf %548 : vector<1x64xbf16> to vector<1x64xf32>
    %550 = vector.broadcast %549 : vector<1x64xf32> to vector<4x64xf32>
    %551 = arith.addf %547, %550 : vector<4x64xf32>
    %cst_83 = arith.constant 0.000000e+00 : f32
    %552 = vector.broadcast %cst_83 : f32 to vector<4x64xf32>
    %553 = arith.maximumf %551, %552 : vector<4x64xf32>
    %c1808 = arith.constant 1808 : index
    %c0_84 = arith.constant 0 : index
    %554 = vector.load %arg2[%c1808, %c0_84] : memref<6768x128xbf16, #tpu.memory_space<vmem>>, vector<26x64xbf16>
    %c1840 = arith.constant 1840 : index
    %c0_85 = arith.constant 0 : index
    %555 = vector.load %arg2[%c1840, %c0_85] : memref<6768x128xbf16, #tpu.memory_space<vmem>>, vector<100x4xbf16>
    %556 = arith.truncf %553 : vector<4x64xf32> to vector<4x64xbf16>
    %cst_86 = arith.constant dense<0.000000e+00> : vector<100x64xf32>
    %557 = tpu.matmul %555, %556, %cst_86 {dimension_numbers = #tpu.dot_dimension_numbers<[1], [0], [0], [1], [0, 0, 1, 1], [], []>} : vector<100x4xbf16>, vector<4x64xbf16>, vector<100x64xf32> -> vector<100x64xf32>
    %558 = vector.extract_strided_slice %557 {offsets = [0, 0], sizes = [4, 64], strides = [1, 1]} : vector<100x64xf32> to vector<4x64xf32>
    %559 = vector.extract_strided_slice %554 {offsets = [0, 0], sizes = [1, 64], strides = [1, 1]} : vector<26x64xbf16> to vector<1x64xbf16>
    %560 = arith.extf %559 : vector<1x64xbf16> to vector<1x64xf32>
    %561 = vector.broadcast %560 : vector<1x64xf32> to vector<4x64xf32>
    %562 = arith.mulf %558, %561 : vector<4x64xf32>
    %563 = vector.extract_strided_slice %557 {offsets = [4, 0], sizes = [4, 64], strides = [1, 1]} : vector<100x64xf32> to vector<4x64xf32>
    %564 = vector.extract_strided_slice %554 {offsets = [1, 0], sizes = [1, 64], strides = [1, 1]} : vector<26x64xbf16> to vector<1x64xbf16>
    %565 = arith.extf %564 : vector<1x64xbf16> to vector<1x64xf32>
    %566 = vector.broadcast %565 : vector<1x64xf32> to vector<4x64xf32>
    %567 = arith.mulf %563, %566 : vector<4x64xf32>
    %568 = arith.addf %562, %567 : vector<4x64xf32>
    %569 = vector.extract_strided_slice %557 {offsets = [8, 0], sizes = [4, 64], strides = [1, 1]} : vector<100x64xf32> to vector<4x64xf32>
    %570 = vector.extract_strided_slice %554 {offsets = [2, 0], sizes = [1, 64], strides = [1, 1]} : vector<26x64xbf16> to vector<1x64xbf16>
    %571 = arith.extf %570 : vector<1x64xbf16> to vector<1x64xf32>
    %572 = vector.broadcast %571 : vector<1x64xf32> to vector<4x64xf32>
    %573 = arith.mulf %569, %572 : vector<4x64xf32>
    %574 = arith.addf %568, %573 : vector<4x64xf32>
    %575 = vector.extract_strided_slice %557 {offsets = [12, 0], sizes = [4, 64], strides = [1, 1]} : vector<100x64xf32> to vector<4x64xf32>
    %576 = vector.extract_strided_slice %554 {offsets = [3, 0], sizes = [1, 64], strides = [1, 1]} : vector<26x64xbf16> to vector<1x64xbf16>
    %577 = arith.extf %576 : vector<1x64xbf16> to vector<1x64xf32>
    %578 = vector.broadcast %577 : vector<1x64xf32> to vector<4x64xf32>
    %579 = arith.mulf %575, %578 : vector<4x64xf32>
    %580 = arith.addf %574, %579 : vector<4x64xf32>
    %581 = vector.extract_strided_slice %557 {offsets = [16, 0], sizes = [4, 64], strides = [1, 1]} : vector<100x64xf32> to vector<4x64xf32>
    %582 = vector.extract_strided_slice %554 {offsets = [4, 0], sizes = [1, 64], strides = [1, 1]} : vector<26x64xbf16> to vector<1x64xbf16>
    %583 = arith.extf %582 : vector<1x64xbf16> to vector<1x64xf32>
    %584 = vector.broadcast %583 : vector<1x64xf32> to vector<4x64xf32>
    %585 = arith.mulf %581, %584 : vector<4x64xf32>
    %586 = arith.addf %580, %585 : vector<4x64xf32>
    %587 = vector.extract_strided_slice %557 {offsets = [20, 0], sizes = [4, 64], strides = [1, 1]} : vector<100x64xf32> to vector<4x64xf32>
    %588 = vector.extract_strided_slice %554 {offsets = [5, 0], sizes = [1, 64], strides = [1, 1]} : vector<26x64xbf16> to vector<1x64xbf16>
    %589 = arith.extf %588 : vector<1x64xbf16> to vector<1x64xf32>
    %590 = vector.broadcast %589 : vector<1x64xf32> to vector<4x64xf32>
    %591 = arith.mulf %587, %590 : vector<4x64xf32>
    %592 = arith.addf %586, %591 : vector<4x64xf32>
    %593 = vector.extract_strided_slice %557 {offsets = [24, 0], sizes = [4, 64], strides = [1, 1]} : vector<100x64xf32> to vector<4x64xf32>
    %594 = vector.extract_strided_slice %554 {offsets = [6, 0], sizes = [1, 64], strides = [1, 1]} : vector<26x64xbf16> to vector<1x64xbf16>
    %595 = arith.extf %594 : vector<1x64xbf16> to vector<1x64xf32>
    %596 = vector.broadcast %595 : vector<1x64xf32> to vector<4x64xf32>
    %597 = arith.mulf %593, %596 : vector<4x64xf32>
    %598 = arith.addf %592, %597 : vector<4x64xf32>
    %599 = vector.extract_strided_slice %557 {offsets = [28, 0], sizes = [4, 64], strides = [1, 1]} : vector<100x64xf32> to vector<4x64xf32>
    %600 = vector.extract_strided_slice %554 {offsets = [7, 0], sizes = [1, 64], strides = [1, 1]} : vector<26x64xbf16> to vector<1x64xbf16>
    %601 = arith.extf %600 : vector<1x64xbf16> to vector<1x64xf32>
    %602 = vector.broadcast %601 : vector<1x64xf32> to vector<4x64xf32>
    %603 = arith.mulf %599, %602 : vector<4x64xf32>
    %604 = arith.addf %598, %603 : vector<4x64xf32>
    %605 = vector.extract_strided_slice %557 {offsets = [32, 0], sizes = [4, 64], strides = [1, 1]} : vector<100x64xf32> to vector<4x64xf32>
    %606 = vector.extract_strided_slice %554 {offsets = [8, 0], sizes = [1, 64], strides = [1, 1]} : vector<26x64xbf16> to vector<1x64xbf16>
    %607 = arith.extf %606 : vector<1x64xbf16> to vector<1x64xf32>
    %608 = vector.broadcast %607 : vector<1x64xf32> to vector<4x64xf32>
    %609 = arith.mulf %605, %608 : vector<4x64xf32>
    %610 = arith.addf %604, %609 : vector<4x64xf32>
    %611 = vector.extract_strided_slice %557 {offsets = [36, 0], sizes = [4, 64], strides = [1, 1]} : vector<100x64xf32> to vector<4x64xf32>
    %612 = vector.extract_strided_slice %554 {offsets = [9, 0], sizes = [1, 64], strides = [1, 1]} : vector<26x64xbf16> to vector<1x64xbf16>
    %613 = arith.extf %612 : vector<1x64xbf16> to vector<1x64xf32>
    %614 = vector.broadcast %613 : vector<1x64xf32> to vector<4x64xf32>
    %615 = arith.mulf %611, %614 : vector<4x64xf32>
    %616 = arith.addf %610, %615 : vector<4x64xf32>
    %617 = vector.extract_strided_slice %557 {offsets = [40, 0], sizes = [4, 64], strides = [1, 1]} : vector<100x64xf32> to vector<4x64xf32>
    %618 = vector.extract_strided_slice %554 {offsets = [10, 0], sizes = [1, 64], strides = [1, 1]} : vector<26x64xbf16> to vector<1x64xbf16>
    %619 = arith.extf %618 : vector<1x64xbf16> to vector<1x64xf32>
    %620 = vector.broadcast %619 : vector<1x64xf32> to vector<4x64xf32>
    %621 = arith.mulf %617, %620 : vector<4x64xf32>
    %622 = arith.addf %616, %621 : vector<4x64xf32>
    %623 = vector.extract_strided_slice %557 {offsets = [44, 0], sizes = [4, 64], strides = [1, 1]} : vector<100x64xf32> to vector<4x64xf32>
    %624 = vector.extract_strided_slice %554 {offsets = [11, 0], sizes = [1, 64], strides = [1, 1]} : vector<26x64xbf16> to vector<1x64xbf16>
    %625 = arith.extf %624 : vector<1x64xbf16> to vector<1x64xf32>
    %626 = vector.broadcast %625 : vector<1x64xf32> to vector<4x64xf32>
    %627 = arith.mulf %623, %626 : vector<4x64xf32>
    %628 = arith.addf %622, %627 : vector<4x64xf32>
    %629 = vector.extract_strided_slice %557 {offsets = [48, 0], sizes = [4, 64], strides = [1, 1]} : vector<100x64xf32> to vector<4x64xf32>
    %630 = vector.extract_strided_slice %554 {offsets = [12, 0], sizes = [1, 64], strides = [1, 1]} : vector<26x64xbf16> to vector<1x64xbf16>
    %631 = arith.extf %630 : vector<1x64xbf16> to vector<1x64xf32>
    %632 = vector.broadcast %631 : vector<1x64xf32> to vector<4x64xf32>
    %633 = arith.mulf %629, %632 : vector<4x64xf32>
    %634 = arith.addf %628, %633 : vector<4x64xf32>
    %635 = vector.extract_strided_slice %557 {offsets = [52, 0], sizes = [4, 64], strides = [1, 1]} : vector<100x64xf32> to vector<4x64xf32>
    %636 = vector.extract_strided_slice %554 {offsets = [13, 0], sizes = [1, 64], strides = [1, 1]} : vector<26x64xbf16> to vector<1x64xbf16>
    %637 = arith.extf %636 : vector<1x64xbf16> to vector<1x64xf32>
    %638 = vector.broadcast %637 : vector<1x64xf32> to vector<4x64xf32>
    %639 = arith.mulf %635, %638 : vector<4x64xf32>
    %640 = arith.addf %634, %639 : vector<4x64xf32>
    %641 = vector.extract_strided_slice %557 {offsets = [56, 0], sizes = [4, 64], strides = [1, 1]} : vector<100x64xf32> to vector<4x64xf32>
    %642 = vector.extract_strided_slice %554 {offsets = [14, 0], sizes = [1, 64], strides = [1, 1]} : vector<26x64xbf16> to vector<1x64xbf16>
    %643 = arith.extf %642 : vector<1x64xbf16> to vector<1x64xf32>
    %644 = vector.broadcast %643 : vector<1x64xf32> to vector<4x64xf32>
    %645 = arith.mulf %641, %644 : vector<4x64xf32>
    %646 = arith.addf %640, %645 : vector<4x64xf32>
    %647 = vector.extract_strided_slice %557 {offsets = [60, 0], sizes = [4, 64], strides = [1, 1]} : vector<100x64xf32> to vector<4x64xf32>
    %648 = vector.extract_strided_slice %554 {offsets = [15, 0], sizes = [1, 64], strides = [1, 1]} : vector<26x64xbf16> to vector<1x64xbf16>
    %649 = arith.extf %648 : vector<1x64xbf16> to vector<1x64xf32>
    %650 = vector.broadcast %649 : vector<1x64xf32> to vector<4x64xf32>
    %651 = arith.mulf %647, %650 : vector<4x64xf32>
    %652 = arith.addf %646, %651 : vector<4x64xf32>
    %653 = vector.extract_strided_slice %557 {offsets = [64, 0], sizes = [4, 64], strides = [1, 1]} : vector<100x64xf32> to vector<4x64xf32>
    %654 = vector.extract_strided_slice %554 {offsets = [16, 0], sizes = [1, 64], strides = [1, 1]} : vector<26x64xbf16> to vector<1x64xbf16>
    %655 = arith.extf %654 : vector<1x64xbf16> to vector<1x64xf32>
    %656 = vector.broadcast %655 : vector<1x64xf32> to vector<4x64xf32>
    %657 = arith.mulf %653, %656 : vector<4x64xf32>
    %658 = arith.addf %652, %657 : vector<4x64xf32>
    %659 = vector.extract_strided_slice %557 {offsets = [68, 0], sizes = [4, 64], strides = [1, 1]} : vector<100x64xf32> to vector<4x64xf32>
    %660 = vector.extract_strided_slice %554 {offsets = [17, 0], sizes = [1, 64], strides = [1, 1]} : vector<26x64xbf16> to vector<1x64xbf16>
    %661 = arith.extf %660 : vector<1x64xbf16> to vector<1x64xf32>
    %662 = vector.broadcast %661 : vector<1x64xf32> to vector<4x64xf32>
    %663 = arith.mulf %659, %662 : vector<4x64xf32>
    %664 = arith.addf %658, %663 : vector<4x64xf32>
    %665 = vector.extract_strided_slice %557 {offsets = [72, 0], sizes = [4, 64], strides = [1, 1]} : vector<100x64xf32> to vector<4x64xf32>
    %666 = vector.extract_strided_slice %554 {offsets = [18, 0], sizes = [1, 64], strides = [1, 1]} : vector<26x64xbf16> to vector<1x64xbf16>
    %667 = arith.extf %666 : vector<1x64xbf16> to vector<1x64xf32>
    %668 = vector.broadcast %667 : vector<1x64xf32> to vector<4x64xf32>
    %669 = arith.mulf %665, %668 : vector<4x64xf32>
    %670 = arith.addf %664, %669 : vector<4x64xf32>
    %671 = vector.extract_strided_slice %557 {offsets = [76, 0], sizes = [4, 64], strides = [1, 1]} : vector<100x64xf32> to vector<4x64xf32>
    %672 = vector.extract_strided_slice %554 {offsets = [19, 0], sizes = [1, 64], strides = [1, 1]} : vector<26x64xbf16> to vector<1x64xbf16>
    %673 = arith.extf %672 : vector<1x64xbf16> to vector<1x64xf32>
    %674 = vector.broadcast %673 : vector<1x64xf32> to vector<4x64xf32>
    %675 = arith.mulf %671, %674 : vector<4x64xf32>
    %676 = arith.addf %670, %675 : vector<4x64xf32>
    %677 = vector.extract_strided_slice %557 {offsets = [80, 0], sizes = [4, 64], strides = [1, 1]} : vector<100x64xf32> to vector<4x64xf32>
    %678 = vector.extract_strided_slice %554 {offsets = [20, 0], sizes = [1, 64], strides = [1, 1]} : vector<26x64xbf16> to vector<1x64xbf16>
    %679 = arith.extf %678 : vector<1x64xbf16> to vector<1x64xf32>
    %680 = vector.broadcast %679 : vector<1x64xf32> to vector<4x64xf32>
    %681 = arith.mulf %677, %680 : vector<4x64xf32>
    %682 = arith.addf %676, %681 : vector<4x64xf32>
    %683 = vector.extract_strided_slice %557 {offsets = [84, 0], sizes = [4, 64], strides = [1, 1]} : vector<100x64xf32> to vector<4x64xf32>
    %684 = vector.extract_strided_slice %554 {offsets = [21, 0], sizes = [1, 64], strides = [1, 1]} : vector<26x64xbf16> to vector<1x64xbf16>
    %685 = arith.extf %684 : vector<1x64xbf16> to vector<1x64xf32>
    %686 = vector.broadcast %685 : vector<1x64xf32> to vector<4x64xf32>
    %687 = arith.mulf %683, %686 : vector<4x64xf32>
    %688 = arith.addf %682, %687 : vector<4x64xf32>
    %689 = vector.extract_strided_slice %557 {offsets = [88, 0], sizes = [4, 64], strides = [1, 1]} : vector<100x64xf32> to vector<4x64xf32>
    %690 = vector.extract_strided_slice %554 {offsets = [22, 0], sizes = [1, 64], strides = [1, 1]} : vector<26x64xbf16> to vector<1x64xbf16>
    %691 = arith.extf %690 : vector<1x64xbf16> to vector<1x64xf32>
    %692 = vector.broadcast %691 : vector<1x64xf32> to vector<4x64xf32>
    %693 = arith.mulf %689, %692 : vector<4x64xf32>
    %694 = arith.addf %688, %693 : vector<4x64xf32>
    %695 = vector.extract_strided_slice %557 {offsets = [92, 0], sizes = [4, 64], strides = [1, 1]} : vector<100x64xf32> to vector<4x64xf32>
    %696 = vector.extract_strided_slice %554 {offsets = [23, 0], sizes = [1, 64], strides = [1, 1]} : vector<26x64xbf16> to vector<1x64xbf16>
    %697 = arith.extf %696 : vector<1x64xbf16> to vector<1x64xf32>
    %698 = vector.broadcast %697 : vector<1x64xf32> to vector<4x64xf32>
    %699 = arith.mulf %695, %698 : vector<4x64xf32>
    %700 = arith.addf %694, %699 : vector<4x64xf32>
    %701 = vector.extract_strided_slice %557 {offsets = [96, 0], sizes = [4, 64], strides = [1, 1]} : vector<100x64xf32> to vector<4x64xf32>
    %702 = vector.extract_strided_slice %554 {offsets = [24, 0], sizes = [1, 64], strides = [1, 1]} : vector<26x64xbf16> to vector<1x64xbf16>
    %703 = arith.extf %702 : vector<1x64xbf16> to vector<1x64xf32>
    %704 = vector.broadcast %703 : vector<1x64xf32> to vector<4x64xf32>
    %705 = arith.mulf %701, %704 : vector<4x64xf32>
    %706 = arith.addf %700, %705 : vector<4x64xf32>
    %707 = vector.extract_strided_slice %554 {offsets = [25, 0], sizes = [1, 64], strides = [1, 1]} : vector<26x64xbf16> to vector<1x64xbf16>
    %708 = arith.extf %707 : vector<1x64xbf16> to vector<1x64xf32>
    %709 = vector.broadcast %708 : vector<1x64xf32> to vector<4x64xf32>
    %710 = arith.addf %706, %709 : vector<4x64xf32>
    %cst_87 = arith.constant 0.000000e+00 : f32
    %711 = vector.broadcast %cst_87 : f32 to vector<4x64xf32>
    %712 = arith.maximumf %710, %711 : vector<4x64xf32>
    %c1952 = arith.constant 1952 : index
    %c0_88 = arith.constant 0 : index
    %713 = vector.load %arg2[%c1952, %c0_88] : memref<6768x128xbf16, #tpu.memory_space<vmem>>, vector<65x16xbf16>
    %c2032 = arith.constant 2032 : index
    %c0_89 = arith.constant 0 : index
    %714 = vector.load %arg2[%c2032, %c0_89] : memref<6768x128xbf16, #tpu.memory_space<vmem>>, vector<17x64xbf16>
    %cst_90 = arith.constant dense<0.000000e+00> : vector<64xf32>
    %715 = vector.multi_reduction <add>, %712, %cst_90 [0] : vector<4x64xf32> to vector<64xf32>
    %716 = vector.shape_cast %715 : vector<64xf32> to vector<1x64xf32>
    %cst_91 = arith.constant 4.000000e+00 : f32
    %717 = vector.broadcast %cst_91 : f32 to vector<1x64xf32>
    %718 = arith.divf %716, %717 : vector<1x64xf32>
    %719 = arith.truncf %718 : vector<1x64xf32> to vector<1x64xbf16>
    %720 = vector.extract_strided_slice %713 {offsets = [0, 0], sizes = [64, 16], strides = [1, 1]} : vector<65x16xbf16> to vector<64x16xbf16>
    %cst_92 = arith.constant dense<0.000000e+00> : vector<1x16xf32>
    %721 = tpu.matmul %719, %720, %cst_92 {dimension_numbers = #tpu.dot_dimension_numbers<[1], [0], [0], [1], [0, 0, 1, 1], [], []>} : vector<1x64xbf16>, vector<64x16xbf16>, vector<1x16xf32> -> vector<1x16xf32>
    %722 = vector.extract_strided_slice %713 {offsets = [64, 0], sizes = [1, 16], strides = [1, 1]} : vector<65x16xbf16> to vector<1x16xbf16>
    %723 = arith.extf %722 : vector<1x16xbf16> to vector<1x16xf32>
    %724 = arith.addf %721, %723 : vector<1x16xf32>
    %cst_93 = arith.constant 0.000000e+00 : f32
    %725 = vector.broadcast %cst_93 : f32 to vector<1x16xf32>
    %726 = arith.maximumf %724, %725 : vector<1x16xf32>
    %727 = arith.truncf %726 : vector<1x16xf32> to vector<1x16xbf16>
    %728 = vector.extract_strided_slice %714 {offsets = [0, 0], sizes = [16, 64], strides = [1, 1]} : vector<17x64xbf16> to vector<16x64xbf16>
    %cst_94 = arith.constant dense<0.000000e+00> : vector<1x64xf32>
    %729 = tpu.matmul %727, %728, %cst_94 {dimension_numbers = #tpu.dot_dimension_numbers<[1], [0], [0], [1], [0, 0, 1, 1], [], []>} : vector<1x16xbf16>, vector<16x64xbf16>, vector<1x64xf32> -> vector<1x64xf32>
    %730 = vector.extract_strided_slice %714 {offsets = [16, 0], sizes = [1, 64], strides = [1, 1]} : vector<17x64xbf16> to vector<1x64xbf16>
    %731 = arith.extf %730 : vector<1x64xbf16> to vector<1x64xf32>
    %732 = arith.addf %729, %731 : vector<1x64xf32>
    %cst_95 = arith.constant 3.000000e+00 : f32
    %733 = vector.broadcast %cst_95 : f32 to vector<1x64xf32>
    %734 = arith.addf %732, %733 : vector<1x64xf32>
    %cst_96 = arith.constant 0.000000e+00 : f32
    %cst_97 = arith.constant 6.000000e+00 : f32
    %735 = vector.broadcast %cst_96 : f32 to vector<1x64xf32>
    %736 = arith.maximumf %735, %734 : vector<1x64xf32>
    %737 = vector.broadcast %cst_97 : f32 to vector<1x64xf32>
    %738 = arith.minimumf %737, %736 : vector<1x64xf32>
    %cst_98 = arith.constant 0.166666672 : f32
    %739 = vector.broadcast %cst_98 : f32 to vector<1x64xf32>
    %740 = arith.mulf %738, %739 : vector<1x64xf32>
    %741 = vector.broadcast %740 : vector<1x64xf32> to vector<4x64xf32>
    %742 = arith.mulf %712, %741 : vector<4x64xf32>
    %c2064 = arith.constant 2064 : index
    %c0_99 = arith.constant 0 : index
    %743 = vector.load %arg2[%c2064, %c0_99] : memref<6768x128xbf16, #tpu.memory_space<vmem>>, vector<65x24xbf16>
    %744 = arith.truncf %742 : vector<4x64xf32> to vector<4x64xbf16>
    %745 = vector.extract_strided_slice %743 {offsets = [0, 0], sizes = [64, 24], strides = [1, 1]} : vector<65x24xbf16> to vector<64x24xbf16>
    %cst_100 = arith.constant dense<0.000000e+00> : vector<4x24xf32>
    %746 = tpu.matmul %744, %745, %cst_100 {dimension_numbers = #tpu.dot_dimension_numbers<[1], [0], [0], [1], [0, 0, 1, 1], [], []>} : vector<4x64xbf16>, vector<64x24xbf16>, vector<4x24xf32> -> vector<4x24xf32>
    %747 = vector.extract_strided_slice %743 {offsets = [64, 0], sizes = [1, 24], strides = [1, 1]} : vector<65x24xbf16> to vector<1x24xbf16>
    %748 = arith.extf %747 : vector<1x24xbf16> to vector<1x24xf32>
    %749 = vector.broadcast %748 : vector<1x24xf32> to vector<4x24xf32>
    %750 = arith.addf %746, %749 : vector<4x24xf32>
    %751 = arith.addf %750, %543 : vector<4x24xf32>
    %c0_101 = arith.constant 0 : index
    %c0_102 = arith.constant 0 : index
    %c0_103 = arith.constant 0 : index
    %752 = vector.load %arg5[%c0_101, %c0_102, %c0_103] : memref<1x4x24xf32, #tpu.memory_space<vmem>>, vector<1x4x24xf32>
    %753 = vector.shape_cast %752 : vector<1x4x24xf32> to vector<4x24xf32>
    %754 = vector.shape_cast %751 : vector<4x24xf32> to vector<1x4x24xf32>
    tpu.vector_store %arg5[%c0_101, %c0_102, %c0_103], %754 {strides = array<i32>} : memref<1x4x24xf32, #tpu.memory_space<vmem>>, vector<1x4x24xf32>,
    %c2144 = arith.constant 2144 : index
    %c0_104 = arith.constant 0 : index
    %755 = vector.load %arg2[%c2144, %c0_104] : memref<6768x128xbf16, #tpu.memory_space<vmem>>, vector<25x120xbf16>
    %756 = arith.truncf %751 : vector<4x24xf32> to vector<4x24xbf16>
    %757 = vector.extract_strided_slice %755 {offsets = [0, 0], sizes = [24, 120], strides = [1, 1]} : vector<25x120xbf16> to vector<24x120xbf16>
    %cst_105 = arith.constant dense<0.000000e+00> : vector<4x120xf32>
    %758 = tpu.matmul %756, %757, %cst_105 {dimension_numbers = #tpu.dot_dimension_numbers<[1], [0], [0], [1], [0, 0, 1, 1], [], []>} : vector<4x24xbf16>, vector<24x120xbf16>, vector<4x120xf32> -> vector<4x120xf32>
    %759 = vector.extract_strided_slice %755 {offsets = [24, 0], sizes = [1, 120], strides = [1, 1]} : vector<25x120xbf16> to vector<1x120xbf16>
    %760 = arith.extf %759 : vector<1x120xbf16> to vector<1x120xf32>
    %761 = vector.broadcast %760 : vector<1x120xf32> to vector<4x120xf32>
    %762 = arith.addf %758, %761 : vector<4x120xf32>
    %cst_106 = arith.constant 3.000000e+00 : f32
    %763 = vector.broadcast %cst_106 : f32 to vector<4x120xf32>
    %764 = arith.addf %762, %763 : vector<4x120xf32>
    %cst_107 = arith.constant 0.000000e+00 : f32
    %cst_108 = arith.constant 6.000000e+00 : f32
    %765 = vector.broadcast %cst_107 : f32 to vector<4x120xf32>
    %766 = arith.maximumf %765, %764 : vector<4x120xf32>
    %767 = vector.broadcast %cst_108 : f32 to vector<4x120xf32>
    %768 = arith.minimumf %767, %766 : vector<4x120xf32>
    %769 = arith.mulf %762, %768 : vector<4x120xf32>
    %cst_109 = arith.constant 0.166666672 : f32
    %770 = vector.broadcast %cst_109 : f32 to vector<4x120xf32>
    %771 = arith.mulf %769, %770 : vector<4x120xf32>
    %c2176 = arith.constant 2176 : index
    %c0_110 = arith.constant 0 : index
    %772 = vector.load %arg2[%c2176, %c0_110] : memref<6768x128xbf16, #tpu.memory_space<vmem>>, vector<10x120xbf16>
    %c2192 = arith.constant 2192 : index
    %c0_111 = arith.constant 0 : index
    %773 = vector.load %arg2[%c2192, %c0_111] : memref<6768x128xbf16, #tpu.memory_space<vmem>>, vector<9x4xbf16>
    %774 = arith.truncf %771 : vector<4x120xf32> to vector<4x120xbf16>
    %cst_112 = arith.constant dense<0.000000e+00> : vector<9x120xf32>
    %775 = tpu.matmul %773, %774, %cst_112 {dimension_numbers = #tpu.dot_dimension_numbers<[1], [0], [0], [1], [0, 0, 1, 1], [], []>} : vector<9x4xbf16>, vector<4x120xbf16>, vector<9x120xf32> -> vector<9x120xf32>
    %776 = vector.extract_strided_slice %775 {offsets = [0, 0], sizes = [1, 120], strides = [1, 1]} : vector<9x120xf32> to vector<1x120xf32>
    %777 = vector.extract_strided_slice %772 {offsets = [0, 0], sizes = [1, 120], strides = [1, 1]} : vector<10x120xbf16> to vector<1x120xbf16>
    %778 = arith.extf %777 : vector<1x120xbf16> to vector<1x120xf32>
    %779 = arith.mulf %776, %778 : vector<1x120xf32>
    %780 = vector.extract_strided_slice %775 {offsets = [1, 0], sizes = [1, 120], strides = [1, 1]} : vector<9x120xf32> to vector<1x120xf32>
    %781 = vector.extract_strided_slice %772 {offsets = [1, 0], sizes = [1, 120], strides = [1, 1]} : vector<10x120xbf16> to vector<1x120xbf16>
    %782 = arith.extf %781 : vector<1x120xbf16> to vector<1x120xf32>
    %783 = arith.mulf %780, %782 : vector<1x120xf32>
    %784 = arith.addf %779, %783 : vector<1x120xf32>
    %785 = vector.extract_strided_slice %775 {offsets = [2, 0], sizes = [1, 120], strides = [1, 1]} : vector<9x120xf32> to vector<1x120xf32>
    %786 = vector.extract_strided_slice %772 {offsets = [2, 0], sizes = [1, 120], strides = [1, 1]} : vector<10x120xbf16> to vector<1x120xbf16>
    %787 = arith.extf %786 : vector<1x120xbf16> to vector<1x120xf32>
    %788 = arith.mulf %785, %787 : vector<1x120xf32>
    %789 = arith.addf %784, %788 : vector<1x120xf32>
    %790 = vector.extract_strided_slice %775 {offsets = [3, 0], sizes = [1, 120], strides = [1, 1]} : vector<9x120xf32> to vector<1x120xf32>
    %791 = vector.extract_strided_slice %772 {offsets = [3, 0], sizes = [1, 120], strides = [1, 1]} : vector<10x120xbf16> to vector<1x120xbf16>
    %792 = arith.extf %791 : vector<1x120xbf16> to vector<1x120xf32>
    %793 = arith.mulf %790, %792 : vector<1x120xf32>
    %794 = arith.addf %789, %793 : vector<1x120xf32>
    %795 = vector.extract_strided_slice %775 {offsets = [4, 0], sizes = [1, 120], strides = [1, 1]} : vector<9x120xf32> to vector<1x120xf32>
    %796 = vector.extract_strided_slice %772 {offsets = [4, 0], sizes = [1, 120], strides = [1, 1]} : vector<10x120xbf16> to vector<1x120xbf16>
    %797 = arith.extf %796 : vector<1x120xbf16> to vector<1x120xf32>
    %798 = arith.mulf %795, %797 : vector<1x120xf32>
    %799 = arith.addf %794, %798 : vector<1x120xf32>
    %800 = vector.extract_strided_slice %775 {offsets = [5, 0], sizes = [1, 120], strides = [1, 1]} : vector<9x120xf32> to vector<1x120xf32>
    %801 = vector.extract_strided_slice %772 {offsets = [5, 0], sizes = [1, 120], strides = [1, 1]} : vector<10x120xbf16> to vector<1x120xbf16>
    %802 = arith.extf %801 : vector<1x120xbf16> to vector<1x120xf32>
    %803 = arith.mulf %800, %802 : vector<1x120xf32>
    %804 = arith.addf %799, %803 : vector<1x120xf32>
    %805 = vector.extract_strided_slice %775 {offsets = [6, 0], sizes = [1, 120], strides = [1, 1]} : vector<9x120xf32> to vector<1x120xf32>
    %806 = vector.extract_strided_slice %772 {offsets = [6, 0], sizes = [1, 120], strides = [1, 1]} : vector<10x120xbf16> to vector<1x120xbf16>
    %807 = arith.extf %806 : vector<1x120xbf16> to vector<1x120xf32>
    %808 = arith.mulf %805, %807 : vector<1x120xf32>
    %809 = arith.addf %804, %808 : vector<1x120xf32>
    %810 = vector.extract_strided_slice %775 {offsets = [7, 0], sizes = [1, 120], strides = [1, 1]} : vector<9x120xf32> to vector<1x120xf32>
    %811 = vector.extract_strided_slice %772 {offsets = [7, 0], sizes = [1, 120], strides = [1, 1]} : vector<10x120xbf16> to vector<1x120xbf16>
    %812 = arith.extf %811 : vector<1x120xbf16> to vector<1x120xf32>
    %813 = arith.mulf %810, %812 : vector<1x120xf32>
    %814 = arith.addf %809, %813 : vector<1x120xf32>
    %815 = vector.extract_strided_slice %775 {offsets = [8, 0], sizes = [1, 120], strides = [1, 1]} : vector<9x120xf32> to vector<1x120xf32>
    %816 = vector.extract_strided_slice %772 {offsets = [8, 0], sizes = [1, 120], strides = [1, 1]} : vector<10x120xbf16> to vector<1x120xbf16>
    %817 = arith.extf %816 : vector<1x120xbf16> to vector<1x120xf32>
    %818 = arith.mulf %815, %817 : vector<1x120xf32>
    %819 = arith.addf %814, %818 : vector<1x120xf32>
    %820 = vector.extract_strided_slice %772 {offsets = [9, 0], sizes = [1, 120], strides = [1, 1]} : vector<10x120xbf16> to vector<1x120xbf16>
    %821 = arith.extf %820 : vector<1x120xbf16> to vector<1x120xf32>
    %822 = arith.addf %819, %821 : vector<1x120xf32>
    %cst_113 = arith.constant 3.000000e+00 : f32
    %823 = vector.broadcast %cst_113 : f32 to vector<1x120xf32>
    %824 = arith.addf %822, %823 : vector<1x120xf32>
    %cst_114 = arith.constant 0.000000e+00 : f32
    %cst_115 = arith.constant 6.000000e+00 : f32
    %825 = vector.broadcast %cst_114 : f32 to vector<1x120xf32>
    %826 = arith.maximumf %825, %824 : vector<1x120xf32>
    %827 = vector.broadcast %cst_115 : f32 to vector<1x120xf32>
    %828 = arith.minimumf %827, %826 : vector<1x120xf32>
    %829 = arith.mulf %822, %828 : vector<1x120xf32>
    %cst_116 = arith.constant 0.166666672 : f32
    %830 = vector.broadcast %cst_116 : f32 to vector<1x120xf32>
    %831 = arith.mulf %829, %830 : vector<1x120xf32>
    %c2208 = arith.constant 2208 : index
    %c0_117 = arith.constant 0 : index
    %832 = vector.load %arg2[%c2208, %c0_117] : memref<6768x128xbf16, #tpu.memory_space<vmem>>, vector<121x40xbf16>
    %833 = arith.truncf %831 : vector<1x120xf32> to vector<1x120xbf16>
    %834 = vector.extract_strided_slice %832 {offsets = [0, 0], sizes = [120, 40], strides = [1, 1]} : vector<121x40xbf16> to vector<120x40xbf16>
    %cst_118 = arith.constant dense<0.000000e+00> : vector<1x40xf32>
    %835 = tpu.matmul %833, %834, %cst_118 {dimension_numbers = #tpu.dot_dimension_numbers<[1], [0], [0], [1], [0, 0, 1, 1], [], []>} : vector<1x120xbf16>, vector<120x40xbf16>, vector<1x40xf32> -> vector<1x40xf32>
    %836 = vector.extract_strided_slice %832 {offsets = [120, 0], sizes = [1, 40], strides = [1, 1]} : vector<121x40xbf16> to vector<1x40xbf16>
    %837 = arith.extf %836 : vector<1x40xbf16> to vector<1x40xf32>
    %838 = arith.addf %835, %837 : vector<1x40xf32>
    %c2336 = arith.constant 2336 : index
    %c0_119 = arith.constant 0 : index
    %839 = vector.load %arg2[%c2336, %c0_119] : memref<6768x128xbf16, #tpu.memory_space<vmem>>, vector<41x104xbf16>
    %840 = arith.truncf %838 : vector<1x40xf32> to vector<1x40xbf16>
    %841 = vector.extract_strided_slice %839 {offsets = [0, 0], sizes = [40, 104], strides = [1, 1]} : vector<41x104xbf16> to vector<40x104xbf16>
    %cst_120 = arith.constant dense<0.000000e+00> : vector<1x104xf32>
    %842 = tpu.matmul %840, %841, %cst_120 {dimension_numbers = #tpu.dot_dimension_numbers<[1], [0], [0], [1], [0, 0, 1, 1], [], []>} : vector<1x40xbf16>, vector<40x104xbf16>, vector<1x104xf32> -> vector<1x104xf32>
    %843 = vector.extract_strided_slice %839 {offsets = [40, 0], sizes = [1, 104], strides = [1, 1]} : vector<41x104xbf16> to vector<1x104xbf16>
    %844 = arith.extf %843 : vector<1x104xbf16> to vector<1x104xf32>
    %845 = arith.addf %842, %844 : vector<1x104xf32>
    %cst_121 = arith.constant 3.000000e+00 : f32
    %846 = vector.broadcast %cst_121 : f32 to vector<1x104xf32>
    %847 = arith.addf %845, %846 : vector<1x104xf32>
    %cst_122 = arith.constant 0.000000e+00 : f32
    %cst_123 = arith.constant 6.000000e+00 : f32
    %848 = vector.broadcast %cst_122 : f32 to vector<1x104xf32>
    %849 = arith.maximumf %848, %847 : vector<1x104xf32>
    %850 = vector.broadcast %cst_123 : f32 to vector<1x104xf32>
    %851 = arith.minimumf %850, %849 : vector<1x104xf32>
    %852 = arith.mulf %845, %851 : vector<1x104xf32>
    %cst_124 = arith.constant 0.166666672 : f32
    %853 = vector.broadcast %cst_124 : f32 to vector<1x104xf32>
    %854 = arith.mulf %852, %853 : vector<1x104xf32>
    %c2384 = arith.constant 2384 : index
    %c0_125 = arith.constant 0 : index
    %855 = vector.load %arg2[%c2384, %c0_125] : memref<6768x128xbf16, #tpu.memory_space<vmem>>, vector<10x104xbf16>
    %856 = vector.extract_strided_slice %855 {offsets = [4, 0], sizes = [1, 104], strides = [1, 1]} : vector<10x104xbf16> to vector<1x104xbf16>
    %857 = arith.extf %856 : vector<1x104xbf16> to vector<1x104xf32>
    %858 = arith.mulf %854, %857 : vector<1x104xf32>
    %859 = vector.extract_strided_slice %855 {offsets = [9, 0], sizes = [1, 104], strides = [1, 1]} : vector<10x104xbf16> to vector<1x104xbf16>
    %860 = arith.extf %859 : vector<1x104xbf16> to vector<1x104xf32>
    %861 = arith.addf %858, %860 : vector<1x104xf32>
    %cst_126 = arith.constant 3.000000e+00 : f32
    %862 = vector.broadcast %cst_126 : f32 to vector<1x104xf32>
    %863 = arith.addf %861, %862 : vector<1x104xf32>
    %cst_127 = arith.constant 0.000000e+00 : f32
    %cst_128 = arith.constant 6.000000e+00 : f32
    %864 = vector.broadcast %cst_127 : f32 to vector<1x104xf32>
    %865 = arith.maximumf %864, %863 : vector<1x104xf32>
    %866 = vector.broadcast %cst_128 : f32 to vector<1x104xf32>
    %867 = arith.minimumf %866, %865 : vector<1x104xf32>
    %868 = arith.mulf %861, %867 : vector<1x104xf32>
    %cst_129 = arith.constant 0.166666672 : f32
    %869 = vector.broadcast %cst_129 : f32 to vector<1x104xf32>
    %870 = arith.mulf %868, %869 : vector<1x104xf32>
    %c2400 = arith.constant 2400 : index
    %c0_130 = arith.constant 0 : index
    %871 = vector.load %arg2[%c2400, %c0_130] : memref<6768x128xbf16, #tpu.memory_space<vmem>>, vector<105x40xbf16>
    %872 = arith.truncf %870 : vector<1x104xf32> to vector<1x104xbf16>
    %873 = vector.extract_strided_slice %871 {offsets = [0, 0], sizes = [104, 40], strides = [1, 1]} : vector<105x40xbf16> to vector<104x40xbf16>
    %cst_131 = arith.constant dense<0.000000e+00> : vector<1x40xf32>
    %874 = tpu.matmul %872, %873, %cst_131 {dimension_numbers = #tpu.dot_dimension_numbers<[1], [0], [0], [1], [0, 0, 1, 1], [], []>} : vector<1x104xbf16>, vector<104x40xbf16>, vector<1x40xf32> -> vector<1x40xf32>
    %875 = vector.extract_strided_slice %871 {offsets = [104, 0], sizes = [1, 40], strides = [1, 1]} : vector<105x40xbf16> to vector<1x40xbf16>
    %876 = arith.extf %875 : vector<1x40xbf16> to vector<1x40xf32>
    %877 = arith.addf %874, %876 : vector<1x40xf32>
    %878 = arith.addf %877, %838 : vector<1x40xf32>
    %c2512 = arith.constant 2512 : index
    %c0_132 = arith.constant 0 : index
    %879 = vector.load %arg2[%c2512, %c0_132] : memref<6768x128xbf16, #tpu.memory_space<vmem>>, vector<41x96xbf16>
    %880 = arith.truncf %878 : vector<1x40xf32> to vector<1x40xbf16>
    %881 = vector.extract_strided_slice %879 {offsets = [0, 0], sizes = [40, 96], strides = [1, 1]} : vector<41x96xbf16> to vector<40x96xbf16>
    %cst_133 = arith.constant dense<0.000000e+00> : vector<1x96xf32>
    %882 = tpu.matmul %880, %881, %cst_133 {dimension_numbers = #tpu.dot_dimension_numbers<[1], [0], [0], [1], [0, 0, 1, 1], [], []>} : vector<1x40xbf16>, vector<40x96xbf16>, vector<1x96xf32> -> vector<1x96xf32>
    %883 = vector.extract_strided_slice %879 {offsets = [40, 0], sizes = [1, 96], strides = [1, 1]} : vector<41x96xbf16> to vector<1x96xbf16>
    %884 = arith.extf %883 : vector<1x96xbf16> to vector<1x96xf32>
    %885 = arith.addf %882, %884 : vector<1x96xf32>
    %cst_134 = arith.constant 3.000000e+00 : f32
    %886 = vector.broadcast %cst_134 : f32 to vector<1x96xf32>
    %887 = arith.addf %885, %886 : vector<1x96xf32>
    %cst_135 = arith.constant 0.000000e+00 : f32
    %cst_136 = arith.constant 6.000000e+00 : f32
    %888 = vector.broadcast %cst_135 : f32 to vector<1x96xf32>
    %889 = arith.maximumf %888, %887 : vector<1x96xf32>
    %890 = vector.broadcast %cst_136 : f32 to vector<1x96xf32>
    %891 = arith.minimumf %890, %889 : vector<1x96xf32>
    %892 = arith.mulf %885, %891 : vector<1x96xf32>
    %cst_137 = arith.constant 0.166666672 : f32
    %893 = vector.broadcast %cst_137 : f32 to vector<1x96xf32>
    %894 = arith.mulf %892, %893 : vector<1x96xf32>
    %c2560 = arith.constant 2560 : index
    %c0_138 = arith.constant 0 : index
    %895 = vector.load %arg2[%c2560, %c0_138] : memref<6768x128xbf16, #tpu.memory_space<vmem>>, vector<10x96xbf16>
    %896 = vector.extract_strided_slice %895 {offsets = [4, 0], sizes = [1, 96], strides = [1, 1]} : vector<10x96xbf16> to vector<1x96xbf16>
    %897 = arith.extf %896 : vector<1x96xbf16> to vector<1x96xf32>
    %898 = arith.mulf %894, %897 : vector<1x96xf32>
    %899 = vector.extract_strided_slice %895 {offsets = [9, 0], sizes = [1, 96], strides = [1, 1]} : vector<10x96xbf16> to vector<1x96xbf16>
    %900 = arith.extf %899 : vector<1x96xbf16> to vector<1x96xf32>
    %901 = arith.addf %898, %900 : vector<1x96xf32>
    %cst_139 = arith.constant 3.000000e+00 : f32
    %902 = vector.broadcast %cst_139 : f32 to vector<1x96xf32>
    %903 = arith.addf %901, %902 : vector<1x96xf32>
    %cst_140 = arith.constant 0.000000e+00 : f32
    %cst_141 = arith.constant 6.000000e+00 : f32
    %904 = vector.broadcast %cst_140 : f32 to vector<1x96xf32>
    %905 = arith.maximumf %904, %903 : vector<1x96xf32>
    %906 = vector.broadcast %cst_141 : f32 to vector<1x96xf32>
    %907 = arith.minimumf %906, %905 : vector<1x96xf32>
    %908 = arith.mulf %901, %907 : vector<1x96xf32>
    %cst_142 = arith.constant 0.166666672 : f32
    %909 = vector.broadcast %cst_142 : f32 to vector<1x96xf32>
    %910 = arith.mulf %908, %909 : vector<1x96xf32>
    %c2576 = arith.constant 2576 : index
    %c0_143 = arith.constant 0 : index
    %911 = vector.load %arg2[%c2576, %c0_143] : memref<6768x128xbf16, #tpu.memory_space<vmem>>, vector<97x40xbf16>
    %912 = arith.truncf %910 : vector<1x96xf32> to vector<1x96xbf16>
    %913 = vector.extract_strided_slice %911 {offsets = [0, 0], sizes = [96, 40], strides = [1, 1]} : vector<97x40xbf16> to vector<96x40xbf16>
    %cst_144 = arith.constant dense<0.000000e+00> : vector<1x40xf32>
    %914 = tpu.matmul %912, %913, %cst_144 {dimension_numbers = #tpu.dot_dimension_numbers<[1], [0], [0], [1], [0, 0, 1, 1], [], []>} : vector<1x96xbf16>, vector<96x40xbf16>, vector<1x40xf32> -> vector<1x40xf32>
    %915 = vector.extract_strided_slice %911 {offsets = [96, 0], sizes = [1, 40], strides = [1, 1]} : vector<97x40xbf16> to vector<1x40xbf16>
    %916 = arith.extf %915 : vector<1x40xbf16> to vector<1x40xf32>
    %917 = arith.addf %914, %916 : vector<1x40xf32>
    %918 = arith.addf %917, %878 : vector<1x40xf32>
    %c2688 = arith.constant 2688 : index
    %c0_145 = arith.constant 0 : index
    %919 = vector.load %arg2[%c2688, %c0_145] : memref<6768x128xbf16, #tpu.memory_space<vmem>>, vector<41x96xbf16>
    %920 = arith.truncf %918 : vector<1x40xf32> to vector<1x40xbf16>
    %921 = vector.extract_strided_slice %919 {offsets = [0, 0], sizes = [40, 96], strides = [1, 1]} : vector<41x96xbf16> to vector<40x96xbf16>
    %cst_146 = arith.constant dense<0.000000e+00> : vector<1x96xf32>
    %922 = tpu.matmul %920, %921, %cst_146 {dimension_numbers = #tpu.dot_dimension_numbers<[1], [0], [0], [1], [0, 0, 1, 1], [], []>} : vector<1x40xbf16>, vector<40x96xbf16>, vector<1x96xf32> -> vector<1x96xf32>
    %923 = vector.extract_strided_slice %919 {offsets = [40, 0], sizes = [1, 96], strides = [1, 1]} : vector<41x96xbf16> to vector<1x96xbf16>
    %924 = arith.extf %923 : vector<1x96xbf16> to vector<1x96xf32>
    %925 = arith.addf %922, %924 : vector<1x96xf32>
    %cst_147 = arith.constant 3.000000e+00 : f32
    %926 = vector.broadcast %cst_147 : f32 to vector<1x96xf32>
    %927 = arith.addf %925, %926 : vector<1x96xf32>
    %cst_148 = arith.constant 0.000000e+00 : f32
    %cst_149 = arith.constant 6.000000e+00 : f32
    %928 = vector.broadcast %cst_148 : f32 to vector<1x96xf32>
    %929 = arith.maximumf %928, %927 : vector<1x96xf32>
    %930 = vector.broadcast %cst_149 : f32 to vector<1x96xf32>
    %931 = arith.minimumf %930, %929 : vector<1x96xf32>
    %932 = arith.mulf %925, %931 : vector<1x96xf32>
    %cst_150 = arith.constant 0.166666672 : f32
    %933 = vector.broadcast %cst_150 : f32 to vector<1x96xf32>
    %934 = arith.mulf %932, %933 : vector<1x96xf32>
    %c2736 = arith.constant 2736 : index
    %c0_151 = arith.constant 0 : index
    %935 = vector.load %arg2[%c2736, %c0_151] : memref<6768x128xbf16, #tpu.memory_space<vmem>>, vector<10x96xbf16>
    %936 = vector.extract_strided_slice %935 {offsets = [4, 0], sizes = [1, 96], strides = [1, 1]} : vector<10x96xbf16> to vector<1x96xbf16>
    %937 = arith.extf %936 : vector<1x96xbf16> to vector<1x96xf32>
    %938 = arith.mulf %934, %937 : vector<1x96xf32>
    %939 = vector.extract_strided_slice %935 {offsets = [9, 0], sizes = [1, 96], strides = [1, 1]} : vector<10x96xbf16> to vector<1x96xbf16>
    %940 = arith.extf %939 : vector<1x96xbf16> to vector<1x96xf32>
    %941 = arith.addf %938, %940 : vector<1x96xf32>
    %cst_152 = arith.constant 3.000000e+00 : f32
    %942 = vector.broadcast %cst_152 : f32 to vector<1x96xf32>
    %943 = arith.addf %941, %942 : vector<1x96xf32>
    %cst_153 = arith.constant 0.000000e+00 : f32
    %cst_154 = arith.constant 6.000000e+00 : f32
    %944 = vector.broadcast %cst_153 : f32 to vector<1x96xf32>
    %945 = arith.maximumf %944, %943 : vector<1x96xf32>
    %946 = vector.broadcast %cst_154 : f32 to vector<1x96xf32>
    %947 = arith.minimumf %946, %945 : vector<1x96xf32>
    %948 = arith.mulf %941, %947 : vector<1x96xf32>
    %cst_155 = arith.constant 0.166666672 : f32
    %949 = vector.broadcast %cst_155 : f32 to vector<1x96xf32>
    %950 = arith.mulf %948, %949 : vector<1x96xf32>
    %c2752 = arith.constant 2752 : index
    %c0_156 = arith.constant 0 : index
    %951 = vector.load %arg2[%c2752, %c0_156] : memref<6768x128xbf16, #tpu.memory_space<vmem>>, vector<97x40xbf16>
    %952 = arith.truncf %950 : vector<1x96xf32> to vector<1x96xbf16>
    %953 = vector.extract_strided_slice %951 {offsets = [0, 0], sizes = [96, 40], strides = [1, 1]} : vector<97x40xbf16> to vector<96x40xbf16>
    %cst_157 = arith.constant dense<0.000000e+00> : vector<1x40xf32>
    %954 = tpu.matmul %952, %953, %cst_157 {dimension_numbers = #tpu.dot_dimension_numbers<[1], [0], [0], [1], [0, 0, 1, 1], [], []>} : vector<1x96xbf16>, vector<96x40xbf16>, vector<1x40xf32> -> vector<1x40xf32>
    %955 = vector.extract_strided_slice %951 {offsets = [96, 0], sizes = [1, 40], strides = [1, 1]} : vector<97x40xbf16> to vector<1x40xbf16>
    %956 = arith.extf %955 : vector<1x40xbf16> to vector<1x40xf32>
    %957 = arith.addf %954, %956 : vector<1x40xf32>
    %958 = arith.addf %957, %918 : vector<1x40xf32>
    %c0_158 = arith.constant 0 : index
    %c0_159 = arith.constant 0 : index
    %959 = vector.load %arg3[%c0_158, %c0_159] : memref<1104x512xbf16, #tpu.memory_space<vmem>>, vector<41x240xbf16>
    %960 = arith.truncf %958 : vector<1x40xf32> to vector<1x40xbf16>
    %961 = vector.extract_strided_slice %959 {offsets = [0, 0], sizes = [40, 240], strides = [1, 1]} : vector<41x240xbf16> to vector<40x240xbf16>
    %cst_160 = arith.constant dense<0.000000e+00> : vector<1x240xf32>
    %962 = tpu.matmul %960, %961, %cst_160 {dimension_numbers = #tpu.dot_dimension_numbers<[1], [0], [0], [1], [0, 0, 1, 1], [], []>} : vector<1x40xbf16>, vector<40x240xbf16>, vector<1x240xf32> -> vector<1x240xf32>
    %963 = vector.extract_strided_slice %959 {offsets = [40, 0], sizes = [1, 240], strides = [1, 1]} : vector<41x240xbf16> to vector<1x240xbf16>
    %964 = arith.extf %963 : vector<1x240xbf16> to vector<1x240xf32>
    %965 = arith.addf %962, %964 : vector<1x240xf32>
    %cst_161 = arith.constant 3.000000e+00 : f32
    %966 = vector.broadcast %cst_161 : f32 to vector<1x240xf32>
    %967 = arith.addf %965, %966 : vector<1x240xf32>
    %cst_162 = arith.constant 0.000000e+00 : f32
    %cst_163 = arith.constant 6.000000e+00 : f32
    %968 = vector.broadcast %cst_162 : f32 to vector<1x240xf32>
    %969 = arith.maximumf %968, %967 : vector<1x240xf32>
    %970 = vector.broadcast %cst_163 : f32 to vector<1x240xf32>
    %971 = arith.minimumf %970, %969 : vector<1x240xf32>
    %972 = arith.mulf %965, %971 : vector<1x240xf32>
    %cst_164 = arith.constant 0.166666672 : f32
    %973 = vector.broadcast %cst_164 : f32 to vector<1x240xf32>
    %974 = arith.mulf %972, %973 : vector<1x240xf32>
    %c48_165 = arith.constant 48 : index
    %c0_166 = arith.constant 0 : index
    %975 = vector.load %arg3[%c48_165, %c0_166] : memref<1104x512xbf16, #tpu.memory_space<vmem>>, vector<10x240xbf16>
    %976 = vector.extract_strided_slice %975 {offsets = [4, 0], sizes = [1, 240], strides = [1, 1]} : vector<10x240xbf16> to vector<1x240xbf16>
    %977 = arith.extf %976 : vector<1x240xbf16> to vector<1x240xf32>
    %978 = arith.mulf %974, %977 : vector<1x240xf32>
    %979 = vector.extract_strided_slice %975 {offsets = [9, 0], sizes = [1, 240], strides = [1, 1]} : vector<10x240xbf16> to vector<1x240xbf16>
    %980 = arith.extf %979 : vector<1x240xbf16> to vector<1x240xf32>
    %981 = arith.addf %978, %980 : vector<1x240xf32>
    %cst_167 = arith.constant 3.000000e+00 : f32
    %982 = vector.broadcast %cst_167 : f32 to vector<1x240xf32>
    %983 = arith.addf %981, %982 : vector<1x240xf32>
    %cst_168 = arith.constant 0.000000e+00 : f32
    %cst_169 = arith.constant 6.000000e+00 : f32
    %984 = vector.broadcast %cst_168 : f32 to vector<1x240xf32>
    %985 = arith.maximumf %984, %983 : vector<1x240xf32>
    %986 = vector.broadcast %cst_169 : f32 to vector<1x240xf32>
    %987 = arith.minimumf %986, %985 : vector<1x240xf32>
    %988 = arith.mulf %981, %987 : vector<1x240xf32>
    %cst_170 = arith.constant 0.166666672 : f32
    %989 = vector.broadcast %cst_170 : f32 to vector<1x240xf32>
    %990 = arith.mulf %988, %989 : vector<1x240xf32>
    %c2864 = arith.constant 2864 : index
    %c0_171 = arith.constant 0 : index
    %991 = vector.load %arg2[%c2864, %c0_171] : memref<6768x128xbf16, #tpu.memory_space<vmem>>, vector<241x60xbf16>
    %c64_172 = arith.constant 64 : index
    %c0_173 = arith.constant 0 : index
    %992 = vector.load %arg3[%c64_172, %c0_173] : memref<1104x512xbf16, #tpu.memory_space<vmem>>, vector<61x240xbf16>
    %cst_174 = arith.constant dense<0.000000e+00> : vector<240xf32>
    %993 = vector.multi_reduction <add>, %990, %cst_174 [0] : vector<1x240xf32> to vector<240xf32>
    %994 = vector.shape_cast %993 : vector<240xf32> to vector<1x240xf32>
    %cst_175 = arith.constant 1.000000e+00 : f32
    %995 = vector.broadcast %cst_175 : f32 to vector<1x240xf32>
    %996 = arith.divf %994, %995 : vector<1x240xf32>
    %997 = arith.truncf %996 : vector<1x240xf32> to vector<1x240xbf16>
    %998 = vector.extract_strided_slice %991 {offsets = [0, 0], sizes = [240, 60], strides = [1, 1]} : vector<241x60xbf16> to vector<240x60xbf16>
    %cst_176 = arith.constant dense<0.000000e+00> : vector<1x60xf32>
    %999 = tpu.matmul %997, %998, %cst_176 {dimension_numbers = #tpu.dot_dimension_numbers<[1], [0], [0], [1], [0, 0, 1, 1], [], []>} : vector<1x240xbf16>, vector<240x60xbf16>, vector<1x60xf32> -> vector<1x60xf32>
    %1000 = vector.extract_strided_slice %991 {offsets = [240, 0], sizes = [1, 60], strides = [1, 1]} : vector<241x60xbf16> to vector<1x60xbf16>
    %1001 = arith.extf %1000 : vector<1x60xbf16> to vector<1x60xf32>
    %1002 = arith.addf %999, %1001 : vector<1x60xf32>
    %cst_177 = arith.constant 0.000000e+00 : f32
    %1003 = vector.broadcast %cst_177 : f32 to vector<1x60xf32>
    %1004 = arith.maximumf %1002, %1003 : vector<1x60xf32>
    %1005 = arith.truncf %1004 : vector<1x60xf32> to vector<1x60xbf16>
    %1006 = vector.extract_strided_slice %992 {offsets = [0, 0], sizes = [60, 240], strides = [1, 1]} : vector<61x240xbf16> to vector<60x240xbf16>
    %cst_178 = arith.constant dense<0.000000e+00> : vector<1x240xf32>
    %1007 = tpu.matmul %1005, %1006, %cst_178 {dimension_numbers = #tpu.dot_dimension_numbers<[1], [0], [0], [1], [0, 0, 1, 1], [], []>} : vector<1x60xbf16>, vector<60x240xbf16>, vector<1x240xf32> -> vector<1x240xf32>
    %1008 = vector.extract_strided_slice %992 {offsets = [60, 0], sizes = [1, 240], strides = [1, 1]} : vector<61x240xbf16> to vector<1x240xbf16>
    %1009 = arith.extf %1008 : vector<1x240xbf16> to vector<1x240xf32>
    %1010 = arith.addf %1007, %1009 : vector<1x240xf32>
    %cst_179 = arith.constant 3.000000e+00 : f32
    %1011 = vector.broadcast %cst_179 : f32 to vector<1x240xf32>
    %1012 = arith.addf %1010, %1011 : vector<1x240xf32>
    %cst_180 = arith.constant 0.000000e+00 : f32
    %cst_181 = arith.constant 6.000000e+00 : f32
    %1013 = vector.broadcast %cst_180 : f32 to vector<1x240xf32>
    %1014 = arith.maximumf %1013, %1012 : vector<1x240xf32>
    %1015 = vector.broadcast %cst_181 : f32 to vector<1x240xf32>
    %1016 = arith.minimumf %1015, %1014 : vector<1x240xf32>
    %cst_182 = arith.constant 0.166666672 : f32
    %1017 = vector.broadcast %cst_182 : f32 to vector<1x240xf32>
    %1018 = arith.mulf %1016, %1017 : vector<1x240xf32>
    %1019 = arith.mulf %990, %1018 : vector<1x240xf32>
    %c3120 = arith.constant 3120 : index
    %c0_183 = arith.constant 0 : index
    %1020 = vector.load %arg2[%c3120, %c0_183] : memref<6768x128xbf16, #tpu.memory_space<vmem>>, vector<241x56xbf16>
    %1021 = arith.truncf %1019 : vector<1x240xf32> to vector<1x240xbf16>
    %1022 = vector.extract_strided_slice %1020 {offsets = [0, 0], sizes = [240, 56], strides = [1, 1]} : vector<241x56xbf16> to vector<240x56xbf16>
    %cst_184 = arith.constant dense<0.000000e+00> : vector<1x56xf32>
    %1023 = tpu.matmul %1021, %1022, %cst_184 {dimension_numbers = #tpu.dot_dimension_numbers<[1], [0], [0], [1], [0, 0, 1, 1], [], []>} : vector<1x240xbf16>, vector<240x56xbf16>, vector<1x56xf32> -> vector<1x56xf32>
    %1024 = vector.extract_strided_slice %1020 {offsets = [240, 0], sizes = [1, 56], strides = [1, 1]} : vector<241x56xbf16> to vector<1x56xbf16>
    %1025 = arith.extf %1024 : vector<1x56xbf16> to vector<1x56xf32>
    %1026 = arith.addf %1023, %1025 : vector<1x56xf32>
    %c128 = arith.constant 128 : index
    %c0_185 = arith.constant 0 : index
    %1027 = vector.load %arg3[%c128, %c0_185] : memref<1104x512xbf16, #tpu.memory_space<vmem>>, vector<57x336xbf16>
    %1028 = arith.truncf %1026 : vector<1x56xf32> to vector<1x56xbf16>
    %1029 = vector.extract_strided_slice %1027 {offsets = [0, 0], sizes = [56, 336], strides = [1, 1]} : vector<57x336xbf16> to vector<56x336xbf16>
    %cst_186 = arith.constant dense<0.000000e+00> : vector<1x336xf32>
    %1030 = tpu.matmul %1028, %1029, %cst_186 {dimension_numbers = #tpu.dot_dimension_numbers<[1], [0], [0], [1], [0, 0, 1, 1], [], []>} : vector<1x56xbf16>, vector<56x336xbf16>, vector<1x336xf32> -> vector<1x336xf32>
    %1031 = vector.extract_strided_slice %1027 {offsets = [56, 0], sizes = [1, 336], strides = [1, 1]} : vector<57x336xbf16> to vector<1x336xbf16>
    %1032 = arith.extf %1031 : vector<1x336xbf16> to vector<1x336xf32>
    %1033 = arith.addf %1030, %1032 : vector<1x336xf32>
    %cst_187 = arith.constant 3.000000e+00 : f32
    %1034 = vector.broadcast %cst_187 : f32 to vector<1x336xf32>
    %1035 = arith.addf %1033, %1034 : vector<1x336xf32>
    %cst_188 = arith.constant 0.000000e+00 : f32
    %cst_189 = arith.constant 6.000000e+00 : f32
    %1036 = vector.broadcast %cst_188 : f32 to vector<1x336xf32>
    %1037 = arith.maximumf %1036, %1035 : vector<1x336xf32>
    %1038 = vector.broadcast %cst_189 : f32 to vector<1x336xf32>
    %1039 = arith.minimumf %1038, %1037 : vector<1x336xf32>
    %1040 = arith.mulf %1033, %1039 : vector<1x336xf32>
    %cst_190 = arith.constant 0.166666672 : f32
    %1041 = vector.broadcast %cst_190 : f32 to vector<1x336xf32>
    %1042 = arith.mulf %1040, %1041 : vector<1x336xf32>
    %c192 = arith.constant 192 : index
    %c0_191 = arith.constant 0 : index
    %1043 = vector.load %arg3[%c192, %c0_191] : memref<1104x512xbf16, #tpu.memory_space<vmem>>, vector<10x336xbf16>
    %1044 = vector.extract_strided_slice %1043 {offsets = [4, 0], sizes = [1, 336], strides = [1, 1]} : vector<10x336xbf16> to vector<1x336xbf16>
    %1045 = arith.extf %1044 : vector<1x336xbf16> to vector<1x336xf32>
    %1046 = arith.mulf %1042, %1045 : vector<1x336xf32>
    %1047 = vector.extract_strided_slice %1043 {offsets = [9, 0], sizes = [1, 336], strides = [1, 1]} : vector<10x336xbf16> to vector<1x336xbf16>
    %1048 = arith.extf %1047 : vector<1x336xbf16> to vector<1x336xf32>
    %1049 = arith.addf %1046, %1048 : vector<1x336xf32>
    %cst_192 = arith.constant 3.000000e+00 : f32
    %1050 = vector.broadcast %cst_192 : f32 to vector<1x336xf32>
    %1051 = arith.addf %1049, %1050 : vector<1x336xf32>
    %cst_193 = arith.constant 0.000000e+00 : f32
    %cst_194 = arith.constant 6.000000e+00 : f32
    %1052 = vector.broadcast %cst_193 : f32 to vector<1x336xf32>
    %1053 = arith.maximumf %1052, %1051 : vector<1x336xf32>
    %1054 = vector.broadcast %cst_194 : f32 to vector<1x336xf32>
    %1055 = arith.minimumf %1054, %1053 : vector<1x336xf32>
    %1056 = arith.mulf %1049, %1055 : vector<1x336xf32>
    %cst_195 = arith.constant 0.166666672 : f32
    %1057 = vector.broadcast %cst_195 : f32 to vector<1x336xf32>
    %1058 = arith.mulf %1056, %1057 : vector<1x336xf32>
    %c3376 = arith.constant 3376 : index
    %c0_196 = arith.constant 0 : index
    %1059 = vector.load %arg2[%c3376, %c0_196] : memref<6768x128xbf16, #tpu.memory_space<vmem>>, vector<337x84xbf16>
    %c208 = arith.constant 208 : index
    %c0_197 = arith.constant 0 : index
    %1060 = vector.load %arg3[%c208, %c0_197] : memref<1104x512xbf16, #tpu.memory_space<vmem>>, vector<85x336xbf16>
    %cst_198 = arith.constant dense<0.000000e+00> : vector<336xf32>
    %1061 = vector.multi_reduction <add>, %1058, %cst_198 [0] : vector<1x336xf32> to vector<336xf32>
    %1062 = vector.shape_cast %1061 : vector<336xf32> to vector<1x336xf32>
    %cst_199 = arith.constant 1.000000e+00 : f32
    %1063 = vector.broadcast %cst_199 : f32 to vector<1x336xf32>
    %1064 = arith.divf %1062, %1063 : vector<1x336xf32>
    %1065 = arith.truncf %1064 : vector<1x336xf32> to vector<1x336xbf16>
    %1066 = vector.extract_strided_slice %1059 {offsets = [0, 0], sizes = [336, 84], strides = [1, 1]} : vector<337x84xbf16> to vector<336x84xbf16>
    %cst_200 = arith.constant dense<0.000000e+00> : vector<1x84xf32>
    %1067 = tpu.matmul %1065, %1066, %cst_200 {dimension_numbers = #tpu.dot_dimension_numbers<[1], [0], [0], [1], [0, 0, 1, 1], [], []>} : vector<1x336xbf16>, vector<336x84xbf16>, vector<1x84xf32> -> vector<1x84xf32>
    %1068 = vector.extract_strided_slice %1059 {offsets = [336, 0], sizes = [1, 84], strides = [1, 1]} : vector<337x84xbf16> to vector<1x84xbf16>
    %1069 = arith.extf %1068 : vector<1x84xbf16> to vector<1x84xf32>
    %1070 = arith.addf %1067, %1069 : vector<1x84xf32>
    %cst_201 = arith.constant 0.000000e+00 : f32
    %1071 = vector.broadcast %cst_201 : f32 to vector<1x84xf32>
    %1072 = arith.maximumf %1070, %1071 : vector<1x84xf32>
    %1073 = arith.truncf %1072 : vector<1x84xf32> to vector<1x84xbf16>
    %1074 = vector.extract_strided_slice %1060 {offsets = [0, 0], sizes = [84, 336], strides = [1, 1]} : vector<85x336xbf16> to vector<84x336xbf16>
    %cst_202 = arith.constant dense<0.000000e+00> : vector<1x336xf32>
    %1075 = tpu.matmul %1073, %1074, %cst_202 {dimension_numbers = #tpu.dot_dimension_numbers<[1], [0], [0], [1], [0, 0, 1, 1], [], []>} : vector<1x84xbf16>, vector<84x336xbf16>, vector<1x336xf32> -> vector<1x336xf32>
    %1076 = vector.extract_strided_slice %1060 {offsets = [84, 0], sizes = [1, 336], strides = [1, 1]} : vector<85x336xbf16> to vector<1x336xbf16>
    %1077 = arith.extf %1076 : vector<1x336xbf16> to vector<1x336xf32>
    %1078 = arith.addf %1075, %1077 : vector<1x336xf32>
    %cst_203 = arith.constant 3.000000e+00 : f32
    %1079 = vector.broadcast %cst_203 : f32 to vector<1x336xf32>
    %1080 = arith.addf %1078, %1079 : vector<1x336xf32>
    %cst_204 = arith.constant 0.000000e+00 : f32
    %cst_205 = arith.constant 6.000000e+00 : f32
    %1081 = vector.broadcast %cst_204 : f32 to vector<1x336xf32>
    %1082 = arith.maximumf %1081, %1080 : vector<1x336xf32>
    %1083 = vector.broadcast %cst_205 : f32 to vector<1x336xf32>
    %1084 = arith.minimumf %1083, %1082 : vector<1x336xf32>
    %cst_206 = arith.constant 0.166666672 : f32
    %1085 = vector.broadcast %cst_206 : f32 to vector<1x336xf32>
    %1086 = arith.mulf %1084, %1085 : vector<1x336xf32>
    %1087 = arith.mulf %1058, %1086 : vector<1x336xf32>
    %c3728 = arith.constant 3728 : index
    %c0_207 = arith.constant 0 : index
    %1088 = vector.load %arg2[%c3728, %c0_207] : memref<6768x128xbf16, #tpu.memory_space<vmem>>, vector<337x56xbf16>
    %1089 = arith.truncf %1087 : vector<1x336xf32> to vector<1x336xbf16>
    %1090 = vector.extract_strided_slice %1088 {offsets = [0, 0], sizes = [336, 56], strides = [1, 1]} : vector<337x56xbf16> to vector<336x56xbf16>
    %cst_208 = arith.constant dense<0.000000e+00> : vector<1x56xf32>
    %1091 = tpu.matmul %1089, %1090, %cst_208 {dimension_numbers = #tpu.dot_dimension_numbers<[1], [0], [0], [1], [0, 0, 1, 1], [], []>} : vector<1x336xbf16>, vector<336x56xbf16>, vector<1x56xf32> -> vector<1x56xf32>
    %1092 = vector.extract_strided_slice %1088 {offsets = [336, 0], sizes = [1, 56], strides = [1, 1]} : vector<337x56xbf16> to vector<1x56xbf16>
    %1093 = arith.extf %1092 : vector<1x56xbf16> to vector<1x56xf32>
    %1094 = arith.addf %1091, %1093 : vector<1x56xf32>
    %1095 = arith.addf %1094, %1026 : vector<1x56xf32>
    %c0_209 = arith.constant 0 : index
    %c0_210 = arith.constant 0 : index
    %c0_211 = arith.constant 0 : index
    %1096 = vector.load %arg6[%c0_209, %c0_210, %c0_211] : memref<1x1x56xf32, #tpu.memory_space<vmem>>, vector<1x1x56xf32>
    %1097 = vector.shape_cast %1096 : vector<1x1x56xf32> to vector<1x56xf32>
    %1098 = vector.shape_cast %1095 : vector<1x56xf32> to vector<1x1x56xf32>
    tpu.vector_store %arg6[%c0_209, %c0_210, %c0_211], %1098 {strides = array<i32>} : memref<1x1x56xf32, #tpu.memory_space<vmem>>, vector<1x1x56xf32>,
    %c304 = arith.constant 304 : index
    %c0_212 = arith.constant 0 : index
    %1099 = vector.load %arg3[%c304, %c0_212] : memref<1104x512xbf16, #tpu.memory_space<vmem>>, vector<57x336xbf16>
    %1100 = arith.truncf %1095 : vector<1x56xf32> to vector<1x56xbf16>
    %1101 = vector.extract_strided_slice %1099 {offsets = [0, 0], sizes = [56, 336], strides = [1, 1]} : vector<57x336xbf16> to vector<56x336xbf16>
    %cst_213 = arith.constant dense<0.000000e+00> : vector<1x336xf32>
    %1102 = tpu.matmul %1100, %1101, %cst_213 {dimension_numbers = #tpu.dot_dimension_numbers<[1], [0], [0], [1], [0, 0, 1, 1], [], []>} : vector<1x56xbf16>, vector<56x336xbf16>, vector<1x336xf32> -> vector<1x336xf32>
    %1103 = vector.extract_strided_slice %1099 {offsets = [56, 0], sizes = [1, 336], strides = [1, 1]} : vector<57x336xbf16> to vector<1x336xbf16>
    %1104 = arith.extf %1103 : vector<1x336xbf16> to vector<1x336xf32>
    %1105 = arith.addf %1102, %1104 : vector<1x336xf32>
    %cst_214 = arith.constant 3.000000e+00 : f32
    %1106 = vector.broadcast %cst_214 : f32 to vector<1x336xf32>
    %1107 = arith.addf %1105, %1106 : vector<1x336xf32>
    %cst_215 = arith.constant 0.000000e+00 : f32
    %cst_216 = arith.constant 6.000000e+00 : f32
    %1108 = vector.broadcast %cst_215 : f32 to vector<1x336xf32>
    %1109 = arith.maximumf %1108, %1107 : vector<1x336xf32>
    %1110 = vector.broadcast %cst_216 : f32 to vector<1x336xf32>
    %1111 = arith.minimumf %1110, %1109 : vector<1x336xf32>
    %1112 = arith.mulf %1105, %1111 : vector<1x336xf32>
    %cst_217 = arith.constant 0.166666672 : f32
    %1113 = vector.broadcast %cst_217 : f32 to vector<1x336xf32>
    %1114 = arith.mulf %1112, %1113 : vector<1x336xf32>
    %c368 = arith.constant 368 : index
    %c0_218 = arith.constant 0 : index
    %1115 = vector.load %arg3[%c368, %c0_218] : memref<1104x512xbf16, #tpu.memory_space<vmem>>, vector<26x336xbf16>
    %1116 = vector.extract_strided_slice %1115 {offsets = [12, 0], sizes = [1, 336], strides = [1, 1]} : vector<26x336xbf16> to vector<1x336xbf16>
    %1117 = arith.extf %1116 : vector<1x336xbf16> to vector<1x336xf32>
    %1118 = arith.mulf %1114, %1117 : vector<1x336xf32>
    %1119 = vector.extract_strided_slice %1115 {offsets = [25, 0], sizes = [1, 336], strides = [1, 1]} : vector<26x336xbf16> to vector<1x336xbf16>
    %1120 = arith.extf %1119 : vector<1x336xbf16> to vector<1x336xf32>
    %1121 = arith.addf %1118, %1120 : vector<1x336xf32>
    %cst_219 = arith.constant 3.000000e+00 : f32
    %1122 = vector.broadcast %cst_219 : f32 to vector<1x336xf32>
    %1123 = arith.addf %1121, %1122 : vector<1x336xf32>
    %cst_220 = arith.constant 0.000000e+00 : f32
    %cst_221 = arith.constant 6.000000e+00 : f32
    %1124 = vector.broadcast %cst_220 : f32 to vector<1x336xf32>
    %1125 = arith.maximumf %1124, %1123 : vector<1x336xf32>
    %1126 = vector.broadcast %cst_221 : f32 to vector<1x336xf32>
    %1127 = arith.minimumf %1126, %1125 : vector<1x336xf32>
    %1128 = arith.mulf %1121, %1127 : vector<1x336xf32>
    %cst_222 = arith.constant 0.166666672 : f32
    %1129 = vector.broadcast %cst_222 : f32 to vector<1x336xf32>
    %1130 = arith.mulf %1128, %1129 : vector<1x336xf32>
    %c4080 = arith.constant 4080 : index
    %c0_223 = arith.constant 0 : index
    %1131 = vector.load %arg2[%c4080, %c0_223] : memref<6768x128xbf16, #tpu.memory_space<vmem>>, vector<337x84xbf16>
    %c400 = arith.constant 400 : index
    %c0_224 = arith.constant 0 : index
    %1132 = vector.load %arg3[%c400, %c0_224] : memref<1104x512xbf16, #tpu.memory_space<vmem>>, vector<85x336xbf16>
    %cst_225 = arith.constant dense<0.000000e+00> : vector<336xf32>
    %1133 = vector.multi_reduction <add>, %1130, %cst_225 [0] : vector<1x336xf32> to vector<336xf32>
    %1134 = vector.shape_cast %1133 : vector<336xf32> to vector<1x336xf32>
    %cst_226 = arith.constant 1.000000e+00 : f32
    %1135 = vector.broadcast %cst_226 : f32 to vector<1x336xf32>
    %1136 = arith.divf %1134, %1135 : vector<1x336xf32>
    %1137 = arith.truncf %1136 : vector<1x336xf32> to vector<1x336xbf16>
    %1138 = vector.extract_strided_slice %1131 {offsets = [0, 0], sizes = [336, 84], strides = [1, 1]} : vector<337x84xbf16> to vector<336x84xbf16>
    %cst_227 = arith.constant dense<0.000000e+00> : vector<1x84xf32>
    %1139 = tpu.matmul %1137, %1138, %cst_227 {dimension_numbers = #tpu.dot_dimension_numbers<[1], [0], [0], [1], [0, 0, 1, 1], [], []>} : vector<1x336xbf16>, vector<336x84xbf16>, vector<1x84xf32> -> vector<1x84xf32>
    %1140 = vector.extract_strided_slice %1131 {offsets = [336, 0], sizes = [1, 84], strides = [1, 1]} : vector<337x84xbf16> to vector<1x84xbf16>
    %1141 = arith.extf %1140 : vector<1x84xbf16> to vector<1x84xf32>
    %1142 = arith.addf %1139, %1141 : vector<1x84xf32>
    %cst_228 = arith.constant 0.000000e+00 : f32
    %1143 = vector.broadcast %cst_228 : f32 to vector<1x84xf32>
    %1144 = arith.maximumf %1142, %1143 : vector<1x84xf32>
    %1145 = arith.truncf %1144 : vector<1x84xf32> to vector<1x84xbf16>
    %1146 = vector.extract_strided_slice %1132 {offsets = [0, 0], sizes = [84, 336], strides = [1, 1]} : vector<85x336xbf16> to vector<84x336xbf16>
    %cst_229 = arith.constant dense<0.000000e+00> : vector<1x336xf32>
    %1147 = tpu.matmul %1145, %1146, %cst_229 {dimension_numbers = #tpu.dot_dimension_numbers<[1], [0], [0], [1], [0, 0, 1, 1], [], []>} : vector<1x84xbf16>, vector<84x336xbf16>, vector<1x336xf32> -> vector<1x336xf32>
    %1148 = vector.extract_strided_slice %1132 {offsets = [84, 0], sizes = [1, 336], strides = [1, 1]} : vector<85x336xbf16> to vector<1x336xbf16>
    %1149 = arith.extf %1148 : vector<1x336xbf16> to vector<1x336xf32>
    %1150 = arith.addf %1147, %1149 : vector<1x336xf32>
    %cst_230 = arith.constant 3.000000e+00 : f32
    %1151 = vector.broadcast %cst_230 : f32 to vector<1x336xf32>
    %1152 = arith.addf %1150, %1151 : vector<1x336xf32>
    %cst_231 = arith.constant 0.000000e+00 : f32
    %cst_232 = arith.constant 6.000000e+00 : f32
    %1153 = vector.broadcast %cst_231 : f32 to vector<1x336xf32>
    %1154 = arith.maximumf %1153, %1152 : vector<1x336xf32>
    %1155 = vector.broadcast %cst_232 : f32 to vector<1x336xf32>
    %1156 = arith.minimumf %1155, %1154 : vector<1x336xf32>
    %cst_233 = arith.constant 0.166666672 : f32
    %1157 = vector.broadcast %cst_233 : f32 to vector<1x336xf32>
    %1158 = arith.mulf %1156, %1157 : vector<1x336xf32>
    %1159 = arith.mulf %1130, %1158 : vector<1x336xf32>
    %c4432 = arith.constant 4432 : index
    %c0_234 = arith.constant 0 : index
    %1160 = vector.load %arg2[%c4432, %c0_234] : memref<6768x128xbf16, #tpu.memory_space<vmem>>, vector<337x80xbf16>
    %1161 = arith.truncf %1159 : vector<1x336xf32> to vector<1x336xbf16>
    %1162 = vector.extract_strided_slice %1160 {offsets = [0, 0], sizes = [336, 80], strides = [1, 1]} : vector<337x80xbf16> to vector<336x80xbf16>
    %cst_235 = arith.constant dense<0.000000e+00> : vector<1x80xf32>
    %1163 = tpu.matmul %1161, %1162, %cst_235 {dimension_numbers = #tpu.dot_dimension_numbers<[1], [0], [0], [1], [0, 0, 1, 1], [], []>} : vector<1x336xbf16>, vector<336x80xbf16>, vector<1x80xf32> -> vector<1x80xf32>
    %1164 = vector.extract_strided_slice %1160 {offsets = [336, 0], sizes = [1, 80], strides = [1, 1]} : vector<337x80xbf16> to vector<1x80xbf16>
    %1165 = arith.extf %1164 : vector<1x80xbf16> to vector<1x80xf32>
    %1166 = arith.addf %1163, %1165 : vector<1x80xf32>
    %c496 = arith.constant 496 : index
    %c0_236 = arith.constant 0 : index
    %1167 = vector.load %arg3[%c496, %c0_236] : memref<1104x512xbf16, #tpu.memory_space<vmem>>, vector<81x480xbf16>
    %1168 = arith.truncf %1166 : vector<1x80xf32> to vector<1x80xbf16>
    %1169 = vector.extract_strided_slice %1167 {offsets = [0, 0], sizes = [80, 480], strides = [1, 1]} : vector<81x480xbf16> to vector<80x480xbf16>
    %cst_237 = arith.constant dense<0.000000e+00> : vector<1x480xf32>
    %1170 = tpu.matmul %1168, %1169, %cst_237 {dimension_numbers = #tpu.dot_dimension_numbers<[1], [0], [0], [1], [0, 0, 1, 1], [], []>} : vector<1x80xbf16>, vector<80x480xbf16>, vector<1x480xf32> -> vector<1x480xf32>
    %1171 = vector.extract_strided_slice %1167 {offsets = [80, 0], sizes = [1, 480], strides = [1, 1]} : vector<81x480xbf16> to vector<1x480xbf16>
    %1172 = arith.extf %1171 : vector<1x480xbf16> to vector<1x480xf32>
    %1173 = arith.addf %1170, %1172 : vector<1x480xf32>
    %cst_238 = arith.constant 3.000000e+00 : f32
    %1174 = vector.broadcast %cst_238 : f32 to vector<1x480xf32>
    %1175 = arith.addf %1173, %1174 : vector<1x480xf32>
    %cst_239 = arith.constant 0.000000e+00 : f32
    %cst_240 = arith.constant 6.000000e+00 : f32
    %1176 = vector.broadcast %cst_239 : f32 to vector<1x480xf32>
    %1177 = arith.maximumf %1176, %1175 : vector<1x480xf32>
    %1178 = vector.broadcast %cst_240 : f32 to vector<1x480xf32>
    %1179 = arith.minimumf %1178, %1177 : vector<1x480xf32>
    %1180 = arith.mulf %1173, %1179 : vector<1x480xf32>
    %cst_241 = arith.constant 0.166666672 : f32
    %1181 = vector.broadcast %cst_241 : f32 to vector<1x480xf32>
    %1182 = arith.mulf %1180, %1181 : vector<1x480xf32>
    %c592 = arith.constant 592 : index
    %c0_242 = arith.constant 0 : index
    %1183 = vector.load %arg3[%c592, %c0_242] : memref<1104x512xbf16, #tpu.memory_space<vmem>>, vector<26x480xbf16>
    %1184 = vector.extract_strided_slice %1183 {offsets = [12, 0], sizes = [1, 480], strides = [1, 1]} : vector<26x480xbf16> to vector<1x480xbf16>
    %1185 = arith.extf %1184 : vector<1x480xbf16> to vector<1x480xf32>
    %1186 = arith.mulf %1182, %1185 : vector<1x480xf32>
    %1187 = vector.extract_strided_slice %1183 {offsets = [25, 0], sizes = [1, 480], strides = [1, 1]} : vector<26x480xbf16> to vector<1x480xbf16>
    %1188 = arith.extf %1187 : vector<1x480xbf16> to vector<1x480xf32>
    %1189 = arith.addf %1186, %1188 : vector<1x480xf32>
    %cst_243 = arith.constant 3.000000e+00 : f32
    %1190 = vector.broadcast %cst_243 : f32 to vector<1x480xf32>
    %1191 = arith.addf %1189, %1190 : vector<1x480xf32>
    %cst_244 = arith.constant 0.000000e+00 : f32
    %cst_245 = arith.constant 6.000000e+00 : f32
    %1192 = vector.broadcast %cst_244 : f32 to vector<1x480xf32>
    %1193 = arith.maximumf %1192, %1191 : vector<1x480xf32>
    %1194 = vector.broadcast %cst_245 : f32 to vector<1x480xf32>
    %1195 = arith.minimumf %1194, %1193 : vector<1x480xf32>
    %1196 = arith.mulf %1189, %1195 : vector<1x480xf32>
    %cst_246 = arith.constant 0.166666672 : f32
    %1197 = vector.broadcast %cst_246 : f32 to vector<1x480xf32>
    %1198 = arith.mulf %1196, %1197 : vector<1x480xf32>
    %c4784 = arith.constant 4784 : index
    %c0_247 = arith.constant 0 : index
    %1199 = vector.load %arg2[%c4784, %c0_247] : memref<6768x128xbf16, #tpu.memory_space<vmem>>, vector<481x120xbf16>
    %c624 = arith.constant 624 : index
    %c0_248 = arith.constant 0 : index
    %1200 = vector.load %arg3[%c624, %c0_248] : memref<1104x512xbf16, #tpu.memory_space<vmem>>, vector<121x480xbf16>
    %cst_249 = arith.constant dense<0.000000e+00> : vector<480xf32>
    %1201 = vector.multi_reduction <add>, %1198, %cst_249 [0] : vector<1x480xf32> to vector<480xf32>
    %1202 = vector.shape_cast %1201 : vector<480xf32> to vector<1x480xf32>
    %cst_250 = arith.constant 1.000000e+00 : f32
    %1203 = vector.broadcast %cst_250 : f32 to vector<1x480xf32>
    %1204 = arith.divf %1202, %1203 : vector<1x480xf32>
    %1205 = arith.truncf %1204 : vector<1x480xf32> to vector<1x480xbf16>
    %1206 = vector.extract_strided_slice %1199 {offsets = [0, 0], sizes = [480, 120], strides = [1, 1]} : vector<481x120xbf16> to vector<480x120xbf16>
    %cst_251 = arith.constant dense<0.000000e+00> : vector<1x120xf32>
    %1207 = tpu.matmul %1205, %1206, %cst_251 {dimension_numbers = #tpu.dot_dimension_numbers<[1], [0], [0], [1], [0, 0, 1, 1], [], []>} : vector<1x480xbf16>, vector<480x120xbf16>, vector<1x120xf32> -> vector<1x120xf32>
    %1208 = vector.extract_strided_slice %1199 {offsets = [480, 0], sizes = [1, 120], strides = [1, 1]} : vector<481x120xbf16> to vector<1x120xbf16>
    %1209 = arith.extf %1208 : vector<1x120xbf16> to vector<1x120xf32>
    %1210 = arith.addf %1207, %1209 : vector<1x120xf32>
    %cst_252 = arith.constant 0.000000e+00 : f32
    %1211 = vector.broadcast %cst_252 : f32 to vector<1x120xf32>
    %1212 = arith.maximumf %1210, %1211 : vector<1x120xf32>
    %1213 = arith.truncf %1212 : vector<1x120xf32> to vector<1x120xbf16>
    %1214 = vector.extract_strided_slice %1200 {offsets = [0, 0], sizes = [120, 480], strides = [1, 1]} : vector<121x480xbf16> to vector<120x480xbf16>
    %cst_253 = arith.constant dense<0.000000e+00> : vector<1x480xf32>
    %1215 = tpu.matmul %1213, %1214, %cst_253 {dimension_numbers = #tpu.dot_dimension_numbers<[1], [0], [0], [1], [0, 0, 1, 1], [], []>} : vector<1x120xbf16>, vector<120x480xbf16>, vector<1x480xf32> -> vector<1x480xf32>
    %1216 = vector.extract_strided_slice %1200 {offsets = [120, 0], sizes = [1, 480], strides = [1, 1]} : vector<121x480xbf16> to vector<1x480xbf16>
    %1217 = arith.extf %1216 : vector<1x480xbf16> to vector<1x480xf32>
    %1218 = arith.addf %1215, %1217 : vector<1x480xf32>
    %cst_254 = arith.constant 3.000000e+00 : f32
    %1219 = vector.broadcast %cst_254 : f32 to vector<1x480xf32>
    %1220 = arith.addf %1218, %1219 : vector<1x480xf32>
    %cst_255 = arith.constant 0.000000e+00 : f32
    %cst_256 = arith.constant 6.000000e+00 : f32
    %1221 = vector.broadcast %cst_255 : f32 to vector<1x480xf32>
    %1222 = arith.maximumf %1221, %1220 : vector<1x480xf32>
    %1223 = vector.broadcast %cst_256 : f32 to vector<1x480xf32>
    %1224 = arith.minimumf %1223, %1222 : vector<1x480xf32>
    %cst_257 = arith.constant 0.166666672 : f32
    %1225 = vector.broadcast %cst_257 : f32 to vector<1x480xf32>
    %1226 = arith.mulf %1224, %1225 : vector<1x480xf32>
    %1227 = arith.mulf %1198, %1226 : vector<1x480xf32>
    %c5280 = arith.constant 5280 : index
    %c0_258 = arith.constant 0 : index
    %1228 = vector.load %arg2[%c5280, %c0_258] : memref<6768x128xbf16, #tpu.memory_space<vmem>>, vector<481x80xbf16>
    %1229 = arith.truncf %1227 : vector<1x480xf32> to vector<1x480xbf16>
    %1230 = vector.extract_strided_slice %1228 {offsets = [0, 0], sizes = [480, 80], strides = [1, 1]} : vector<481x80xbf16> to vector<480x80xbf16>
    %cst_259 = arith.constant dense<0.000000e+00> : vector<1x80xf32>
    %1231 = tpu.matmul %1229, %1230, %cst_259 {dimension_numbers = #tpu.dot_dimension_numbers<[1], [0], [0], [1], [0, 0, 1, 1], [], []>} : vector<1x480xbf16>, vector<480x80xbf16>, vector<1x80xf32> -> vector<1x80xf32>
    %1232 = vector.extract_strided_slice %1228 {offsets = [480, 0], sizes = [1, 80], strides = [1, 1]} : vector<481x80xbf16> to vector<1x80xbf16>
    %1233 = arith.extf %1232 : vector<1x80xbf16> to vector<1x80xf32>
    %1234 = arith.addf %1231, %1233 : vector<1x80xf32>
    %1235 = arith.addf %1234, %1166 : vector<1x80xf32>
    %c752 = arith.constant 752 : index
    %c0_260 = arith.constant 0 : index
    %1236 = vector.load %arg3[%c752, %c0_260] : memref<1104x512xbf16, #tpu.memory_space<vmem>>, vector<81x480xbf16>
    %1237 = arith.truncf %1235 : vector<1x80xf32> to vector<1x80xbf16>
    %1238 = vector.extract_strided_slice %1236 {offsets = [0, 0], sizes = [80, 480], strides = [1, 1]} : vector<81x480xbf16> to vector<80x480xbf16>
    %cst_261 = arith.constant dense<0.000000e+00> : vector<1x480xf32>
    %1239 = tpu.matmul %1237, %1238, %cst_261 {dimension_numbers = #tpu.dot_dimension_numbers<[1], [0], [0], [1], [0, 0, 1, 1], [], []>} : vector<1x80xbf16>, vector<80x480xbf16>, vector<1x480xf32> -> vector<1x480xf32>
    %1240 = vector.extract_strided_slice %1236 {offsets = [80, 0], sizes = [1, 480], strides = [1, 1]} : vector<81x480xbf16> to vector<1x480xbf16>
    %1241 = arith.extf %1240 : vector<1x480xbf16> to vector<1x480xf32>
    %1242 = arith.addf %1239, %1241 : vector<1x480xf32>
    %cst_262 = arith.constant 3.000000e+00 : f32
    %1243 = vector.broadcast %cst_262 : f32 to vector<1x480xf32>
    %1244 = arith.addf %1242, %1243 : vector<1x480xf32>
    %cst_263 = arith.constant 0.000000e+00 : f32
    %cst_264 = arith.constant 6.000000e+00 : f32
    %1245 = vector.broadcast %cst_263 : f32 to vector<1x480xf32>
    %1246 = arith.maximumf %1245, %1244 : vector<1x480xf32>
    %1247 = vector.broadcast %cst_264 : f32 to vector<1x480xf32>
    %1248 = arith.minimumf %1247, %1246 : vector<1x480xf32>
    %1249 = arith.mulf %1242, %1248 : vector<1x480xf32>
    %cst_265 = arith.constant 0.166666672 : f32
    %1250 = vector.broadcast %cst_265 : f32 to vector<1x480xf32>
    %1251 = arith.mulf %1249, %1250 : vector<1x480xf32>
    %c848 = arith.constant 848 : index
    %c0_266 = arith.constant 0 : index
    %1252 = vector.load %arg3[%c848, %c0_266] : memref<1104x512xbf16, #tpu.memory_space<vmem>>, vector<26x480xbf16>
    %1253 = vector.extract_strided_slice %1252 {offsets = [12, 0], sizes = [1, 480], strides = [1, 1]} : vector<26x480xbf16> to vector<1x480xbf16>
    %1254 = arith.extf %1253 : vector<1x480xbf16> to vector<1x480xf32>
    %1255 = arith.mulf %1251, %1254 : vector<1x480xf32>
    %1256 = vector.extract_strided_slice %1252 {offsets = [25, 0], sizes = [1, 480], strides = [1, 1]} : vector<26x480xbf16> to vector<1x480xbf16>
    %1257 = arith.extf %1256 : vector<1x480xbf16> to vector<1x480xf32>
    %1258 = arith.addf %1255, %1257 : vector<1x480xf32>
    %cst_267 = arith.constant 3.000000e+00 : f32
    %1259 = vector.broadcast %cst_267 : f32 to vector<1x480xf32>
    %1260 = arith.addf %1258, %1259 : vector<1x480xf32>
    %cst_268 = arith.constant 0.000000e+00 : f32
    %cst_269 = arith.constant 6.000000e+00 : f32
    %1261 = vector.broadcast %cst_268 : f32 to vector<1x480xf32>
    %1262 = arith.maximumf %1261, %1260 : vector<1x480xf32>
    %1263 = vector.broadcast %cst_269 : f32 to vector<1x480xf32>
    %1264 = arith.minimumf %1263, %1262 : vector<1x480xf32>
    %1265 = arith.mulf %1258, %1264 : vector<1x480xf32>
    %cst_270 = arith.constant 0.166666672 : f32
    %1266 = vector.broadcast %cst_270 : f32 to vector<1x480xf32>
    %1267 = arith.mulf %1265, %1266 : vector<1x480xf32>
    %c5776 = arith.constant 5776 : index
    %c0_271 = arith.constant 0 : index
    %1268 = vector.load %arg2[%c5776, %c0_271] : memref<6768x128xbf16, #tpu.memory_space<vmem>>, vector<481x120xbf16>
    %c880_272 = arith.constant 880 : index
    %c0_273 = arith.constant 0 : index
    %1269 = vector.load %arg3[%c880_272, %c0_273] : memref<1104x512xbf16, #tpu.memory_space<vmem>>, vector<121x480xbf16>
    %cst_274 = arith.constant dense<0.000000e+00> : vector<480xf32>
    %1270 = vector.multi_reduction <add>, %1267, %cst_274 [0] : vector<1x480xf32> to vector<480xf32>
    %1271 = vector.shape_cast %1270 : vector<480xf32> to vector<1x480xf32>
    %cst_275 = arith.constant 1.000000e+00 : f32
    %1272 = vector.broadcast %cst_275 : f32 to vector<1x480xf32>
    %1273 = arith.divf %1271, %1272 : vector<1x480xf32>
    %1274 = arith.truncf %1273 : vector<1x480xf32> to vector<1x480xbf16>
    %1275 = vector.extract_strided_slice %1268 {offsets = [0, 0], sizes = [480, 120], strides = [1, 1]} : vector<481x120xbf16> to vector<480x120xbf16>
    %cst_276 = arith.constant dense<0.000000e+00> : vector<1x120xf32>
    %1276 = tpu.matmul %1274, %1275, %cst_276 {dimension_numbers = #tpu.dot_dimension_numbers<[1], [0], [0], [1], [0, 0, 1, 1], [], []>} : vector<1x480xbf16>, vector<480x120xbf16>, vector<1x120xf32> -> vector<1x120xf32>
    %1277 = vector.extract_strided_slice %1268 {offsets = [480, 0], sizes = [1, 120], strides = [1, 1]} : vector<481x120xbf16> to vector<1x120xbf16>
    %1278 = arith.extf %1277 : vector<1x120xbf16> to vector<1x120xf32>
    %1279 = arith.addf %1276, %1278 : vector<1x120xf32>
    %cst_277 = arith.constant 0.000000e+00 : f32
    %1280 = vector.broadcast %cst_277 : f32 to vector<1x120xf32>
    %1281 = arith.maximumf %1279, %1280 : vector<1x120xf32>
    %1282 = arith.truncf %1281 : vector<1x120xf32> to vector<1x120xbf16>
    %1283 = vector.extract_strided_slice %1269 {offsets = [0, 0], sizes = [120, 480], strides = [1, 1]} : vector<121x480xbf16> to vector<120x480xbf16>
    %cst_278 = arith.constant dense<0.000000e+00> : vector<1x480xf32>
    %1284 = tpu.matmul %1282, %1283, %cst_278 {dimension_numbers = #tpu.dot_dimension_numbers<[1], [0], [0], [1], [0, 0, 1, 1], [], []>} : vector<1x120xbf16>, vector<120x480xbf16>, vector<1x480xf32> -> vector<1x480xf32>
    %1285 = vector.extract_strided_slice %1269 {offsets = [120, 0], sizes = [1, 480], strides = [1, 1]} : vector<121x480xbf16> to vector<1x480xbf16>
    %1286 = arith.extf %1285 : vector<1x480xbf16> to vector<1x480xf32>
    %1287 = arith.addf %1284, %1286 : vector<1x480xf32>
    %cst_279 = arith.constant 3.000000e+00 : f32
    %1288 = vector.broadcast %cst_279 : f32 to vector<1x480xf32>
    %1289 = arith.addf %1287, %1288 : vector<1x480xf32>
    %cst_280 = arith.constant 0.000000e+00 : f32
    %cst_281 = arith.constant 6.000000e+00 : f32
    %1290 = vector.broadcast %cst_280 : f32 to vector<1x480xf32>
    %1291 = arith.maximumf %1290, %1289 : vector<1x480xf32>
    %1292 = vector.broadcast %cst_281 : f32 to vector<1x480xf32>
    %1293 = arith.minimumf %1292, %1291 : vector<1x480xf32>
    %cst_282 = arith.constant 0.166666672 : f32
    %1294 = vector.broadcast %cst_282 : f32 to vector<1x480xf32>
    %1295 = arith.mulf %1293, %1294 : vector<1x480xf32>
    %1296 = arith.mulf %1267, %1295 : vector<1x480xf32>
    %c6272 = arith.constant 6272 : index
    %c0_283 = arith.constant 0 : index
    %1297 = vector.load %arg2[%c6272, %c0_283] : memref<6768x128xbf16, #tpu.memory_space<vmem>>, vector<481x80xbf16>
    %1298 = arith.truncf %1296 : vector<1x480xf32> to vector<1x480xbf16>
    %1299 = vector.extract_strided_slice %1297 {offsets = [0, 0], sizes = [480, 80], strides = [1, 1]} : vector<481x80xbf16> to vector<480x80xbf16>
    %cst_284 = arith.constant dense<0.000000e+00> : vector<1x80xf32>
    %1300 = tpu.matmul %1298, %1299, %cst_284 {dimension_numbers = #tpu.dot_dimension_numbers<[1], [0], [0], [1], [0, 0, 1, 1], [], []>} : vector<1x480xbf16>, vector<480x80xbf16>, vector<1x80xf32> -> vector<1x80xf32>
    %1301 = vector.extract_strided_slice %1297 {offsets = [480, 0], sizes = [1, 80], strides = [1, 1]} : vector<481x80xbf16> to vector<1x80xbf16>
    %1302 = arith.extf %1301 : vector<1x80xbf16> to vector<1x80xf32>
    %1303 = arith.addf %1300, %1302 : vector<1x80xf32>
    %1304 = arith.addf %1303, %1235 : vector<1x80xf32>
    %c1008 = arith.constant 1008 : index
    %c0_285 = arith.constant 0 : index
    %1305 = vector.load %arg3[%c1008, %c0_285] : memref<1104x512xbf16, #tpu.memory_space<vmem>>, vector<81x480xbf16>
    %1306 = arith.truncf %1304 : vector<1x80xf32> to vector<1x80xbf16>
    %1307 = vector.extract_strided_slice %1305 {offsets = [0, 0], sizes = [80, 480], strides = [1, 1]} : vector<81x480xbf16> to vector<80x480xbf16>
    %cst_286 = arith.constant dense<0.000000e+00> : vector<1x480xf32>
    %1308 = tpu.matmul %1306, %1307, %cst_286 {dimension_numbers = #tpu.dot_dimension_numbers<[1], [0], [0], [1], [0, 0, 1, 1], [], []>} : vector<1x80xbf16>, vector<80x480xbf16>, vector<1x480xf32> -> vector<1x480xf32>
    %1309 = vector.extract_strided_slice %1305 {offsets = [80, 0], sizes = [1, 480], strides = [1, 1]} : vector<81x480xbf16> to vector<1x480xbf16>
    %1310 = arith.extf %1309 : vector<1x480xbf16> to vector<1x480xf32>
    %1311 = arith.addf %1308, %1310 : vector<1x480xf32>
    %cst_287 = arith.constant 3.000000e+00 : f32
    %1312 = vector.broadcast %cst_287 : f32 to vector<1x480xf32>
    %1313 = arith.addf %1311, %1312 : vector<1x480xf32>
    %cst_288 = arith.constant 0.000000e+00 : f32
    %cst_289 = arith.constant 6.000000e+00 : f32
    %1314 = vector.broadcast %cst_288 : f32 to vector<1x480xf32>
    %1315 = arith.maximumf %1314, %1313 : vector<1x480xf32>
    %1316 = vector.broadcast %cst_289 : f32 to vector<1x480xf32>
    %1317 = arith.minimumf %1316, %1315 : vector<1x480xf32>
    %1318 = arith.mulf %1311, %1317 : vector<1x480xf32>
    %cst_290 = arith.constant 0.166666672 : f32
    %1319 = vector.broadcast %cst_290 : f32 to vector<1x480xf32>
    %1320 = arith.mulf %1318, %1319 : vector<1x480xf32>
    %c0_291 = arith.constant 0 : index
    %c0_292 = arith.constant 0 : index
    %c0_293 = arith.constant 0 : index
    %1321 = vector.load %arg7[%c0_291, %c0_292, %c0_293] : memref<1x1x480xf32, #tpu.memory_space<vmem>>, vector<1x1x480xf32>
    %1322 = vector.shape_cast %1321 : vector<1x1x480xf32> to vector<1x480xf32>
    %1323 = vector.shape_cast %1320 : vector<1x480xf32> to vector<1x1x480xf32>
    tpu.vector_store %arg7[%c0_291, %c0_292, %c0_293], %1323 {strides = array<i32>} : memref<1x1x480xf32, #tpu.memory_space<vmem>>, vector<1x1x480xf32>,
    return
  }
  func.func @transform_0(%arg0: i32) -> (i32, i32, i32) {
    %c0_i32 = arith.constant 0 : i32
    %c0_i32_0 = arith.constant 0 : i32
    %c0_i32_1 = arith.constant 0 : i32
    return %arg0, %c0_i32, %c0_i32_0 : i32, i32, i32
  }
  func.func @transform_1(%arg0: i32) -> (i32, i32) {
    %c0_i32 = arith.constant 0 : i32
    %c0_i32_0 = arith.constant 0 : i32
    %c0_i32_1 = arith.constant 0 : i32
    return %c0_i32, %c0_i32_0 : i32, i32
  }
  func.func @transform_2(%arg0: i32) -> (i32, i32) {
    %c0_i32 = arith.constant 0 : i32
    %c0_i32_0 = arith.constant 0 : i32
    %c0_i32_1 = arith.constant 0 : i32
    return %c0_i32, %c0_i32_0 : i32, i32
  }
  func.func @transform_3(%arg0: i32) -> (i32, i32, i32) {
    %c0_i32 = arith.constant 0 : i32
    %c0_i32_0 = arith.constant 0 : i32
    %c0_i32_1 = arith.constant 0 : i32
    return %arg0, %c0_i32, %c0_i32_0 : i32, i32, i32
  }
  func.func @transform_4(%arg0: i32) -> (i32, i32, i32) {
    %c0_i32 = arith.constant 0 : i32
    %c0_i32_0 = arith.constant 0 : i32
    %c0_i32_1 = arith.constant 0 : i32
    return %arg0, %c0_i32, %c0_i32_0 : i32, i32, i32
  }
  func.func @transform_5(%arg0: i32) -> (i32, i32, i32) {
    %c0_i32 = arith.constant 0 : i32
    %c0_i32_0 = arith.constant 0 : i32
    %c0_i32_1 = arith.constant 0 : i32
    return %arg0, %c0_i32, %c0_i32_0 : i32, i32, i32
  }
  func.func @transform_6(%arg0: i32) -> (i32, i32, i32) {
    %c0_i32 = arith.constant 0 : i32
    %c0_i32_0 = arith.constant 0 : i32
    %c0_i32_1 = arith.constant 0 : i32
    return %arg0, %c0_i32, %c0_i32_0 : i32, i32, i32
  }
}

</mosaic_0001>

<bundles_post_ra>
// kernel: _lambda_.1
= control target key start
LH: loop header
LB: loop body
LE: loop exit
PB: predicated region body
PF: predicated region fallthrough
CT: control target
= control target key end

     0   :  { %s17051_s0 = inlined_call_operand.vmem [shape: f32[2,64,27], index: 0, kind: input, shape index: {}]   ;;  %s17052_s1 = inlined_call_operand.vmem [shape: bf16[6768,128], index: 1, kind: input, shape index: {}]   ;;  %s17053_s2 = inlined_call_operand.hbm [shape: bf16[1104,512], index: 2, kind: input, shape index: {}]   ;;  %s17054_s3 = inlined_call_operand.hbm [shape: f32[2,16,16], index: 3, kind: output, shape index: {0}]   ;;  %s17055_s4 = inlined_call_operand.hbm [shape: f32[2,4,24], index: 4, kind: output, shape index: {1}]   ;;  %s17056_s5 = inlined_call_operand.hbm [shape: f32[2,1,56], index: 5, kind: output, shape index: {2}]   ;;  %s17057_s6 = inlined_call_operand.hbm [shape: f32[2,1,480], index: 6, kind: output, shape index: {3}]  }
   0x1   :  { %17069 = sst [smem:[#allocation18_spill]] %s17051_s0 }
   0x2   :  { %17070 = sst [smem:[#allocation19_spill]] %s17052_s1 }
   0x3   :  { %12 = vsyncpa [#allocation3], 0 }
   0x4   :  { %13 = vsyncpa [#allocation4], 0 }
   0x5   :  { %15 = vsyncpa [#allocation4 + $0x1], 0 }
   0x6   :  { %16 = vsyncpa [#allocation7], 0 }
   0x7   :  { %18 = vsyncpa [#allocation7 + $0x1], 0 }
   0x8   :  { %19 = vsyncpa [#allocation10], 0 }
   0x9   :  { %21 = vsyncpa [#allocation10 + $0x1], 0  ;;  %s14139_s21 = smov 0   ;;  %s14141_s22 = smov 0  }
   0xa   :  { %s14143_s23 = smov 0   ;;  %s14145_s24 = smov 0  }
   0xb LB: > { %s14160_s25 = sadd.s32 4294967295, %s14087_s24   ;;  %s17065_s26 = sadd.s32 4294967294, %s14087_s24   ;;  %s14087_s24 = sphi %s14145_s24, %s17091_s24   ;;  %s14083_s23 = sphi %s14143_s23, %s17090_s23   ;;  %s14079_s22 = sphi %s14141_s22, %s17089_s22   ;;  %s14075_s21 = sphi %s14139_s21, %s17088_s21  }
   0xc   : > { %s14164_s27 = sadd.s32 1, %s14087_s24   ;;  %s102_s28 = sadd.s32 1, %s14083_s23 }
   0xd   : > { %s99_s29 = ssub.s32 %s14087_s24, %s14164_s27  ;;  %p112_p0 = scmp.ne.s32.totalorder %s14083_s23, %s14079_s22 }
   0xe   : > { %p100_p1 = scmp.eq.s32.totalorder %s99_s29, 0  ;;  %p113_p2 = scmp.eq.s32.totalorder %s14160_s25, 1 }
   0xf   : > { %p118_p3 = scmp.ne.s32.totalorder %s14079_s22, %s14075_s21  ;;  %p119_p4 = scmp.eq.s32.totalorder %s17065_s26, 1 }
  0x10   : > { %s14177_s30 = scalar_select %p100_p1, %s14083_s23, %s102_s28  }
  0x11   : > { %p14179_p5 = por %p113_p2, %p112_p0  ;;  %p14183_p6 = por %p119_p4, %p118_p3 }
  0x12   : > { %p11290_p7 = scmp.ge.s32.totalorder %s14087_s24, 1  ;;  %p204_p8 = scmp.lt.s32.totalorder %s14087_s24, 3 }
  0x13   : > { %s17072_s8 = scalar_select %p14183_p6, 1, 0 }
  0x14   : > { %p13201_p9 = scmp.eq.s32.totalorder %s14160_s25, 0  ;;  %p14190_p10 = pnand %p11290_p7, %p204_p8 }
  0x15   : > { %s14089_s10 = smov [#allocation2]  }
  0x16   : > { %s219_s11 = sshll.u32 %s14089_s10, 4  ;;  %p13184_p11 = pneg %p14190_p10  ;;  %s220_s11 = int_to_ptr.vmem [resolvable:$true] %s219_s11 }
  0x17   : > { %s13922_s12 = scalar_lea.vmem %s220_s11, 35328  ;;  %p13930_p3 = scmp.lt.s32.totalorder %s220_s11, %s220_s11 }
  0x18   : > { %p13185_p12 = pnand %p13201_p9, %p13184_p11  ;;  %p13923_p0 = scmp.ne.s32.totalorder %s220_s11, %s13922_s12 }
  0x19   : > { %p13931_p4 = scmp.lt.s32.totalorder %s13922_s12, %s13922_s12 }
  0x1a   : > { %p13913_p13 = pneg %p13185_p12 }
  0x1b   : > { %p13932_p6 = por %p13931_p4, %p13930_p3 }
  0x1c   : > { %p13925_p1 = pnand %p13923_p0, %p13913_p13 }
  0x1e   : > { %p13926_p2 = pneg %p13925_p1 }
  0x20   : > { %p13933_p7 = pnand %p13932_p6, %p13926_p2 }
  0x22   : > { %13936 = shalt.err (!%p13933_p7)
}
  0x23   : > { %s14090_s13 = smov 256   ;;  %s14091_s14 = smov 16  }
  0x24   : > { %13187 = dma.hbm_to_vmem [thread:$0]  (!%p13185_p12), %s17053_s2, 35328, %s220_s11, [#allocation3], %s14090_s13, %s14090_s13, %s14091_s14  }
  0x25   : > { %243 = sbr.rel (%p14190_p10) target bundleno = 12054 (0x2f16), region = 32 }
  0x2a   : > { %14058 = dma.done.wait (%p13201_p9), [#allocation3], 35328  }
  0x2b   : > { %14060 = vsyncadd (%p13201_p9), [#allocation3], 4294931968  ;;  %vm338_vm0 = vcmask 1044480   ;;  %p287_p6 = scmp.lt.s32.totalorder %s14160_s25, 1  ;;  %vm339_vm1 = vcmask 1045504   ;;  %v14092_v0 = vmov 65535   ;;  %v17058_v22 = vlaneseq }
  0x2c   : > { %v340_v1 = vsel %vm338_vm0, 4294967295, %v14092_v0  ;;  %s17074_s0 = sld [smem:[#allocation18_spill]]  ;;  %vm325_vm2 = vcmask 220160   ;;  %vm474_vm3 = vcmask 1043456   ;;  %vm461_vm4 = vcmask 64512   ;;  %s15100_s14 = sand.u32 1, %s14079_s22  }
  0x2d   : > { %s288_s17 = scalar_select %p287_p6, %s14160_s25, 1  ;;  %v341_v2 = vsel %vm339_vm1, %v340_v1, 0  ;;  %v14233_v23 = vshrl.u32 %v17058_v22, 7  ;;  %vm809_vm5 = vcmask 523264   ;;  %vm14096_vm6 = vmmov 0  }
  0x2e   : > { %s17075_s1 = sld [smem:[#allocation19_spill]]  ;;  %vm2235_vm7 = vcmask 261120   ;;  %vm2361_vm8 = vcmask 130048   ;;  %vm2799_vm9 = vcmask 326656   ;;  %s11295_s15 = sshll.u32 %s15100_s14, 4  ;;  %vm3345_vm10 = vcmask 322560  }
  0x2f   : > { %s12068_s18 = sshll.u32 %s288_s17, 6  ;;  %v14236_v24 = vsub.s32 3, %v14233_v23  ;;  %s15105_s16 = scalar_lea.vmem [#allocation5], %s11295_s15  ;;  %vm3429_vm11 = vcmask 80896   ;;  %vm3577_vm12 = vcmask 195584   ;;  %vm3698_vm13 = vcmask 1041408  }
  0x30   : > { %vm3676_vm14 = vcmask 31744   ;;  %vm3997_vm15 = vcmask 519168   ;;  %s17066_s19 = sshll.u32 %s15100_s14, 2  ;;  %s17067_s11 = scalar_lea.vmem [#allocation8], %s15100_s14 }
  0x31   : > { %17076 = vst [vmem:[#allocation15_spill] sm:$0xff] %v14236_v24  ;;  %s15595_s20 = scalar_lea.vmem [#allocation6], %s17066_s19  ;;  %s11063_s29 = sand.u32 1, %s14160_s25  }
  0x32   : > { %s291_s28 = scalar_lea.vmem %s17074_s0, %s12068_s18  ;;  %s17068_s9 = sshll.u32 %s14160_s25, 6 }
  0x33   : > { %v293_v6 = vld [vmem:[%s291_s28] sm:$0xff]  ;;  %v294_v7 = vld [vmem:[%s291_s28 + $0x8] sm:$0xff]  ;;  %v295_v11 = vld [vmem:[%s291_s28 + $0x10] sm:$0xff]  ;;  %s16933_s12 = scalar_lea.hbm %s17055_s4, %s17068_s9  ;;  %s11102_s13 = sshll.u32 %s15595_s20, 4  ;;  %s11103_s13 = int_to_ptr.vmem [resolvable:$true] %s11102_s13 }
  0x34   : > { %v307_v3 = vld [vmem:[%s17075_s1 + $0x8] sm:$0xf]  ;;  %v308_v4 = vld [vmem:[%s17075_s1 + $0xc] sm:$0x3]  ;;  %v13248_v9 = vld [vmem:[%s17075_s1] sm:$0xff]   ;;  %v301_v10 = vpack.c.bf16 %v294_v7, %v293_v6  ;;  %s12069_s15 = sshll.u32 %s14160_s25, 8 }
  0x35   : > { %v11301_v5 = vcombine.low %v307_v3, %v308_v4  ;;  %v296_v12 = vld [vmem:[%s291_s28 + $0x18] sm:$0xff]  ;;  %v297_v13 = vld [vmem:[%s291_s28 + $0x20] sm:$0xff]  ;;  %v298_v14 = vld [vmem:[%s291_s28 + $0x28] sm:$0xff]  ;;  %s16937_s17 = scalar_lea.sflag [#allocation7], %s11063_s29  ;;  %s13937_s18 = scalar_lea.vmem %s11103_s13, 64 }
  0x36   : > { %12521 = vmatprep.mubr.msk.bf16.mxu0 %vm325_vm2, %v301_v10  ;;  %v302_v15 = vpack.c.bf16 %v296_v12, %v295_v11  ;;  %v303_v16 = vpack.c.bf16 %v298_v14, %v297_v13  ;;  %v299_v17 = vld [vmem:[%s291_s28 + $0x30] sm:$0xff]  ;;  %v300_v18 = vld [vmem:[%s291_s28 + $0x38] sm:$0xff]  ;;  %v13910_v25 = vld [vmem:[%s17075_s1 + $0xc] sm:$0x3]  ;;  %p13938_p8 = scmp.ne.s32.totalorder %s11103_s13, %s13937_s18  ;;  %s14098_s28 = smov [#allocation6]  }
  0x37   : > { %v343_v8 = vand.u32 %v11301_v5, %v341_v2  ;;  %v304_v19 = vpack.c.bf16 %v300_v18, %v299_v17  ;;  %v450_v20 = vld [vmem:[%s17075_s1 + $0x10] sm:$0xf]  ;;  %v309_v26 = vunpack.c.l.bf16 %v13910_v25  ;;  %s13941_s19 = sshll.u32 %s14098_s28, 4  ;;  %s13942_s19 = int_to_ptr.vmem [resolvable:$false] %s13941_s19 }
  0x38   : > { %13169 = vmatprep.subr.msk.bf16.mxu1 %vm474_vm3, %v450_v20  ;;  %v476_v21 = vsel %vm474_vm3, %v450_v20, 0  ;;  %p13939_p9 = pnand %p13938_p8, %p14179_p5  ;;  %p13944_p11 = scmp.lt.s32.totalorder %s11103_s13, %s13942_s19 }
  0x39   : > { %12517 = vmatprep.subr.bf16.mxu0 %v343_v8  ;;  %12530 = vmatpush3.bf16.msra.mxu1 %v476_v21  ;;  %v313_v27 = vrot.slane %v309_v26, %v14236_v24 }
  0x3a   : > { %12518 = vmatpush3.bf16.msra.mxu0 %v343_v8  ;;  %p13940_p10 = pneg %p13939_p9 }
  0x3b   : > { %12519 = vmatprep.subr.bf16.mxu0 %v13248_v9 }
  0x3e   : > { %12520 = vmatpush3.bf16.msra.mxu0 %v13248_v9 }
  0x41   : > { %12522 = vmatmul.mubr.msk.bf16.vlgmr.msra.gmra.mxu0 %vm325_vm2, %v302_v15 }
  0x42   : > { %12525 = vmatprep.mubr.msk.bf16.mxu0 %vm325_vm2, %v303_v16 }
  0x49   : > { %12526 = vmatmul.mubr.msk.bf16.gmra.mxu0 %vm325_vm2, %v304_v19  ;;  %vm5104_vm2 = vcmask 982016  }
 0x101   : > { %v12523_v28 = vpop.f32.mrf.mxu0 }
 0x102   : > { %v388_v29 = vadd.f32 %v12523_v28, %v313_v27 }
 0x103   : > { %v379_v30 = vpop.f32.mrf.mxu0 }
 0x104   : > { %v412_v31 = vadd.f32 3.0, %v388_v29  ;;  %v380_v32 = vadd.f32 %v379_v30, %v313_v27 }
 0x105   : > { %v12524_v33 = vpop.f32.mrf.mxu0 }
 0x106   : > { %v420_v34 = vmax.f32 %v412_v31, 0.0  ;;  %v410_v35 = vadd.f32 3.0, %v380_v32  ;;  %v391_v36 = vadd.f32 %v12524_v33, %v313_v27  ;;  %v14278_v33 = vsub.s32 0, %v14233_v23 }
 0x107   : > { %v382_v37 = vpop.f32.mrf.mxu0 }
 0x108   : > { %v428_v38 = vmin.f32 %v420_v34, 6.0  ;;  %v418_v39 = vmax.f32 %v410_v35, 0.0  ;;  %v413_v40 = vadd.f32 3.0, %v391_v36  ;;  %v383_v41 = vadd.f32 %v382_v37, %v313_v27 }
 0x109   : > { %v12527_v42 = vpop.f32.mrf.mxu0 }
 0x10a   : > { %v436_v43 = vmul.f32 %v428_v38, %v388_v29  ;;  %v426_v44 = vmin.f32 %v418_v39, 6.0  ;;  %v421_v45 = vmax.f32 %v413_v40, 0.0  ;;  %v411_v46 = vadd.f32 3.0, %v383_v41  ;;  %v451_v29 = vld [vmem:[%s17075_s1 + $0x14] sm:$0x1] }
 0x10b   : > { %v404_v47 = vadd.f32 %v12527_v42, %v313_v27  ;;  %v395_v48 = vpop.f32.mrf.mxu0 }
 0x10c   : > { %v14242_v49 = vmul.f32 0.16666667, %v436_v43  ;;  %v434_v50 = vmul.f32 %v426_v44, %v380_v32  ;;  %v429_v51 = vmin.f32 %v421_v45, 6.0  ;;  %v419_v52 = vmax.f32 %v411_v46, 0.0 }
 0x10d   : > { %v416_v53 = vadd.f32 3.0, %v404_v47  ;;  %v396_v54 = vadd.f32 %v395_v48, %v313_v27  ;;  %v12528_v55 = vpop.f32.mrf.mxu0  ;;  %v456_v32 = vunpack.c.l.bf16 %v451_v29  ;;  %v13272_v29 = vld [vmem:[%s17075_s1 + $0xd8] sm:$0xff]  }
 0x10e   : > { %v14244_v56 = vmul.f32 0.16666667, %v434_v50  ;;  %v437_v57 = vmul.f32 %v429_v51, %v391_v36  ;;  %v427_v58 = vmin.f32 %v419_v52, 6.0  ;;  %v407_v59 = vadd.f32 %v12528_v55, %v313_v27 }
 0x10f   : > { %v424_v60 = vmax.f32 %v416_v53, 0.0  ;;  %v414_v61 = vadd.f32 3.0, %v396_v54  ;;  %v398_v62 = vpop.f32.mrf.mxu0  ;;  %v460_v36 = vrot.slane %v456_v32, %v14278_v33  ;;  %v13275_v32 = vld [vmem:[%s17075_s1 + $0xf0] sm:$0xff]  }
 0x110   : > { %v14246_v63 = vmul.f32 0.16666667, %v437_v57  ;;  %v435_v0 = vmul.f32 %v427_v58, %v383_v41  ;;  %v417_v1 = vadd.f32 3.0, %v407_v59  ;;  %v399_v2 = vadd.f32 %v398_v62, %v313_v27  ;;  %v13249_v27 = vld [vmem:[%s17075_s1 + $0x20] sm:$0xff]   ;;  %v13250_v62 = vld [vmem:[%s17075_s1 + $0x28] sm:$0xff]  }
 0x111   : > { %v432_v3 = vmin.f32 %v424_v60, 6.0  ;;  %v422_v4 = vmax.f32 %v414_v61, 0.0 }
 0x112   : > { %v425_v5 = vmax.f32 %v417_v1, 0.0  ;;  %v415_v6 = vadd.f32 3.0, %v399_v2  ;;  %v14248_v7 = vmul.f32 0.16666667, %v435_v0  ;;  %v453_v13 = vpack.c.bf16 %v14246_v63, %v14242_v49  ;;  %v13251_v0 = vld [vmem:[%s17075_s1 + $0x30] sm:$0xff]   ;;  %v13252_v1 = vld [vmem:[%s17075_s1 + $0x38] sm:$0xff]  }
 0x113   : > { %v440_v8 = vmul.f32 %v432_v3, %v404_v47  ;;  %v430_v9 = vmin.f32 %v422_v4, 6.0  ;;  %v13254_v3 = vld [vmem:[%s17075_s1 + $0x48] sm:$0xff]   ;;  %v13255_v4 = vld [vmem:[%s17075_s1 + $0x50] sm:$0xff]  }
 0x114   : > { %v433_v10 = vmin.f32 %v425_v5, 6.0  ;;  %v423_v11 = vmax.f32 %v415_v6, 0.0  ;;  %v452_v12 = vpack.c.bf16 %v14248_v7, %v14244_v56  ;;  %v13256_v5 = vld [vmem:[%s17075_s1 + $0x58] sm:$0xff]   ;;  %v13257_v6 = vld [vmem:[%s17075_s1 + $0x60] sm:$0xff]  }
 0x115   : > { %v14254_v14 = vmul.f32 0.16666667, %v440_v8  ;;  %v438_v15 = vmul.f32 %v430_v9, %v396_v54  ;;  %v13258_v8 = vld [vmem:[%s17075_s1 + $0x68] sm:$0xff]   ;;  %v13259_v9 = vld [vmem:[%s17075_s1 + $0x70] sm:$0xff]  }
 0x116   : > { %v441_v16 = vmul.f32 %v433_v10, %v407_v59  ;;  %v431_v17 = vmin.f32 %v423_v11, 6.0  ;;  %12531 = vmatprep.mubr.msk.bf16.mxu1 %vm461_vm4, %v452_v12  ;;  %v13260_v10 = vld [vmem:[%s17075_s1 + $0x78] sm:$0xff]   ;;  %v13261_v11 = vld [vmem:[%s17075_s1 + $0x80] sm:$0xff]   ;;  %v13262_v12 = vld [vmem:[%s17075_s1 + $0x88] sm:$0xff]  }
 0x117   : > { %v14257_v18 = vmul.f32 0.16666667, %v438_v15  ;;  %12532 = vmatmul.mubr.msk.bf16.vlgmr.msra.gmra.mxu1 %vm461_vm4, %v453_v13  ;;  %v13263_v13 = vld [vmem:[%s17075_s1 + $0x90] sm:$0xff]   ;;  %v13264_v15 = vld [vmem:[%s17075_s1 + $0x98] sm:$0xff]  }
 0x118   : > { %v14260_v19 = vmul.f32 0.16666667, %v441_v16  ;;  %v439_v20 = vmul.f32 %v431_v17, %v399_v2  ;;  %v13253_v2 = vld [vmem:[%s17075_s1 + $0x40] sm:$0xff]   ;;  %v13266_v17 = vld [vmem:[%s17075_s1 + $0xa8] sm:$0xff]  }
 0x119   : > { %v13265_v16 = vld [vmem:[%s17075_s1 + $0xa0] sm:$0xff]  }
 0x11a   : > { %v14262_v21 = vmul.f32 0.16666667, %v439_v20  ;;  %v455_v26 = vpack.c.bf16 %v14260_v19, %v14254_v14  ;;  %v13267_v20 = vld [vmem:[%s17075_s1 + $0xb0] sm:$0xff]  }
 0x11c   : > { %v454_v25 = vpack.c.bf16 %v14262_v21, %v14257_v18 }
 0x11e   : > { %12535 = vmatprep.mubr.msk.bf16.mxu1 %vm461_vm4, %v454_v25  ;;  %v13268_v25 = vld [vmem:[%s17075_s1 + $0xb8] sm:$0xff]  }
 0x11f   : > { %12536 = vmatmul.mubr.msk.bf16.gmra.mxu1 %vm461_vm4, %v455_v26  ;;  %v13269_v26 = vld [vmem:[%s17075_s1 + $0xc0] sm:$0xff]  }
 0x120   : > { %12547 = vmatprep.mubr.msk.bf16.mxu1 %vm809_vm5, %v13249_v27  ;;  %v13270_v27 = vld [vmem:[%s17075_s1 + $0xc8] sm:$0xff]  }
 0x1d7   : > { %v12533_v28 = vpop.f32.mrf.mxu1 }
 0x1d8   : > { %v521_v47 = vadd.f32 %v12533_v28, %v460_v36  ;;  %v13271_v28 = vld [vmem:[%s17075_s1 + $0xd0] sm:$0xff]  }
 0x1d9   : > { %v512_v30 = vpop.f32.mrf.mxu1 }
 0x1da   : > { %v545_v55 = vmax.f32 %v521_v47, 0.0  ;;  %v513_v57 = vadd.f32 %v512_v30, %v460_v36  ;;  %v13273_v30 = vld [vmem:[%s17075_s1 + $0xe0] sm:$0xff]   ;;  %v14094_v47 = vmov 286326784  }
 0x1db   : > { %v12534_v31 = vpop.f32.mrf.mxu1 }
 0x1dc   : > { %v524_v43 = vadd.f32 %v12534_v31, %v460_v36  ;;  %v543_v60 = vmax.f32 %v513_v57, 0.0  ;;  %v13274_v31 = vld [vmem:[%s17075_s1 + $0xe8] sm:$0xff]  }
 0x1dd   : > { %v515_v34 = vpop.f32.mrf.mxu1 }
 0x1de   : > { %v546_v52 = vmax.f32 %v524_v43, 0.0  ;;  %v516_v53 = vadd.f32 %v515_v34, %v460_v36  ;;  %v13276_v34 = vld [vmem:[%s17075_s1 + $0xf8] sm:$0xff]   ;;  %v14093_v43 = vmov 1966171168  }
 0x1df   : > { %v12537_v35 = vpop.f32.mrf.mxu1 }
 0x1e0   : > { %v537_v38 = vadd.f32 %v12537_v35, %v460_v36  ;;  %v626_v58 = vpack.c.bf16 %v546_v52, %v545_v55  ;;  %v544_v59 = vmax.f32 %v516_v53, 0.0  ;;  %v13277_v35 = vld [vmem:[%s17075_s1 + $0x100] sm:$0xff]  }
 0x1e1   : > { %v528_v37 = vpop.f32.mrf.mxu1 }
 0x1e2   : > { %v529_v40 = vadd.f32 %v528_v37, %v460_v36  ;;  %v549_v44 = vmax.f32 %v537_v38, 0.0  ;;  %v625_v61 = vpack.c.bf16 %v544_v59, %v543_v60  ;;  %v13279_v37 = vld [vmem:[%s17075_s1 + $0x110] sm:$0xff]   ;;  %v13280_v38 = vld [vmem:[%s17075_s1 + $0x118] sm:$0xff]  }
 0x1e3   : > { %v12538_v39 = vpop.f32.mrf.mxu1 }
 0x1e4   : > { %v540_v41 = vadd.f32 %v12538_v39, %v460_v36  ;;  %v547_v48 = vmax.f32 %v529_v40, 0.0  ;;  %v13281_v39 = vld [vmem:[%s17075_s1 + $0x120] sm:$0xff]   ;;  %v13282_v40 = vld [vmem:[%s17075_s1 + $0x128] sm:$0xff]  }
 0x1e5   : > { %v531_v42 = vpop.f32.mrf.mxu1 }
 0x1e6   : > { %v550_v45 = vmax.f32 %v540_v41, 0.0  ;;  %v532_v46 = vadd.f32 %v531_v42, %v460_v36  ;;  %v13278_v36 = vld [vmem:[%s17075_s1 + $0x108] sm:$0xff]   ;;  %v13283_v41 = vld [vmem:[%s17075_s1 + $0x130] sm:$0xff]   ;;  %v13284_v42 = vld [vmem:[%s17075_s1 + $0x138] sm:$0xff]  }
 0x1e8   : > { %v628_v50 = vpack.c.bf16 %v550_v45, %v549_v44  ;;  %v548_v51 = vmax.f32 %v532_v46, 0.0  ;;  %v1250_v44 = vunpack.c.l.s4 %v14093_v43 }
 0x1ea   : > { %12539 = vmatprep.subr.bf16.mxu1 %v628_v50  ;;  %v627_v54 = vpack.c.bf16 %v548_v51, %v547_v48  ;;  %v1251_v45 = vunpack.c.0.s8 %v1250_v44  ;;  %v1298_v48 = vunpack.c.l.s4 %v14094_v47 }
 0x1eb   : > { %12540 = vmatpush3.bf16.msra.mxu1 %v628_v50  ;;  %v11382_v50 = vld.sshfl [vmem:[%s17075_s1 + $0x18] sm:$0x33 pattern:$0x75316420] }
 0x1ec   : > { %12541 = vmatprep.subr.bf16.mxu1 %v627_v54  ;;  %v14422_v46 = vsub.s32 %v1251_v45, %v14233_v23  ;;  %v1299_v52 = vunpack.c.0.s8 %v1298_v48 }
 0x1ee   : > { %17077 = vst [vmem:[#allocation16_spill] sm:$0xff] %v14422_v46  ;;  %v14428_v51 = vrot.slane %v11382_v50, %v14422_v46  ;;  %v14434_v55 = vsub.s32 %v1299_v52, %v14233_v23 }
 0x1ef   : > { %12542 = vmatpush3.bf16.msra.mxu1 %v627_v54 }
 0x1f0   : > { %12543 = vmatprep.subr.bf16.mxu1 %v626_v58  ;;  %v1280_v53 = vunpack.i.h.s16 %v14428_v51  ;;  %v11383_v54 = vpack.i.b16 %v14428_v51, %v14428_v51  ;;  %17078 = vst [vmem:[#allocation17_spill] sm:$0xff] %v14434_v55 }
 0x1f2   : > { %v1303_v60 = vrot.slane %v11383_v54, %v14434_v55 }
 0x1f3   : > { %12544 = vmatpush3.bf16.msra.mxu1 %v626_v58  ;;  %v1289_v58 = vpack.i.b16 %v1280_v53, %v1280_v53 }
 0x1f4   : > { %12545 = vmatprep.subr.bf16.mxu1 %v625_v61 }
 0x1f7   : > { %12546 = vmatpush3.bf16.msra.mxu1 %v625_v61 }
 0x1fa   : > { %12548 = vmatmul.mubr.msk.bf16.vlgmr.msra.gmra.mxu1 %vm809_vm5, %v13250_v62  ;;  %v1310_v62 = vrot.slane %v1289_v58, %v14434_v55 }
 0x1fb   : > { %12551 = vmatprep.mubr.msk.bf16.mxu1 %vm809_vm5, %v13251_v0 }
 0x202   : > { %12552 = vmatmul.mubr.msk.bf16.gmra.mxu1 %vm809_vm5, %v13252_v1  ;;  %v1369_v1 = vunpack.c.l.bf16 %v1303_v60 }
 0x203   : > { %12555 = vmatprep.mubr.msk.bf16.mxu1 %vm809_vm5, %v13253_v2 }
 0x20a   : > { %12556 = vmatmul.mubr.msk.bf16.gmra.mxu1 %vm809_vm5, %v13254_v3  ;;  %v1248_v3 = vcombine.high %v11382_v50, %v11382_v50 }
 0x20b   : > { %12559 = vmatprep.mubr.msk.bf16.mxu1 %vm809_vm5, %v13255_v4  ;;  %v1370_v4 = vunpack.c.l.bf16 %v1310_v62 }
 0x212   : > { %12560 = vmatmul.mubr.msk.bf16.gmra.mxu1 %vm809_vm5, %v13256_v5 }
 0x213   : > { %12563 = vmatprep.mubr.msk.bf16.mxu1 %vm809_vm5, %v13257_v6  ;;  %v14441_v6 = vrot.slane %v1369_v1, %v14278_v33 }
 0x21a   : > { %12564 = vmatmul.mubr.msk.bf16.gmra.mxu1 %vm809_vm5, %v13258_v8 }
 0x21b   : > { %12567 = vmatprep.mubr.msk.bf16.mxu1 %vm809_vm5, %v13259_v9  ;;  %v14444_v9 = vrot.slane %v1248_v3, %v14422_v46 }
 0x222   : > { %12568 = vmatmul.mubr.msk.bf16.gmra.mxu1 %vm809_vm5, %v13260_v10  ;;  %v14447_v10 = vrot.slane %v1370_v4, %v14278_v33 }
 0x223   : > { %12571 = vmatprep.mubr.msk.bf16.mxu1 %vm809_vm5, %v13261_v11 }
 0x22a   : > { %12572 = vmatmul.mubr.msk.bf16.gmra.mxu1 %vm809_vm5, %v13262_v12  ;;  %v1643_v12 = vld [vmem:[%s17075_s1 + $0x140] sm:$0xf] }
 0x22b   : > { %12575 = vmatprep.mubr.msk.bf16.mxu1 %vm809_vm5, %v13263_v13  ;;  %13170 = vmatprep.subr.msk.bf16.mxu0 %vm474_vm3, %v1643_v12 }
 0x232   : > { %12576 = vmatmul.mubr.msk.bf16.gmra.mxu1 %vm809_vm5, %v13264_v15 }
 0x233   : > { %12579 = vmatprep.mubr.msk.bf16.mxu1 %vm809_vm5, %v13265_v16  ;;  %v11384_v16 = vpack.i.b16 %v14444_v9, %v14444_v9 }
 0x23a   : > { %12580 = vmatmul.mubr.msk.bf16.gmra.mxu1 %vm809_vm5, %v13266_v17  ;;  %v1667_v17 = vsel %vm474_vm3, %v1643_v12, 0 }
 0x23b   : > { %12583 = vmatprep.mubr.msk.bf16.mxu1 %vm809_vm5, %v13267_v20  ;;  %12620 = vmatpush3.bf16.msra.mxu0 %v1667_v17 }
 0x242   : > { %12584 = vmatmul.mubr.msk.bf16.gmra.mxu1 %vm809_vm5, %v13268_v25 }
 0x243   : > { %12587 = vmatprep.mubr.msk.bf16.mxu1 %vm809_vm5, %v13269_v26 }
 0x24a   : > { %12588 = vmatmul.mubr.msk.bf16.gmra.mxu1 %vm809_vm5, %v13270_v27 }
 0x24b   : > { %12591 = vmatprep.mubr.msk.bf16.mxu1 %vm809_vm5, %v13271_v28 }
 0x252   : > { %12592 = vmatmul.mubr.msk.bf16.gmra.mxu1 %vm809_vm5, %v13272_v29 }
 0x253   : > { %12595 = vmatprep.mubr.msk.bf16.mxu1 %vm809_vm5, %v13273_v30 }
 0x25a   : > { %12596 = vmatmul.mubr.msk.bf16.gmra.mxu1 %vm809_vm5, %v13274_v31 }
 0x25b   : > { %12599 = vmatprep.mubr.msk.bf16.mxu1 %vm809_vm5, %v13275_v32 }
 0x262   : > { %12600 = vmatmul.mubr.msk.bf16.gmra.mxu1 %vm809_vm5, %v13276_v34  ;;  %v1317_v34 = vrot.slane %v11384_v16, %v14434_v55 }
 0x263   : > { %12603 = vmatprep.mubr.msk.bf16.mxu1 %vm809_vm5, %v13277_v35 }
 0x264   : > { %v1371_v45 = vunpack.c.l.bf16 %v1317_v34 }
 0x266   : > { %v14481_v60 = vrot.slane %v1371_v45, %v14278_v33 }
 0x26a   : > { %12604 = vmatmul.mubr.msk.bf16.gmra.mxu1 %vm809_vm5, %v13278_v36 }
 0x26b   : > { %12607 = vmatprep.mubr.msk.bf16.mxu1 %vm809_vm5, %v13279_v37 }
 0x272   : > { %12608 = vmatmul.mubr.msk.bf16.gmra.mxu1 %vm809_vm5, %v13280_v38 }
 0x273   : > { %12611 = vmatprep.mubr.msk.bf16.mxu1 %vm809_vm5, %v13281_v39 }
 0x27a   : > { %12612 = vmatmul.mubr.msk.bf16.gmra.mxu1 %vm809_vm5, %v13282_v40 }
 0x27b   : > { %12615 = vmatprep.mubr.msk.bf16.mxu1 %vm809_vm5, %v13283_v41 }
 0x282   : > { %12616 = vmatmul.mubr.msk.bf16.gmra.mxu1 %vm809_vm5, %v13284_v42 }
 0x2ba   : > { %v12549_v57 = vpop.f32.mrf.mxu1 }
 0x2bb   : > { %v1416_v13 = vmul.f32 %v12549_v57, %v14441_v6 }
 0x2bc   : > { %v952_v59 = vpop.f32.mrf.mxu1 }
 0x2bd   : > { %v1414_v20 = vmul.f32 %v14441_v6, %v952_v59  ;;  %v1520_v27 = vsel %vm461_vm4, %v1416_v13, 0.0 }
 0x2be   : > { %v12550_v61 = vpop.f32.mrf.mxu1 }
 0x2bf   : > { %v1417_v28 = vmul.f32 %v12550_v61, %v14441_v6  ;;  %v1486_v35 = vsel %vm461_vm4, %v1414_v20, 0.0 }
 0x2c0   : > { %v14438_v0 = vpop.f32.mrf.mxu1 }
 0x2c1   : > { %v1537_v40 = vsel %vm461_vm4, %v1417_v28, 0.0 }
 0x2c2   : > { %v12553_v2 = vpop.f32.mrf.mxu1 }
 0x2c3   : > { %v1420_v41 = vmul.f32 %v12553_v2, %v14441_v6  ;;  %v1282_v2 = vunpack.i.h.s16 %v14444_v9 }
 0x2c4   : > { %v968_v5 = vpop.f32.mrf.mxu1 }
 0x2c5   : > { %v1418_v47 = vmul.f32 %v14441_v6, %v968_v5  ;;  %v1588_v52 = vsel %vm461_vm4, %v1420_v41, 0.0  ;;  %v1291_v16 = vpack.i.b16 %v1282_v2, %v1282_v2 }
 0x2c6   : > { %v12554_v8 = vpop.f32.mrf.mxu1 }
 0x2c7   : > { %v1421_v53 = vmul.f32 %v12554_v8, %v14441_v6  ;;  %v1554_v61 = vsel %vm461_vm4, %v1418_v47, 0.0 }
 0x2c8   : > { %v14449_v11 = vpop.f32.mrf.mxu1 }
 0x2c9   : > { %v1605_v5 = vsel %vm461_vm4, %v1421_v53, 0.0 }
 0x2ca   : > { %v12557_v15 = vpop.f32.mrf.mxu1 }
 0x2cb   : > { %v1424_v25 = vmul.f32 %v12557_v15, %v14447_v10 }
 0x2cc   : > { %v984_v26 = vpop.f32.mrf.mxu1 }
 0x2cd   : > { %v1521_v29 = vsel %vm461_vm4, %v1424_v25, 0.0  ;;  %v1422_v30 = vmul.f32 %v14447_v10, %v984_v26 }
 0x2ce   : > { %v1522_v31 = vadd.f32 %v1521_v29, %v1520_v27  ;;  %v12558_v32 = vpop.f32.mrf.mxu1 }
 0x2cf   : > { %v1487_v36 = vsel %vm461_vm4, %v1422_v30, 0.0  ;;  %v1425_v37 = vmul.f32 %v12558_v32, %v14447_v10  ;;  %v1324_v30 = vrot.slane %v1291_v16, %v14434_v55 }
 0x2d0   : > { %v1488_v38 = vadd.f32 %v1487_v36, %v1486_v35  ;;  %v14469_v39 = vpop.f32.mrf.mxu1 }
 0x2d1   : > { %v1538_v42 = vsel %vm461_vm4, %v1425_v37, 0.0  ;;  %v1372_v41 = vunpack.c.l.bf16 %v1324_v30 }
 0x2d2   : > { %v1539_v43 = vadd.f32 %v1538_v42, %v1537_v40  ;;  %v12561_v44 = vpop.f32.mrf.mxu1 }
 0x2d3   : > { %v1428_v48 = vmul.f32 %v12561_v44, %v14447_v10 }
 0x2d4   : > { %v1000_v50 = vpop.f32.mrf.mxu1 }
 0x2d5   : > { %v1589_v54 = vsel %vm461_vm4, %v1428_v48, 0.0  ;;  %v1426_v57 = vmul.f32 %v14447_v10, %v1000_v50  ;;  %v14506_v50 = vrot.slane %v1372_v41, %v14278_v33 }
 0x2d6   : > { %v1590_v58 = vadd.f32 %v1589_v54, %v1588_v52  ;;  %v12562_v59 = vpop.f32.mrf.mxu1 }
 0x2d7   : > { %v1555_v62 = vsel %vm461_vm4, %v1426_v57, 0.0  ;;  %v1429_v1 = vmul.f32 %v12562_v59, %v14447_v10 }
 0x2d8   : > { %v1556_v3 = vadd.f32 %v1555_v62, %v1554_v61  ;;  %v14487_v4 = vpop.f32.mrf.mxu1 }
 0x2d9   : > { %v1606_v8 = vsel %vm461_vm4, %v1429_v1, 0.0 }
 0x2da   : > { %v1607_v12 = vadd.f32 %v1606_v8, %v1605_v5  ;;  %v12565_v13 = vpop.f32.mrf.mxu1 }
 0x2db   : > { %v1432_v15 = vmul.f32 %v12565_v13, %v14481_v60 }
 0x2dc   : > { %v1016_v17 = vpop.f32.mrf.mxu1 }
 0x2dd   : > { %v1523_v20 = vsel %vm461_vm4, %v1432_v15, 0.0  ;;  %v1430_v25 = vmul.f32 %v14481_v60, %v1016_v17 }
 0x2de   : > { %v1524_v26 = vadd.f32 %v1523_v20, %v1522_v31  ;;  %v12566_v27 = vpop.f32.mrf.mxu1 }
 0x2df   : > { %v1489_v28 = vsel %vm461_vm4, %v1430_v25, 0.0  ;;  %v1433_v29 = vmul.f32 %v12566_v27, %v14481_v60 }
 0x2e0   : > { %v1490_v32 = vadd.f32 %v1489_v28, %v1488_v38  ;;  %v14497_v34 = vpop.f32.mrf.mxu1 }
 0x2e1   : > { %v1540_v35 = vsel %vm461_vm4, %v1433_v29, 0.0 }
 0x2e2   : > { %v1541_v36 = vadd.f32 %v1540_v35, %v1539_v43  ;;  %v12569_v37 = vpop.f32.mrf.mxu1 }
 0x2e3   : > { %v1436_v40 = vmul.f32 %v12569_v37, %v14481_v60 }
 0x2e4   : > { %v1032_v42 = vpop.f32.mrf.mxu1 }
 0x2e5   : > { %v1591_v31 = vsel %vm461_vm4, %v1436_v40, 0.0  ;;  %v1434_v44 = vmul.f32 %v14481_v60, %v1032_v42 }
 0x2e6   : > { %v1592_v45 = vadd.f32 %v1591_v31, %v1590_v58  ;;  %v12570_v47 = vpop.f32.mrf.mxu1 }
 0x2e7   : > { %v1557_v48 = vsel %vm461_vm4, %v1434_v44, 0.0  ;;  %v1437_v38 = vmul.f32 %v12570_v47, %v14481_v60 }
 0x2e8   : > { %v1558_v52 = vadd.f32 %v1557_v48, %v1556_v3  ;;  %v14508_v43 = vpop.f32.mrf.mxu1 }
 0x2e9   : > { %v1608_v53 = vsel %vm461_vm4, %v1437_v38, 0.0 }
 0x2ea   : > { %v1609_v54 = vadd.f32 %v1608_v53, %v1607_v12  ;;  %v12573_v57 = vpop.f32.mrf.mxu1 }
 0x2eb   : > { %v1440_v59 = vmul.f32 %v12573_v57, %v14506_v50  ;;  %v1263_v57 = vcombine.high %v14428_v51, %v14428_v51 }
 0x2ec   : > { %v1048_v61 = vpop.f32.mrf.mxu1 }
 0x2ed   : > { %v1525_v58 = vsel %vm461_vm4, %v1440_v59, 0.0  ;;  %v1438_v62 = vmul.f32 %v14506_v50, %v1048_v61  ;;  %v14570_v61 = vld [vmem:[%s17075_s1 + $0x1c] sm:$0x1] }
 0x2ee   : > { %v14514_v1 = vadd.f32 %v1525_v58, %v1524_v26  ;;  %v12574_v2 = vpop.f32.mrf.mxu1  ;;  %v1284_v58 = vunpack.i.h.s16 %v1263_v57 }
 0x2ef   : > { %v1491_v5 = vsel %vm461_vm4, %v1438_v62, 0.0  ;;  %v1441_v3 = vmul.f32 %v12574_v2, %v14506_v50  ;;  %v1271_v2 = vrot.slane %v14570_v61, %v14422_v46 }
 0x2f0   : > { %v14518_v8 = vadd.f32 %v1491_v5, %v1490_v32  ;;  %v14520_v13 = vpop.f32.mrf.mxu1  ;;  %v1293_v51 = vpack.i.b16 %v1284_v58, %v1284_v58 }
 0x2f1   : > { %v1542_v12 = vsel %vm461_vm4, %v1441_v3, 0.0  ;;  %v11385_v3 = vpack.i.b16 %v1263_v57, %v1263_v57 }
 0x2f2   : > { %v14523_v15 = vadd.f32 %v1542_v12, %v1541_v36  ;;  %v12577_v16 = vpop.f32.mrf.mxu1  ;;  %v1264_v12 = vcombine.high %v14444_v9, %v14444_v9  ;;  %v1423_v9 = vmul.f32 %v14447_v10, %v14469_v39  ;;  %v1431_v39 = vmul.f32 %v14481_v60, %v14497_v34 }
 0x2f3   : > { %v1444_v17 = vmul.f32 %v12577_v16, %v14506_v50 }
 0x2f4   : > { %v1064_v20 = vpop.f32.mrf.mxu1 }
 0x2f5   : > { %v1593_v25 = vsel %vm461_vm4, %v1444_v17, 0.0  ;;  %v1442_v26 = vmul.f32 %v14506_v50, %v1064_v20  ;;  %v1286_v17 = vunpack.i.h.s16 %v1264_v12  ;;  %v1278_v20 = vrot.slane %v1271_v2, %v14422_v46 }
 0x2f6   : > { %v14528_v27 = vadd.f32 %v1593_v25, %v1592_v45  ;;  %v12578_v28 = vpop.f32.mrf.mxu1  ;;  %v1427_v2 = vmul.f32 %v14447_v10, %v14487_v4  ;;  %v1504_v10 = vsel %vm461_vm4, %v1423_v9, 0.0  ;;  %v1435_v4 = vmul.f32 %v14481_v60, %v14508_v43 }
 0x2f7   : > { %v1559_v29 = vsel %vm461_vm4, %v1442_v26, 0.0  ;;  %v1445_v30 = vmul.f32 %v12578_v28, %v14506_v50  ;;  %v1331_v26 = vrot.slane %v11385_v3, %v14434_v55  ;;  %v1338_v28 = vrot.slane %v1293_v51, %v14434_v55 }
 0x2f8   : > { %v14532_v32 = vadd.f32 %v1559_v29, %v1558_v52  ;;  %v14534_v35 = vpop.f32.mrf.mxu1  ;;  %v11386_v29 = vpack.i.b16 %v1264_v12, %v1264_v12  ;;  %v11387_v57 = vpack.i.b16 %v1278_v20, %v1278_v20  ;;  %v1415_v12 = vmul.f32 %v14441_v6, %v14438_v0 }
 0x2f9   : > { %v1610_v36 = vsel %vm461_vm4, %v1445_v30, 0.0  ;;  %v1373_v58 = vunpack.c.l.bf16 %v1331_v26  ;;  %v1374_v24 = vunpack.c.l.bf16 %v1338_v28  ;;  %v1419_v20 = vmul.f32 %v14441_v6, %v14449_v11 }
 0x2fa   : > { %v14537_v37 = vadd.f32 %v1610_v36, %v1609_v54  ;;  %v14539_v40 = vpop.f32.mrf.mxu1  ;;  %v1295_v36 = vpack.i.b16 %v1286_v17, %v1286_v17  ;;  %v1345_v46 = vrot.slane %v11386_v29, %v14434_v55  ;;  %v1359_v17 = vrot.slane %v11387_v57, %v14434_v55 }
 0x2fb   : > { %v1397_v28 = vrot.slane %v1373_v58, %v14278_v33  ;;  %v1572_v0 = vsel %vm461_vm4, %v1427_v2, 0.0  ;;  %v1439_v29 = vmul.f32 %v14506_v50, %v14520_v13  ;;  %v1503_v34 = vsel %vm461_vm4, %v1415_v12, 0.0 }
 0x2fc   : > { %v14541_v41 = vpop.f32.mrf.mxu1  ;;  %v1352_v51 = vrot.slane %v1295_v36, %v14434_v55  ;;  %v14616_v36 = vrot.slane %v1374_v24, %v14278_v33  ;;  %v1375_v6 = vunpack.c.l.bf16 %v1345_v46  ;;  %v1377_v9 = vunpack.c.l.bf16 %v1359_v17 }
 0x2fd   : > { %v1622_v55 = vunpack.c.l.bf16 %v14570_v61  ;;  %v1571_v60 = vsel %vm461_vm4, %v1419_v20, 0.0  ;;  %v1505_v43 = vadd.f32 %v1504_v10, %v1503_v34  ;;  %v1506_v58 = vsel %vm461_vm4, %v1431_v39, 0.0 }
 0x2fe   : > { %v14543_v42 = vpop.f32.mrf.mxu1  ;;  %v1376_v57 = vunpack.c.l.bf16 %v1352_v51  ;;  %v14627_v13 = vsub.s32 1, %v14233_v23  ;;  %v1573_v24 = vadd.f32 %v1572_v0, %v1571_v60  ;;  %v1574_v46 = vsel %vm461_vm4, %v1435_v4, 0.0 }
 0x2ff   : > { %v1443_v12 = vmul.f32 %v14506_v50, %v14534_v35  ;;  %v1448_v51 = vmul.f32 %v14539_v40, %v1397_v28  ;;  %v1508_v61 = vsel %vm461_vm4, %v1439_v29, 0.0  ;;  %v1446_v17 = vmul.f32 %v1397_v28, %v14541_v41 }
 0x300   : > { %v14545_v31 = vpop.f32.mrf.mxu1  ;;  %v1449_v20 = vmul.f32 %v14543_v42, %v1397_v28  ;;  %v1507_v34 = vadd.f32 %v1506_v58, %v1505_v43  ;;  %v14642_v60 = vrot.slane %v1375_v6, %v14278_v33  ;;  %v1575_v50 = vadd.f32 %v1574_v46, %v1573_v24 }
 0x301   : > { %v1447_v39 = vmul.f32 %v1397_v28, %v14545_v31  ;;  %v14645_v40 = vrot.slane %v1376_v57, %v14278_v33  ;;  %v14648_v41 = vrot.slane %v1377_v9, %v14278_v33  ;;  %v14651_v42 = vrot.slane %v1622_v55, %v14627_v13 }
 0x302   : > { %v14547_v44 = vpop.f32.mrf.mxu1  ;;  %v1509_v31 = vadd.f32 %v1508_v61, %v1507_v34  ;;  %v1576_v29 = vsel %vm461_vm4, %v1443_v12, 0.0  ;;  %v1493_v6 = vsel %vm461_vm4, %v1446_v17, 0.0  ;;  %v1544_v43 = vsel %vm461_vm4, %v1449_v20, 0.0 }
 0x303   : > { %v1452_v0 = vmul.f32 %v14547_v44, %v1397_v28  ;;  %v1527_v44 = vsel %vm461_vm4, %v1448_v51, 0.0  ;;  %v1510_v57 = vsel %vm461_vm4, %v1447_v39, 0.0  ;;  %v1494_v17 = vadd.f32 %v1493_v6, %v14518_v8 }
 0x304   : > { %v14549_v45 = vpop.f32.mrf.mxu1  ;;  %v1528_v51 = vadd.f32 %v1527_v44, %v14514_v1  ;;  %v1545_v20 = vadd.f32 %v1544_v43, %v14523_v15 }
 0x305   : > { %v1450_v4 = vmul.f32 %v1397_v28, %v14549_v45  ;;  %v1595_v24 = vsel %vm461_vm4, %v1452_v0, 0.0 }
 0x306   : > { %v14551_v47 = vpop.f32.mrf.mxu1  ;;  %v1596_v34 = vadd.f32 %v1595_v24, %v14528_v27 }
 0x307   : > { %v1453_v45 = vmul.f32 %v14551_v47, %v1397_v28  ;;  %v1561_v55 = vsel %vm461_vm4, %v1450_v4, 0.0  ;;  %v1577_v47 = vadd.f32 %v1576_v29, %v1575_v50 }
 0x308   : > { %v14553_v48 = vpop.f32.mrf.mxu1  ;;  %v1562_v1 = vadd.f32 %v1561_v55, %v14532_v32 }
 0x309   : > { %v1451_v58 = vmul.f32 %v1397_v28, %v14553_v48  ;;  %v1612_v39 = vsel %vm461_vm4, %v1453_v45, 0.0 }
 0x30a   : > { %v14555_v38 = vpop.f32.mrf.mxu1 }
 0x30b   : > { %v1456_v46 = vmul.f32 %v14555_v38, %v14616_v36 }
 0x30c   : > { %v14557_v52 = vpop.f32.mrf.mxu1 }
 0x30d   : > { %v1454_v12 = vmul.f32 %v14616_v36, %v14557_v52  ;;  %v1511_v52 = vadd.f32 %v1510_v57, %v1509_v31 }
 0x30e   : > { %v14559_v53 = vpop.f32.mrf.mxu1 }
 0x30f   : > { %v1457_v61 = vmul.f32 %v14559_v53, %v14616_v36  ;;  %v1578_v53 = vsel %vm461_vm4, %v1451_v58, 0.0  ;;  %v1495_v4 = vsel %vm461_vm4, %v1454_v12, 0.0 }
 0x310   : > { %v14561_v54 = vpop.f32.mrf.mxu1  ;;  %v1496_v6 = vadd.f32 %v1495_v4, %v1494_v17 }
 0x311   : > { %v1455_v48 = vmul.f32 %v14616_v36, %v14561_v54  ;;  %v1529_v54 = vsel %vm461_vm4, %v1456_v46, 0.0  ;;  %v1546_v50 = vsel %vm461_vm4, %v1457_v61, 0.0 }
 0x312   : > { %v14565_v59 = vpop.f32.mrf.mxu1  ;;  %v1530_v45 = vadd.f32 %v1529_v54, %v1528_v51 }
 0x313   : > { %v1460_v38 = vmul.f32 %v14565_v59, %v14616_v36  ;;  %v1613_v59 = vadd.f32 %v1612_v39, %v14537_v37  ;;  %v1512_v27 = vsel %vm461_vm4, %v1455_v48, 0.0  ;;  %v1579_v37 = vadd.f32 %v1578_v53, %v1577_v47 }
 0x314   : > { %v14572_v62 = vpop.f32.mrf.mxu1  ;;  %v1513_v24 = vadd.f32 %v1512_v27, %v1511_v52 }
 0x315   : > { %v1458_v8 = vmul.f32 %v14616_v36, %v14572_v62  ;;  %v1597_v29 = vsel %vm461_vm4, %v1460_v38, 0.0 }
 0x316   : > { %v14576_v5 = vpop.f32.mrf.mxu1  ;;  %v1598_v55 = vadd.f32 %v1597_v29, %v1596_v34 }
 0x317   : > { %v1461_v15 = vmul.f32 %v14576_v5, %v14616_v36 }
 0x318   : > { %v14580_v16 = vpop.f32.mrf.mxu1 }
 0x319   : > { %v1459_v32 = vmul.f32 %v14616_v36, %v14580_v16  ;;  %v1563_v16 = vsel %vm461_vm4, %v1458_v8, 0.0  ;;  %v1614_v36 = vsel %vm461_vm4, %v1461_v15, 0.0 }
 0x31a   : > { %v14583_v25 = vpop.f32.mrf.mxu1  ;;  %v1564_v61 = vadd.f32 %v1563_v16, %v1562_v1  ;;  %v1615_v48 = vadd.f32 %v1614_v36, %v1613_v59 }
 0x31b   : > { %v1464_v44 = vmul.f32 %v14583_v25, %v14642_v60 }
 0x31c   : > { %v14587_v30 = vpop.f32.mrf.mxu1 }
 0x31d   : > { %v1462_v62 = vmul.f32 %v14642_v60, %v14587_v30  ;;  %v1547_v30 = vadd.f32 %v1546_v50, %v1545_v20  ;;  %v1531_v12 = vsel %vm461_vm4, %v1464_v44, 0.0 }
 0x31e   : > { %v14589_v22 = vpop.f32.mrf.mxu1  ;;  %v1532_v34 = vadd.f32 %v1531_v12, %v1530_v45 }
 0x31f   : > { %v1465_v5 = vmul.f32 %v14589_v22, %v14642_v60  ;;  %v1580_v22 = vsel %vm461_vm4, %v1459_v32, 0.0 }
 0x320   : > { %v14596_v3 = vpop.f32.mrf.mxu1  ;;  %v1581_v20 = vadd.f32 %v1580_v22, %v1579_v37 }
 0x321   : > { %v1463_v43 = vmul.f32 %v14642_v60, %v14596_v3  ;;  %v1497_v3 = vsel %vm461_vm4, %v1462_v62, 0.0  ;;  %v1548_v47 = vsel %vm461_vm4, %v1465_v5, 0.0 }
 0x322   : > { %v14606_v26 = vpop.f32.mrf.mxu1  ;;  %v1498_v53 = vadd.f32 %v1497_v3, %v1496_v6  ;;  %v1549_v54 = vadd.f32 %v1548_v47, %v1547_v30 }
 0x323   : > { %v1468_v25 = vmul.f32 %v14606_v26, %v14642_v60  ;;  %v1514_v26 = vsel %vm461_vm4, %v1463_v43, 0.0 }
 0x324   : > { %v14618_v11 = vpop.f32.mrf.mxu1  ;;  %v1515_v4 = vadd.f32 %v1514_v26, %v1513_v24 }
 0x325   : > { %v1599_v39 = vsel %vm461_vm4, %v1468_v25, 0.0 }
 0x326   : > { %v14624_v2 = vpop.f32.mrf.mxu1  ;;  %v1600_v59 = vadd.f32 %v1599_v39, %v1598_v55 }
 0x328   : > { %v14637_v10 = vpop.f32.mrf.mxu1 }
 0x329   : > { %v1467_v29 = vmul.f32 %v14642_v60, %v14637_v10 }
 0x32a   : > { %v12605_v35 = vpop.f32.mrf.mxu1 }
 0x32b   : > { %v1472_v58 = vmul.f32 %v12605_v35, %v14645_v40  ;;  %v1466_v35 = vmul.f32 %v14642_v60, %v14618_v11  ;;  %v1582_v55 = vsel %vm461_vm4, %v1467_v29, 0.0 }
 0x32c   : > { %v1176_v9 = vpop.f32.mrf.mxu1 }
 0x32d   : > { %v1470_v51 = vmul.f32 %v14645_v40, %v1176_v9  ;;  %v1533_v38 = vsel %vm461_vm4, %v1472_v58, 0.0  ;;  %v1469_v9 = vmul.f32 %v14624_v2, %v14642_v60  ;;  %v1565_v50 = vsel %vm461_vm4, %v1466_v35, 0.0 }
 0x32e   : > { %v12606_v28 = vpop.f32.mrf.mxu1  ;;  %v1534_v27 = vadd.f32 %v1533_v38, %v1532_v34  ;;  %v1566_v43 = vadd.f32 %v1565_v50, %v1564_v61 }
 0x32f   : > { %v1473_v52 = vmul.f32 %v12606_v28, %v14645_v40  ;;  %v1499_v8 = vsel %vm461_vm4, %v1470_v51, 0.0 }
 0x330   : > { %v1179_v0 = vpop.f32.mrf.mxu1  ;;  %v1500_v5 = vadd.f32 %v1499_v8, %v1498_v53 }
 0x331   : > { %v1471_v11 = vmul.f32 %v14645_v40, %v1179_v0  ;;  %v1550_v2 = vsel %vm461_vm4, %v1473_v52, 0.0  ;;  %v1616_v0 = vsel %vm461_vm4, %v1469_v9, 0.0 }
 0x332   : > { %v12609_v31 = vpop.f32.mrf.mxu1  ;;  %v1551_v60 = vadd.f32 %v1550_v2, %v1549_v54  ;;  %v1617_v24 = vadd.f32 %v1616_v0, %v1615_v48  ;;  %v1583_v54 = vadd.f32 %v1582_v55, %v1581_v20  ;;  %v1742_v55 = vld [vmem:[%s17075_s1 + $0x148] sm:$0xf] }
 0x333   : > { %v1476_v28 = vmul.f32 %v12609_v31, %v14645_v40  ;;  %v1516_v31 = vsel %vm461_vm4, %v1471_v11, 0.0  ;;  %13171 = vmatprep.subr.msk.bf16.mxu0 %vm474_vm3, %v1742_v55 }
 0x334   : > { %v1192_v57 = vpop.f32.mrf.mxu1  ;;  %v1517_v12 = vadd.f32 %v1516_v31, %v1515_v4 }
 0x335   : > { %v1474_v37 = vmul.f32 %v14645_v40, %v1192_v57  ;;  %v1601_v36 = vsel %vm461_vm4, %v1476_v28, 0.0 }
 0x336   : > { %v12610_v46 = vpop.f32.mrf.mxu1  ;;  %v1602_v26 = vadd.f32 %v1601_v36, %v1600_v59 }
 0x337   : > { %v1477_v25 = vmul.f32 %v12610_v46, %v14645_v40  ;;  %v1567_v3 = vsel %vm461_vm4, %v1474_v37, 0.0 }
 0x338   : > { %v1195_v17 = vpop.f32.mrf.mxu1  ;;  %v1568_v9 = vadd.f32 %v1567_v3, %v1566_v43 }
 0x339   : > { %v1475_v35 = vmul.f32 %v14645_v40, %v1195_v17  ;;  %v1618_v39 = vsel %vm461_vm4, %v1477_v25, 0.0 }
 0x33a   : > { %v12613_v1 = vpop.f32.mrf.mxu1  ;;  %v1619_v59 = vadd.f32 %v1618_v39, %v1617_v24 }
 0x33b   : > { %v1480_v15 = vmul.f32 %v12613_v1, %v14648_v41  ;;  %v1584_v50 = vsel %vm461_vm4, %v1475_v35, 0.0 }
 0x33c   : > { %v1208_v32 = vpop.f32.mrf.mxu1 }
 0x33d   : > { %v1535_v44 = vsel %vm461_vm4, %v1480_v15, 0.0  ;;  %v1478_v62 = vmul.f32 %v14648_v41, %v1208_v32 }
 0x33e   : > { %v1536_v45 = vadd.f32 %v1535_v44, %v1534_v27  ;;  %v12614_v6 = vpop.f32.mrf.mxu1 }
 0x33f   : > { %v1501_v16 = vsel %vm461_vm4, %v1478_v62, 0.0  ;;  %v1481_v10 = vmul.f32 %v12614_v6, %v14648_v41 }
 0x340   : > { %v1502_v58 = vadd.f32 %v1501_v16, %v1500_v5  ;;  %v1211_v30 = vpop.f32.mrf.mxu1  ;;  %v1629_v47 = vadd.f32 %v14651_v42, %v1536_v45  ;;  %v1585_v5 = vadd.f32 %v1584_v50, %v1583_v54 }
 0x341   : > { %v1552_v57 = vsel %vm461_vm4, %v1481_v10, 0.0  ;;  %v1479_v22 = vmul.f32 %v14648_v41, %v1211_v30 }
 0x342   : > { %v1553_v51 = vadd.f32 %v1552_v57, %v1551_v60  ;;  %v12617_v61 = vpop.f32.mrf.mxu1  ;;  %v1627_v38 = vadd.f32 %v14651_v42, %v1502_v58  ;;  %v1637_v8 = vmax.f32 %v1629_v47, 0.0  ;;  %v1766_v57 = vsel %vm474_vm3, %v1742_v55, 0 }
 0x343   : > { %v1518_v46 = vsel %vm461_vm4, %v1479_v22, 0.0  ;;  %v1484_v48 = vmul.f32 %v12617_v61, %v14648_v41 }
 0x344   : > { %v1630_v52 = vadd.f32 %v14651_v42, %v1553_v51  ;;  %v1519_v34 = vadd.f32 %v1518_v46, %v1517_v12  ;;  %v1224_v53 = vpop.f32.mrf.mxu1  ;;  %v1635_v32 = vmax.f32 %v1627_v38, 0.0 }
 0x345   : > { %v1603_v1 = vsel %vm461_vm4, %v1484_v48, 0.0  ;;  %v1482_v4 = vmul.f32 %v14648_v41, %v1224_v53 }
 0x346   : > { %v1638_v40 = vmax.f32 %v1630_v52, 0.0  ;;  %v1628_v17 = vadd.f32 %v14651_v42, %v1519_v34  ;;  %v1604_v11 = vadd.f32 %v1603_v1, %v1602_v26  ;;  %v12618_v15 = vpop.f32.mrf.mxu1 }
 0x347   : > { %v1569_v27 = vsel %vm461_vm4, %v1482_v4, 0.0  ;;  %v1485_v28 = vmul.f32 %v12618_v15, %v14648_v41 }
 0x348   : > { %v1646_v20 = vpack.c.bf16 %v1638_v40, %v1637_v8  ;;  %v1636_v29 = vmax.f32 %v1628_v17, 0.0  ;;  %v1570_v2 = vadd.f32 %v1569_v27, %v1568_v9  ;;  %v1227_v44 = vpop.f32.mrf.mxu1  ;;  %v1633_v37 = vadd.f32 %v14651_v42, %v1604_v11 }
 0x349   : > { %v1620_v62 = vsel %vm461_vm4, %v1485_v28, 0.0  ;;  %v1483_v0 = vmul.f32 %v14648_v41, %v1227_v44  ;;  %v14095_v27 = vmov 0.0  }
 0x34a   : > { %v1621_v45 = vadd.f32 %v1620_v62, %v1619_v59  ;;  %v1645_v6 = vpack.c.bf16 %v1636_v29, %v1635_v32  ;;  %v1631_v31 = vadd.f32 %v14651_v42, %v1570_v2  ;;  %v1641_v60 = vmax.f32 %v1633_v37, 0.0  ;;  %12735 = vmatprep.subr.bf16.mxu1 %v14095_v27  ;;  %12741 = vmatprep.mubr.msk.bf16.mxu1 %vm14096_vm6, %v14095_v27 }
 0x34b   : > { %v1586_v43 = vsel %vm461_vm4, %v1483_v0, 0.0 }
 0x34c   : > { %v1634_v16 = vadd.f32 %v14651_v42, %v1621_v45  ;;  %v1587_v10 = vadd.f32 %v1586_v43, %v1585_v5  ;;  %12621 = vmatprep.mubr.msk.bf16.mxu0 %vm461_vm4, %v1645_v6  ;;  %v1639_v25 = vmax.f32 %v1631_v31, 0.0 }
 0x34d   : > { %12622 = vmatmul.mubr.msk.bf16.vlgmr.msra.gmra.mxu0 %vm461_vm4, %v1646_v20 }
 0x34e   : > { %v1642_v36 = vmax.f32 %v1634_v16, 0.0  ;;  %v1632_v41 = vadd.f32 %v14651_v42, %v1587_v10  ;;  %12630 = vmatpush3.bf16.msra.mxu0 %v1766_v57  ;;  %v1644_v42 = vld [vmem:[%s17075_s1 + $0x144] sm:$0x1] }
 0x34f   : > { %v1649_v22 = vunpack.c.l.bf16 %v1644_v42  ;;  %12639 = vmatprep.subr.bf16.mxu0 %v14095_v27 }
 0x350   : > { %v1640_v58 = vmax.f32 %v1632_v41, 0.0  ;;  %v1648_v30 = vpack.c.bf16 %v1642_v36, %v1641_v60 }
 0x351   : > { %v1653_v3 = vrot.slane %v1649_v22, %v14278_v33 }
 0x352   : > { %v1647_v24 = vpack.c.bf16 %v1640_v58, %v1639_v25 }
 0x354   : > { %12625 = vmatprep.mubr.msk.bf16.mxu0 %vm461_vm4, %v1647_v24 }
 0x355   : > { %12626 = vmatmul.mubr.msk.bf16.gmra.mxu0 %vm461_vm4, %v1648_v30 }
 0x40d   : > { %v12623_v12 = vpop.f32.mrf.mxu0 }
 0x40e   : > { %v1712_v35 = vadd.f32 %v12623_v12, %v1653_v3  ;;  %v13285_v12 = vld [vmem:[%s17075_s1 + $0x158] sm:$0xff]  }
 0x40f   : > { %v1703_v47 = vpop.f32.mrf.mxu0 }
 0x410   : > { %v1704_v61 = vadd.f32 %v1703_v47, %v1653_v3  ;;  %v1736_v53 = vadd.f32 %v1712_v35, %v14242_v49  ;;  %v13287_v47 = vld [vmem:[%s17075_s1 + $0x168] sm:$0xff]  }
 0x411   : > { %v12624_v51 = vpop.f32.mrf.mxu0  ;;  %v13291_v35 = vld [vmem:[%s17075_s1 + $0x188] sm:$0xff]  }
 0x412   : > { %v1715_v26 = vadd.f32 %v12624_v51, %v1653_v3  ;;  %v1734_v52 = vadd.f32 %v1704_v61, %v14244_v56  ;;  %v13288_v51 = vld [vmem:[%s17075_s1 + $0x170] sm:$0xff]   ;;  %v13289_v61 = vld [vmem:[%s17075_s1 + $0x178] sm:$0xff]  }
 0x413   : > { %v1706_v46 = vpop.f32.mrf.mxu0 }
 0x414   : > { %v1707_v48 = vadd.f32 %v1706_v46, %v1653_v3  ;;  %v1737_v39 = vadd.f32 %v1715_v26, %v14246_v63  ;;  %v13290_v26 = vld [vmem:[%s17075_s1 + $0x180] sm:$0xff]   ;;  %v13292_v46 = vld [vmem:[%s17075_s1 + $0x190] sm:$0xff]  }
 0x415   : > { %v12627_v38 = vpop.f32.mrf.mxu0 }
 0x416   : > { %v1735_v34 = vadd.f32 %v1707_v48, %v14248_v7  ;;  %v1745_v1 = vpack.c.bf16 %v1737_v39, %v1736_v53  ;;  %v1728_v17 = vadd.f32 %v12627_v38, %v1653_v3  ;;  %v13293_v48 = vld [vmem:[%s17075_s1 + $0x198] sm:$0xff]   ;;  %v13294_v39 = vld [vmem:[%s17075_s1 + $0x1a8] sm:$0xff]   ;;  %v13295_v38 = vld [vmem:[%s17075_s1 + $0x1a0] sm:$0xff]  }
 0x417   : > { %v1719_v54 = vpop.f32.mrf.mxu0 }
 0x418   : > { %v1744_v9 = vpack.c.bf16 %v1735_v34, %v1734_v52  ;;  %v1720_v8 = vadd.f32 %v1719_v54, %v1653_v3  ;;  %v1740_v49 = vadd.f32 %v1728_v17, %v14254_v14  ;;  %v1743_v14 = vld [vmem:[%s17075_s1 + $0x14c] sm:$0x1] }
 0x419   : > { %v12628_v4 = vpop.f32.mrf.mxu0  ;;  %v1748_v28 = vunpack.c.l.bf16 %v1743_v14 }
 0x41a   : > { %v1731_v40 = vadd.f32 %v12628_v4, %v1653_v3  ;;  %12631 = vmatprep.mubr.msk.bf16.mxu0 %vm461_vm4, %v1744_v9  ;;  %v1738_v56 = vadd.f32 %v1720_v8, %v14257_v18 }
 0x41b   : > { %v1722_v11 = vpop.f32.mrf.mxu0  ;;  %12632 = vmatmul.mubr.msk.bf16.vlgmr.msra.gmra.mxu0 %vm461_vm4, %v1745_v1  ;;  %v1752_v29 = vrot.slane %v1748_v28, %v14278_v33 }
 0x41c   : > { %v1723_v63 = vadd.f32 %v1722_v11, %v1653_v3  ;;  %v1741_v15 = vadd.f32 %v1731_v40, %v14260_v19  ;;  %v13286_v3 = vld [vmem:[%s17075_s1 + $0x160] sm:$0xff]  }
 0x41e   : > { %v1739_v7 = vadd.f32 %v1723_v63, %v14262_v21  ;;  %v1747_v50 = vpack.c.bf16 %v1741_v15, %v1740_v49  ;;  %v11414_v63 = vld.sshfl [vmem:[%s17075_s1 + $0x150] sm:$0x33 pattern:$0x75316420] }
 0x420   : > { %v1746_v59 = vpack.c.bf16 %v1739_v7, %v1738_v56  ;;  %v17079_v7 = vld [vmem:[#allocation16_spill] sm:$0xff] }
 0x421   : > { %v2058_v49 = vrot.slane %v11414_v63, %v17079_v7 }
 0x422   : > { %12635 = vmatprep.mubr.msk.bf16.mxu0 %vm461_vm4, %v1746_v59  ;;  %v2051_v59 = vcombine.high %v11414_v63, %v11414_v63 }
 0x423   : > { %12636 = vmatmul.mubr.msk.bf16.gmra.mxu0 %vm461_vm4, %v1747_v50  ;;  %vm5297_vm4 = vcmask 850944  }
 0x424   : > { %12647 = vmatprep.mubr.msk.bf16.mxu0 %vm14096_vm6, %v14095_v27 }
 0x4db   : > { %v12633_v18 = vpop.f32.mrf.mxu0 }
 0x4dc   : > { %v1811_v60 = vadd.f32 %v12633_v18, %v1752_v29  ;;  %v2083_v18 = vunpack.i.h.s16 %v2058_v49 }
 0x4dd   : > { %v1802_v19 = vpop.f32.mrf.mxu0 }
 0x4de   : > { %v1835_v30 = vmax.f32 %v1811_v60, 0.0  ;;  %v1803_v24 = vadd.f32 %v1802_v19, %v1752_v29  ;;  %v2065_v19 = vrot.slane %v2051_v59, %v17079_v7  ;;  %v2092_v28 = vpack.i.b16 %v2083_v18, %v2083_v18  ;;  %v14882_v60 = vld [vmem:[%s17075_s1 + $0x154] sm:$0x1] }
 0x4df   : > { %v12634_v21 = vpop.f32.mrf.mxu0 }
 0x4e0   : > { %v1814_v31 = vadd.f32 %v12634_v21, %v1752_v29  ;;  %v1833_v42 = vmax.f32 %v1803_v24, 0.0 }
 0x4e1   : > { %v1805_v32 = vpop.f32.mrf.mxu0 }
 0x4e2   : > { %v1836_v41 = vmax.f32 %v1814_v31, 0.0  ;;  %v1806_v25 = vadd.f32 %v1805_v32, %v1752_v29  ;;  %v2085_v32 = vunpack.i.h.s16 %v2065_v19 }
 0x4e3   : > { %v12637_v20 = vpop.f32.mrf.mxu0 }
 0x4e4   : > { %v1827_v44 = vadd.f32 %v12637_v20, %v1752_v29  ;;  %v1862_v55 = vpack.c.bf16 %v1836_v41, %v1835_v30  ;;  %v1834_v57 = vmax.f32 %v1806_v25, 0.0 }
 0x4e5   : > { %v1818_v2 = vpop.f32.mrf.mxu0 }
 0x4e6   : > { %v1839_v37 = vmax.f32 %v1827_v44, 0.0  ;;  %v1819_v45 = vadd.f32 %v1818_v2, %v1752_v29  ;;  %v1861_v22 = vpack.c.bf16 %v1834_v57, %v1833_v42  ;;  %v11416_v2 = vpack.i.b16 %v2065_v19, %v2065_v19 }
 0x4e7   : > { %v12638_v62 = vpop.f32.mrf.mxu0  ;;  %v2066_v44 = vcombine.high %v2058_v49, %v2058_v49  ;;  %v2074_v57 = vrot.slane %v14882_v60, %v17079_v7 }
 0x4e8   : > { %v1830_v0 = vadd.f32 %v12638_v62, %v1752_v29  ;;  %v1837_v36 = vmax.f32 %v1819_v45, 0.0 }
 0x4e9   : > { %v1821_v5 = vpop.f32.mrf.mxu0  ;;  %v2087_v45 = vunpack.i.h.s16 %v2066_v44 }
 0x4ea   : > { %v1840_v6 = vmax.f32 %v1830_v0, 0.0  ;;  %v1822_v43 = vadd.f32 %v1821_v5, %v1752_v29  ;;  %v11415_v29 = vpack.i.b16 %v2058_v49, %v2058_v49  ;;  %v17080_v0 = vld [vmem:[#allocation17_spill] sm:$0xff] }
 0x4eb   : > { %v2113_v5 = vrot.slane %v2092_v28, %v17080_v0  ;;  %v2096_v30 = vpack.i.b16 %v2087_v45, %v2087_v45 }
 0x4ec   : > { %v1864_v16 = vpack.c.bf16 %v1840_v6, %v1839_v37  ;;  %v1838_v10 = vmax.f32 %v1822_v43, 0.0  ;;  %v2094_v37 = vpack.i.b16 %v2085_v32, %v2085_v32  ;;  %v2067_v43 = vcombine.high %v2065_v19, %v2065_v19 }
 0x4ed   : > { %v2106_v31 = vrot.slane %v11415_v29, %v17080_v0  ;;  %v2173_v25 = vunpack.c.l.bf16 %v2113_v5 }
 0x4ee   : > { %12640 = vmatpush3.bf16.msra.mxu0 %v1864_v16  ;;  %v1863_v58 = vpack.c.bf16 %v1838_v10, %v1837_v36  ;;  %v2120_v16 = vrot.slane %v11416_v2, %v17080_v0  ;;  %v11417_v10 = vpack.i.b16 %v2066_v44, %v2066_v44  ;;  %v2089_v41 = vunpack.i.h.s16 %v2067_v43 }
 0x4ef   : > { %12641 = vmatprep.subr.bf16.mxu0 %v14095_v27  ;;  %v2172_v42 = vunpack.c.l.bf16 %v2106_v31 }
 0x4f2   : > { %12642 = vmatpush3.bf16.msra.mxu0 %v1863_v58  ;;  %v2127_v58 = vrot.slane %v2094_v37, %v17080_v0 }
 0x4f3   : > { %12643 = vmatprep.subr.bf16.mxu0 %v14095_v27 }
 0x4f6   : > { %12644 = vmatpush3.bf16.msra.mxu0 %v1862_v55  ;;  %v11418_v55 = vpack.i.b16 %v2067_v43, %v2067_v43 }
 0x4f7   : > { %12645 = vmatprep.subr.bf16.mxu0 %v14095_v27 }
 0x4fa   : > { %12646 = vmatpush3.bf16.msra.mxu0 %v1861_v22  ;;  %v2174_v22 = vunpack.c.l.bf16 %v2120_v16 }
 0x4fb   : > { %12683 = vmatprep.subr.bf16.mxu0 %v14095_v27 }
 0x4fd   : > { %12648 = vmatmul.mubr.msk.bf16.vlgmr.msra.gmra.mxu0 %vm809_vm5, %v13285_v12  ;;  %v2134_v12 = vrot.slane %v11417_v10, %v17080_v0 }
 0x4fe   : > { %12651 = vmatprep.mubr.msk.bf16.mxu0 %vm14096_vm6, %v14095_v27  ;;  %12684 = vmatpush3.bf16.msra.mxu0 %v13294_v39  ;;  %v2184_v39 = vrot.slane %v2172_v42, %v14278_v33 }
 0x4ff   : > { %12685 = vmatprep.subr.bf16.mxu0 %v14095_v27 }
 0x502   : > { %12686 = vmatpush3.bf16.msra.mxu0 %v13295_v38  ;;  %v2192_v38 = vrot.slane %v2174_v22, %v14278_v33 }
 0x503   : > { %12691 = vmatprep.subr.bf16.mxu0 %v14095_v27 }
 0x505   : > { %12652 = vmatmul.mubr.msk.bf16.gmra.mxu0 %vm809_vm5, %v13286_v3 }
 0x506   : > { %12655 = vmatprep.mubr.msk.bf16.mxu0 %vm14096_vm6, %v14095_v27 }
 0x50d   : > { %12656 = vmatmul.mubr.msk.bf16.gmra.mxu0 %vm809_vm5, %v13287_v47  ;;  %v2098_v47 = vpack.i.b16 %v2089_v41, %v2089_v41 }
 0x50e   : > { %12659 = vmatprep.mubr.msk.bf16.mxu0 %vm14096_vm6, %v14095_v27 }
 0x515   : > { %12660 = vmatmul.mubr.msk.bf16.gmra.mxu0 %vm809_vm5, %v13288_v51  ;;  %v2188_v51 = vrot.slane %v2173_v25, %v14278_v33 }
 0x516   : > { %12663 = vmatprep.mubr.msk.bf16.mxu0 %vm14096_vm6, %v14095_v27 }
 0x51d   : > { %12664 = vmatmul.mubr.msk.bf16.gmra.mxu0 %vm809_vm5, %v13289_v61  ;;  %v2175_v61 = vunpack.c.l.bf16 %v2127_v58 }
 0x51e   : > { %12667 = vmatprep.mubr.msk.bf16.mxu0 %vm14096_vm6, %v14095_v27 }
 0x525   : > { %12668 = vmatmul.mubr.msk.bf16.gmra.mxu0 %vm809_vm5, %v13290_v26  ;;  %v2141_v26 = vrot.slane %v2096_v30, %v17080_v0 }
 0x526   : > { %12671 = vmatprep.mubr.msk.bf16.mxu0 %vm14096_vm6, %v14095_v27 }
 0x527   : > { %v2177_v63 = vunpack.c.l.bf16 %v2141_v26 }
 0x52d   : > { %12672 = vmatmul.mubr.msk.bf16.gmra.mxu0 %vm809_vm5, %v13291_v35 }
 0x52e   : > { %12675 = vmatprep.mubr.msk.bf16.mxu0 %vm14096_vm6, %v14095_v27 }
 0x535   : > { %12676 = vmatmul.mubr.msk.bf16.gmra.mxu0 %vm809_vm5, %v13292_v46  ;;  %v2148_v46 = vrot.slane %v11418_v55, %v17080_v0 }
 0x536   : > { %12679 = vmatprep.mubr.msk.bf16.mxu0 %vm14096_vm6, %v14095_v27 }
 0x537   : > { %v2178_v49 = vunpack.c.l.bf16 %v2148_v46 }
 0x53d   : > { %12680 = vmatmul.mubr.msk.bf16.gmra.mxu0 %vm809_vm5, %v13293_v48  ;;  %v2081_v48 = vrot.slane %v2074_v57, %v17079_v7 }
 0x53e   : > { %12687 = vmatprep.mubr.msk.bf16.mxu0 %vm14096_vm6, %v14095_v27 }
 0x53f   : > { %v11419_v59 = vpack.i.b16 %v2081_v48, %v2081_v48 }
 0x5bd   : > { %v14859_v52 = vpop.f32.mrf.mxu0 }
 0x5bf   : > { %v12649_v34 = vpop.f32.mrf.mxu0 }
 0x5c0   : > { %v2176_v34 = vunpack.c.l.bf16 %v2134_v12 }
 0x5c1   : > { %v14861_v53 = vpop.f32.mrf.mxu0 }
 0x5c2   : > { %v2200_v19 = vrot.slane %v2176_v34, %v14278_v33  ;;  %v2218_v44 = vmul.f32 %v2184_v39, %v14861_v53 }
 0x5c3   : > { %v12650_v54 = vpop.f32.mrf.mxu0 }
 0x5c4   : > { %v2253_v41 = vsel %vm2235_vm7, %v2218_v44, 0.0 }
 0x5c5   : > { %v1979_v9 = vpop.f32.mrf.mxu0 }
 0x5c7   : > { %v12653_v1 = vpop.f32.mrf.mxu0 }
 0x5c8   : > { %v2155_v1 = vrot.slane %v2098_v47, %v17080_v0 }
 0x5c9   : > { %v14863_v4 = vpop.f32.mrf.mxu0 }
 0x5ca   : > { %v2179_v28 = vunpack.c.l.bf16 %v2155_v1  ;;  %v2220_v29 = vmul.f32 %v2188_v51, %v14863_v4 }
 0x5cb   : > { %v12654_v8 = vpop.f32.mrf.mxu0 }
 0x5cc   : > { %v2219_v8 = vmul.f32 %v2188_v51, %v1979_v9  ;;  %v2204_v9 = vrot.slane %v2177_v63, %v14278_v33  ;;  %v2212_v4 = vrot.slane %v2179_v28, %v14278_v33 }
 0x5cd   : > { %v1987_v40 = vpop.f32.mrf.mxu0 }
 0x5ce   : > { %v2221_v18 = vmul.f32 %v2192_v38, %v1987_v40  ;;  %v2237_v32 = vsel %vm2235_vm7, %v2219_v8, 0.0 }
 0x5cf   : > { %v12657_v17 = vpop.f32.mrf.mxu0 }
 0x5d0   : > { %v2196_v17 = vrot.slane %v2175_v61, %v14278_v33  ;;  %v2239_v37 = vsel %vm2235_vm7, %v2221_v18, 0.0 }
 0x5d1   : > { %v14865_v11 = vpop.f32.mrf.mxu0 }
 0x5d2   : > { %v2222_v45 = vmul.f32 %v2192_v38, %v14865_v11 }
 0x5d3   : > { %v12658_v15 = vpop.f32.mrf.mxu0 }
 0x5d4   : > { %v2256_v55 = vsel %vm2235_vm7, %v2222_v45, 0.0 }
 0x5d5   : > { %v1995_v56 = vpop.f32.mrf.mxu0 }
 0x5d6   : > { %v2223_v2 = vmul.f32 %v2196_v17, %v1995_v56  ;;  %v2254_v56 = vsel %vm2235_vm7, %v2220_v29, 0.0 }
 0x5d7   : > { %v12661_v50 = vpop.f32.mrf.mxu0  ;;  %v2255_v42 = vadd.f32 %v2254_v56, %v2253_v41  ;;  %v2283_v56 = vld [vmem:[%s17075_s1 + $0x1b0] sm:$0x1] }
 0x5d8   : > { %v2217_v50 = vmul.f32 %v2184_v39, %v14859_v52  ;;  %v2162_v52 = vrot.slane %v11419_v59, %v17080_v0  ;;  %v2241_v53 = vsel %vm2235_vm7, %v2223_v2, 0.0 }
 0x5d9   : > { %v14871_v14 = vpop.f32.mrf.mxu0  ;;  %v2257_v51 = vadd.f32 %v2256_v55, %v2255_v42  ;;  %v13307_v42 = vld [vmem:[%s17075_s1 + $0x220] sm:$0xff]  }
 0x5da   : > { %v2236_v40 = vsel %vm2235_vm7, %v2217_v50, 0.0  ;;  %v2224_v10 = vmul.f32 %v2196_v17, %v14871_v14  ;;  %v2180_v30 = vunpack.c.l.bf16 %v2162_v52 }
 0x5db   : > { %v12662_v21 = vpop.f32.mrf.mxu0  ;;  %v2238_v31 = vadd.f32 %v2237_v32, %v2236_v40 }
 0x5dd   : > { %v2003_v20 = vpop.f32.mrf.mxu0  ;;  %v2240_v25 = vadd.f32 %v2239_v37, %v2238_v31 }
 0x5de   : > { %v2225_v43 = vmul.f32 %v2200_v19, %v2003_v20 }
 0x5df   : > { %v12665_v62 = vpop.f32.mrf.mxu0  ;;  %v2242_v22 = vadd.f32 %v2241_v53, %v2240_v25  ;;  %v2285_v53 = vunpack.c.l.bf16 %v2283_v56 }
 0x5e0   : > { %v2208_v62 = vrot.slane %v2178_v49, %v14278_v33  ;;  %v2243_v11 = vsel %vm2235_vm7, %v2225_v43, 0.0  ;;  %v2270_v49 = vunpack.c.l.bf16 %v14882_v60 }
 0x5e1   : > { %v14875_v6 = vpop.f32.mrf.mxu0  ;;  %v2244_v61 = vadd.f32 %v2243_v11, %v2242_v22  ;;  %v2348_v22 = vld [vmem:[%s17075_s1 + $0x1c0] sm:$0x1] }
 0x5e2   : > { %v2226_v20 = vmul.f32 %v2200_v19, %v14875_v6  ;;  %v2216_v6 = vrot.slane %v2180_v30, %v14278_v33 }
 0x5e3   : > { %v12666_v36 = vpop.f32.mrf.mxu0 }
 0x5e4   : > { %v2260_v46 = vsel %vm2235_vm7, %v2226_v20, 0.0  ;;  %v13306_v20 = vld [vmem:[%s17075_s1 + $0x228] ss:$0 sps:$4 sm:$0xff]  }
 0x5e5   : > { %v2011_v24 = vpop.f32.mrf.mxu0 }
 0x5e6   : > { %v2227_v36 = vmul.f32 %v2204_v9, %v2011_v24 }
 0x5e7   : > { %v12669_v3 = vpop.f32.mrf.mxu0 }
 0x5e8   : > { %v2258_v3 = vsel %vm2235_vm7, %v2224_v10, 0.0  ;;  %v2245_v14 = vsel %vm2235_vm7, %v2227_v36, 0.0  ;;  %v2289_v36 = vrot.slane %v2285_v53, %v14278_v33 }
 0x5e9   : > { %v2014_v35 = vpop.f32.mrf.mxu0  ;;  %v2259_v38 = vadd.f32 %v2258_v3, %v2257_v51  ;;  %v2246_v34 = vadd.f32 %v2245_v14, %v2244_v61 }
 0x5ea   : > { %v2228_v24 = vmul.f32 %v2204_v9, %v2014_v35  ;;  %v2274_v9 = vrot.slane %v2270_v49, %v14627_v13 }
 0x5eb   : > { %v12670_v54 = vpop.f32.mrf.mxu0  ;;  %v2261_v35 = vadd.f32 %v2260_v46, %v2259_v38  ;;  %v13298_v38 = vld [vmem:[%s17075_s1 + $0x1d8] sm:$0xff]  }
 0x5ec   : > { %v2262_v1 = vsel %vm2235_vm7, %v2228_v24, 0.0 }
 0x5ed   : > { %v2019_v15 = vpop.f32.mrf.mxu0  ;;  %v2263_v18 = vadd.f32 %v2262_v1, %v2261_v35  ;;  %v13301_v1 = vld [vmem:[%s17075_s1 + $0x1f0] sm:$0xff]   ;;  %v13304_v35 = vld [vmem:[%s17075_s1 + $0x208] sm:$0xff]  }
 0x5ee   : > { %v2229_v57 = vmul.f32 %v2208_v62, %v2019_v15 }
 0x5ef   : > { %v12673_v21 = vpop.f32.mrf.mxu0 }
 0x5f0   : > { %v2247_v48 = vsel %vm2235_vm7, %v2229_v57, 0.0  ;;  %v2874_v57 = vsel %vm474_vm3, %v13306_v20, 0 }
 0x5f1   : > { %v2022_v5 = vpop.f32.mrf.mxu0  ;;  %v2248_v63 = vadd.f32 %v2247_v48, %v2246_v34  ;;  %12736 = vmatpush3.bf16.msra.mxu1 %v2874_v57  ;;  %v13299_v34 = vld [vmem:[%s17075_s1 + $0x1e0] sm:$0xff]  }
 0x5f2   : > { %v2230_v39 = vmul.f32 %v2208_v62, %v2022_v5  ;;  %12737 = vmatprep.subr.bf16.mxu1 %v14095_v27 }
 0x5f3   : > { %v12674_v16 = vpop.f32.mrf.mxu0 }
 0x5f4   : > { %v2264_v59 = vsel %vm2235_vm7, %v2230_v39, 0.0 }
 0x5f5   : > { %v2027_v58 = vpop.f32.mrf.mxu0  ;;  %v2265_v29 = vadd.f32 %v2264_v59, %v2263_v18  ;;  %12738 = vmatpush3.bf16.msra.mxu1 %v13307_v42 }
 0x5f6   : > { %v2231_v47 = vmul.f32 %v2212_v4, %v2027_v58  ;;  %12739 = vmatprep.subr.bf16.mxu1 %v14095_v27 }
 0x5f7   : > { %v12677_v12 = vpop.f32.mrf.mxu0 }
 0x5f8   : > { %v2249_v8 = vsel %vm2235_vm7, %v2231_v47, 0.0  ;;  %v2350_v12 = vunpack.c.l.bf16 %v2348_v22 }
 0x5f9   : > { %v2030_v26 = vpop.f32.mrf.mxu0  ;;  %v2250_v19 = vadd.f32 %v2249_v8, %v2248_v63  ;;  %v13302_v8 = vld [vmem:[%s17075_s1 + $0x1f8] sm:$0xff]   ;;  %v13305_v63 = vld [vmem:[%s17075_s1 + $0x210] sm:$0xff]  }
 0x5fa   : > { %v2232_v17 = vmul.f32 %v2212_v4, %v2030_v26  ;;  %v13296_v4 = vld [vmem:[%s17075_s1 + $0x1b8] sm:$0xff]   ;;  %v2354_v3 = vrot.slane %v2350_v12, %v14278_v33 }
 0x5fb   : > { %v12678_v54 = vpop.f32.mrf.mxu0 }
 0x5fc   : > { %v2266_v28 = vsel %vm2235_vm7, %v2232_v17, 0.0  ;;  %v13300_v54 = vld [vmem:[%s17075_s1 + $0x1e8] sm:$0xff]   ;;  %v13303_v17 = vld [vmem:[%s17075_s1 + $0x200] sm:$0xff]  }
 0x5fd   : > { %v2035_v15 = vpop.f32.mrf.mxu0  ;;  %v2267_v5 = vadd.f32 %v2266_v28, %v2265_v29 }
 0x5fe   : > { %v2233_v50 = vmul.f32 %v2216_v6, %v2035_v15  ;;  %v13308_v15 = vld [vmem:[%s17075_s1 + $0x218] sm:$0xff]  }
 0x5ff   : > { %v12681_v21 = vpop.f32.mrf.mxu0  ;;  %12740 = vmatpush3.bf16.msra.mxu1 %v13308_v15 }
 0x600   : > { %v2251_v32 = vsel %vm2235_vm7, %v2233_v50, 0.0  ;;  %12745 = vmatprep.subr.bf16.mxu1 %v14095_v27 }
 0x601   : > { %v2252_v2 = vadd.f32 %v2251_v32, %v2250_v19  ;;  %v2038_v44 = vpop.f32.mrf.mxu0 }
 0x602   : > { %v2234_v62 = vmul.f32 %v2216_v6, %v2038_v44  ;;  %v13297_v6 = vld [vmem:[%s17075_s1 + $0x1d0] sm:$0xff]   ;;  %v11443_v44 = vld.sshfl [vmem:[%s17075_s1 + $0x1c8] sm:$0x33 pattern:$0x75316420] }
 0x603   : > { %v12682_v52 = vpop.f32.mrf.mxu0  ;;  %v2275_v40 = vadd.f32 %v2274_v9, %v2252_v2 }
 0x604   : > { %v2268_v60 = vsel %vm2235_vm7, %v2234_v62, 0.0  ;;  %v2622_v52 = vrot.slane %v11443_v44, %v17079_v7 }
 0x605   : > { %v2269_v37 = vadd.f32 %v2268_v60, %v2267_v5  ;;  %v2277_v43 = vmax.f32 %v2275_v40, 0.0  ;;  %v2615_v60 = vcombine.high %v11443_v44, %v11443_v44 }
 0x606   : > { %v11444_v53 = vpack.i.b16 %v2622_v52, %v2622_v52 }
 0x607   : > { %v2276_v45 = vadd.f32 %v2274_v9, %v2269_v37  ;;  %v2647_v37 = vunpack.i.h.s16 %v2622_v52 }
 0x608   : > { %v2670_v42 = vrot.slane %v11444_v53, %v17080_v0 }
 0x609   : > { %v2278_v31 = vmax.f32 %v2276_v45, 0.0 }
 0x60b   : > { %v2284_v16 = vpack.c.bf16 %v2278_v31, %v2277_v43  ;;  %v2629_v43 = vrot.slane %v2615_v60, %v17079_v7 }
 0x60d   : > { %12688 = vmatmul.mubr.msk.bf16.vlgmr.msra.gmra.mxu0 %vm2235_vm7, %v2284_v16  ;;  %v2656_v16 = vpack.i.b16 %v2647_v37, %v2647_v37  ;;  %v2631_v57 = vcombine.high %v2629_v43, %v2629_v43  ;;  %vm6070_vm7 = vcmask 490496  }
 0x60e   : > { %12693 = vmatprep.mubr.msk.bf16.mxu0 %vm14096_vm6, %v14095_v27  ;;  %12692 = vmatpush3.bf16.msra.mxu0 %v13296_v4  ;;  %v2649_v4 = vunpack.i.h.s16 %v2629_v43 }
 0x60f   : > { %12697 = vmatprep.subr.bf16.mxu0 %v14095_v27 }
 0x6cd   : > { %v2339_v10 = vpop.f32.mrf.mxu0 }
 0x6ce   : > { %v14939_v58 = vadd.f32 %v2339_v10, %v2289_v36  ;;  %v11445_v10 = vpack.i.b16 %v2629_v43, %v2629_v43 }
 0x6cf   : > { %v12689_v41 = vpop.f32.mrf.mxu0 }
 0x6d0   : > { %v2684_v22 = vrot.slane %v11445_v10, %v17080_v0 }
 0x6d1   : > { %v2342_v25 = vpop.f32.mrf.mxu0 }
 0x6d2   : > { %v14941_v30 = vadd.f32 %v2342_v25, %v2289_v36  ;;  %v2630_v36 = vcombine.high %v2622_v52, %v2622_v52  ;;  %v2677_v25 = vrot.slane %v2656_v16, %v17080_v0 }
 0x6d3   : > { %v12690_v55 = vpop.f32.mrf.mxu0 }
 0x6d4   : > { %v2349_v11 = vpack.c.bf16 %v14941_v30, %v14939_v58  ;;  %v2658_v55 = vpack.i.b16 %v2649_v4, %v2649_v4  ;;  %v11446_v12 = vpack.i.b16 %v2630_v36, %v2630_v36 }
 0x6d6   : > { %12694 = vmatmul.mubr.msk.bf16.vlgmr.msra.gmra.mxu0 %vm2361_vm8, %v2349_v11  ;;  %v2651_v11 = vunpack.i.h.s16 %v2630_v36 }
 0x6d7   : > { %12699 = vmatprep.mubr.msk.bf16.mxu0 %vm14096_vm6, %v14095_v27 }
 0x796   : > { %v2399_v14 = vpop.f32.mrf.mxu0 }
 0x797   : > { %v2400_v47 = vadd.f32 %v2399_v14, %v2354_v3 }
 0x798   : > { %v12695_v24 = vpop.f32.mrf.mxu0 }
 0x799   : > { %v2406_v46 = vmax.f32 %v2400_v47, 0.0  ;;  %v2653_v24 = vunpack.i.h.s16 %v2631_v57  ;;  %v2737_v47 = vunpack.c.l.bf16 %v2677_v25 }
 0x79a   : > { %v2402_v51 = vpop.f32.mrf.mxu0 }
 0x79b   : > { %v2403_v61 = vadd.f32 %v2402_v51, %v2354_v3  ;;  %v15043_v3 = vld [vmem:[%s17075_s1 + $0x1cc] sm:$0x1]  ;;  %v2691_v51 = vrot.slane %v2658_v55, %v17080_v0 }
 0x79c   : > { %v12696_v26 = vpop.f32.mrf.mxu0 }
 0x79d   : > { %v2407_v48 = vmax.f32 %v2403_v61, 0.0  ;;  %v2660_v61 = vpack.i.b16 %v2651_v11, %v2651_v11 }
 0x79f   : > { %v2428_v39 = vpack.c.bf16 %v2407_v48, %v2406_v46  ;;  %v11447_v46 = vpack.i.b16 %v2631_v57, %v2631_v57  ;;  %v2638_v48 = vrot.slane %v15043_v3, %v17079_v7 }
 0x7a1   : > { %12698 = vmatpush3.bf16.msra.mxu0 %v2428_v39  ;;  %v2736_v39 = vunpack.c.l.bf16 %v2670_v42  ;;  %v2645_v15 = vrot.slane %v2638_v48, %v17079_v7 }
 0x7a2   : > { %12791 = vmatprep.subr.bf16.mxu0 %v14095_v27 }
 0x7a3   : > { %v11448_v37 = vpack.i.b16 %v2645_v15, %v2645_v15 }
 0x7a4   : > { %12700 = vmatmul.mubr.msk.bf16.vlgmr.msra.gmra.mxu0 %vm2361_vm8, %v13297_v6  ;;  %v2738_v6 = vunpack.c.l.bf16 %v2684_v22 }
 0x7a5   : > { %12703 = vmatprep.mubr.msk.bf16.mxu0 %vm14096_vm6, %v14095_v27 }
 0x7ac   : > { %12704 = vmatmul.mubr.msk.bf16.gmra.mxu0 %vm2361_vm8, %v13298_v38  ;;  %v2698_v38 = vrot.slane %v11446_v12, %v17080_v0 }
 0x7ad   : > { %12707 = vmatprep.mubr.msk.bf16.mxu0 %vm14096_vm6, %v14095_v27 }
 0x7b4   : > { %12708 = vmatmul.mubr.msk.bf16.gmra.mxu0 %vm2361_vm8, %v13299_v34 }
 0x7b5   : > { %12711 = vmatprep.mubr.msk.bf16.mxu0 %vm14096_vm6, %v14095_v27 }
 0x7bc   : > { %12712 = vmatmul.mubr.msk.bf16.gmra.mxu0 %vm2361_vm8, %v13300_v54  ;;  %v2662_v54 = vpack.i.b16 %v2653_v24, %v2653_v24 }
 0x7bd   : > { %12715 = vmatprep.mubr.msk.bf16.mxu0 %vm14096_vm6, %v14095_v27 }
 0x7c4   : > { %12716 = vmatmul.mubr.msk.bf16.gmra.mxu0 %vm2361_vm8, %v13301_v1  ;;  %v2752_v1 = vrot.slane %v2737_v47, %v14278_v33 }
 0x7c5   : > { %12719 = vmatprep.mubr.msk.bf16.mxu0 %vm14096_vm6, %v14095_v27 }
 0x7cc   : > { %12720 = vmatmul.mubr.msk.bf16.gmra.mxu0 %vm2361_vm8, %v13302_v8  ;;  %v2739_v8 = vunpack.c.l.bf16 %v2691_v51 }
 0x7cd   : > { %12723 = vmatprep.mubr.msk.bf16.mxu0 %vm14096_vm6, %v14095_v27 }
 0x7d4   : > { %12724 = vmatmul.mubr.msk.bf16.gmra.mxu0 %vm2361_vm8, %v13303_v17  ;;  %v2705_v17 = vrot.slane %v2660_v61, %v17080_v0 }
 0x7d5   : > { %12727 = vmatprep.mubr.msk.bf16.mxu0 %vm14096_vm6, %v14095_v27 }
 0x7d6   : > { %v2741_v52 = vunpack.c.l.bf16 %v2705_v17 }
 0x7dc   : > { %12728 = vmatmul.mubr.msk.bf16.gmra.mxu0 %vm2361_vm8, %v13304_v35 }
 0x7dd   : > { %12731 = vmatprep.mubr.msk.bf16.mxu0 %vm14096_vm6, %v14095_v27 }
 0x7e4   : > { %12732 = vmatmul.mubr.msk.bf16.gmra.mxu0 %vm2361_vm8, %v13305_v63  ;;  %v2712_v63 = vrot.slane %v11447_v46, %v17080_v0 }
 0x7e5   : > { %12793 = vmatprep.mubr.msk.bf16.mxu0 %vm14096_vm6, %v14095_v27 }
 0x864   : > { %v15020_v49 = vpop.f32.mrf.mxu0 }
 0x866   : > { %v12701_v59 = vpop.f32.mrf.mxu0 }
 0x867   : > { %v2748_v59 = vrot.slane %v2736_v39, %v14278_v33 }
 0x868   : > { %v15022_v50 = vpop.f32.mrf.mxu0 }
 0x869   : > { %v2781_v43 = vmul.f32 %v2748_v59, %v15020_v49  ;;  %v2782_v25 = vmul.f32 %v2748_v59, %v15022_v50  ;;  %v2726_v49 = vrot.slane %v11448_v37, %v17080_v0  ;;  %v2834_v37 = vunpack.c.l.bf16 %v15043_v3 }
 0x86a   : > { %v12702_v18 = vpop.f32.mrf.mxu0 }
 0x86b   : > { %v2756_v18 = vrot.slane %v2738_v6, %v14278_v33  ;;  %v2744_v46 = vunpack.c.l.bf16 %v2726_v49 }
 0x86c   : > { %v2543_v19 = vpop.f32.mrf.mxu0 }
 0x86d   : > { %v2783_v44 = vmul.f32 %v2752_v1, %v2543_v19  ;;  %v2768_v19 = vrot.slane %v2741_v52, %v14278_v33 }
 0x86e   : > { %v12705_v21 = vpop.f32.mrf.mxu0 }
 0x86f   : > { %v2740_v21 = vunpack.c.l.bf16 %v2698_v38  ;;  %v2801_v10 = vsel %vm2799_vm9, %v2783_v44, 0.0 }
 0x870   : > { %v15024_v28 = vpop.f32.mrf.mxu0 }
 0x871   : > { %v2764_v16 = vrot.slane %v2740_v21, %v14278_v33  ;;  %v2784_v36 = vmul.f32 %v2752_v1, %v15024_v28 }
 0x872   : > { %v12706_v32 = vpop.f32.mrf.mxu0 }
 0x874   : > { %v2551_v29 = vpop.f32.mrf.mxu0 }
 0x876   : > { %v12709_v2 = vpop.f32.mrf.mxu0 }
 0x877   : > { %v2719_v2 = vrot.slane %v2662_v54, %v17080_v0  ;;  %v2817_v0 = vsel %vm2799_vm9, %v2782_v25, 0.0  ;;  %v2838_v25 = vrot.slane %v2834_v37, %v14627_v13  ;;  %v15181_v37 = vld [vmem:[%s17075_s1 + $0x2a4] sm:$0x3] }
 0x878   : > { %v15026_v9 = vpop.f32.mrf.mxu0 }
 0x879   : > { %v2743_v53 = vunpack.c.l.bf16 %v2719_v2  ;;  %v2786_v42 = vmul.f32 %v2756_v18, %v15026_v9 }
 0x87a   : > { %v12710_v62 = vpop.f32.mrf.mxu0 }
 0x87b   : > { %v2760_v62 = vrot.slane %v2739_v8, %v14278_v33  ;;  %v2776_v28 = vrot.slane %v2743_v53, %v14278_v33  ;;  %v2820_v48 = vsel %vm2799_vm9, %v2786_v42, 0.0 }
 0x87c   : > { %v2559_v5 = vpop.f32.mrf.mxu0 }
 0x87e   : > { %v12713_v40 = vpop.f32.mrf.mxu0 }
 0x87f   : > { %v2742_v40 = vunpack.c.l.bf16 %v2712_v63 }
 0x880   : > { %v15032_v45 = vpop.f32.mrf.mxu0 }
 0x881   : > { %v2772_v55 = vrot.slane %v2742_v40, %v14278_v33  ;;  %v2788_v24 = vmul.f32 %v2760_v62, %v15032_v45 }
 0x882   : > { %v12714_v31 = vpop.f32.mrf.mxu0 }
 0x883   : > { %v2785_v31 = vmul.f32 %v2756_v18, %v2551_v29  ;;  %v2800_v29 = vsel %vm2799_vm9, %v2781_v43, 0.0  ;;  %v2822_v54 = vsel %vm2799_vm9, %v2788_v24, 0.0 }
 0x884   : > { %v2567_v56 = vpop.f32.mrf.mxu0  ;;  %v2802_v12 = vadd.f32 %v2801_v10, %v2800_v29 }
 0x885   : > { %v2803_v57 = vsel %vm2799_vm9, %v2785_v31, 0.0  ;;  %v2789_v22 = vmul.f32 %v2764_v16, %v2567_v56 }
 0x886   : > { %v12717_v41 = vpop.f32.mrf.mxu0  ;;  %v2804_v51 = vadd.f32 %v2803_v57, %v2802_v12 }
 0x887   : > { %v2787_v41 = vmul.f32 %v2760_v62, %v2559_v5  ;;  %v2818_v5 = vsel %vm2799_vm9, %v2784_v36, 0.0  ;;  %v2807_v9 = vsel %vm2799_vm9, %v2789_v22, 0.0 }
 0x888   : > { %v15036_v20 = vpop.f32.mrf.mxu0  ;;  %v2819_v6 = vadd.f32 %v2818_v5, %v2817_v0  ;;  %v13309_v5 = vld [vmem:[%s17075_s1 + $0x230] sm:$0xff]  }
 0x889   : > { %v2805_v50 = vsel %vm2799_vm9, %v2787_v41, 0.0  ;;  %v2790_v56 = vmul.f32 %v2764_v16, %v15036_v20  ;;  %v2780_v20 = vrot.slane %v2744_v46, %v14278_v33 }
 0x88a   : > { %v12718_v14 = vpop.f32.mrf.mxu0  ;;  %v2806_v38 = vadd.f32 %v2805_v50, %v2804_v51  ;;  %v2821_v8 = vadd.f32 %v2820_v48, %v2819_v6  ;;  %v2848_v50 = vld [vmem:[%s17075_s1 + $0x22c] sm:$0x1] }
 0x88b   : > { %v2824_v15 = vsel %vm2799_vm9, %v2790_v56, 0.0  ;;  %v2850_v24 = vunpack.c.l.bf16 %v2848_v50 }
 0x88c   : > { %v2575_v26 = vpop.f32.mrf.mxu0  ;;  %v2808_v17 = vadd.f32 %v2807_v9, %v2806_v38  ;;  %v2823_v21 = vadd.f32 %v2822_v54, %v2821_v8 }
 0x88d   : > { %v2791_v47 = vmul.f32 %v2768_v19, %v2575_v26 }
 0x88e   : > { %v12721_v34 = vpop.f32.mrf.mxu0 }
 0x88f   : > { %v2809_v45 = vsel %vm2799_vm9, %v2791_v47, 0.0  ;;  %v2854_v47 = vrot.slane %v2850_v24, %v14278_v33 }
 0x890   : > { %v2578_v35 = vpop.f32.mrf.mxu0 }
 0x891   : > { %v2792_v26 = vmul.f32 %v2768_v19, %v2578_v35  ;;  %v2825_v35 = vadd.f32 %v2824_v15, %v2823_v21  ;;  %v13313_v21 = vld [vmem:[%s17075_s1 + $0x268] sm:$0xff]  }
 0x892   : > { %v12722_v32 = vpop.f32.mrf.mxu0 }
 0x893   : > { %v2810_v32 = vadd.f32 %v2809_v45, %v2808_v17  ;;  %v2826_v44 = vsel %vm2799_vm9, %v2792_v26, 0.0 }
 0x894   : > { %v2583_v60 = vpop.f32.mrf.mxu0  ;;  %v2827_v16 = vadd.f32 %v2826_v44, %v2825_v35  ;;  %v13316_v44 = vld [vmem:[%s17075_s1 + $0x280] ss:$0 sps:$4 sm:$0x33]   ;;  %v13318_v35 = vld [vmem:[%s17075_s1 + $0x290] sm:$0xff]  }
 0x895   : > { %v2793_v39 = vmul.f32 %v2772_v55, %v2583_v60 }
 0x896   : > { %v12725_v4 = vpop.f32.mrf.mxu0 }
 0x897   : > { %v2811_v59 = vsel %vm2799_vm9, %v2793_v39, 0.0 }
 0x898   : > { %v2586_v11 = vpop.f32.mrf.mxu0  ;;  %v2812_v60 = vadd.f32 %v2811_v59, %v2810_v32  ;;  %v13310_v59 = vld [vmem:[%s17075_s1 + $0x250] sm:$0xff]  }
 0x899   : > { %v2794_v18 = vmul.f32 %v2772_v55, %v2586_v11  ;;  %v13314_v32 = vld [vmem:[%s17075_s1 + $0x270] sm:$0xff]  }
 0x89a   : > { %v12726_v14 = vpop.f32.mrf.mxu0 }
 0x89b   : > { %v2828_v43 = vsel %vm2799_vm9, %v2794_v18, 0.0  ;;  %v13311_v18 = vld [vmem:[%s17075_s1 + $0x258] sm:$0xff]  }
 0x89c   : > { %v2591_v61 = vpop.f32.mrf.mxu0  ;;  %v2829_v41 = vadd.f32 %v2828_v43, %v2827_v16  ;;  %v12083_v16 = vld [vmem:[%s17075_s1 + $0x240] sm:$0xff]  }
 0x89d   : > { %v2795_v1 = vmul.f32 %v2776_v28, %v2591_v61 }
 0x89e   : > { %v12729_v34 = vpop.f32.mrf.mxu0 }
 0x89f   : > { %v2813_v62 = vsel %vm2799_vm9, %v2795_v1, 0.0 }
 0x8a0   : > { %v2594_v63 = vpop.f32.mrf.mxu0  ;;  %v2814_v4 = vadd.f32 %v2813_v62, %v2812_v60  ;;  %v13317_v62 = vld [vmem:[%s17075_s1 + $0x298] ss:$0 sps:$4 sm:$0xff]   ;;  %v13319_v60 = vld [vmem:[%s17075_s1 + $0x288] sm:$0xff]  }
 0x8a1   : > { %v2796_v52 = vmul.f32 %v2776_v28, %v2594_v63 }
 0x8a2   : > { %v12730_v2 = vpop.f32.mrf.mxu0 }
 0x8a3   : > { %v2830_v10 = vsel %vm2799_vm9, %v2796_v52, 0.0  ;;  %v13315_v2 = vld [vmem:[%s17075_s1 + $0x278] sm:$0xff]   ;;  %v3376_v52 = vsel %vm474_vm3, %v13317_v62, 0 }
 0x8a4   : > { %v2599_v40 = vpop.f32.mrf.mxu0  ;;  %v2831_v49 = vadd.f32 %v2830_v10, %v2829_v41  ;;  %v15191_v10 = vsub.s32 2, %v14233_v23 }
 0x8a5   : > { %v2797_v31 = vmul.f32 %v2780_v20, %v2599_v40  ;;  %v3343_v40 = vld [vmem:[%s17075_s1 + $0x2a0] sm:$0xf] }
 0x8a6   : > { %v12733_v53 = vpop.f32.mrf.mxu0  ;;  %v11473_v43 = vcombine.low %v3343_v40, %v15181_v37 }
 0x8a7   : > { %v2815_v36 = vsel %vm2799_vm9, %v2797_v31, 0.0 }
 0x8a8   : > { %v2816_v19 = vadd.f32 %v2815_v36, %v2814_v4  ;;  %v2602_v55 = vpop.f32.mrf.mxu0  ;;  %v3434_v31 = vsel %vm338_vm0, %v11473_v43, 0  ;;  %v12073_v4 = vunpack.c.l.bf16 %v12083_v16  ;;  %vm4876_vm0 = vcmask 191488  }
 0x8a9   : > { %v2798_v11 = vmul.f32 %v2780_v20, %v2602_v55  ;;  %v13312_v20 = vld [vmem:[%s17075_s1 + $0x260] sm:$0xff]   ;;  %12792 = vmatpush3.bf16.msra.mxu0 %v3434_v31 }
 0x8aa   : > { %v12734_v29 = vpop.f32.mrf.mxu0  ;;  %v2839_v57 = vadd.f32 %v2838_v25, %v2816_v19  ;;  %12797 = vmatprep.subr.bf16.mxu0 %v14095_v27  ;;  %v3151_v53 = vrot.slane %v12073_v4, %v14627_v13  ;;  %v3146_v36 = vrot.slane %v12073_v4, %v14278_v33  ;;  %v15195_v19 = vsub.s32 4, %v14233_v23 }
 0x8ab   : > { %v2832_v3 = vsel %vm2799_vm9, %v2798_v11, 0.0  ;;  %v3160_v11 = vrot.slane %v12073_v4, %v15191_v10 }
 0x8ac   : > { %v2833_v42 = vadd.f32 %v2832_v3, %v2831_v49  ;;  %v2841_v12 = vmax.f32 %v2839_v57, 0.0  ;;  %v17081_v49 = vld [vmem:[#allocation15_spill] sm:$0xff] }
 0x8ad   : > { %v3166_v29 = vrot.slane %v12073_v4, %v17081_v49 }
 0x8ae   : > { %v2840_v22 = vadd.f32 %v2838_v25, %v2833_v42  ;;  %v15198_v25 = vsub.s32 5, %v14233_v23 }
 0x8b0   : > { %v2842_v14 = vmax.f32 %v2840_v22, 0.0 }
 0x8b2   : > { %v2849_v28 = vpack.c.bf16 %v2842_v14, %v2841_v12  ;;  %v3175_v12 = vrot.slane %v12073_v4, %v15195_v19  ;;  %v3181_v14 = vrot.slane %v12073_v4, %v15198_v25 }
 0x8b4   : > { %12742 = vmatmul.mubr.msk.bf16.vlgmr.msra.gmra.mxu1 %vm2799_vm9, %v2849_v28  ;;  %v15205_v28 = vsub.s32 6, %v14233_v23 }
 0x8b5   : > { %12747 = vmatprep.mubr.msk.bf16.mxu1 %vm14096_vm6, %v14095_v27  ;;  %12746 = vmatpush3.bf16.msra.mxu1 %v13309_v5 }
 0x8b6   : > { %12751 = vmatprep.subr.bf16.mxu1 %v14095_v27 }
 0x974   : > { %v2910_v0 = vpop.f32.mrf.mxu1 }
 0x975   : > { %v2911_v51 = vadd.f32 %v2910_v0, %v2854_v47 }
 0x976   : > { %v12743_v61 = vpop.f32.mrf.mxu1 }
 0x977   : > { %v2917_v46 = vadd.f32 %v2911_v51, %v14939_v58  ;;  %v2923_v58 = vld [vmem:[%s17075_s1 + $0x238] sm:$0x1] }
 0x978   : > { %v2913_v48 = vpop.f32.mrf.mxu1  ;;  %v2925_v38 = vunpack.c.l.bf16 %v2923_v58 }
 0x979   : > { %2919 = vst.msk [vmem:[%s15105_s16] sm:$0xff] %vm2361_vm8, %v2917_v46  ;;  %v2914_v9 = vadd.f32 %v2913_v48, %v2854_v47  ;;  %v15208_v47 = vsub.s32 7, %v14233_v23  ;;  %v3190_v48 = vrot.slane %v12073_v4, %v15205_v28 }
 0x97a   : > { %v12744_v56 = vpop.f32.mrf.mxu1  ;;  %v2929_v34 = vrot.slane %v2925_v38, %v14278_v33 }
 0x97b   : > { %v2918_v39 = vadd.f32 %v2914_v9, %v14941_v30  ;;  %v12074_v9 = vunpack.c.h.bf16 %v12083_v16  ;;  %v3196_v58 = vrot.slane %v12073_v4, %v15208_v47  ;;  %v2984_v4 = vld [vmem:[%s17075_s1 + $0x248] sm:$0xf] }
 0x97d   : > { %2920 = vst.msk [vmem:[%s15105_s16 + $0x8] sm:$0xff] %vm2361_vm8, %v2918_v39  ;;  %v2924_v6 = vpack.c.bf16 %v2918_v39, %v2917_v46  ;;  %v3242_v16 = vrot.slane %v12074_v9, %v15198_v25 }
 0x97f   : > { %12748 = vmatmul.mubr.msk.bf16.vlgmr.msra.gmra.mxu1 %vm2361_vm8, %v2924_v6 }
 0x980   : > { %12753 = vmatprep.mubr.msk.bf16.mxu1 %vm14096_vm6, %v14095_v27 }
 0xa3f   : > { %v2973_v54 = vpop.f32.mrf.mxu1 }
 0xa40   : > { %v2974_v26 = vadd.f32 %v2973_v54, %v2929_v34 }
 0xa41   : > { %v12749_v45 = vpop.f32.mrf.mxu1 }
 0xa42   : > { %v2980_v17 = vmax.f32 %v2974_v26, 0.0  ;;  %v3206_v26 = vrot.slane %v12074_v9, %v14278_v33 }
 0xa43   : > { %v2976_v1 = vpop.f32.mrf.mxu1 }
 0xa44   : > { %v2977_v30 = vadd.f32 %v2976_v1, %v2929_v34 }
 0xa45   : > { %v12750_v8 = vpop.f32.mrf.mxu1 }
 0xa46   : > { %v2981_v63 = vmax.f32 %v2977_v30, 0.0  ;;  %v3212_v8 = vrot.slane %v12074_v9, %v14627_v13 }
 0xa48   : > { %v2999_v15 = vpack.c.bf16 %v2981_v63, %v2980_v17 }
 0xa4a   : > { %12752 = vmatpush3.bf16.msra.mxu1 %v2999_v15 }
 0xa4b   : > { %12781 = vmatprep.subr.bf16.mxu1 %v14095_v27 }
 0xa4d   : > { %12754 = vmatmul.mubr.msk.bf16.vlgmr.msra.gmra.mxu1 %vm2361_vm8, %v13310_v59 }
 0xa4e   : > { %12757 = vmatprep.mubr.msk.bf16.mxu1 %vm14096_vm6, %v14095_v27  ;;  %12782 = vmatpush3.bf16.msra.mxu1 %v3376_v52 }
 0xa4f   : > { %12783 = vmatprep.subr.bf16.mxu1 %v14095_v27 }
 0xa52   : > { %12784 = vmatpush3.bf16.msra.mxu1 %v13318_v35 }
 0xa53   : > { %12785 = vmatprep.subr.bf16.mxu1 %v14095_v27 }
 0xa55   : > { %12758 = vmatmul.mubr.msk.bf16.gmra.mxu1 %vm2361_vm8, %v13311_v18  ;;  %v3221_v18 = vrot.slane %v12074_v9, %v15191_v10 }
 0xa56   : > { %12761 = vmatprep.mubr.msk.bf16.mxu1 %vm14096_vm6, %v14095_v27  ;;  %12786 = vmatpush3.bf16.msra.mxu1 %v13319_v60  ;;  %v3236_v60 = vrot.slane %v12074_v9, %v15195_v19 }
 0xa57   : > { %12807 = vmatprep.subr.bf16.mxu1 %v14095_v27 }
 0xa5d   : > { %12762 = vmatmul.mubr.msk.bf16.gmra.mxu1 %vm2361_vm8, %v13312_v20 }
 0xa5e   : > { %12765 = vmatprep.mubr.msk.bf16.mxu1 %vm14096_vm6, %v14095_v27 }
 0xa65   : > { %12766 = vmatmul.mubr.msk.bf16.gmra.mxu1 %vm2361_vm8, %v13313_v21 }
 0xa66   : > { %12769 = vmatprep.mubr.msk.bf16.mxu1 %vm14096_vm6, %v14095_v27 }
 0xa6d   : > { %12770 = vmatmul.mubr.msk.bf16.gmra.mxu1 %vm2361_vm8, %v13314_v32 }
 0xa6e   : > { %12773 = vmatprep.mubr.msk.bf16.mxu1 %vm14096_vm6, %v14095_v27 }
 0xa75   : > { %12774 = vmatmul.mubr.msk.bf16.gmra.mxu1 %vm2361_vm8, %v13315_v2  ;;  %v3227_v2 = vrot.slane %v12074_v9, %v17081_v49 }
 0xa76   : > { %12777 = vmatprep.mubr.msk.bf16.mxu1 %vm14096_vm6, %v14095_v27 }
 0xa7d   : > { %12778 = vmatmul.mubr.msk.bf16.gmra.mxu1 %vm2361_vm8, %v13316_v44 }
 0xa7e   : > { %12787 = vmatprep.mubr.msk.bf16.mxu1 %vm14096_vm6, %v14095_v27 }
 0xb0d   : > { %v3088_v41 = vpop.f32.mrf.mxu1 }
 0xb0e   : > { %v3152_v55 = vmul.f32 %v3151_v53, %v3088_v41  ;;  %v3147_v57 = vmul.f32 %v3146_v36, %v3088_v41 }
 0xb0f   : > { %v12755_v3 = vpop.f32.mrf.mxu1 }
 0xb10   : > { %v3154_v42 = vrot.slane %v3152_v55, 4 }
 0xb11   : > { %v3091_v22 = vpop.f32.mrf.mxu1 }
 0xb12   : > { %v3156_v5 = vadd.f32 %v3154_v42, %v3147_v57  ;;  %v3161_v50 = vmul.f32 %v3160_v11, %v3091_v22  ;;  %v3167_v24 = vmul.f32 %v3166_v29, %v3091_v22  ;;  %v3251_v11 = vrot.slane %v12074_v9, %v15205_v28 }
 0xb13   : > { %v12756_v0 = vpop.f32.mrf.mxu1  ;;  %v3263_v29 = vunpack.c.l.bf16 %v2984_v4  ;;  %v3257_v22 = vrot.slane %v12074_v9, %v15208_v47 }
 0xb14   : > { %v3162_v51 = vadd.f32 %v3161_v50, %v3156_v5  ;;  %v3169_v61 = vrot.slane %v3167_v24, 4 }
 0xb15   : > { %v3096_v46 = vpop.f32.mrf.mxu1  ;;  %v3267_v24 = vrot.slane %v3263_v29, %v14278_v33 }
 0xb16   : > { %v3171_v56 = vadd.f32 %v3169_v61, %v3162_v51  ;;  %v3176_v39 = vmul.f32 %v3175_v12, %v3096_v46  ;;  %v3182_v6 = vmul.f32 %v3181_v14, %v3096_v46  ;;  %v3273_v46 = vrot.slane %v3263_v29, %v14627_v13 }
 0xb17   : > { %v12759_v38 = vpop.f32.mrf.mxu1 }
 0xb18   : > { %v3177_v34 = vadd.f32 %v3176_v39, %v3171_v56  ;;  %v3184_v54 = vrot.slane %v3182_v6, 4 }
 0xb19   : > { %v3099_v45 = vpop.f32.mrf.mxu1 }
 0xb1a   : > { %v3186_v23 = vadd.f32 %v3184_v54, %v3177_v34  ;;  %v3191_v1 = vmul.f32 %v3190_v48, %v3099_v45  ;;  %v3197_v30 = vmul.f32 %v3196_v58, %v3099_v45  ;;  %v3282_v58 = vrot.slane %v3263_v29, %v15191_v10 }
 0xb1b   : > { %v12760_v17 = vpop.f32.mrf.mxu1  ;;  %v3288_v54 = vrot.slane %v3263_v29, %v17081_v49 }
 0xb1c   : > { %v3192_v63 = vadd.f32 %v3191_v1, %v3186_v23  ;;  %v3199_v15 = vrot.slane %v3197_v30, 4  ;;  %v3297_v30 = vrot.slane %v3263_v29, %v15195_v19 }
 0xb1d   : > { %v3104_v59 = vpop.f32.mrf.mxu1 }
 0xb1e   : > { %v3201_v20 = vadd.f32 %v3199_v15, %v3192_v63  ;;  %v3207_v21 = vmul.f32 %v3206_v26, %v3104_v59  ;;  %v3213_v32 = vmul.f32 %v3212_v8, %v3104_v59  ;;  %v3303_v15 = vrot.slane %v3263_v29, %v15198_v25 }
 0xb1f   : > { %v12763_v44 = vpop.f32.mrf.mxu1 }
 0xb20   : > { %v3208_v62 = vadd.f32 %v3207_v21, %v3201_v20  ;;  %v3215_v52 = vrot.slane %v3213_v32, 4  ;;  %v3318_v44 = vrot.slane %v3263_v29, %v15208_v47 }
 0xb21   : > { %v3107_v35 = vpop.f32.mrf.mxu1 }
 0xb22   : > { %v3217_v40 = vadd.f32 %v3215_v52, %v3208_v62  ;;  %v3222_v43 = vmul.f32 %v3221_v18, %v3107_v35  ;;  %v3228_v31 = vmul.f32 %v3227_v2, %v3107_v35  ;;  %v2985_v18 = vld [vmem:[%s17075_s1 + $0x24c] sm:$0x1]  ;;  %v3312_v2 = vrot.slane %v3263_v29, %v15205_v28 }
 0xb23   : > { %v12764_v53 = vpop.f32.mrf.mxu1 }
 0xb24   : > { %v3223_v36 = vadd.f32 %v3222_v43, %v3217_v40  ;;  %v3230_v41 = vrot.slane %v3228_v31, 4 }
 0xb25   : > { %v3112_v55 = vpop.f32.mrf.mxu1 }
 0xb26   : > { %v3232_v3 = vadd.f32 %v3230_v41, %v3223_v36  ;;  %v3237_v57 = vmul.f32 %v3236_v60, %v3112_v55  ;;  %v3243_v42 = vmul.f32 %v3242_v16, %v3112_v55  ;;  %v3324_v60 = vunpack.c.l.bf16 %v2985_v18  ;;  %v13324_v18 = vld [vmem:[%s17075_s1 + $0x2c8] ss:$0 sps:$4 sm:$0xff]  }
 0xb27   : > { %v12767_v12 = vpop.f32.mrf.mxu1 }
 0xb28   : > { %v3238_v14 = vadd.f32 %v3237_v57, %v3232_v3  ;;  %v3245_v5 = vrot.slane %v3243_v42, 4  ;;  %v3328_v41 = vrot.slane %v3324_v60, %v14278_v33  ;;  %v3334_v29 = vrot.slane %v3324_v60, %v14627_v13 }
 0xb29   : > { %v3115_v50 = vpop.f32.mrf.mxu1 }
 0xb2a   : > { %v3247_v0 = vadd.f32 %v3245_v5, %v3238_v14  ;;  %v3252_v51 = vmul.f32 %v3251_v11, %v3115_v50  ;;  %v3258_v61 = vmul.f32 %v3257_v22, %v3115_v50 }
 0xb2b   : > { %v12768_v48 = vpop.f32.mrf.mxu1 }
 0xb2c   : > { %v3253_v56 = vadd.f32 %v3252_v51, %v3247_v0  ;;  %v3260_v39 = vrot.slane %v3258_v61, 4 }
 0xb2d   : > { %v3120_v6 = vpop.f32.mrf.mxu1 }
 0xb2e   : > { %v3262_v38 = vadd.f32 %v3260_v39, %v3253_v56  ;;  %v3268_v34 = vmul.f32 %v3267_v24, %v3120_v6  ;;  %v3274_v9 = vmul.f32 %v3273_v46, %v3120_v6 }
 0xb2f   : > { %v12771_v45 = vpop.f32.mrf.mxu1 }
 0xb30   : > { %v3269_v26 = vadd.f32 %v3268_v34, %v3262_v38  ;;  %v3276_v23 = vrot.slane %v3274_v9, 4  ;;  %v3342_v34 = vld [vmem:[%s17075_s1 + $0x29c] sm:$0x1] }
 0xb31   : > { %v3123_v1 = vpop.f32.mrf.mxu1  ;;  %v3356_v9 = vunpack.c.l.bf16 %v3342_v34  ;;  %v13330_v34 = vld [vmem:[%s17075_s1 + $0x300] sm:$0xff]  }
 0xb32   : > { %v3278_v8 = vadd.f32 %v3276_v23, %v3269_v26  ;;  %v3283_v17 = vmul.f32 %v3282_v58, %v3123_v1  ;;  %v3289_v63 = vmul.f32 %v3288_v54, %v3123_v1 }
 0xb33   : > { %v12772_v59 = vpop.f32.mrf.mxu1 }
 0xb34   : > { %v3284_v20 = vadd.f32 %v3283_v17, %v3278_v8  ;;  %v3291_v21 = vrot.slane %v3289_v63, 4  ;;  %v13321_v17 = vld [vmem:[%s17075_s1 + $0x2b8] ss:$0 sps:$4 sm:$0xff]   ;;  %v13323_v59 = vld [vmem:[%s17075_s1 + $0x2a8] sm:$0xff]  }
 0xb35   : > { %v3128_v32 = vpop.f32.mrf.mxu1  ;;  %v3516_v63 = vsel %vm474_vm3, %v13321_v17, 0 }
 0xb36   : > { %v3293_v62 = vadd.f32 %v3291_v21, %v3284_v20  ;;  %v3298_v52 = vmul.f32 %v3297_v30, %v3128_v32  ;;  %v3304_v35 = vmul.f32 %v3303_v15, %v3128_v32  ;;  %v13322_v15 = vld [vmem:[%s17075_s1 + $0x2b0] sm:$0xff]   ;;  %v3582_v20 = vsel %vm474_vm3, %v13324_v18, 0 }
 0xb37   : > { %v12775_v40 = vpop.f32.mrf.mxu1  ;;  %v3420_v21 = vunpack.c.l.bf16 %v15181_v37  ;;  %v13325_v37 = vld [vmem:[%s17075_s1 + $0x2c0] sm:$0xff]  }
 0xb38   : > { %v3299_v43 = vadd.f32 %v3298_v52, %v3293_v62  ;;  %v3306_v31 = vrot.slane %v3304_v35, 4 }
 0xb39   : > { %v3131_v16 = vpop.f32.mrf.mxu1  ;;  %v3427_v32 = vrot.slane %v3420_v21, 2 }
 0xb3a   : > { %v3308_v4 = vadd.f32 %v3306_v31, %v3299_v43  ;;  %v3313_v53 = vmul.f32 %v3312_v2, %v3131_v16  ;;  %v3319_v36 = vmul.f32 %v3318_v44, %v3131_v16 }
 0xb3b   : > { %v12776_v55 = vpop.f32.mrf.mxu1 }
 0xb3c   : > { %v3314_v11 = vadd.f32 %v3313_v53, %v3308_v4  ;;  %v3321_v3 = vrot.slane %v3319_v36, 4  ;;  %v3490_v36 = vld [vmem:[%s17075_s1 + $0x2bc] sm:$0x1] }
 0xb3d   : > { %v3136_v57 = vpop.f32.mrf.mxu1 }
 0xb3e   : > { %v3323_v42 = vadd.f32 %v3321_v3, %v3314_v11  ;;  %v3329_v22 = vmul.f32 %v3328_v41, %v3136_v57  ;;  %v3492_v41 = vunpack.c.l.bf16 %v3490_v36 }
 0xb3f   : > { %v12779_v12 = vpop.f32.mrf.mxu1 }
 0xb40   : > { %v3330_v14 = vadd.f32 %v3329_v22, %v3323_v42  ;;  %v3496_v55 = vrot.slane %v3492_v41, %v14278_v33  ;;  %v3561_v12 = vld [vmem:[%s17075_s1 + $0x2cc] sm:$0x1] }
 0xb41   : > { %v3139_v5 = vpop.f32.mrf.mxu1 }
 0xb42   : > { %v3335_v50 = vadd.f32 %v3334_v29, %v3330_v14  ;;  %v3563_v14 = vunpack.c.l.bf16 %v3561_v12 }
 0xb43   : > { %v12780_v24 = vpop.f32.mrf.mxu1 }
 0xb44   : > { %v3336_v0 = vmax.f32 %v3335_v50, 0.0  ;;  %v3567_v5 = vrot.slane %v3563_v14, %v14278_v33 }
 0xb46   : > { %v3346_v51 = vsel %vm3345_vm10, %v3336_v0, 0.0  ;;  %vm6916_vm10 = vcmask 687104  }
 0xb47   : > { %v3347_v61 = vrot.slane %v3346_v51, 4 }
 0xb49   : > { %v3348_v46 = vadd.f32 %v3347_v61, %v3346_v51 }
 0xb4b   : > { %v3349_v48 = vrot.slane %v3348_v46, 2 }
 0xb4d   : > { %v3350_v56 = vadd.f32 %v3349_v48, %v3348_v46 }
 0xb4f   : > { %v3351_v39 = vrot.slane %v3350_v56, 1 }
 0xb51   : > { %v3352_v6 = vadd.f32 %v3351_v39, %v3350_v56  ;;  %v13326_v39 = vld [vmem:[%s17075_s1 + $0x2e0] sm:$0xff]  }
 0xb53   : > { %v3354_v58 = vmul.f32 0.25, %v3352_v6  ;;  %v13327_v6 = vld [vmem:[%s17075_s1 + $0x2e8] sm:$0xff]  }
 0xb55   : > { %v3355_v38 = vpack.c.bf16 %v3354_v58, %v3354_v58  ;;  %v13328_v58 = vld [vmem:[%s17075_s1 + $0x2f0] sm:$0xff]  }
 0xb57   : > { %12788 = vmatmul.mubr.msk.bf16.vlgmr.msra.gmra.mxu1 %vm2799_vm9, %v3355_v38  ;;  %v13329_v38 = vld [vmem:[%s17075_s1 + $0x2f8] sm:$0xff]  }
 0xb58   : > { %12811 = vmatprep.mubr.msk.bf16.mxu1 %vm14096_vm6, %v14095_v27  ;;  %12808 = vmatpush3.bf16.msra.mxu1 %v3582_v20 }
 0xb59   : > { %12809 = vmatprep.subr.bf16.mxu1 %v14095_v27 }
 0xb5c   : > { %12810 = vmatpush3.bf16.msra.mxu1 %v13325_v37 }
 0xb5d   : > { %12845 = vmatprep.subr.bf16.mxu1 %v14095_v27 }
 0xc17   : > { %v3412_v54 = vpop.f32.mrf.mxu1 }
 0xc18   : > { %v3413_v45 = vadd.f32 %v3412_v54, %v3356_v9  ;;  %v13331_v9 = vld [vmem:[%s17075_s1 + $0x308] sm:$0xff]   ;;  %v13332_v54 = vld [vmem:[%s17075_s1 + $0x310] ss:$0 sps:$4 sm:$0x33]  }
 0xc19   : > { %v12789_v26 = vpop.f32.mrf.mxu1 }
 0xc1a   : > { %v3418_v23 = vmax.f32 %v3413_v45, 0.0  ;;  %v13333_v45 = vld [vmem:[%s17075_s1 + $0x330] sm:$0xff]   ;;  %v13334_v26 = vld [vmem:[%s17075_s1 + $0x328] sm:$0xff]  }
 0xc1b   : > { %v3415_v1 = vpop.f32.mrf.mxu1 }
 0xc1c   : > { %v3419_v30 = vpack.c.bf16 %v3418_v23, %v3418_v23  ;;  %v13335_v23 = vld [vmem:[%s17075_s1 + $0x320] sm:$0xff]   ;;  %v13336_v1 = vld [vmem:[%s17075_s1 + $0x318] sm:$0xff]  }
 0xc1d   : > { %v12790_v8 = vpop.f32.mrf.mxu1 }
 0xc1e   : > { %12794 = vmatmul.mubr.msk.bf16.vlgmr.msra.gmra.mxu0 %vm3429_vm11, %v3419_v30  ;;  %v12084_v30 = vld [vmem:[%s17075_s1 + $0x2d0] sm:$0xff]   ;;  %vm7282_vm11 = vcmask 450560  }
 0xc1f   : > { %12803 = vmatprep.mubr.msk.bf16.mxu0 %vm14096_vm6, %v14095_v27  ;;  %12798 = vmatpush3.bf16.msra.mxu0 %v3516_v63  ;;  %v12077_v8 = vunpack.c.l.bf16 %v12084_v30  ;;  %v12078_v37 = vunpack.c.h.bf16 %v12084_v30 }
 0xc20   : > { %12799 = vmatprep.subr.bf16.mxu0 %v14095_v27 }
 0xc21   : > { %v3799_v17 = vrot.slane %v12077_v8, %v14627_v13  ;;  %v3794_v63 = vrot.slane %v12077_v8, %v14278_v33  ;;  %v3808_v18 = vrot.slane %v12077_v8, %v15191_v10  ;;  %v3814_v20 = vrot.slane %v12077_v8, %v17081_v49 }
 0xc22   : > { %v3854_v12 = vrot.slane %v12078_v37, %v14278_v33  ;;  %v3890_v30 = vrot.slane %v12078_v37, %v15198_v25 }
 0xc23   : > { %12800 = vmatpush3.bf16.msra.mxu0 %v13322_v15 }
 0xc24   : > { %12801 = vmatprep.subr.bf16.mxu0 %v14095_v27 }
 0xc27   : > { %12802 = vmatpush3.bf16.msra.mxu0 %v13323_v59 }
 0xc28   : > { %12815 = vmatprep.subr.bf16.mxu0 %v14095_v27 }
 0xcde   : > { %v3470_v2 = vpop.f32.mrf.mxu0 }
 0xcdf   : > { %v3471_v44 = vadd.f32 %v3470_v2, %v3427_v32 }
 0xce0   : > { %v12795_v62 = vpop.f32.mrf.mxu0 }
 0xce1   : > { %v3476_v52 = vadd.f32 3.0, %v3471_v44  ;;  %v3823_v62 = vrot.slane %v12077_v8, %v15195_v19 }
 0xce2   : > { %v3473_v35 = vpop.f32.mrf.mxu0 }
 0xce3   : > { %v3477_v60 = vmax.f32 %v3476_v52, 0.0 }
 0xce4   : > { %v12796_v40 = vpop.f32.mrf.mxu0 }
 0xce5   : > { %v3478_v43 = vmin.f32 %v3477_v60, 6.0  ;;  %v3829_v40 = vrot.slane %v12077_v8, %v15198_v25 }
 0xce7   : > { %v3479_v31 = vmul.f32 0.16666667, %v3478_v43 }
 0xce9   : > { %v3483_v16 = vrot.slane %v3479_v31, %v14278_v33 }
 0xceb   : > { %v3484_v4 = vmul.f32 %v3483_v16, %v3336_v0 }
 0xced   : > { %v3491_v53 = vpack.c.bf16 %v3484_v4, %v3484_v4 }
 0xcef   : > { %12804 = vmatmul.mubr.msk.bf16.vlgmr.msra.gmra.mxu0 %vm2799_vm9, %v3491_v53  ;;  %v3838_v53 = vrot.slane %v12077_v8, %v15205_v28 }
 0xcf0   : > { %12817 = vmatprep.mubr.msk.bf16.mxu0 %vm14096_vm6, %v14095_v27 }
 0xdaf   : > { %v3552_v11 = vpop.f32.mrf.mxu0 }
 0xdb0   : > { %v15275_v3 = vadd.f32 %v3552_v11, %v3496_v55  ;;  %v3844_v11 = vrot.slane %v12077_v8, %v15208_v47  ;;  %v3627_v8 = vld [vmem:[%s17075_s1 + $0x2d8] sm:$0xf] }
 0xdb1   : > { %v12805_v57 = vpop.f32.mrf.mxu0 }
 0xdb2   : > { %v3562_v42 = vpack.c.bf16 %v15275_v3, %v15275_v3 }
 0xdb3   : > { %v3555_v22 = vpop.f32.mrf.mxu0 }
 0xdb4   : > { %12812 = vmatmul.mubr.msk.bf16.vlgmr.msra.gmra.mxu1 %vm3577_vm12, %v3562_v42 }
 0xdb5   : > { %v12806_v29 = vpop.f32.mrf.mxu0  ;;  %12853 = vmatprep.mubr.msk.bf16.mxu1 %vm14096_vm6, %v14095_v27  ;;  %12846 = vmatpush3.bf16.msra.mxu1 %v13333_v45  ;;  %v3884_v45 = vrot.slane %v12078_v37, %v15195_v19 }
 0xdb6   : > { %12847 = vmatprep.subr.bf16.mxu1 %v14095_v27 }
 0xdb9   : > { %12848 = vmatpush3.bf16.msra.mxu1 %v13334_v26 }
 0xdba   : > { %12849 = vmatprep.subr.bf16.mxu1 %v14095_v27 }
 0xdbd   : > { %12850 = vmatpush3.bf16.msra.mxu1 %v13335_v23 }
 0xdbe   : > { %12851 = vmatprep.subr.bf16.mxu1 %v14095_v27 }
 0xdc1   : > { %12852 = vmatpush3.bf16.msra.mxu1 %v13336_v1 }
 0xdc2   : > { %12857 = vmatprep.subr.bf16.mxu1 %v14095_v27 }
 0xe74   : > { %v3618_v50 = vpop.f32.mrf.mxu1 }
 0xe75   : > { %v3619_v24 = vadd.f32 %v3618_v50, %v3567_v5 }
 0xe76   : > { %v12813_v0 = vpop.f32.mrf.mxu1 }
 0xe77   : > { %v3624_v51 = vmax.f32 %v3619_v24, 0.0  ;;  %v3860_v24 = vrot.slane %v12078_v37, %v14627_v13 }
 0xe78   : > { %v3621_v61 = vpop.f32.mrf.mxu1 }
 0xe79   : > { %v3642_v46 = vpack.c.bf16 %v3624_v51, %v3624_v51 }
 0xe7a   : > { %v12814_v48 = vpop.f32.mrf.mxu1 }
 0xe7b   : > { %v3700_v56 = vsel %vm3698_vm13, %v3642_v46, 0  ;;  %v3869_v48 = vrot.slane %v12078_v37, %v15191_v10 }
 0xe7c   : > { %12816 = vmatpush3.bf16.msra.mxu0 %v3700_v56 }
 0xe7d   : > { %12913 = vmatprep.subr.bf16.mxu0 %v14095_v27 }
 0xe7f   : > { %12818 = vmatmul.mubr.msk.bf16.vlgmr.msra.gmra.mxu0 %vm3676_vm14, %v13326_v39 }
 0xe80   : > { %12821 = vmatprep.mubr.msk.bf16.mxu0 %vm14096_vm6, %v14095_v27 }
 0xe87   : > { %12822 = vmatmul.mubr.msk.bf16.gmra.mxu0 %vm3676_vm14, %v13327_v6 }
 0xe88   : > { %12825 = vmatprep.mubr.msk.bf16.mxu0 %vm14096_vm6, %v14095_v27 }
 0xe8f   : > { %12826 = vmatmul.mubr.msk.bf16.gmra.mxu0 %vm3676_vm14, %v13328_v58  ;;  %v3875_v58 = vrot.slane %v12078_v37, %v17081_v49 }
 0xe90   : > { %12829 = vmatprep.mubr.msk.bf16.mxu0 %vm14096_vm6, %v14095_v27 }
 0xe97   : > { %12830 = vmatmul.mubr.msk.bf16.gmra.mxu0 %vm3676_vm14, %v13329_v38 }
 0xe98   : > { %12833 = vmatprep.mubr.msk.bf16.mxu0 %vm14096_vm6, %v14095_v27 }
 0xe9f   : > { %12834 = vmatmul.mubr.msk.bf16.gmra.mxu0 %vm3676_vm14, %v13330_v34 }
 0xea0   : > { %12837 = vmatprep.mubr.msk.bf16.mxu0 %vm14096_vm6, %v14095_v27 }
 0xea7   : > { %12838 = vmatmul.mubr.msk.bf16.gmra.mxu0 %vm3676_vm14, %v13331_v9 }
 0xea8   : > { %12841 = vmatprep.mubr.msk.bf16.mxu0 %vm14096_vm6, %v14095_v27 }
 0xeaf   : > { %12842 = vmatmul.mubr.msk.bf16.gmra.mxu0 %vm3676_vm14, %v13332_v54 }
 0xeb0   : > { %12921 = vmatprep.mubr.msk.bf16.mxu0 %vm14096_vm6, %v14095_v27 }
 0xf3f   : > { %v3736_v15 = vpop.f32.mrf.mxu0 }
 0xf40   : > { %v3800_v59 = vmul.f32 %v3799_v17, %v3736_v15  ;;  %v3795_v32 = vmul.f32 %v3794_v63, %v3736_v15 }
 0xf41   : > { %v12819_v21 = vpop.f32.mrf.mxu0 }
 0xf42   : > { %v3802_v2 = vrot.slane %v3800_v59, 4 }
 0xf43   : > { %v3739_v44 = vpop.f32.mrf.mxu0 }
 0xf44   : > { %v3804_v52 = vadd.f32 %v3802_v2, %v3795_v32  ;;  %v3809_v35 = vmul.f32 %v3808_v18, %v3739_v44  ;;  %v3815_v60 = vmul.f32 %v3814_v20, %v3739_v44  ;;  %v3899_v18 = vrot.slane %v12078_v37, %v15205_v28 }
 0xf45   : > { %v12820_v43 = vpop.f32.mrf.mxu0  ;;  %v3911_v20 = vunpack.c.l.bf16 %v3627_v8  ;;  %v3905_v44 = vrot.slane %v12078_v37, %v15208_v47 }
 0xf46   : > { %v3810_v31 = vadd.f32 %v3809_v35, %v3804_v52  ;;  %v3817_v16 = vrot.slane %v3815_v60, 4 }
 0xf47   : > { %v3744_v4 = vpop.f32.mrf.mxu0 }
 0xf48   : > { %v3819_v36 = vadd.f32 %v3817_v16, %v3810_v31  ;;  %v3824_v41 = vmul.f32 %v3823_v62, %v3744_v4  ;;  %v3830_v55 = vmul.f32 %v3829_v40, %v3744_v4  ;;  %v3915_v40 = vrot.slane %v3911_v20, %v14278_v33 }
 0xf49   : > { %v12823_v57 = vpop.f32.mrf.mxu0  ;;  %v3921_v4 = vrot.slane %v3911_v20, %v14627_v13 }
 0xf4a   : > { %v3825_v42 = vadd.f32 %v3824_v41, %v3819_v36  ;;  %v3832_v22 = vrot.slane %v3830_v55, 4 }
 0xf4b   : > { %v3747_v29 = vpop.f32.mrf.mxu0 }
 0xf4c   : > { %v3834_v14 = vadd.f32 %v3832_v22, %v3825_v42  ;;  %v3839_v5 = vmul.f32 %v3838_v53, %v3747_v29  ;;  %v3845_v50 = vmul.f32 %v3844_v11, %v3747_v29  ;;  %v3930_v11 = vrot.slane %v3911_v20, %v15191_v10 }
 0xf4d   : > { %v12824_v0 = vpop.f32.mrf.mxu0  ;;  %v3936_v22 = vrot.slane %v3911_v20, %v17081_v49 }
 0xf4e   : > { %v3840_v51 = vadd.f32 %v3839_v5, %v3834_v14  ;;  %v3847_v61 = vrot.slane %v3845_v50, 4  ;;  %v3945_v50 = vrot.slane %v3911_v20, %v15195_v19 }
 0xf4f   : > { %v3752_v46 = vpop.f32.mrf.mxu0 }
 0xf50   : > { %v3849_v56 = vadd.f32 %v3847_v61, %v3840_v51  ;;  %v3855_v39 = vmul.f32 %v3854_v12, %v3752_v46  ;;  %v3861_v6 = vmul.f32 %v3860_v24, %v3752_v46  ;;  %v3951_v61 = vrot.slane %v3911_v20, %v15198_v25 }
 0xf51   : > { %v12827_v38 = vpop.f32.mrf.mxu0 }
 0xf52   : > { %v3856_v34 = vadd.f32 %v3855_v39, %v3849_v56  ;;  %v3863_v9 = vrot.slane %v3861_v6, 4  ;;  %v3966_v38 = vrot.slane %v3911_v20, %v15208_v47 }
 0xf53   : > { %v3755_v54 = vpop.f32.mrf.mxu0 }
 0xf54   : > { %v3865_v26 = vadd.f32 %v3863_v9, %v3856_v34  ;;  %v3870_v23 = vmul.f32 %v3869_v48, %v3755_v54  ;;  %v3876_v1 = vmul.f32 %v3875_v58, %v3755_v54  ;;  %v3628_v48 = vld [vmem:[%s17075_s1 + $0x2dc] sm:$0x1]  ;;  %v3960_v58 = vrot.slane %v3911_v20, %v15205_v28 }
 0xf55   : > { %v12828_v17 = vpop.f32.mrf.mxu0 }
 0xf56   : > { %v3871_v63 = vadd.f32 %v3870_v23, %v3865_v26  ;;  %v3878_v15 = vrot.slane %v3876_v1, 4 }
 0xf57   : > { %v3760_v59 = vpop.f32.mrf.mxu0 }
 0xf58   : > { %v3880_v21 = vadd.f32 %v3878_v15, %v3871_v63  ;;  %v3885_v32 = vmul.f32 %v3884_v45, %v3760_v59  ;;  %v3891_v2 = vmul.f32 %v3890_v30, %v3760_v59  ;;  %v3972_v45 = vunpack.c.l.bf16 %v3628_v48  ;;  %v13341_v48 = vld [vmem:[%s17075_s1 + $0x350] sm:$0xff]  }
 0xf59   : > { %v12831_v62 = vpop.f32.mrf.mxu0 }
 0xf5a   : > { %v3886_v52 = vadd.f32 %v3885_v32, %v3880_v21  ;;  %v3893_v35 = vrot.slane %v3891_v2, 4  ;;  %v3976_v15 = vrot.slane %v3972_v45, %v14278_v33  ;;  %v3982_v20 = vrot.slane %v3972_v45, %v14627_v13 }
 0xf5b   : > { %v3763_v60 = vpop.f32.mrf.mxu0 }
 0xf5c   : > { %v3895_v43 = vadd.f32 %v3893_v35, %v3886_v52  ;;  %v3900_v31 = vmul.f32 %v3899_v18, %v3763_v60  ;;  %v3906_v16 = vmul.f32 %v3905_v44, %v3763_v60 }
 0xf5d   : > { %v12832_v53 = vpop.f32.mrf.mxu0 }
 0xf5e   : > { %v3901_v36 = vadd.f32 %v3900_v31, %v3895_v43  ;;  %v3908_v41 = vrot.slane %v3906_v16, 4 }
 0xf5f   : > { %v3768_v55 = vpop.f32.mrf.mxu0 }
 0xf60   : > { %v3910_v57 = vadd.f32 %v3908_v41, %v3901_v36  ;;  %v3916_v42 = vmul.f32 %v3915_v40, %v3768_v55  ;;  %v3922_v37 = vmul.f32 %v3921_v4, %v3768_v55 }
 0xf61   : > { %v12835_v29 = vpop.f32.mrf.mxu0 }
 0xf62   : > { %v3917_v12 = vadd.f32 %v3916_v42, %v3910_v57  ;;  %v3924_v14 = vrot.slane %v3922_v37, 4  ;;  %v13337_v42 = vld [vmem:[%s17075_s1 + $0x340] sm:$0xff]   ;;  %v3993_v37 = vld [vmem:[%s17075_s1 + $0x338] sm:$0x1] }
 0xf63   : > { %v3771_v5 = vpop.f32.mrf.mxu0 }
 0xf64   : > { %v3926_v24 = vadd.f32 %v3924_v14, %v3917_v12  ;;  %v3931_v0 = vmul.f32 %v3930_v11, %v3771_v5  ;;  %v3937_v51 = vmul.f32 %v3936_v22, %v3771_v5  ;;  %v4007_v22 = vunpack.c.l.bf16 %v3993_v37  ;;  %v13347_v37 = vld [vmem:[%s17075_s1 + $0x3b0] sm:$0xff]  }
 0xf65   : > { %v12836_v46 = vpop.f32.mrf.mxu0 }
 0xf66   : > { %v3932_v56 = vadd.f32 %v3931_v0, %v3926_v24  ;;  %v3939_v39 = vrot.slane %v3937_v51, 4  ;;  %v13338_v51 = vld [vmem:[%s17075_s1 + $0x368] sm:$0xff]   ;;  %v13340_v46 = vld [vmem:[%s17075_s1 + $0x358] sm:$0xff]  }
 0xf67   : > { %v3776_v6 = vpop.f32.mrf.mxu0 }
 0xf68   : > { %v3941_v34 = vadd.f32 %v3939_v39, %v3932_v56  ;;  %v3946_v9 = vmul.f32 %v3945_v50, %v3776_v6  ;;  %v3952_v54 = vmul.f32 %v3951_v61, %v3776_v6  ;;  %v13339_v61 = vld [vmem:[%s17075_s1 + $0x360] sm:$0xff]   ;;  %v3996_v56 = vld [vmem:[%s17075_s1 + $0x348] sm:$0x1] }
 0xf69   : > { %v12839_v26 = vpop.f32.mrf.mxu0  ;;  %v4077_v39 = vunpack.c.l.bf16 %v3996_v56 }
 0xf6a   : > { %v3947_v23 = vadd.f32 %v3946_v9, %v3941_v34  ;;  %v3954_v1 = vrot.slane %v3952_v54, 4 }
 0xf6b   : > { %v3779_v30 = vpop.f32.mrf.mxu0 }
 0xf6c   : > { %v3956_v8 = vadd.f32 %v3954_v1, %v3947_v23  ;;  %v3961_v17 = vmul.f32 %v3960_v58, %v3779_v30  ;;  %v3967_v63 = vmul.f32 %v3966_v38, %v3779_v30 }
 0xf6d   : > { %v12840_v59 = vpop.f32.mrf.mxu0 }
 0xf6e   : > { %v3962_v18 = vadd.f32 %v3961_v17, %v3956_v8  ;;  %v3969_v21 = vrot.slane %v3967_v63, 4  ;;  %v13342_v17 = vld [vmem:[%s17075_s1 + $0x380] ss:$0 sps:$4 sm:$0xff]   ;;  %v4144_v59 = vld [vmem:[%s17075_s1 + $0x370] sm:$0x1] }
 0xf6f   : > { %v3784_v32 = vpop.f32.mrf.mxu0  ;;  %v4242_v63 = vsel %vm474_vm3, %v13342_v17, 0 }
 0xf70   : > { %v3971_v2 = vadd.f32 %v3969_v21, %v3962_v18  ;;  %v3977_v44 = vmul.f32 %v3976_v15, %v3784_v32  ;;  %v13343_v15 = vld [vmem:[%s17075_s1 + $0x378] sm:$0xff]   ;;  %v4146_v18 = vunpack.c.l.bf16 %v4144_v59 }
 0xf71   : > { %v12843_v62 = vpop.f32.mrf.mxu0 }
 0xf72   : > { %v3978_v52 = vadd.f32 %v3977_v44, %v3971_v2  ;;  %v4150_v21 = vrot.slane %v4146_v18, %v14278_v33 }
 0xf73   : > { %v3787_v35 = vpop.f32.mrf.mxu0 }
 0xf74   : > { %v3983_v60 = vadd.f32 %v3982_v20, %v3978_v52 }
 0xf75   : > { %v12844_v40 = vpop.f32.mrf.mxu0 }
 0xf76   : > { %v3984_v43 = vmax.f32 %v3983_v60, 0.0  ;;  %v4222_v60 = vld [vmem:[%s17075_s1 + $0x384] sm:$0x1] }
 0xf77   : > { %v4224_v40 = vunpack.c.l.bf16 %v4222_v60 }
 0xf78   : > { %v3998_v31 = vsel %vm3997_vm15, %v3984_v43, 0.0 }
 0xf79   : > { %v3999_v16 = vrot.slane %v3998_v31, 4 }
 0xf7b   : > { %v4000_v4 = vadd.f32 %v3999_v16, %v3998_v31 }
 0xf7d   : > { %v4001_v53 = vrot.slane %v4000_v4, 2 }
 0xf7f   : > { %v4002_v36 = vadd.f32 %v4001_v53, %v4000_v4 }
 0xf81   : > { %v4003_v41 = vrot.slane %v4002_v36, 1 }
 0xf83   : > { %v4004_v55 = vadd.f32 %v4003_v41, %v4002_v36 }
 0xf85   : > { %v4005_v11 = vmul.f32 0.25, %v4004_v55 }
 0xf87   : > { %v4006_v57 = vpack.c.bf16 %v4005_v11, %v4005_v11  ;;  %v13344_v11 = vld [vmem:[%s17075_s1 + $0x398] sm:$0xff]  }
 0xf89   : > { %12854 = vmatmul.mubr.msk.bf16.vlgmr.msra.gmra.mxu1 %vm809_vm5, %v4006_v57  ;;  %v13345_v57 = vld [vmem:[%s17075_s1 + $0x3a0] sm:$0xff]  }
 0xf8a   : > { %12859 = vmatprep.mubr.msk.bf16.mxu1 %vm14096_vm6, %v14095_v27  ;;  %12858 = vmatpush3.bf16.msra.mxu1 %v13337_v42  ;;  %v13346_v42 = vld [vmem:[%s17075_s1 + $0x3a8] sm:$0xff]  }
 0xf8b   : > { %12863 = vmatprep.subr.bf16.mxu1 %v14095_v27 }
0x1049   : > { %v4069_v29 = vpop.f32.mrf.mxu1 }
0x104a   : > { %v4070_v12 = vadd.f32 %v4069_v29, %v4007_v22  ;;  %v13348_v22 = vld [vmem:[%s17075_s1 + $0x3b8] sm:$0xff]   ;;  %v13349_v29 = vld [vmem:[%s17075_s1 + $0x3c0] sm:$0xff]  }
0x104b   : > { %v12855_v14 = vpop.f32.mrf.mxu1 }
0x104c   : > { %v4075_v5 = vmax.f32 %v4070_v12, 0.0  ;;  %v13350_v12 = vld [vmem:[%s17075_s1 + $0x3c8] ss:$0 sps:$4 sm:$0x33]  }
0x104d   : > { %v4072_v50 = vpop.f32.mrf.mxu1  ;;  %v13351_v14 = vld [vmem:[%s17075_s1 + $0x3e8] sm:$0xff]  }
0x104e   : > { %v4076_v24 = vpack.c.bf16 %v4075_v5, %v4075_v5  ;;  %12914 = vmatpush3.bf16.msra.mxu0 %v13351_v14  ;;  %v13352_v5 = vld [vmem:[%s17075_s1 + $0x3e0] sm:$0xff]   ;;  %v13353_v50 = vld [vmem:[%s17075_s1 + $0x3d8] sm:$0xff]  }
0x104f   : > { %v12856_v0 = vpop.f32.mrf.mxu1  ;;  %12915 = vmatprep.subr.bf16.mxu0 %v14095_v27 }
0x1050   : > { %12860 = vmatmul.mubr.msk.bf16.vlgmr.msra.gmra.mxu1 %vm2361_vm8, %v4076_v24  ;;  %v13354_v24 = vld [vmem:[%s17075_s1 + $0x3d0] sm:$0xff]   ;;  %v12085_v0 = vld [vmem:[%s17075_s1 + $0x388] sm:$0xff]  }
0x1051   : > { %12871 = vmatprep.mubr.msk.bf16.mxu1 %vm14096_vm6, %v14095_v27  ;;  %12864 = vmatpush3.bf16.msra.mxu1 %v13338_v51  ;;  %v12081_v51 = vunpack.c.l.bf16 %v12085_v0  ;;  %v12082_v59 = vunpack.c.h.bf16 %v12085_v0 }
0x1052   : > { %12865 = vmatprep.subr.bf16.mxu1 %v14095_v27  ;;  %12916 = vmatpush3.bf16.msra.mxu0 %v13352_v5 }
0x1053   : > { %12917 = vmatprep.subr.bf16.mxu0 %v14095_v27  ;;  %v4512_v60 = vrot.slane %v12082_v59, %v14278_v33  ;;  %v4542_v14 = vrot.slane %v12082_v59, %v15195_v19  ;;  %v4548_v0 = vrot.slane %v12082_v59, %v15198_v25 }
0x1055   : > { %12866 = vmatpush3.bf16.msra.mxu1 %v13339_v61  ;;  %v4457_v61 = vrot.slane %v12081_v51, %v14627_v13 }
0x1056   : > { %12867 = vmatprep.subr.bf16.mxu1 %v14095_v27  ;;  %12918 = vmatpush3.bf16.msra.mxu0 %v13353_v50 }
0x1057   : > { %12919 = vmatprep.subr.bf16.mxu0 %v14095_v27 }
0x1059   : > { %12868 = vmatpush3.bf16.msra.mxu1 %v13340_v46  ;;  %v4452_v46 = vrot.slane %v12081_v51, %v14278_v33 }
0x105a   : > { %12869 = vmatprep.subr.bf16.mxu1 %v14095_v27  ;;  %12920 = vmatpush3.bf16.msra.mxu0 %v13354_v24 }
0x105b   : > { %12925 = vmatprep.subr.bf16.mxu0 %v14095_v27 }
0x105d   : > { %12870 = vmatpush3.bf16.msra.mxu1 %v13341_v48 }
0x105e   : > { %12875 = vmatprep.subr.bf16.mxu1 %v14095_v27 }
0x1110   : > { %v4121_v6 = vpop.f32.mrf.mxu1 }
0x1111   : > { %v4122_v58 = vadd.f32 %v4121_v6, %v4077_v39  ;;  %v4466_v39 = vrot.slane %v12081_v51, %v15191_v10  ;;  %v4472_v6 = vrot.slane %v12081_v51, %v17081_v49 }
0x1112   : > { %v12861_v38 = vpop.f32.mrf.mxu1 }
0x1113   : > { %v4127_v34 = vadd.f32 3.0, %v4122_v58 }
0x1114   : > { %v4124_v9 = vpop.f32.mrf.mxu1 }
0x1115   : > { %v4128_v54 = vmax.f32 %v4127_v34, 0.0 }
0x1116   : > { %v12862_v45 = vpop.f32.mrf.mxu1 }
0x1117   : > { %v4129_v26 = vmin.f32 %v4128_v54, 6.0  ;;  %v4481_v54 = vrot.slane %v12081_v51, %v15195_v19 }
0x1119   : > { %v4130_v23 = vmul.f32 0.16666667, %v4129_v26 }
0x111b   : > { %v4134_v1 = vrot.slane %v4130_v23, %v14278_v33 }
0x111d   : > { %v4135_v30 = vmul.f32 %v4134_v1, %v3984_v43  ;;  %v4228_v43 = vrot.slane %v4224_v40, %v14278_v33  ;;  %v4487_v1 = vrot.slane %v12081_v51, %v15198_v25 }
0x111f   : > { %v4145_v8 = vpack.c.bf16 %v4135_v30, %v4135_v30 }
0x1121   : > { %12872 = vmatmul.mubr.msk.bf16.vlgmr.msra.gmra.mxu1 %vm809_vm5, %v4145_v8 }
0x1122   : > { %12879 = vmatprep.mubr.msk.bf16.mxu1 %vm14096_vm6, %v14095_v27  ;;  %12876 = vmatpush3.bf16.msra.mxu1 %v4242_v63 }
0x1123   : > { %12877 = vmatprep.subr.bf16.mxu1 %v14095_v27 }
0x1126   : > { %12878 = vmatpush3.bf16.msra.mxu1 %v13343_v15  ;;  %v4496_v15 = vrot.slane %v12081_v51, %v15205_v28 }
0x1127   : > { %12883 = vmatprep.subr.bf16.mxu1 %v14095_v27 }
0x11e1   : > { %v4212_v32 = vpop.f32.mrf.mxu1 }
0x11e2   : > { %v4213_v2 = vadd.f32 %v4212_v32, %v4150_v21 }
0x11e3   : > { %v12873_v44 = vpop.f32.mrf.mxu1 }
0x11e4   : > { %v15432_v20 = vadd.f32 %v4213_v2, %v15275_v3  ;;  %v4502_v2 = vrot.slane %v12081_v51, %v15208_v47  ;;  %v15523_v51 = vld [vmem:[%s17075_s1 + $0x390] ss:$176 sps:$4 sm:$0xff]  }
0x11e5   : > { %v4215_v62 = vpop.f32.mrf.mxu1 }
0x11e6   : > { %v4223_v52 = vpack.c.bf16 %v15432_v20, %v15432_v20 }
0x11e7   : > { %v12874_v35 = vpop.f32.mrf.mxu1 }
0x11e8   : > { %12880 = vmatmul.mubr.msk.bf16.vlgmr.msra.gmra.mxu1 %vm3577_vm12, %v4223_v52 }
0x11e9   : > { %12885 = vmatprep.mubr.msk.bf16.mxu1 %vm14096_vm6, %v14095_v27 }
0x12a8   : > { %v4278_v31 = vpop.f32.mrf.mxu1 }
0x12a9   : > { %v4279_v3 = vadd.f32 %v4278_v31, %v4228_v43 }
0x12aa   : > { %v12881_v16 = vpop.f32.mrf.mxu1 }
0x12ab   : > { %v4284_v4 = vmax.f32 %v4279_v3, 0.0  ;;  %v4518_v3 = vrot.slane %v12082_v59, %v14627_v13 }
0x12ac   : > { %v4281_v53 = vpop.f32.mrf.mxu1 }
0x12ad   : > { %v4302_v36 = vpack.c.bf16 %v4284_v4, %v4284_v4 }
0x12ae   : > { %v12882_v41 = vpop.f32.mrf.mxu1 }
0x12af   : > { %v4358_v55 = vsel %vm3698_vm13, %v4302_v36, 0  ;;  %v4527_v41 = vrot.slane %v12082_v59, %v15191_v10 }
0x12b0   : > { %12884 = vmatpush3.bf16.msra.mxu1 %v4358_v55 }
0x12b1   : > { %12957 = vmatprep.subr.bf16.mxu1 %v14095_v27 }
0x12b3   : > { %12886 = vmatmul.mubr.msk.bf16.vlgmr.msra.gmra.mxu1 %vm3676_vm14, %v13344_v11 }
0x12b4   : > { %12889 = vmatprep.mubr.msk.bf16.mxu1 %vm14096_vm6, %v14095_v27 }
0x12bb   : > { %12890 = vmatmul.mubr.msk.bf16.gmra.mxu1 %vm3676_vm14, %v13345_v57 }
0x12bc   : > { %12893 = vmatprep.mubr.msk.bf16.mxu1 %vm14096_vm6, %v14095_v27 }
0x12c3   : > { %12894 = vmatmul.mubr.msk.bf16.gmra.mxu1 %vm3676_vm14, %v13346_v42  ;;  %v4533_v42 = vrot.slane %v12082_v59, %v17081_v49 }
0x12c4   : > { %12897 = vmatprep.mubr.msk.bf16.mxu1 %vm14096_vm6, %v14095_v27 }
0x12cb   : > { %12898 = vmatmul.mubr.msk.bf16.gmra.mxu1 %vm3676_vm14, %v13347_v37 }
0x12cc   : > { %12901 = vmatprep.mubr.msk.bf16.mxu1 %vm14096_vm6, %v14095_v27 }
0x12d3   : > { %12902 = vmatmul.mubr.msk.bf16.gmra.mxu1 %vm3676_vm14, %v13348_v22 }
0x12d4   : > { %12905 = vmatprep.mubr.msk.bf16.mxu1 %vm14096_vm6, %v14095_v27 }
0x12db   : > { %12906 = vmatmul.mubr.msk.bf16.gmra.mxu1 %vm3676_vm14, %v13349_v29 }
0x12dc   : > { %12909 = vmatprep.mubr.msk.bf16.mxu1 %vm14096_vm6, %v14095_v27 }
0x12e3   : > { %12910 = vmatmul.mubr.msk.bf16.gmra.mxu1 %vm3676_vm14, %v13350_v12 }
0x12e4   : > { %12973 = vmatprep.mubr.msk.bf16.mxu1 %vm14096_vm6, %v14095_v27 }
0x1373   : > { %v4394_v48 = vpop.f32.mrf.mxu1 }
0x1374   : > { %v4458_v56 = vmul.f32 %v4457_v61, %v4394_v48  ;;  %v4453_v38 = vmul.f32 %v4452_v46, %v4394_v48 }
0x1375   : > { %v12887_v58 = vpop.f32.mrf.mxu1 }
0x1376   : > { %v4460_v34 = vrot.slane %v4458_v56, 4 }
0x1377   : > { %v4397_v9 = vpop.f32.mrf.mxu1 }
0x1378   : > { %v4462_v45 = vadd.f32 %v4460_v34, %v4453_v38  ;;  %v4467_v26 = vmul.f32 %v4466_v39, %v4397_v9  ;;  %v4473_v23 = vmul.f32 %v4472_v6, %v4397_v9  ;;  %v4557_v39 = vrot.slane %v12082_v59, %v15205_v28 }
0x1379   : > { %v12888_v30 = vpop.f32.mrf.mxu1  ;;  %v4569_v6 = vunpack.c.l.bf16 %v15523_v51  ;;  %v4563_v9 = vrot.slane %v12082_v59, %v15208_v47 }
0x137a   : > { %v4468_v8 = vadd.f32 %v4467_v26, %v4462_v45  ;;  %v4475_v17 = vrot.slane %v4473_v23, 4 }
0x137b   : > { %v4402_v63 = vpop.f32.mrf.mxu1 }
0x137c   : > { %v4477_v18 = vadd.f32 %v4475_v17, %v4468_v8  ;;  %v4482_v21 = vmul.f32 %v4481_v54, %v4402_v63  ;;  %v4488_v32 = vmul.f32 %v4487_v1, %v4402_v63  ;;  %v4573_v1 = vrot.slane %v4569_v6, %v14278_v33 }
0x137d   : > { %v12891_v44 = vpop.f32.mrf.mxu1  ;;  %v4579_v63 = vrot.slane %v4569_v6, %v14627_v13 }
0x137e   : > { %v4483_v62 = vadd.f32 %v4482_v21, %v4477_v18  ;;  %v4490_v52 = vrot.slane %v4488_v32, 4 }
0x137f   : > { %v4405_v35 = vpop.f32.mrf.mxu1 }
0x1380   : > { %v4492_v40 = vadd.f32 %v4490_v52, %v4483_v62  ;;  %v4497_v43 = vmul.f32 %v4496_v15, %v4405_v35  ;;  %v4503_v31 = vmul.f32 %v4502_v2, %v4405_v35  ;;  %v4588_v2 = vrot.slane %v4569_v6, %v15191_v10  ;;  %v4288_v10 = vld [vmem:[%s17075_s1 + $0x394] sm:$0x1] }
0x1381   : > { %v12892_v16 = vpop.f32.mrf.mxu1  ;;  %v4594_v52 = vrot.slane %v4569_v6, %v17081_v49  ;;  %v4618_v49 = vrot.slane %v4569_v6, %v15205_v28 }
0x1382   : > { %v4498_v4 = vadd.f32 %v4497_v43, %v4492_v40  ;;  %v4505_v53 = vrot.slane %v4503_v31, 4  ;;  %v4603_v31 = vrot.slane %v4569_v6, %v15195_v19 }
0x1383   : > { %v4410_v36 = vpop.f32.mrf.mxu1 }
0x1384   : > { %v4507_v55 = vadd.f32 %v4505_v53, %v4498_v4  ;;  %v4513_v11 = vmul.f32 %v4512_v60, %v4410_v36  ;;  %v4519_v57 = vmul.f32 %v4518_v3, %v4410_v36  ;;  %v4609_v53 = vrot.slane %v4569_v6, %v15198_v25 }
0x1385   : > { %v12895_v37 = vpop.f32.mrf.mxu1 }
0x1386   : > { %v4514_v22 = vadd.f32 %v4513_v11, %v4507_v55  ;;  %v4521_v29 = vrot.slane %v4519_v57, 4  ;;  %v4624_v57 = vrot.slane %v4569_v6, %v15208_v47 }
0x1387   : > { %v4413_v12 = vpop.f32.mrf.mxu1 }
0x1388   : > { %v4523_v5 = vadd.f32 %v4521_v29, %v4514_v22  ;;  %v4528_v50 = vmul.f32 %v4527_v41, %v4413_v12  ;;  %v4534_v24 = vmul.f32 %v4533_v42, %v4413_v12  ;;  %v4630_v22 = vunpack.c.l.bf16 %v4288_v10 }
0x1389   : > { %v12896_v61 = vpop.f32.mrf.mxu1 }
0x138a   : > { %v4529_v46 = vadd.f32 %v4528_v50, %v4523_v5  ;;  %v4536_v48 = vrot.slane %v4534_v24, 4  ;;  %v4640_v47 = vrot.slane %v4630_v22, %v14627_v13  ;;  %v13355_v13 = vld [vmem:[%s17075_s1 + $0x3f8] sm:$0xff]  }
0x138b   : > { %v4418_v56 = vpop.f32.mrf.mxu1 }
0x138c   : > { %v4538_v58 = vadd.f32 %v4536_v48, %v4529_v46  ;;  %v4543_v38 = vmul.f32 %v4542_v14, %v4418_v56  ;;  %v4549_v34 = vmul.f32 %v4548_v0, %v4418_v56  ;;  %v4634_v0 = vrot.slane %v4630_v22, %v14278_v33  ;;  %v13360_v22 = vld [vmem:[%s17075_s1 + $0x438] ss:$0 sps:$4 sm:$0xff]  }
0x138d   : > { %v12899_v54 = vpop.f32.mrf.mxu1 }
0x138e   : > { %v4544_v45 = vadd.f32 %v4543_v38, %v4538_v58  ;;  %v4551_v26 = vrot.slane %v4549_v34, 4 }
0x138f   : > { %v4421_v23 = vpop.f32.mrf.mxu1 }
0x1390   : > { %v4553_v30 = vadd.f32 %v4551_v26, %v4544_v45  ;;  %v4558_v8 = vmul.f32 %v4557_v39, %v4421_v23  ;;  %v4564_v17 = vmul.f32 %v4563_v9, %v4421_v23 }
0x1391   : > { %v12900_v15 = vpop.f32.mrf.mxu1 }
0x1392   : > { %v4559_v18 = vadd.f32 %v4558_v8, %v4553_v30  ;;  %v4566_v21 = vrot.slane %v4564_v17, 4 }
0x1393   : > { %v4426_v32 = vpop.f32.mrf.mxu1 }
0x1394   : > { %v4568_v44 = vadd.f32 %v4566_v21, %v4559_v18  ;;  %v4574_v62 = vmul.f32 %v4573_v1, %v4426_v32  ;;  %v4580_v59 = vmul.f32 %v4579_v63, %v4426_v32  ;;  %v4651_v18 = vld [vmem:[%s17075_s1 + $0x3f0] sm:$0x1] }
0x1395   : > { %v12903_v35 = vpop.f32.mrf.mxu1  ;;  %v4664_v21 = vunpack.c.l.bf16 %v4651_v18  ;;  %v13367_v18 = vld [vmem:[%s17075_s1 + $0x468] sm:$0xff]  }
0x1396   : > { %v4575_v60 = vadd.f32 %v4574_v62, %v4568_v44  ;;  %v4582_v40 = vrot.slane %v4580_v59, 4 }
0x1397   : > { %v4429_v43 = vpop.f32.mrf.mxu1 }
0x1398   : > { %v4584_v3 = vadd.f32 %v4582_v40, %v4575_v60  ;;  %v4589_v16 = vmul.f32 %v4588_v2, %v4429_v43  ;;  %v4595_v4 = vmul.f32 %v4594_v52, %v4429_v43  ;;  %v13356_v60 = vld [vmem:[%s17075_s1 + $0x420] sm:$0xff]   ;;  %v13357_v40 = vld [vmem:[%s17075_s1 + $0x418] sm:$0xff]   ;;  %v13358_v43 = vld [vmem:[%s17075_s1 + $0x410] sm:$0xff]  }
0x1399   : > { %v12904_v36 = vpop.f32.mrf.mxu1 }
0x139a   : > { %v4590_v41 = vadd.f32 %v4589_v16, %v4584_v3  ;;  %v4597_v55 = vrot.slane %v4595_v4, 4  ;;  %v4654_v3 = vld [vmem:[%s17075_s1 + $0x400] sm:$0x1] }
0x139b   : > { %v4434_v11 = vpop.f32.mrf.mxu1  ;;  %v4734_v16 = vunpack.c.l.bf16 %v4654_v3 }
0x139c   : > { %v4599_v42 = vadd.f32 %v4597_v55, %v4590_v41  ;;  %v4604_v37 = vmul.f32 %v4603_v31, %v4434_v11  ;;  %v4610_v19 = vmul.f32 %v4609_v53, %v4434_v11  ;;  %v13359_v31 = vld [vmem:[%s17075_s1 + $0x408] sm:$0xff]  }
0x139d   : > { %v12907_v29 = vpop.f32.mrf.mxu1 }
0x139e   : > { %v4605_v12 = vadd.f32 %v4604_v37, %v4599_v42  ;;  %v4612_v14 = vrot.slane %v4610_v19, 4  ;;  %v4901_v29 = vsel %vm474_vm3, %v13360_v22, 0 }
0x139f   : > { %v4437_v25 = vpop.f32.mrf.mxu1 }
0x13a0   : > { %v4614_v5 = vadd.f32 %v4612_v14, %v4605_v12  ;;  %v4619_v50 = vmul.f32 %v4618_v49, %v4437_v25  ;;  %v4625_v24 = vmul.f32 %v4624_v57, %v4437_v25  ;;  %v13361_v12 = vld [vmem:[%s17075_s1 + $0x430] sm:$0xff]   ;;  %v4801_v14 = vld [vmem:[%s17075_s1 + $0x428] sm:$0x1] }
0x13a1   : > { %v12908_v61 = vpop.f32.mrf.mxu1  ;;  %v4803_v25 = vunpack.c.l.bf16 %v4801_v14 }
0x13a2   : > { %v4620_v46 = vadd.f32 %v4619_v50, %v4614_v5  ;;  %v4627_v48 = vrot.slane %v4625_v24, 4 }
0x13a3   : > { %v4442_v56 = vpop.f32.mrf.mxu1  ;;  %v4807_v5 = vrot.slane %v4803_v25, %v14278_v33 }
0x13a4   : > { %v4629_v28 = vadd.f32 %v4627_v48, %v4620_v46  ;;  %v4635_v39 = vmul.f32 %v4634_v0, %v4442_v56 }
0x13a5   : > { %v12911_v6 = vpop.f32.mrf.mxu1 }
0x13a6   : > { %v4636_v58 = vadd.f32 %v4635_v39, %v4629_v28  ;;  %v13363_v28 = vld [vmem:[%s17075_s1 + $0x488] ss:$0 sps:$4 sm:$0xff]   ;;  %v4881_v6 = vld [vmem:[%s17075_s1 + $0x43c] sm:$0x1] }
0x13a7   : > { %v4445_v38 = vpop.f32.mrf.mxu1  ;;  %v5109_v39 = vsel %vm474_vm3, %v13363_v28, 0 }
0x13a8   : > { %v4641_v34 = vadd.f32 %v4640_v47, %v4636_v58  ;;  %12958 = vmatpush3.bf16.msra.mxu1 %v5109_v39  ;;  %v13365_v47 = vld [vmem:[%s17075_s1 + $0x478] sm:$0xff]   ;;  %v4883_v58 = vunpack.c.l.bf16 %v4881_v6 }
0x13a9   : > { %v12912_v9 = vpop.f32.mrf.mxu1  ;;  %12959 = vmatprep.subr.bf16.mxu1 %v14095_v27 }
0x13aa   : > { %v4642_v54 = vmax.f32 %v4641_v34, 0.0  ;;  %v4887_v38 = vrot.slane %v4883_v58, %v14278_v33 }
0x13ac   : > { %v4655_v45 = vsel %vm3997_vm15, %v4642_v54, 0.0 }
0x13ad   : > { %v4656_v26 = vrot.slane %v4655_v45, 4 }
0x13af   : > { %v4657_v23 = vadd.f32 %v4656_v26, %v4655_v45 }
0x13b1   : > { %v4658_v1 = vrot.slane %v4657_v23, 2 }
0x13b3   : > { %v4659_v30 = vadd.f32 %v4658_v1, %v4657_v23 }
0x13b5   : > { %v4660_v8 = vrot.slane %v4659_v30, 1 }
0x13b7   : > { %v4661_v17 = vadd.f32 %v4660_v8, %v4659_v30 }
0x13b9   : > { %v4662_v63 = vmul.f32 0.25, %v4661_v17 }
0x13bb   : > { %v4663_v15 = vpack.c.bf16 %v4662_v63, %v4662_v63 }
0x13bd   : > { %12922 = vmatmul.mubr.msk.bf16.vlgmr.msra.gmra.mxu0 %vm809_vm5, %v4663_v15 }
0x13be   : > { %12927 = vmatprep.mubr.msk.bf16.mxu0 %vm14096_vm6, %v14095_v27  ;;  %12926 = vmatpush3.bf16.msra.mxu0 %v13355_v13  ;;  %v13362_v13 = vld [vmem:[%s17075_s1 + $0x448] sm:$0x1f]  }
0x13bf   : > { %12931 = vmatprep.subr.bf16.mxu0 %v14095_v27 }
0x147d   : > { %v4726_v32 = vpop.f32.mrf.mxu0 }
0x147e   : > { %v4727_v2 = vadd.f32 %v4726_v32, %v4664_v21  ;;  %v13368_v21 = vld [vmem:[%s17075_s1 + $0x460] sm:$0xff]   ;;  %v13369_v32 = vld [vmem:[%s17075_s1 + $0x458] sm:$0xff]  }
0x147f   : > { %v12923_v44 = vpop.f32.mrf.mxu0 }
0x1480   : > { %v4732_v62 = vmax.f32 %v4727_v2, 0.0  ;;  %v13370_v2 = vld [vmem:[%s17075_s1 + $0x450] sm:$0xff]   ;;  %v13371_v44 = vld [vmem:[%s17075_s1 + $0x4a0] ss:$0 sps:$4 sm:$0xff]  }
0x1481   : > { %v4729_v59 = vpop.f32.mrf.mxu0 }
0x1482   : > { %v4733_v52 = vpack.c.bf16 %v4732_v62, %v4732_v62  ;;  %v5178_v62 = vsel %vm474_vm3, %v13371_v44, 0  ;;  %v13372_v59 = vld [vmem:[%s17075_s1 + $0x498] sm:$0xff]  }
0x1483   : > { %v12924_v35 = vpop.f32.mrf.mxu0 }
0x1484   : > { %12928 = vmatmul.mubr.msk.bf16.vlgmr.msra.gmra.mxu0 %vm2361_vm8, %v4733_v52  ;;  %v5005_v52 = vunpack.c.h.bf16 %v15523_v51  ;;  %vm6374_vm8 = vcmask 457728  }
0x1485   : > { %12939 = vmatprep.mubr.msk.bf16.mxu0 %vm14096_vm6, %v14095_v27  ;;  %12932 = vmatpush3.bf16.msra.mxu0 %v13356_v60 }
0x1486   : > { %12933 = vmatprep.subr.bf16.mxu0 %v14095_v27 }
0x1489   : > { %12934 = vmatpush3.bf16.msra.mxu0 %v13357_v40 }
0x148a   : > { %12935 = vmatprep.subr.bf16.mxu0 %v14095_v27 }
0x148d   : > { %12936 = vmatpush3.bf16.msra.mxu0 %v13358_v43 }
0x148e   : > { %12937 = vmatprep.subr.bf16.mxu0 %v14095_v27 }
0x1491   : > { %12938 = vmatpush3.bf16.msra.mxu0 %v13359_v31 }
0x1492   : > { %12943 = vmatprep.subr.bf16.mxu0 %v14095_v27 }
0x1544   : > { %v4778_v4 = vpop.f32.mrf.mxu0 }
0x1545   : > { %v4779_v53 = vadd.f32 %v4778_v4, %v4734_v16 }
0x1546   : > { %v12929_v36 = vpop.f32.mrf.mxu0 }
0x1547   : > { %v4784_v10 = vadd.f32 3.0, %v4779_v53 }
0x1548   : > { %v4781_v41 = vpop.f32.mrf.mxu0 }
0x1549   : > { %v4785_v55 = vmax.f32 %v4784_v10, 0.0 }
0x154a   : > { %v12930_v11 = vpop.f32.mrf.mxu0 }
0x154b   : > { %v4786_v49 = vmin.f32 %v4785_v55, 6.0  ;;  %v4949_v55 = vld [vmem:[%s17075_s1 + $0x444] sm:$0x1] }
0x154d   : > { %v4787_v57 = vmul.f32 0.16666667, %v4786_v49 }
0x154f   : > { %v4791_v42 = vrot.slane %v4787_v57, %v14278_v33  ;;  %v13366_v33 = vld [vmem:[%s17075_s1 + $0x470] sm:$0xff]  }
0x1551   : > { %v4792_v37 = vmul.f32 %v4791_v42, %v4642_v54  ;;  %v5029_v42 = vunpack.c.l.bf16 %v4949_v55 }
0x1553   : > { %v4802_v19 = vpack.c.bf16 %v4792_v37, %v4792_v37 }
0x1555   : > { %12940 = vmatmul.mubr.msk.bf16.vlgmr.msra.gmra.mxu0 %vm809_vm5, %v4802_v19  ;;  %vm5487_vm5 = vcmask 785408  }
0x1556   : > { %12947 = vmatprep.mubr.msk.bf16.mxu0 %vm14096_vm6, %v14095_v27  ;;  %12944 = vmatpush3.bf16.msra.mxu0 %v4901_v29 }
0x1557   : > { %12945 = vmatprep.subr.bf16.mxu0 %v14095_v27 }
0x155a   : > { %12946 = vmatpush3.bf16.msra.mxu0 %v13361_v12  ;;  %v5033_v12 = vrot.slane %v5029_v42, 1 }
0x155b   : > { %12951 = vmatprep.subr.bf16.mxu0 %v14095_v27 }
0x1615   : > { %v4869_v50 = vpop.f32.mrf.mxu0 }
0x1616   : > { %v4870_v24 = vadd.f32 %v4869_v50, %v4807_v5 }
0x1617   : > { %v12941_v0 = vpop.f32.mrf.mxu0 }
0x1618   : > { %v4875_v61 = vadd.f32 %v4870_v24, %v15432_v20  ;;  %v13364_v20 = vld [vmem:[%s17075_s1 + $0x480] sm:$0xff]  }
0x1619   : > { %v4872_v46 = vpop.f32.mrf.mxu0  ;;  %12960 = vmatpush3.bf16.msra.mxu1 %v13364_v20 }
0x161a   : > { %v4882_v48 = vpack.c.bf16 %v4875_v61, %v4875_v61  ;;  %4877 = vst.msk [vmem:[%s15595_s20] sm:$0xf] %vm4876_vm0, %v4875_v61  ;;  %12961 = vmatprep.subr.bf16.mxu1 %v14095_v27 }
0x161b   : > { %v12942_v56 = vpop.f32.mrf.mxu0 }
0x161c   : > { %12948 = vmatmul.mubr.msk.bf16.vlgmr.msra.gmra.mxu0 %vm3577_vm12, %v4882_v48  ;;  %v13373_v48 = vld [vmem:[%s17075_s1 + $0x490] sm:$0xff]   ;;  %v5056_v56 = vld [vmem:[%s17075_s1 + $0x48c] sm:$0x1] }
0x161d   : > { %12953 = vmatprep.mubr.msk.bf16.mxu0 %vm14096_vm6, %v14095_v27  ;;  %12962 = vmatpush3.bf16.msra.mxu1 %v13365_v47  ;;  %v5058_v28 = vunpack.c.l.bf16 %v5056_v56 }
0x161e   : > { %12963 = vmatprep.subr.bf16.mxu1 %v14095_v27 }
0x1621   : > { %12964 = vmatpush3.bf16.msra.mxu1 %v13366_v33 }
0x1622   : > { %12965 = vmatprep.subr.bf16.mxu1 %v14095_v27 }
0x1625   : > { %12966 = vmatpush3.bf16.msra.mxu1 %v13367_v18  ;;  %v15716_v18 = vld [vmem:[%s17075_s1 + $0x4a8] ss:$88 sps:$4 sm:$0xff]  }
0x1626   : > { %12967 = vmatprep.subr.bf16.mxu1 %v14095_v27 }
0x1629   : > { %12968 = vmatpush3.bf16.msra.mxu1 %v13368_v21 }
0x162a   : > { %12969 = vmatprep.subr.bf16.mxu1 %v14095_v27 }
0x162d   : > { %12970 = vmatpush3.bf16.msra.mxu1 %v13369_v32 }
0x162e   : > { %12971 = vmatprep.subr.bf16.mxu1 %v14095_v27 }
0x1631   : > { %12972 = vmatpush3.bf16.msra.mxu1 %v13370_v2  ;;  %v5226_v2 = vld [vmem:[%s17075_s1 + $0x4ac] sm:$0x1] }
0x1632   : > { %12987 = vmatprep.subr.bf16.mxu1 %v14095_v27 }
0x16dc   : > { %v4937_v34 = vpop.f32.mrf.mxu0 }
0x16dd   : > { %v4938_v9 = vadd.f32 %v4937_v34, %v4887_v38  ;;  %v13374_v34 = vld [vmem:[%s17075_s1 + $0x4e0] ss:$0 sps:$4 sm:$0xff]  }
0x16de   : > { %v12949_v54 = vpop.f32.mrf.mxu0 }
0x16df   : > { %v4943_v45 = vadd.f32 3.0, %v4938_v9  ;;  %v13375_v54 = vld [vmem:[%s17075_s1 + $0x4d8] sm:$0xff]  }
0x16e0   : > { %v4940_v26 = vpop.f32.mrf.mxu0 }
0x16e1   : > { %v4944_v23 = vmax.f32 %v4943_v45, 0.0  ;;  %v13376_v45 = vld [vmem:[%s17075_s1 + $0x4d0] sm:$0xff]   ;;  %v13377_v26 = vld [vmem:[%s17075_s1 + $0x4c8] sm:$0xff]  }
0x16e2   : > { %v12950_v1 = vpop.f32.mrf.mxu0 }
0x16e3   : > { %v4945_v30 = vmin.f32 %v4944_v23, 6.0  ;;  %v13378_v23 = vld [vmem:[%s17075_s1 + $0x4c0] sm:$0xff]   ;;  %v13379_v1 = vld [vmem:[%s17075_s1 + $0x4b8] sm:$0xff]  }
0x16e5   : > { %v4946_v8 = vmul.f32 %v4945_v30, %v4938_v9  ;;  %v5302_v9 = vsel %vm474_vm3, %v13374_v34, 0  ;;  %v13380_v30 = vld [vmem:[%s17075_s1 + $0x4b0] sm:$0xff]  }
0x16e7   : > { %v4947_v17 = vmul.f32 0.16666667, %v4946_v8  ;;  %v13381_v8 = vld [vmem:[%s17075_s1 + $0x4f8] ss:$0 sps:$4 sm:$0xff]  }
0x16e9   : > { %v4952_v63 = vpack.c.bf16 %v4947_v17, %v4947_v17  ;;  %v5372_v17 = vsel %vm474_vm3, %v13381_v8, 0 }
0x16eb   : > { %v4962_v15 = vsel %vm3698_vm13, %v4952_v63, 0  ;;  %v5156_v63 = vld [vmem:[%s17075_s1 + $0x4a4] sm:$0x1] }
0x16ec   : > { %12952 = vmatpush3.bf16.msra.mxu0 %v4962_v15  ;;  %v5158_v15 = vunpack.c.l.bf16 %v5156_v63 }
0x16ed   : > { %12977 = vmatprep.subr.bf16.mxu0 %v14095_v27 }
0x16ef   : > { %12954 = vmatmul.mubr.msk.bf16.vlgmr.msra.gmra.mxu0 %vm3676_vm14, %v13362_v13 }
0x16f0   : > { %12983 = vmatprep.mubr.msk.bf16.mxu0 %vm14096_vm6, %v14095_v27  ;;  %12978 = vmatpush3.bf16.msra.mxu0 %v5178_v62 }
0x16f1   : > { %12979 = vmatprep.subr.bf16.mxu0 %v14095_v27 }
0x16f4   : > { %12980 = vmatpush3.bf16.msra.mxu0 %v13372_v59  ;;  %v5227_v59 = vunpack.c.l.bf16 %v15716_v18 }
0x16f5   : > { %12981 = vmatprep.subr.bf16.mxu0 %v14095_v27 }
0x16f8   : > { %12982 = vmatpush3.bf16.msra.mxu0 %v13373_v48  ;;  %v13390_v48 = vld [vmem:[%s17075_s1 + $0x550] ss:$0 sps:$4 sm:$0xff]  }
0x16f9   : > { %13005 = vmatprep.subr.bf16.mxu0 %v14095_v27  ;;  %v5559_v56 = vsel %vm474_vm3, %v13390_v48, 0 }
0x17af   : > { %v4998_v35 = vpop.f32.mrf.mxu0 }
0x17b0   : > { %v5006_v60 = vmul.f32 %v5005_v52, %v4998_v35 }
0x17b1   : > { %v12955_v40 = vpop.f32.mrf.mxu0 }
0x17b2   : > { %v5008_v43 = vrot.slane %v5006_v60, 1  ;;  %v5011_v16 = vrot.slane %v5006_v60, 2  ;;  %v5014_v36 = vrot.slane %v5006_v60, 3  ;;  %v5017_v41 = vrot.slane %v5006_v60, 4 }
0x17b3   : > { %v5001_v31 = vpop.f32.mrf.mxu0  ;;  %v5020_v49 = vrot.slane %v5006_v60, 5  ;;  %v5023_v51 = vrot.slane %v5006_v60, 6  ;;  %v5026_v19 = vrot.slane %v5006_v60, 7 }
0x17b4   : > { %v5010_v3 = vadd.f32 %v5008_v43, %v5006_v60  ;;  %v5030_v29 = vmul.f32 %v5029_v42, %v5001_v31  ;;  %v5232_v60 = vunpack.c.l.bf16 %v5226_v2  ;;  %v5229_v43 = vrot.slane %v5227_v59, 4  ;;  %v5448_v59 = vld [vmem:[%s17075_s1 + $0x538] sm:$0x1] }
0x17b5   : > { %v12956_v4 = vpop.f32.mrf.mxu0 }
0x17b6   : > { %v5013_v53 = vadd.f32 %v5011_v16, %v5010_v3  ;;  %v5234_v3 = vrot.slane %v5232_v60, 1 }
0x17b8   : > { %v5016_v10 = vadd.f32 %v5014_v36, %v5013_v53 }
0x17ba   : > { %v5019_v11 = vadd.f32 %v5017_v41, %v5016_v10 }
0x17bc   : > { %v5022_v57 = vadd.f32 %v5020_v49, %v5019_v11  ;;  %v13382_v49 = vld [vmem:[%s17075_s1 + $0x4f0] sm:$0xff]  }
0x17be   : > { %v5025_v37 = vadd.f32 %v5023_v51, %v5022_v57  ;;  %v13383_v57 = vld [vmem:[%s17075_s1 + $0x4e8] sm:$0xff]   ;;  %v5255_v51 = vld [vmem:[%s17075_s1 + $0x4e4] sm:$0x1] }
0x17bf   : > { %v5257_v42 = vunpack.c.l.bf16 %v5255_v51  ;;  %v13403_v51 = vld [vmem:[#allocation2 + $0x24] ss:$16 sps:$4 sm:$0xff]  }
0x17c0   : > { %v5028_v22 = vadd.f32 %v5026_v19, %v5025_v37 }
0x17c2   : > { %v5031_v14 = vadd.f32 %v5030_v29, %v5028_v22 }
0x17c4   : > { %v5035_v25 = vadd.f32 %v5033_v12, %v5031_v14 }
0x17c6   : > { %v5036_v5 = vadd.f32 3.0, %v5035_v25 }
0x17c8   : > { %v5037_v50 = vmax.f32 %v5036_v5, 0.0  ;;  %v13384_v5 = vld [vmem:[%s17075_s1 + $0x530] sm:$0xff]  }
0x17ca   : > { %v5038_v24 = vmin.f32 %v5037_v50, 6.0  ;;  %v13385_v50 = vld [vmem:[%s17075_s1 + $0x528] sm:$0xff]  }
0x17cc   : > { %v5039_v0 = vmul.f32 %v5038_v24, %v5035_v25  ;;  %v13386_v24 = vld [vmem:[%s17075_s1 + $0x520] sm:$0xff]  }
0x17ce   : > { %v5040_v61 = vmul.f32 0.16666667, %v5039_v0  ;;  %v13387_v0 = vld [vmem:[%s17075_s1 + $0x518] sm:$0xff]  }
0x17d0   : > { %v5057_v46 = vpack.c.bf16 %v5040_v61, %v5040_v61  ;;  %v13388_v61 = vld [vmem:[%s17075_s1 + $0x510] sm:$0xff]  }
0x17d2   : > { %12974 = vmatmul.mubr.msk.bf16.vlgmr.msra.gmra.mxu1 %vm5104_vm2, %v5057_v46  ;;  %v13389_v46 = vld [vmem:[%s17075_s1 + $0x508] sm:$0xff]  }
0x17d3   : > { %13001 = vmatprep.mubr.msk.bf16.mxu1 %vm14096_vm6, %v14095_v27  ;;  %12988 = vmatpush3.bf16.msra.mxu1 %v5302_v9 }
0x17d4   : > { %12989 = vmatprep.subr.bf16.mxu1 %v14095_v27 }
0x17d7   : > { %12990 = vmatpush3.bf16.msra.mxu1 %v13375_v54  ;;  %v5421_v54 = vunpack.c.h.bf16 %v15716_v18  ;;  %v13391_v18 = vld [vmem:[%s17075_s1 + $0x548] sm:$0xff]  }
0x17d8   : > { %12991 = vmatprep.subr.bf16.mxu1 %v14095_v27 }
0x17db   : > { %12992 = vmatpush3.bf16.msra.mxu1 %v13376_v45 }
0x17dc   : > { %12993 = vmatprep.subr.bf16.mxu1 %v14095_v27 }
0x17df   : > { %12994 = vmatpush3.bf16.msra.mxu1 %v13377_v26 }
0x17e0   : > { %12995 = vmatprep.subr.bf16.mxu1 %v14095_v27 }
0x17e3   : > { %12996 = vmatpush3.bf16.msra.mxu1 %v13378_v23 }
0x17e4   : > { %12997 = vmatprep.subr.bf16.mxu1 %v14095_v27 }
0x17e7   : > { %12998 = vmatpush3.bf16.msra.mxu1 %v13379_v1 }
0x17e8   : > { %12999 = vmatprep.subr.bf16.mxu1 %v14095_v27 }
0x17eb   : > { %13000 = vmatpush3.bf16.msra.mxu1 %v13380_v30  ;;  %v5423_v30 = vrot.slane %v5421_v54, 4 }
0x17ec   : > { %13031 = vmatprep.subr.bf16.mxu1 %v14095_v27 }
0x1892   : > { %v5145_v39 = vpop.f32.mrf.mxu1 }
0x1893   : > { %v15669_v20 = vadd.f32 %v5145_v39, %v5058_v28  ;;  %v5350_v28 = vld [vmem:[%s17075_s1 + $0x4fc] sm:$0x1] }
0x1894   : > { %v12975_v47 = vpop.f32.mrf.mxu1  ;;  %v5352_v39 = vunpack.c.l.bf16 %v5350_v28 }
0x1895   : > { %v5157_v6 = vpack.c.bf16 %v15669_v20, %v15669_v20 }
0x1896   : > { %v5148_v58 = vpop.f32.mrf.mxu1 }
0x1897   : > { %12984 = vmatmul.mubr.msk.bf16.vlgmr.msra.gmra.mxu0 %vm2799_vm9, %v5157_v6 }
0x1898   : > { %v12976_v38 = vpop.f32.mrf.mxu1  ;;  %13011 = vmatprep.mubr.msk.bf16.mxu0 %vm14096_vm6, %v14095_v27  ;;  %13006 = vmatpush3.bf16.msra.mxu0 %v5372_v17 }
0x1899   : > { %13007 = vmatprep.subr.bf16.mxu0 %v14095_v27  ;;  %v5420_v38 = vld [vmem:[%s17075_s1 + $0x504] sm:$0x1] }
0x189a   : > { %v5426_v23 = vunpack.c.l.bf16 %v5420_v38 }
0x189c   : > { %13008 = vmatpush3.bf16.msra.mxu0 %v13382_v49  ;;  %v5428_v17 = vrot.slane %v5426_v23, 1  ;;  %v13406_v23 = vld [vmem:[#allocation2 + $0x4] ss:$16 sps:$4 sm:$0xff]  }
0x189d   : > { %13009 = vmatprep.subr.bf16.mxu0 %v14095_v27 }
0x18a0   : > { %13010 = vmatpush3.bf16.msra.mxu0 %v13383_v57 }
0x18a1   : > { %13015 = vmatprep.subr.bf16.mxu0 %v14095_v27 }
0x1957   : > { %v5214_v13 = vpop.f32.mrf.mxu0 }
0x1958   : > { %v5215_v33 = vadd.f32 %v5214_v13, %v5158_v15 }
0x1959   : > { %v12985_v21 = vpop.f32.mrf.mxu0 }
0x195a   : > { %v5220_v32 = vadd.f32 3.0, %v5215_v33 }
0x195b   : > { %v5217_v44 = vpop.f32.mrf.mxu0 }
0x195c   : > { %v5221_v62 = vmax.f32 %v5220_v32, 0.0 }
0x195d   : > { %v12986_v52 = vpop.f32.mrf.mxu0 }
0x195e   : > { %v5222_v35 = vmin.f32 %v5221_v62, 6.0  ;;  %v13392_v62 = vld [vmem:[%s17075_s1 + $0x540] sm:$0xff]   ;;  %v5450_v52 = vunpack.c.l.bf16 %v5448_v59  ;;  %v13410_v59 = vld [vmem:[%s17075_s1 + $0x5b8] sm:$0xff]  }
0x1960   : > { %v5223_v40 = vmul.f32 %v5222_v35, %v5215_v33 }
0x1962   : > { %v5224_v31 = vmul.f32 0.16666667, %v5223_v40 }
0x1964   : > { %v5231_v16 = vmul.f32 %v5229_v43, %v5224_v31 }
0x1966   : > { %v5236_v4 = vadd.f32 %v5234_v3, %v5231_v16 }
0x1968   : > { %v5237_v53 = vadd.f32 3.0, %v5236_v4 }
0x196a   : > { %v5238_v36 = vmax.f32 %v5237_v53, 0.0  ;;  %v13394_v53 = vld [vmem:[%s17075_s1 + $0x580] sm:$0xff]  }
0x196c   : > { %v5239_v10 = vmin.f32 %v5238_v36, 6.0  ;;  %v13395_v36 = vld [vmem:[%s17075_s1 + $0x578] sm:$0xff]  }
0x196e   : > { %v5240_v41 = vmul.f32 %v5239_v10, %v5236_v4  ;;  %v13393_v4 = vld [vmem:[%s17075_s1 + $0x588] sm:$0xff]   ;;  %v13396_v10 = vld [vmem:[%s17075_s1 + $0x570] sm:$0xff]  }
0x1970   : > { %v5241_v55 = vmul.f32 0.16666667, %v5240_v41  ;;  %v13397_v41 = vld [vmem:[%s17075_s1 + $0x568] sm:$0xff]  }
0x1972   : > { %v5256_v11 = vpack.c.bf16 %v5241_v55, %v5241_v55  ;;  %v13398_v55 = vld [vmem:[%s17075_s1 + $0x560] sm:$0xff]  }
0x1974   : > { %13002 = vmatmul.mubr.msk.bf16.vlgmr.msra.gmra.mxu1 %vm5297_vm4, %v5256_v11  ;;  %v5722_v11 = vld [vmem:[#allocation2 + $0x40] sm:$0xff] }
0x1975   : > { %13037 = vmatprep.mubr.msk.bf16.mxu1 %vm14096_vm6, %v14095_v27  ;;  %13032 = vmatpush3.bf16.msra.mxu1 %v5559_v56  ;;  %v11590_v49 = vcombine.high %v5722_v11, %v5722_v11  ;;  %v11589_v57 = vcombine.low %v5722_v11, %v5722_v11 }
0x1976   : > { %13033 = vmatprep.subr.bf16.mxu1 %v14095_v27 }
0x1979   : > { %13034 = vmatpush3.bf16.msra.mxu1 %v13391_v18  ;;  %v13408_v18 = vld [vmem:[%s17075_s1 + $0x5c8] sm:$0xff]  }
0x197a   : > { %13035 = vmatprep.subr.bf16.mxu1 %v14095_v27 }
0x197d   : > { %13036 = vmatpush3.bf16.msra.mxu1 %v13392_v62  ;;  %v13409_v62 = vld [vmem:[%s17075_s1 + $0x5c0] sm:$0xff]  }
0x197e   : > { %11591 = vmatprep.subr.msk.bf16.mxu1 %vm474_vm3, %v11590_v49  ;;  %v13426_v49 = vld [vmem:[#allocation2 + $0xc4] ss:$16 sps:$4 sm:$0xff]  }
0x1a34   : > { %v5338_v37 = vpop.f32.mrf.mxu1 }
0x1a35   : > { %v5339_v19 = vadd.f32 %v5338_v37, %v5257_v42  ;;  %v5756_v42 = vsel %vm474_vm3, %v11589_v57, 0  ;;  %v13401_v37 = vld [vmem:[#allocation2 + $0x20] ss:$16 sps:$4 sm:$0xff]  }
0x1a36   : > { %v13003_v22 = vpop.f32.mrf.mxu1 }
0x1a37   : > { %v15736_v29 = vadd.f32 %v5339_v19, %v15669_v20  ;;  %v5537_v19 = vld [vmem:[%s17075_s1 + $0x554] sm:$0x1] }
0x1a38   : > { %v5341_v12 = vpop.f32.mrf.mxu1  ;;  %v5539_v22 = vunpack.c.l.bf16 %v5537_v19  ;;  %v5723_v19 = vld [vmem:[#allocation2 + $0x50] sm:$0x11] }
0x1a39   : > { %v5351_v14 = vpack.c.bf16 %v15736_v29, %v15736_v29 }
0x1a3a   : > { %v13004_v25 = vpop.f32.mrf.mxu1 }
0x1a3b   : > { %13012 = vmatmul.mubr.msk.bf16.vlgmr.msra.gmra.mxu0 %vm2799_vm9, %v5351_v14  ;;  %v5606_v14 = vld [vmem:[%s17075_s1 + $0x558] sm:$0xf] }
0x1a3c   : > { %13027 = vmatprep.mubr.msk.bf16.mxu0 %vm14096_vm6, %v14095_v27  ;;  %13016 = vmatpush3.bf16.msra.mxu0 %v13384_v5 }
0x1a3d   : > { %13017 = vmatprep.subr.bf16.mxu0 %v14095_v27 }
0x1a40   : > { %13018 = vmatpush3.bf16.msra.mxu0 %v13385_v50  ;;  %v5607_v50 = vld [vmem:[%s17075_s1 + $0x55c] sm:$0x1] }
0x1a41   : > { %13019 = vmatprep.subr.bf16.mxu0 %v14095_v27  ;;  %v5613_v56 = vunpack.c.l.bf16 %v5607_v50 }
0x1a44   : > { %13020 = vmatpush3.bf16.msra.mxu0 %v13386_v24 }
0x1a45   : > { %13021 = vmatprep.subr.bf16.mxu0 %v14095_v27 }
0x1a48   : > { %13022 = vmatpush3.bf16.msra.mxu0 %v13387_v0 }
0x1a49   : > { %13023 = vmatprep.subr.bf16.mxu0 %v14095_v27 }
0x1a4c   : > { %13024 = vmatpush3.bf16.msra.mxu0 %v13388_v61  ;;  %v5608_v61 = vunpack.c.l.bf16 %v5606_v14 }
0x1a4d   : > { %13025 = vmatprep.subr.bf16.mxu0 %v14095_v27 }
0x1a50   : > { %13026 = vmatpush3.bf16.msra.mxu0 %v13389_v46 }
0x1a51   : > { %13041 = vmatprep.subr.bf16.mxu0 %v14095_v27 }
0x1afb   : > { %v5408_v20 = vpop.f32.mrf.mxu0 }
0x1afc   : > { %v5409_v47 = vadd.f32 %v5408_v20, %v5352_v39  ;;  %v5610_v39 = vrot.slane %v5608_v61, 4 }
0x1afd   : > { %v13013_v6 = vpop.f32.mrf.mxu0 }
0x1afe   : > { %v5414_v58 = vadd.f32 3.0, %v5409_v47 }
0x1aff   : > { %v5411_v34 = vpop.f32.mrf.mxu0 }
0x1b00   : > { %v5415_v9 = vmax.f32 %v5414_v58, 0.0 }
0x1b01   : > { %v13014_v45 = vpop.f32.mrf.mxu0 }
0x1b02   : > { %v5416_v26 = vmin.f32 %v5415_v9, 6.0 }
0x1b04   : > { %v5417_v1 = vmul.f32 %v5416_v26, %v5409_v47  ;;  %v5615_v47 = vrot.slane %v5613_v56, 1 }
0x1b06   : > { %v5418_v8 = vmul.f32 0.16666667, %v5417_v1  ;;  %v13404_v1 = vld [vmem:[#allocation2] ss:$16 sps:$4 sm:$0xff]  }
0x1b08   : > { %v5425_v63 = vmul.f32 %v5423_v30, %v5418_v8  ;;  %v14097_v30 = vmov 0   ;;  %v5635_v8 = vld [vmem:[%s17075_s1 + $0x590] sm:$0x1] }
0x1b0a   : > { %v5430_v15 = vadd.f32 %v5428_v17, %v5425_v63  ;;  %v5637_v17 = vunpack.c.l.bf16 %v5635_v8 }
0x1b0c   : > { %v5431_v13 = vadd.f32 3.0, %v5430_v15 }
0x1b0e   : > { %v5432_v33 = vmax.f32 %v5431_v13, 0.0 }
0x1b10   : > { %v5433_v21 = vmin.f32 %v5432_v33, 6.0 }
0x1b12   : > { %v5434_v32 = vmul.f32 %v5433_v21, %v5430_v15 }
0x1b14   : > { %v5435_v2 = vmul.f32 0.16666667, %v5434_v32  ;;  %v13407_v32 = vld [vmem:[%s17075_s1 + $0x5d0] sm:$0xff]  }
0x1b16   : > { %v5449_v44 = vpack.c.bf16 %v5435_v2, %v5435_v2 }
0x1b18   : > { %13028 = vmatmul.mubr.msk.bf16.vlgmr.msra.gmra.mxu0 %vm5487_vm5, %v5449_v44 }
0x1b19   : > { %13053 = vmatprep.mubr.msk.bf16.mxu0 %vm14096_vm6, %v14095_v27  ;;  %13042 = vmatpush3.bf16.msra.mxu0 %v13393_v4  ;;  %v13419_v4 = vld [vmem:[%s17075_s1 + $0x5e8] sm:$0xff]  }
0x1b1a   : > { %13043 = vmatprep.subr.bf16.mxu0 %v14095_v27 }
0x1b1d   : > { %13044 = vmatpush3.bf16.msra.mxu0 %v13394_v53  ;;  %v13420_v53 = vld [vmem:[%s17075_s1 + $0x5e0] sm:$0xff]  }
0x1b1e   : > { %13045 = vmatprep.subr.bf16.mxu0 %v14095_v27 }
0x1b21   : > { %13046 = vmatpush3.bf16.msra.mxu0 %v13395_v36  ;;  %v13421_v36 = vld [vmem:[%s17075_s1 + $0x5d8] sm:$0xff]  }
0x1b22   : > { %13047 = vmatprep.subr.bf16.mxu0 %v14095_v27 }
0x1b25   : > { %13048 = vmatpush3.bf16.msra.mxu0 %v13396_v10  ;;  %v5881_v10 = vld [vmem:[#allocation2 + $0xe0] sm:$0xff] }
0x1b26   : > { %13049 = vmatprep.subr.bf16.mxu0 %v14095_v27 }
0x1b29   : > { %13050 = vmatpush3.bf16.msra.mxu0 %v13397_v41  ;;  %v15900_v41 = vld [vmem:[#allocation2 + $0xf0] sm:$0x77] }
0x1b2a   : > { %13051 = vmatprep.subr.bf16.mxu0 %v14095_v27  ;;  %v11615_v11 = vcombine.low %v5881_v10, %v15900_v41 }
0x1b2c   : > { %v6075_v57 = vsel %vm339_vm1, %v11615_v11, 0  ;;  %v13433_v11 = vld [vmem:[%s17075_s1 + $0x650] sm:$0xff]  }
0x1b2d   : > { %13052 = vmatpush3.bf16.msra.mxu0 %v13398_v55  ;;  %v11616_v55 = vcombine.high %v5881_v10, %v15900_v41 }
0x1b2f   : > { %11617 = vmatprep.subr.msk.bf16.mxu0 %vm339_vm1, %v11616_v55  ;;  %vm5978_vm1 = vcmask 916480  }
0x1bd8   : > { %v5525_v35 = vpop.f32.mrf.mxu0 }
0x1bd9   : > { %v5526_v60 = vadd.f32 %v5525_v35, %v5450_v52  ;;  %v13411_v52 = vld [vmem:[%s17075_s1 + $0x5b0] sm:$0xff]   ;;  %v13412_v35 = vld [vmem:[%s17075_s1 + $0x5a8] sm:$0xff]  }
0x1bda   : > { %v13029_v40 = vpop.f32.mrf.mxu0 }
0x1bdb   : > { %v15793_v43 = vadd.f32 %v5526_v60, %v15736_v29  ;;  %v13413_v60 = vld [vmem:[%s17075_s1 + $0x5a0] sm:$0xff]   ;;  %v13414_v40 = vld [vmem:[%s17075_s1 + $0x598] sm:$0xff]  }
0x1bdc   : > { %v5528_v31 = vpop.f32.mrf.mxu0 }
0x1bdd   : > { %v5538_v3 = vpack.c.bf16 %v15793_v43, %v15793_v43  ;;  %v13416_v31 = vld [vmem:[%s17075_s1 + $0x600] sm:$0xff]  }
0x1bde   : > { %v13030_v16 = vpop.f32.mrf.mxu0 }
0x1bdf   : > { %13038 = vmatmul.mubr.msk.bf16.vlgmr.msra.gmra.mxu1 %vm2799_vm9, %v5538_v3  ;;  %v13417_v3 = vld [vmem:[%s17075_s1 + $0x5f8] sm:$0xff]   ;;  %v13418_v16 = vld [vmem:[%s17075_s1 + $0x5f0] sm:$0xff]  }
0x1be0   : > { %5772 = vmatpush1.bf16.msra.mxu1 %v5756_v42  ;;  %5793 = vmatprep.mubr.bf16.mxu1 %v14097_v30  ;;  %v13429_v42 = vld [vmem:[#allocation2 + $0xa4] ss:$16 sps:$4 sm:$0xff]  }
0x1be1   : > { %5773 = vmatprep.subr.bf16.mxu1 %v13403_v51  ;;  %v13424_v51 = vld [vmem:[#allocation2 + $0xc0] ss:$16 sps:$4 sm:$0xff]  }
0x1be4   : > { %5774 = vmatpush1.bf16.msra.mxu1 %v13401_v37  ;;  %v13427_v37 = vld [vmem:[#allocation2 + $0xa0] ss:$16 sps:$4 sm:$0xff]  }
0x1be5   : > { %5775 = vmatprep.subr.bf16.mxu1 %v13406_v23 }
0x1be8   : > { %5776 = vmatpush1.bf16.msra.mxu1 %v13404_v1 }
0x1be9   : > { %5982 = vmatprep.subr.bf16.mxu1 %v14097_v30 }
0x1c9f   : > { %v5595_v29 = vpop.f32.mrf.mxu1 }
0x1ca0   : > { %v5596_v12 = vadd.f32 %v5595_v29, %v5539_v22  ;;  %v5725_v22 = vunpack.c.l.bf16 %v5723_v19  ;;  %v5726_v29 = vunpack.c.h.bf16 %v5723_v19  ;;  %v13437_v19 = vld [vmem:[%s17075_s1 + $0x630] sm:$0xff]  }
0x1ca1   : > { %v13039_v25 = vpop.f32.mrf.mxu1 }
0x1ca2   : > { %v5601_v5 = vadd.f32 3.0, %v5596_v12  ;;  %v5812_v25 = vld [vmem:[#allocation2 + $0x60] sm:$0xff] }
0x1ca3   : > { %v5598_v24 = vpop.f32.mrf.mxu1 }
0x1ca4   : > { %v5602_v0 = vmax.f32 %v5601_v5, 0.0 }
0x1ca5   : > { %v13040_v46 = vpop.f32.mrf.mxu1 }
0x1ca6   : > { %v5603_v48 = vmin.f32 %v5602_v0, 6.0  ;;  %v5813_v0 = vld [vmem:[#allocation2 + $0x70] sm:$0x11] }
0x1ca8   : > { %v5604_v28 = vmul.f32 %v5603_v48, %v5596_v12  ;;  %v5814_v48 = vunpack.c.l.bf16 %v5812_v25 }
0x1caa   : > { %v5605_v20 = vmul.f32 0.16666667, %v5604_v28 }
0x1cac   : > { %v5612_v6 = vmul.f32 %v5610_v39, %v5605_v20  ;;  %v5824_v20 = vunpack.c.l.bf16 %v5813_v0 }
0x1cae   : > { %v5617_v58 = vadd.f32 %v5615_v47, %v5612_v6  ;;  %v5815_v6 = vunpack.c.h.bf16 %v5812_v25  ;;  %v13442_v25 = vld [vmem:[%s17075_s1 + $0x680] sm:$0xff]  }
0x1cb0   : > { %v5618_v38 = vadd.f32 3.0, %v5617_v58  ;;  %v5819_v23 = vrot.slane %v5815_v6, 4  ;;  %v13453_v6 = vld [vmem:[#allocation2 + $0x120] ss:$16 sps:$4 sm:$0xff]  }
0x1cb2   : > { %v5619_v34 = vmax.f32 %v5618_v38, 0.0  ;;  %v5818_v38 = vrot.slane %v5814_v48, 4 }
0x1cb4   : > { %v5620_v9 = vmin.f32 %v5619_v34, 6.0 }
0x1cb6   : > { %v5621_v54 = vmul.f32 %v5620_v9, %v5617_v58  ;;  %v5825_v9 = vunpack.c.h.bf16 %v5813_v0  ;;  %v13446_v0 = vld [vmem:[%s17075_s1 + $0x660] sm:$0xff]  }
0x1cb8   : > { %v5622_v45 = vmul.f32 0.16666667, %v5621_v54 }
0x1cba   : > { %v5636_v26 = vpack.c.bf16 %v5622_v45, %v5622_v45  ;;  %v5828_v45 = vrot.slane %v5824_v20, 1  ;;  %v13450_v20 = vld [vmem:[#allocation2 + $0x140] ss:$16 sps:$4 sm:$0xff]  }
0x1cbc   : > { %13054 = vmatmul.mubr.msk.bf16.vlgmr.msra.gmra.mxu0 %vm5487_vm5, %v5636_v26 }
0x1cbd   : > { %6112 = vmatprep.mubr.bf16.mxu0 %v14097_v30  ;;  %6089 = vmatpush1.bf16.msra.mxu0 %v6075_v57 }
0x1cbe   : > { %6090 = vmatprep.subr.bf16.mxu0 %v13426_v49 }
0x1cc1   : > { %6091 = vmatpush1.bf16.msra.mxu0 %v13424_v51  ;;  %v13434_v51 = vld [vmem:[%s17075_s1 + $0x648] sm:$0xff]  }
0x1cc2   : > { %6092 = vmatprep.subr.bf16.mxu0 %v13429_v42  ;;  %v13435_v42 = vld [vmem:[%s17075_s1 + $0x640] sm:$0xff]  }
0x1cc5   : > { %6093 = vmatpush1.bf16.msra.mxu0 %v13427_v37  ;;  %v13436_v37 = vld [vmem:[%s17075_s1 + $0x638] sm:$0xff]  }
0x1d7c   : > { %v5711_v63 = vpop.f32.mrf.mxu0 }
0x1d7d   : > { %v5712_v15 = vadd.f32 %v5711_v63, %v5637_v17  ;;  %v5829_v17 = vrot.slane %v5825_v9, 1 }
0x1d7e   : > { %v13055_v13 = vpop.f32.mrf.mxu0 }
0x1d7f   : > { %v5717_v33 = vadd.f32 %v5712_v15, %v15793_v43  ;;  %v13415_v43 = vld [vmem:[%s17075_s1 + $0x608] sm:$0xff]  }
0x1d80   : > { %v5714_v21 = vpop.f32.mrf.mxu0 }
0x1d81   : > { %v5724_v2 = vpack.c.bf16 %v5717_v33, %v5717_v33 }
0x1d82   : > { %v13056_v44 = vpop.f32.mrf.mxu0 }
0x1d83   : > { %11592 = vmatmul.mubr.msk.bf16.vlgmr.msra.gmra.mxu1 %vm2799_vm9, %v5724_v2  ;;  %vm6730_vm9 = vcmask 654336  }
0x1d84   : > { %5983 = vmatpush1.bf16.msra.mxu1 %v13407_v32 }
0x1d85   : > { %5984 = vmatprep.subr.bf16.mxu1 %v14097_v30 }
0x1d88   : > { %5985 = vmatpush1.bf16.msra.mxu1 %v13408_v18 }
0x1d89   : > { %5986 = vmatprep.subr.bf16.mxu1 %v14097_v30 }
0x1d8c   : > { %5987 = vmatpush1.bf16.msra.mxu1 %v13409_v62 }
0x1d8d   : > { %5988 = vmatprep.subr.bf16.mxu1 %v14097_v30 }
0x1d90   : > { %5989 = vmatpush1.bf16.msra.mxu1 %v13410_v59 }
0x1d91   : > { %5990 = vmatprep.subr.bf16.mxu1 %v14097_v30 }
0x1d94   : > { %5991 = vmatpush1.bf16.msra.mxu1 %v13411_v52 }
0x1d95   : > { %5992 = vmatprep.subr.bf16.mxu1 %v14097_v30 }
0x1d98   : > { %5993 = vmatpush1.bf16.msra.mxu1 %v13412_v35 }
0x1d99   : > { %5994 = vmatprep.subr.bf16.mxu1 %v14097_v30 }
0x1d9c   : > { %5995 = vmatpush1.bf16.msra.mxu1 %v13413_v60 }
0x1d9d   : > { %5996 = vmatprep.subr.bf16.mxu1 %v14097_v30 }
0x1da0   : > { %5997 = vmatpush1.bf16.msra.mxu1 %v13414_v40 }
0x1da1   : > { %6000 = vmatprep.subr.bf16.mxu1 %v14097_v30 }
0x1da4   : > { %6001 = vmatpush2.bf16.msra.mxu1 %v13415_v43  ;;  %v13432_v43 = vld [vmem:[#allocation2 + $0x84] ss:$16 sps:$4 sm:$0xff]  }
0x1da5   : > { %6002 = vmatprep.subr.bf16.mxu1 %v14097_v30  ;;  %6094 = vmatprep.subr.bf16.mxu0 %v13432_v43 }
0x1da8   : > { %6003 = vmatpush2.bf16.msra.mxu1 %v13416_v31  ;;  %v13430_v31 = vld [vmem:[#allocation2 + $0x80] ss:$16 sps:$4 sm:$0xff]  }
0x1da9   : > { %6004 = vmatprep.subr.bf16.mxu1 %v14097_v30  ;;  %6095 = vmatpush1.bf16.msra.mxu0 %v13430_v31  ;;  %v13459_v31 = vld [vmem:[#allocation2 + $0x168] ss:$0 sps:$4 sm:$0xff]  }
0x1daa   : > { %6258 = vmatprep.subr.bf16.mxu0 %v14097_v30 }
0x1dac   : > { %6005 = vmatpush2.bf16.msra.mxu1 %v13417_v3  ;;  %v5874_v3 = vld [vmem:[%s17075_s1 + $0x610] sm:$0x1] }
0x1dad   : > { %6006 = vmatprep.subr.bf16.mxu1 %v14097_v30 }
0x1db0   : > { %6007 = vmatpush2.bf16.msra.mxu1 %v13418_v16  ;;  %v5887_v16 = vunpack.c.l.bf16 %v5874_v3 }
0x1db1   : > { %6008 = vmatprep.subr.bf16.mxu1 %v14097_v30 }
0x1db4   : > { %6009 = vmatpush2.bf16.msra.mxu1 %v13419_v4 }
0x1db5   : > { %6010 = vmatprep.subr.bf16.mxu1 %v14097_v30 }
0x1db8   : > { %6011 = vmatpush2.bf16.msra.mxu1 %v13420_v53 }
0x1db9   : > { %6012 = vmatprep.subr.bf16.mxu1 %v14097_v30 }
0x1dbc   : > { %6013 = vmatpush2.bf16.msra.mxu1 %v13421_v36 }
0x1e43   : > { %v5795_v12 = vpop.f32.mrf.mxu1 }
0x1e44   : > { %v5796_v14 = vadd.f32 %v5795_v12, %v5725_v22  ;;  %v13438_v22 = vld [vmem:[%s17075_s1 + $0x628] sm:$0xff]   ;;  %v13440_v12 = vld [vmem:[%s17075_s1 + $0x618] sm:$0xff]  }
0x1e45   : > { %v5797_v5 = vpop.f32.mrf.mxu1 }
0x1e46   : > { %v5802_v50 = vadd.f32 3.0, %v5796_v14  ;;  %v5798_v24 = vadd.f32 %v5797_v5, %v5726_v29  ;;  %v13439_v29 = vld [vmem:[%s17075_s1 + $0x620] sm:$0xff]   ;;  %v13443_v5 = vld [vmem:[%s17075_s1 + $0x678] sm:$0xff]  }
0x1e47   : > { %v5799_v61 = vpop.f32.mrf.mxu1 }
0x1e48   : > { %v5804_v46 = vmax.f32 %v5802_v50, 0.0  ;;  %v5803_v56 = vadd.f32 3.0, %v5798_v24  ;;  %v13444_v50 = vld [vmem:[%s17075_s1 + $0x670] sm:$0xff]   ;;  %v13447_v61 = vld [vmem:[%s17075_s1 + $0x658] sm:$0xff]  }
0x1e49   : > { %v5800_v28 = vpop.f32.mrf.mxu1 }
0x1e4a   : > { %v5806_v39 = vmin.f32 %v5804_v46, 6.0  ;;  %v5805_v47 = vmax.f32 %v5803_v56, 0.0  ;;  %v6310_v46 = vld [vmem:[#allocation2 + $0x160] sm:$0xff] }
0x1e4b   : > { %v11645_v48 = vcombine.high %v6310_v46, %v6310_v46  ;;  %v11644_v56 = vcombine.low %v6310_v46, %v6310_v46  ;;  %v13452_v28 = vld [vmem:[#allocation2 + $0x144] ss:$16 sps:$4 sm:$0xff]  }
0x1e4c   : > { %v5808_v58 = vmul.f32 %v5806_v39, %v5796_v14  ;;  %v5807_v34 = vmin.f32 %v5805_v47, 6.0  ;;  %v13441_v14 = vld [vmem:[%s17075_s1 + $0x688] sm:$0xff]   ;;  %v13479_v46 = vld [vmem:[%s17075_s1 + $0x698] sm:$0xff]  }
0x1e4d   : > { %11647 = vmatprep.subr.msk.bf16.mxu1 %vm474_vm3, %v11645_v48  ;;  %v6379_v39 = vsel %vm474_vm3, %v11644_v56, 0  ;;  %v13455_v47 = vld [vmem:[#allocation2 + $0x124] ss:$16 sps:$4 sm:$0xff]   ;;  %v13480_v48 = vld [vmem:[%s17075_s1 + $0x730] sm:$0xff]  }
0x1e4e   : > { %v5810_v54 = vmul.f32 0.16666667, %v5808_v58  ;;  %v5809_v26 = vmul.f32 %v5807_v34, %v5798_v24  ;;  %v13445_v24 = vld [vmem:[%s17075_s1 + $0x668] sm:$0xff]   ;;  %v6024_v58 = vunpack.c.l.bf16 %v15900_v41 }
0x1e4f   : > { %v13481_v56 = vld [vmem:[%s17075_s1 + $0x728] sm:$0xff]  }
0x1e50   : > { %v5822_v1 = vmul.f32 %v5818_v38, %v5810_v54  ;;  %v5811_v8 = vmul.f32 0.16666667, %v5809_v26  ;;  %v6025_v38 = vunpack.c.h.bf16 %v15900_v41  ;;  %v6066_v34 = vrot.slane %v6024_v58, 4 }
0x1e52   : > { %v5832_v63 = vadd.f32 %v5828_v45, %v5822_v1  ;;  %v5823_v15 = vmul.f32 %v5819_v23, %v5811_v8  ;;  %v6067_v9 = vrot.slane %v6025_v38, 4 }
0x1e54   : > { %v5834_v13 = vadd.f32 3.0, %v5832_v63  ;;  %v5833_v33 = vadd.f32 %v5829_v17, %v5823_v15 }
0x1e56   : > { %v5836_v21 = vmax.f32 %v5834_v13, 0.0  ;;  %v5835_v32 = vadd.f32 3.0, %v5833_v33 }
0x1e58   : > { %v5838_v2 = vmin.f32 %v5836_v21, 6.0  ;;  %v5837_v44 = vmax.f32 %v5835_v32, 0.0 }
0x1e5a   : > { %v5840_v18 = vmul.f32 %v5838_v2, %v5832_v63  ;;  %v5839_v62 = vmin.f32 %v5837_v44, 6.0 }
0x1e5c   : > { %v5841_v59 = vmul.f32 %v5839_v62, %v5833_v33  ;;  %v15906_v52 = vmul.f32 0.16666667, %v5840_v18 }
0x1e5e   : > { %v15908_v35 = vmul.f32 0.16666667, %v5841_v59  ;;  %v5885_v40 = vpack.c.bf16 %v15906_v52, %v15906_v52  ;;  %v13458_v59 = vld [vmem:[#allocation2 + $0x104] ss:$16 sps:$4 sm:$0xff]  }
0x1e60   : > { %v5886_v60 = vpack.c.bf16 %v15908_v35, %v15908_v35 }
0x1e62   : > { %11608 = vmatprep.mubr.msk.bf16.mxu1 %vm5978_vm1, %v5886_v60  ;;  %v13456_v60 = vld [vmem:[#allocation2 + $0x100] ss:$16 sps:$4 sm:$0xff]  }
0x1e63   : > { %6015 = vmatmul.mubr.bf16.vlgmr.msra.gmra.mxu1 %v5885_v40  ;;  %v6161_v40 = vld [vmem:[%s17075_s1 + $0x690] sm:$0x1] }
0x1e64   : > { %6419 = vmatprep.mubr.bf16.mxu1 %v14097_v30  ;;  %6396 = vmatpush1.bf16.msra.mxu1 %v6379_v39  ;;  %v6164_v43 = vunpack.c.l.bf16 %v6161_v40  ;;  %v13483_v39 = vld [vmem:[%s17075_s1 + $0x718] sm:$0xff]  }
0x1e65   : > { %6397 = vmatprep.subr.bf16.mxu1 %v13452_v28  ;;  %v13482_v28 = vld [vmem:[%s17075_s1 + $0x720] sm:$0xff]  }
0x1e68   : > { %6398 = vmatpush1.bf16.msra.mxu1 %v13450_v20  ;;  %v16073_v20 = vld [vmem:[#allocation2 + $0x240] sm:$0x77] }
0x1e69   : > { %6399 = vmatprep.subr.bf16.mxu1 %v13455_v47  ;;  %v11688_v47 = vcombine.high %v16073_v20, %v16073_v20 }
0x1e6c   : > { %6400 = vmatpush1.bf16.msra.mxu1 %v13453_v6  ;;  %v6312_v6 = vld [vmem:[#allocation2 + $0x170] sm:$0x11] }
0x1e6d   : > { %6401 = vmatprep.subr.bf16.mxu1 %v13458_v59  ;;  %v6315_v58 = vunpack.c.l.bf16 %v6312_v6  ;;  %v6316_v38 = vunpack.c.h.bf16 %v6312_v6  ;;  %v6313_v59 = vld [vmem:[#allocation2 + $0x178] sm:$0x1] }
0x1e70   : > { %6402 = vmatpush1.bf16.msra.mxu1 %v13456_v60 }
0x1e71   : > { %13057 = vmatprep.subr.bf16.mxu1 %v14095_v27 }
0x1f23   : > { %v6016_v4 = vpop.f32.mrf.mxu1 }
0x1f24   : > { %v6017_v53 = vadd.f32 %v6016_v4, %v5887_v16  ;;  %v6385_v4 = vsel %vm474_vm3, %v13459_v31, 0 }
0x1f25   : > { %v6018_v36 = vpop.f32.mrf.mxu1 }
0x1f26   : > { %v6022_v10 = vmax.f32 %v6017_v53, 0.0 }
0x1f27   : > { %v6019_v55 = vpop.f32.mrf.mxu1 }
0x1f28   : > { %v6023_v49 = vpack.c.bf16 %v6022_v10, %v6022_v10  ;;  %v13460_v10 = vld [vmem:[#allocation2 + $0x148] ss:$16 sps:$4 sm:$0xff]  }
0x1f29   : > { %v6020_v57 = vpop.f32.mrf.mxu1  ;;  %v13461_v55 = vld [vmem:[#allocation2 + $0x128] ss:$16 sps:$4 sm:$0xff]  }
0x1f2a   : > { %11618 = vmatmul.mubr.msk.bf16.vlgmr.msra.gmra.mxu0 %vm6070_vm7, %v6023_v49  ;;  %v13463_v49 = vld [vmem:[%s17075_s1 + $0x710] sm:$0xff]  }
0x1f2b   : > { %6259 = vmatpush1.bf16.msra.mxu0 %v13433_v11  ;;  %v13462_v11 = vld [vmem:[#allocation2 + $0x108] ss:$16 sps:$4 sm:$0xff]  }
0x1f2c   : > { %6260 = vmatprep.subr.bf16.mxu0 %v14097_v30  ;;  %v13464_v57 = vld [vmem:[%s17075_s1 + $0x6d0] sm:$0xff]  }
0x1f2f   : > { %6261 = vmatpush1.bf16.msra.mxu0 %v13434_v51  ;;  %v13465_v51 = vld [vmem:[%s17075_s1 + $0x708] sm:$0xff]  }
0x1f30   : > { %6262 = vmatprep.subr.bf16.mxu0 %v14097_v30 }
0x1f33   : > { %6263 = vmatpush1.bf16.msra.mxu0 %v13435_v42  ;;  %v13466_v42 = vld [vmem:[%s17075_s1 + $0x6c8] sm:$0xff]  }
0x1f34   : > { %6264 = vmatprep.subr.bf16.mxu0 %v14097_v30 }
0x1f37   : > { %6265 = vmatpush1.bf16.msra.mxu0 %v13436_v37  ;;  %v13467_v37 = vld [vmem:[%s17075_s1 + $0x700] sm:$0xff]  }
0x1f38   : > { %6266 = vmatprep.subr.bf16.mxu0 %v14097_v30 }
0x1f3b   : > { %6267 = vmatpush1.bf16.msra.mxu0 %v13437_v19  ;;  %v13468_v19 = vld [vmem:[%s17075_s1 + $0x6c0] sm:$0xff]  }
0x1f3c   : > { %6268 = vmatprep.subr.bf16.mxu0 %v14097_v30 }
0x1f3f   : > { %6269 = vmatpush1.bf16.msra.mxu0 %v13438_v22  ;;  %v13469_v22 = vld [vmem:[%s17075_s1 + $0x6f8] sm:$0xff]  }
0x1f40   : > { %6270 = vmatprep.subr.bf16.mxu0 %v14097_v30 }
0x1f43   : > { %6271 = vmatpush1.bf16.msra.mxu0 %v13439_v29  ;;  %v13470_v29 = vld [vmem:[%s17075_s1 + $0x6b8] sm:$0xff]  }
0x1f44   : > { %6272 = vmatprep.subr.bf16.mxu0 %v14097_v30 }
0x1f47   : > { %6273 = vmatpush1.bf16.msra.mxu0 %v13440_v12  ;;  %v13471_v12 = vld [vmem:[%s17075_s1 + $0x6f0] sm:$0xff]  }
0x1f48   : > { %6276 = vmatprep.subr.bf16.mxu0 %v14097_v30 }
0x1f4b   : > { %6277 = vmatpush2.bf16.msra.mxu0 %v13441_v14  ;;  %v13472_v14 = vld [vmem:[%s17075_s1 + $0x6b0] sm:$0xff]  }
0x1f4c   : > { %6278 = vmatprep.subr.bf16.mxu0 %v14097_v30 }
0x1f4f   : > { %6279 = vmatpush2.bf16.msra.mxu0 %v13442_v25  ;;  %v13473_v25 = vld [vmem:[%s17075_s1 + $0x6e8] sm:$0xff]  }
0x1f50   : > { %6280 = vmatprep.subr.bf16.mxu0 %v14097_v30 }
0x1f53   : > { %6281 = vmatpush2.bf16.msra.mxu0 %v13443_v5  ;;  %v13474_v5 = vld [vmem:[%s17075_s1 + $0x6a8] sm:$0xff]  }
0x1f54   : > { %6282 = vmatprep.subr.bf16.mxu0 %v14097_v30 }
0x1f57   : > { %6283 = vmatpush2.bf16.msra.mxu0 %v13444_v50  ;;  %v13475_v50 = vld [vmem:[%s17075_s1 + $0x6e0] sm:$0xff]  }
0x1f58   : > { %6284 = vmatprep.subr.bf16.mxu0 %v14097_v30 }
0x1f5b   : > { %6285 = vmatpush2.bf16.msra.mxu0 %v13445_v24  ;;  %v13476_v24 = vld [vmem:[%s17075_s1 + $0x6a0] sm:$0xff]  }
0x1f5c   : > { %6286 = vmatprep.subr.bf16.mxu0 %v14097_v30 }
0x1f5f   : > { %6287 = vmatpush2.bf16.msra.mxu0 %v13446_v0  ;;  %v13477_v0 = vld [vmem:[%s17075_s1 + $0x738] sm:$0xff]  }
0x1f60   : > { %6288 = vmatprep.subr.bf16.mxu0 %v14097_v30 }
0x1f63   : > { %6289 = vmatpush2.bf16.msra.mxu0 %v13447_v61  ;;  %v13478_v61 = vld [vmem:[%s17075_s1 + $0x6d8] sm:$0xff]  }
0x1f64   : > { %12298 = vmatprep.subr.bf16.mxu0 %v13463_v49 }
0x1fea   : > { %v6114_v54 = vpop.f32.mrf.mxu0 }
0x1feb   : > { %v6115_v45 = vadd.f32 %v6114_v54, %v6066_v34  ;;  %v6483_v54 = vld [vmem:[#allocation2 + $0x180] sm:$0xff] }
0x1fec   : > { %v6116_v26 = vpop.f32.mrf.mxu0 }
0x1fed   : > { %v6121_v23 = vadd.f32 3.0, %v6115_v45  ;;  %v6117_v1 = vadd.f32 %v6116_v26, %v6067_v9 }
0x1fee   : > { %v6118_v8 = vpop.f32.mrf.mxu0 }
0x1fef   : > { %v6123_v17 = vmax.f32 %v6121_v23, 0.0  ;;  %v6122_v63 = vadd.f32 3.0, %v6117_v1  ;;  %v6485_v1 = vld [vmem:[#allocation2 + $0x190] sm:$0x11] }
0x1ff0   : > { %v6119_v15 = vpop.f32.mrf.mxu0 }
0x1ff1   : > { %v6125_v13 = vmin.f32 %v6123_v17, 6.0  ;;  %v6124_v33 = vmax.f32 %v6122_v63, 0.0  ;;  %v6487_v63 = vunpack.c.l.bf16 %v6483_v54 }
0x1ff3   : > { %v6127_v21 = vmul.f32 0.16666667, %v6125_v13  ;;  %v6126_v32 = vmin.f32 %v6124_v33, 6.0 }
0x1ff5   : > { %v6128_v2 = vmul.f32 0.16666667, %v6126_v32  ;;  %v6129_v44 = vmul.f32 %v6127_v21, %v15906_v52  ;;  %v6502_v21 = vunpack.c.l.bf16 %v6485_v1 }
0x1ff7   : > { %v6130_v41 = vmul.f32 %v6128_v2, %v15908_v35  ;;  %v6162_v62 = vpack.c.bf16 %v6129_v44, %v6129_v44  ;;  %v6488_v2 = vunpack.c.h.bf16 %v6483_v54  ;;  %v6508_v40 = vrot.slane %v6502_v21, 1 }
0x1ff9   : > { %v6163_v18 = vpack.c.bf16 %v6130_v41, %v6130_v41  ;;  %v6493_v41 = vrot.slane %v6487_v63, 4  ;;  %v6494_v31 = vrot.slane %v6488_v2, 4  ;;  %v13487_v2 = vld [vmem:[#allocation2 + $0x220] ss:$16 sps:$4 sm:$0xff]  }
0x1ffb   : > { %11634 = vmatprep.mubr.msk.bf16.mxu0 %vm5978_vm1, %v6163_v18 }
0x1ffc   : > { %6291 = vmatmul.mubr.bf16.vlgmr.msra.gmra.mxu0 %v6162_v62  ;;  %v6503_v62 = vunpack.c.h.bf16 %v6485_v1 }
0x1ffd   : > { %12299 = vmatpush3.bf16.msra.mxu0 %v13464_v57  ;;  %v6484_v57 = vld [vmem:[#allocation2 + $0x188] sm:$0xf] }
0x1ffe   : > { %12300 = vmatprep.subr.bf16.mxu0 %v13465_v51 }
0x2001   : > { %12301 = vmatpush3.bf16.msra.mxu0 %v13466_v42 }
0x2002   : > { %12302 = vmatprep.subr.bf16.mxu0 %v13467_v37 }
0x2005   : > { %12303 = vmatpush3.bf16.msra.mxu0 %v13468_v19 }
0x2006   : > { %12304 = vmatprep.subr.bf16.mxu0 %v13469_v22  ;;  %v6486_v22 = vld [vmem:[#allocation2 + $0x198] sm:$0x1] }
0x2009   : > { %12305 = vmatpush3.bf16.msra.mxu0 %v13470_v29 }
0x200a   : > { %12306 = vmatprep.subr.bf16.mxu0 %v13471_v12 }
0x200d   : > { %12307 = vmatpush3.bf16.msra.mxu0 %v13472_v14 }
0x200e   : > { %12308 = vmatprep.subr.bf16.mxu0 %v13473_v25  ;;  %v6489_v25 = vunpack.c.l.bf16 %v6484_v57 }
0x2011   : > { %12309 = vmatpush3.bf16.msra.mxu0 %v13474_v5 }
0x2012   : > { %12310 = vmatprep.subr.bf16.mxu0 %v13475_v50 }
0x2015   : > { %12311 = vmatpush3.bf16.msra.mxu0 %v13476_v24 }
0x2016   : > { %12312 = vmatprep.subr.bf16.mxu0 %v13478_v61  ;;  %v6504_v61 = vunpack.c.l.bf16 %v6486_v22 }
0x2019   : > { %12313 = vmatpush3.bf16.msra.mxu0 %v13479_v46 }
0x201a   : > { %13083 = vmatprep.subr.bf16.mxu0 %v14095_v27 }
0x20bc   : > { %v6292_v52 = vpop.f32.mrf.mxu0 }
0x20bd   : > { %v15990_v3 = vadd.f32 %v6292_v52, %v6164_v43 }
0x20be   : > { %v6294_v35 = vpop.f32.mrf.mxu0 }
0x20bf   : > { %v6314_v16 = vpack.c.bf16 %v15990_v3, %v15990_v3 }
0x20c0   : > { %v6295_v53 = vpop.f32.mrf.mxu0 }
0x20c1   : > { %11648 = vmatmul.mubr.msk.bf16.vlgmr.msra.gmra.mxu1 %vm6374_vm8, %v6314_v16 }
0x20c2   : > { %13058 = vmatpush3.bf16.msra.mxu1 %v6385_v4  ;;  %v6296_v36 = vpop.f32.mrf.mxu0  ;;  %13065 = vmatprep.mubr.msk.bf16.mxu1 %vm14096_vm6, %v14095_v27  ;;  %v6317_v4 = vunpack.c.l.bf16 %v6313_v59  ;;  %v13495_v59 = vld [vmem:[#allocation2 + $0x1e0] ss:$16 sps:$4 sm:$0xff]  }
0x20c3   : > { %13059 = vmatprep.subr.bf16.mxu1 %v14095_v27 }
0x20c6   : > { %13060 = vmatpush3.bf16.msra.mxu1 %v13460_v10 }
0x20c7   : > { %13061 = vmatprep.subr.bf16.mxu1 %v14095_v27 }
0x20ca   : > { %13062 = vmatpush3.bf16.msra.mxu1 %v13461_v55 }
0x20cb   : > { %13063 = vmatprep.subr.bf16.mxu1 %v14095_v27 }
0x20ce   : > { %13064 = vmatpush3.bf16.msra.mxu1 %v13462_v11 }
0x20cf   : > { %13069 = vmatprep.subr.bf16.mxu1 %v14095_v27 }
0x20d1   : > { %13066 = vmatmul.mubr.msk.bf16.vlgmr.msra.gmra.mxu1 %vm6374_vm8, %v6314_v16  ;;  %v6509_v16 = vrot.slane %v6503_v62, 1  ;;  %v13494_v62 = vld [vmem:[#allocation2 + $0x208] ss:$16 sps:$4 sm:$0xff]  }
0x20d2   : > { %13079 = vmatprep.mubr.msk.bf16.mxu1 %vm14096_vm6, %v14095_v27  ;;  %13070 = vmatpush3.bf16.msra.mxu1 %v13477_v0 }
0x20d3   : > { %13071 = vmatprep.subr.bf16.mxu1 %v14095_v27 }
0x20d6   : > { %13072 = vmatpush3.bf16.msra.mxu1 %v13480_v48  ;;  %v16078_v48 = vld [vmem:[#allocation2 + $0x248] sm:$0x7] }
0x20d7   : > { %13073 = vmatprep.subr.bf16.mxu1 %v14095_v27  ;;  %v11689_v6 = vcombine.low %v16078_v48, %v16078_v48 }
0x20da   : > { %13074 = vmatpush3.bf16.msra.mxu1 %v13481_v56 }
0x20db   : > { %13075 = vmatprep.subr.bf16.mxu1 %v14095_v27 }
0x20de   : > { %13076 = vmatpush3.bf16.msra.mxu1 %v13482_v28  ;;  %v6495_v28 = vrot.slane %v6489_v25, 4  ;;  %v13513_v25 = vld [vmem:[%s17075_s1 + $0x7e8] sm:$0xff]  }
0x20df   : > { %13077 = vmatprep.subr.bf16.mxu1 %v14095_v27 }
0x20e2   : > { %13078 = vmatpush3.bf16.msra.mxu1 %v13483_v39 }
0x20e3   : > { %11690 = vmatprep.subr.msk.bf16.mxu1 %vm3698_vm13, %v11688_v47 }
0x2181   : > { %v6421_v34 = vpop.f32.mrf.mxu1 }
0x2182   : > { %v6422_v9 = vadd.f32 %v6421_v34, %v6315_v58 }
0x2183   : > { %v6423_v45 = vpop.f32.mrf.mxu1 }
0x2184   : > { %v6468_v26 = vadd.f32 3.0, %v6422_v9  ;;  %v6424_v23 = vadd.f32 %v6423_v45, %v6316_v38  ;;  %v6510_v38 = vrot.slane %v6504_v61, 1  ;;  %v13511_v61 = vld [vmem:[%s17075_s1 + $0x7b0] sm:$0xff]  }
0x2185   : > { %v6425_v8 = vpop.f32.mrf.mxu1 }
0x2186   : > { %v6471_v17 = vmax.f32 %v6468_v26, 0.0  ;;  %v6469_v15 = vadd.f32 3.0, %v6424_v23  ;;  %v6927_v26 = vsel %vm3698_vm13, %v11689_v6, 0  ;;  %v13517_v6 = vld [vmem:[%s17075_s1 + $0x7a0] sm:$0xff]  }
0x2187   : > { %v6426_v13 = vpop.f32.mrf.mxu1 }
0x2188   : > { %v6474_v33 = vmin.f32 %v6471_v17, 6.0  ;;  %v6472_v32 = vmax.f32 %v6469_v15, 0.0  ;;  %v11687_v15 = vcombine.low %v16073_v20, %v16073_v20 }
0x218a   : > { %v6477_v44 = vmul.f32 %v6474_v33, %v6422_v9  ;;  %v6475_v18 = vmin.f32 %v6472_v32, 6.0  ;;  %v6921_v21 = vsel %vm3698_vm13, %v11687_v15, 0  ;;  %v13489_v32 = vld [vmem:[#allocation2 + $0x224] ss:$16 sps:$4 sm:$0xff]   ;;  %v6818_v15 = vunpack.c.l.bf16 %v16078_v48 }
0x218c   : > { %v6480_v60 = vmul.f32 0.16666667, %v6477_v44  ;;  %v6478_v43 = vmul.f32 %v6475_v18, %v6424_v23  ;;  %v13490_v44 = vld [vmem:[#allocation2 + $0x228] ss:$16 sps:$4 sm:$0xff]   ;;  %v13491_v18 = vld [vmem:[#allocation2 + $0x200] ss:$16 sps:$4 sm:$0xff]  }
0x218e   : > { %v6499_v52 = vmul.f32 %v6493_v41, %v6480_v60  ;;  %v6481_v35 = vmul.f32 0.16666667, %v6478_v43  ;;  %v13493_v41 = vld [vmem:[#allocation2 + $0x204] ss:$16 sps:$4 sm:$0xff]  }
0x218f   : > { %v13497_v60 = vld [vmem:[#allocation2 + $0x1e4] ss:$16 sps:$4 sm:$0xff]  }
0x2190   : > { %v6514_v53 = vadd.f32 %v6508_v40, %v6499_v52  ;;  %v6500_v36 = vmul.f32 %v6494_v31, %v6481_v35  ;;  %v13498_v40 = vld [vmem:[#allocation2 + $0x1e8] ss:$16 sps:$4 sm:$0xff]   ;;  %v13501_v43 = vld [vmem:[#allocation2 + $0x1c4] ss:$16 sps:$4 sm:$0xff]   ;;  %v13499_v31 = vld [vmem:[#allocation2 + $0x1c0] ss:$16 sps:$4 sm:$0xff]  }
0x2191   : > { %v6462_v10 = vpop.f32.mrf.mxu1  ;;  %v13502_v52 = vld [vmem:[#allocation2 + $0x1c8] ss:$16 sps:$4 sm:$0xff]   ;;  %v13505_v35 = vld [vmem:[#allocation2 + $0x1a4] ss:$16 sps:$4 sm:$0xff]  }
0x2192   : > { %v6517_v55 = vadd.f32 3.0, %v6514_v53  ;;  %v6515_v11 = vadd.f32 %v6509_v16, %v6500_v36  ;;  %v6463_v49 = vadd.f32 %v6462_v10, %v6317_v4  ;;  %v13503_v16 = vld [vmem:[#allocation2 + $0x1a0] ss:$16 sps:$4 sm:$0xff]   ;;  %v13506_v4 = vld [vmem:[#allocation2 + $0x1a8] ss:$16 sps:$4 sm:$0xff]  }
0x2193   : > { %v13067_v51 = vpop.f32.mrf.mxu1 }
0x2194   : > { %v6520_v42 = vmax.f32 %v6517_v55, 0.0  ;;  %v6518_v37 = vadd.f32 3.0, %v6515_v11  ;;  %v6470_v19 = vadd.f32 3.0, %v6463_v49 }
0x2195   : > { %v6465_v29 = vpop.f32.mrf.mxu1 }
0x2196   : > { %v6523_v12 = vmin.f32 %v6520_v42, 6.0  ;;  %v6473_v14 = vmax.f32 %v6470_v19, 0.0  ;;  %v6521_v5 = vmax.f32 %v6518_v37, 0.0 }
0x2197   : > { %v13068_v50 = vpop.f32.mrf.mxu1 }
0x2198   : > { %v6526_v24 = vmul.f32 %v6523_v12, %v6514_v53  ;;  %v6476_v0 = vmin.f32 %v6473_v14, 6.0  ;;  %v6524_v46 = vmin.f32 %v6521_v5, 6.0  ;;  %v13507_v53 = vld [vmem:[%s17075_s1 + $0x7c0] sm:$0xff]   ;;  %v13509_v50 = vld [vmem:[%s17075_s1 + $0x7b8] sm:$0xff]  }
0x2199   : > { %v13508_v14 = vld [vmem:[%s17075_s1 + $0x780] sm:$0xff]  }
0x219a   : > { %v6479_v56 = vmul.f32 %v6476_v0, %v6463_v49  ;;  %v6527_v39 = vmul.f32 %v6524_v46, %v6515_v11  ;;  %v16080_v47 = vmul.f32 0.16666667, %v6526_v24  ;;  %v6574_v11 = vld [vmem:[%s17075_s1 + $0x740] sm:$0x1]  ;;  %v13510_v0 = vld [vmem:[%s17075_s1 + $0x778] sm:$0xff]   ;;  %v13512_v46 = vld [vmem:[%s17075_s1 + $0x770] sm:$0xff]  }
0x219b   : > { %v6603_v51 = vunpack.c.l.bf16 %v6574_v11 }
0x219c   : > { %v6482_v58 = vmul.f32 0.16666667, %v6479_v56  ;;  %v16084_v34 = vmul.f32 0.16666667, %v6527_v39  ;;  %v6600_v45 = vpack.c.bf16 %v16080_v47, %v16080_v47  ;;  %v13514_v56 = vld [vmem:[%s17075_s1 + $0x7a8] sm:$0xff]   ;;  %v13516_v39 = vld [vmem:[%s17075_s1 + $0x7e0] sm:$0xff]  }
0x219e   : > { %v6501_v9 = vmul.f32 %v6495_v28, %v6482_v58  ;;  %v6601_v54 = vpack.c.bf16 %v16084_v34, %v16084_v34  ;;  %v13515_v28 = vld [vmem:[%s17075_s1 + $0x768] sm:$0xff]   ;;  %v13518_v58 = vld [vmem:[%s17075_s1 + $0x760] sm:$0xff]  }
0x21a0   : > { %v6516_v23 = vadd.f32 %v6510_v38, %v6501_v9  ;;  %6766 = vmatprep.mubr.bf16.mxu0 %v6601_v54  ;;  %v13519_v38 = vld [vmem:[%s17075_s1 + $0x7d8] sm:$0xff]  }
0x21a1   : > { %6767 = vmatmul.mubr.bf16.vlgmr.msra.gmra.mxu0 %v6600_v45  ;;  %v13520_v9 = vld [vmem:[%s17075_s1 + $0x798] sm:$0xff]   ;;  %v13522_v45 = vld [vmem:[%s17075_s1 + $0x7d0] sm:$0xff]  }
0x21a2   : > { %v6519_v1 = vadd.f32 3.0, %v6516_v23  ;;  %13084 = vmatpush3.bf16.msra.mxu0 %v6927_v26  ;;  %13095 = vmatprep.mubr.msk.bf16.mxu0 %vm14096_vm6, %v14095_v27  ;;  %v13521_v54 = vld [vmem:[%s17075_s1 + $0x758] sm:$0xff]   ;;  %v13523_v26 = vld [vmem:[%s17075_s1 + $0x790] sm:$0xff]  }
0x21a3   : > { %13085 = vmatprep.subr.bf16.mxu0 %v14095_v27 }
0x21a4   : > { %v6522_v8 = vmax.f32 %v6519_v1, 0.0  ;;  %v13525_v1 = vld [vmem:[%s17075_s1 + $0x7c8] sm:$0xff]  }
0x21a6   : > { %v6525_v17 = vmin.f32 %v6522_v8, 6.0  ;;  %13086 = vmatpush3.bf16.msra.mxu0 %v13490_v44  ;;  %v13526_v8 = vld [vmem:[%s17075_s1 + $0x788] sm:$0xff]  }
0x21a7   : > { %13087 = vmatprep.subr.bf16.mxu0 %v14095_v27 }
0x21a8   : > { %v6528_v63 = vmul.f32 %v6525_v17, %v6516_v23  ;;  %v13524_v23 = vld [vmem:[%s17075_s1 + $0x750] sm:$0xff]   ;;  %v13527_v17 = vld [vmem:[%s17075_s1 + $0x748] sm:$0xff]  }
0x21aa   : > { %v16096_v13 = vmul.f32 0.16666667, %v6528_v63  ;;  %13088 = vmatpush3.bf16.msra.mxu0 %v13494_v62  ;;  %v6816_v63 = vunpack.c.l.bf16 %v16073_v20 }
0x21ab   : > { %13089 = vmatprep.subr.bf16.mxu0 %v14095_v27 }
0x21ac   : > { %v6602_v33 = vpack.c.bf16 %v16096_v13, %v16096_v13 }
0x21ae   : > { %13080 = vmatmul.mubr.msk.bf16.vlgmr.msra.gmra.mxu1 %vm6730_vm9, %v6602_v33  ;;  %13090 = vmatpush3.bf16.msra.mxu0 %v13498_v40  ;;  %v6817_v33 = vunpack.c.h.bf16 %v16073_v20 }
0x21af   : > { %6934 = vmatpush1.bf16.msra.mxu1 %v6921_v21  ;;  %6961 = vmatprep.mubr.bf16.mxu1 %v14097_v30  ;;  %v6910_v21 = vrot.slane %v6816_v63, 4 }
0x21b0   : > { %6935 = vmatprep.subr.bf16.mxu1 %v13489_v32  ;;  %13091 = vmatprep.subr.bf16.mxu0 %v14095_v27  ;;  %v6912_v32 = vrot.slane %v6818_v15, 4 }
0x21b2   : > { %13092 = vmatpush3.bf16.msra.mxu0 %v13502_v52 }
0x21b3   : > { %6936 = vmatpush1.bf16.msra.mxu1 %v13487_v2  ;;  %13093 = vmatprep.subr.bf16.mxu0 %v14095_v27  ;;  %v6911_v2 = vrot.slane %v6817_v33, 4 }
0x21b4   : > { %6937 = vmatprep.subr.bf16.mxu1 %v13493_v41 }
0x21b6   : > { %13094 = vmatpush3.bf16.msra.mxu0 %v13506_v4 }
0x21b7   : > { %6938 = vmatpush1.bf16.msra.mxu1 %v13491_v18  ;;  %13099 = vmatprep.subr.bf16.mxu0 %v14095_v27 }
0x21b8   : > { %6939 = vmatprep.subr.bf16.mxu1 %v13497_v60 }
0x21bb   : > { %6940 = vmatpush1.bf16.msra.mxu1 %v13495_v59 }
0x21bc   : > { %6941 = vmatprep.subr.bf16.mxu1 %v13501_v43 }
0x21bf   : > { %6942 = vmatpush1.bf16.msra.mxu1 %v13499_v31 }
0x21c0   : > { %6943 = vmatprep.subr.bf16.mxu1 %v13505_v35 }
0x21c3   : > { %6944 = vmatpush1.bf16.msra.mxu1 %v13503_v16 }
0x21c4   : > { %12333 = vmatprep.subr.bf16.mxu1 %v13507_v53 }
0x2261   : > { %v12314_v36 = vpop.f32.mrf.mxu0 }
0x2263   : > { %v12315_v10 = vpop.f32.mrf.mxu0 }
0x2264   : > { %v12316_v57 = vadd.f32 %v12315_v10, %v12314_v36 }
0x2265   : > { %v12317_v55 = vpop.f32.mrf.mxu0 }
0x2266   : > { %v6769_v42 = vadd.f32 %v12316_v57, %v6603_v51 }
0x2267   : > { %v12318_v49 = vpop.f32.mrf.mxu0 }
0x226e   : > { %v6808_v37 = vpop.f32.mrf.mxu1 }
0x226f   : > { %v6809_v19 = vadd.f32 %v6808_v37, %v6769_v42 }
0x2270   : > { %v13081_v22 = vpop.f32.mrf.mxu1 }
0x2271   : > { %v6814_v29 = vmax.f32 %v6809_v19, 0.0 }
0x2272   : > { %v6811_v12 = vpop.f32.mrf.mxu1 }
0x2273   : > { %v6815_v5 = vpack.c.bf16 %v6814_v29, %v6814_v29 }
0x2274   : > { %v13082_v24 = vpop.f32.mrf.mxu1 }
0x2275   : > { %11691 = vmatmul.mubr.msk.bf16.vlgmr.msra.gmra.mxu1 %vm6916_vm10, %v6815_v5  ;;  %13096 = vmatmul.mubr.msk.bf16.vlgmr.msra.gmra.mxu0 %vm6916_vm10, %v6815_v5  ;;  %v13530_v5 = vld [vmem:[#allocation2 + $0x2c8] ss:$0 sps:$4 sm:$0xff]   ;;  %v13531_v24 = vld [vmem:[#allocation2 + $0x2a0] ss:$16 sps:$4 sm:$0xff]  }
0x2276   : > { %12334 = vmatpush3.bf16.msra.mxu1 %v13508_v14  ;;  %13100 = vmatpush3.bf16.msra.mxu0 %v13513_v25  ;;  %v7296_v14 = vld [vmem:[#allocation2 + $0x2c0] sm:$0xff] }
0x2277   : > { %12335 = vmatprep.subr.bf16.mxu1 %v13509_v50  ;;  %13101 = vmatprep.subr.bf16.mxu0 %v14095_v27  ;;  %v11725_v25 = vcombine.high %v7296_v14, %v7296_v14  ;;  %v13533_v50 = vld [vmem:[#allocation2 + $0x2a4] ss:$16 sps:$4 sm:$0xff]  }
0x2278   : > { %13109 = vmatprep.mubr.msk.bf16.mxu0 %vm14096_vm6, %v14095_v27 }
0x227a   : > { %12336 = vmatpush3.bf16.msra.mxu1 %v13510_v0  ;;  %13102 = vmatpush3.bf16.msra.mxu0 %v13516_v39  ;;  %v13534_v0 = vld [vmem:[#allocation2 + $0x2a8] ss:$16 sps:$4 sm:$0xff]   ;;  %v13539_v39 = vld [vmem:[#allocation2 + $0x260] ss:$16 sps:$4 sm:$0xff]  }
0x227b   : > { %12337 = vmatprep.subr.bf16.mxu1 %v13511_v61  ;;  %13103 = vmatprep.subr.bf16.mxu0 %v14095_v27  ;;  %v13537_v61 = vld [vmem:[#allocation2 + $0x284] ss:$16 sps:$4 sm:$0xff]  }
0x227e   : > { %12338 = vmatpush3.bf16.msra.mxu1 %v13512_v46  ;;  %13104 = vmatpush3.bf16.msra.mxu0 %v13519_v38  ;;  %v13535_v46 = vld [vmem:[#allocation2 + $0x280] ss:$16 sps:$4 sm:$0xff]   ;;  %v7067_v38 = vld [vmem:[%s17075_s1 + $0x7f0] sm:$0x1] }
0x227f   : > { %12339 = vmatprep.subr.bf16.mxu1 %v13514_v56  ;;  %13105 = vmatprep.subr.bf16.mxu0 %v14095_v27  ;;  %v13538_v56 = vld [vmem:[#allocation2 + $0x288] ss:$16 sps:$4 sm:$0xff]  }
0x2282   : > { %12340 = vmatpush3.bf16.msra.mxu1 %v13515_v28  ;;  %13106 = vmatpush3.bf16.msra.mxu0 %v13522_v45  ;;  %v13541_v28 = vld [vmem:[#allocation2 + $0x264] ss:$16 sps:$4 sm:$0xff]  }
0x2283   : > { %12341 = vmatprep.subr.bf16.mxu1 %v13517_v6  ;;  %13107 = vmatprep.subr.bf16.mxu0 %v14095_v27  ;;  %v13542_v6 = vld [vmem:[#allocation2 + $0x268] ss:$16 sps:$4 sm:$0xff]  }
0x2286   : > { %12342 = vmatpush3.bf16.msra.mxu1 %v13518_v58  ;;  %13108 = vmatpush3.bf16.msra.mxu0 %v13525_v1 }
0x2287   : > { %12343 = vmatprep.subr.bf16.mxu1 %v13520_v9  ;;  %11727 = vmatprep.subr.msk.bf16.mxu0 %vm474_vm3, %v11725_v25 }
0x228a   : > { %12344 = vmatpush3.bf16.msra.mxu1 %v13521_v54 }
0x228b   : > { %12345 = vmatprep.subr.bf16.mxu1 %v13523_v26  ;;  %v7071_v26 = vunpack.c.l.bf16 %v7067_v38 }
0x228e   : > { %12346 = vmatpush3.bf16.msra.mxu1 %v13524_v23 }
0x228f   : > { %12347 = vmatprep.subr.bf16.mxu1 %v13526_v8 }
0x2292   : > { %12348 = vmatpush3.bf16.msra.mxu1 %v13527_v17 }
0x2293   : > { %13113 = vmatprep.subr.bf16.mxu1 %v14095_v27 }
0x2335   : > { %v6963_v44 = vpop.f32.mrf.mxu1  ;;  %v7004_v41 = vpop.f32.mrf.mxu0 }
0x2336   : > { %v6964_v18 = vadd.f32 %v6963_v44, %v6910_v21  ;;  %v7005_v62 = vadd.f32 %v7004_v41, %v6912_v32  ;;  %v13544_v44 = vld [vmem:[%s17075_s1 + $0x830] sm:$0xff]   ;;  %v13546_v41 = vld [vmem:[%s17075_s1 + $0x828] sm:$0xff]  }
0x2337   : > { %v6965_v59 = vpop.f32.mrf.mxu1  ;;  %v13097_v60 = vpop.f32.mrf.mxu0 }
0x2338   : > { %v7010_v40 = vadd.f32 3.0, %v6964_v18  ;;  %v7012_v43 = vadd.f32 3.0, %v7005_v62  ;;  %v6966_v31 = vadd.f32 %v6965_v59, %v6911_v2  ;;  %v13543_v2 = vld [vmem:[%s17075_s1 + $0x870] sm:$0xff]   ;;  %v13547_v18 = vld [vmem:[%s17075_s1 + $0x860] sm:$0xff]   ;;  %v13549_v59 = vld [vmem:[%s17075_s1 + $0x898] sm:$0xff]  }
0x2339   : > { %v6967_v52 = vpop.f32.mrf.mxu1  ;;  %v7007_v35 = vpop.f32.mrf.mxu0  ;;  %v13548_v62 = vld [vmem:[%s17075_s1 + $0x820] sm:$0xff]   ;;  %v13550_v60 = vld [vmem:[%s17075_s1 + $0x858] sm:$0xff]  }
0x233a   : > { %v7013_v16 = vmax.f32 %v7010_v40, 0.0  ;;  %v7015_v4 = vmax.f32 %v7012_v43, 0.0  ;;  %v7011_v53 = vadd.f32 3.0, %v6966_v31  ;;  %v13551_v40 = vld [vmem:[%s17075_s1 + $0x818] sm:$0xff]   ;;  %v13552_v43 = vld [vmem:[%s17075_s1 + $0x890] sm:$0xff]   ;;  %v13555_v35 = vld [vmem:[%s17075_s1 + $0x888] sm:$0xff]  }
0x233b   : > { %v6968_v48 = vpop.f32.mrf.mxu1  ;;  %v13098_v36 = vpop.f32.mrf.mxu0  ;;  %v13553_v31 = vld [vmem:[%s17075_s1 + $0x850] sm:$0xff]  }
0x233c   : > { %v7016_v20 = vmin.f32 %v7013_v16, 6.0  ;;  %v7018_v10 = vmin.f32 %v7015_v4, 6.0  ;;  %v7014_v55 = vmax.f32 %v7011_v53, 0.0  ;;  %v13554_v52 = vld [vmem:[%s17075_s1 + $0x810] sm:$0xff]   ;;  %v13556_v16 = vld [vmem:[%s17075_s1 + $0x848] sm:$0xff]   ;;  %v13558_v53 = vld [vmem:[%s17075_s1 + $0x880] sm:$0xff]  }
0x233d   : > { %v13557_v4 = vld [vmem:[%s17075_s1 + $0x808] sm:$0xff]   ;;  %v13559_v48 = vld [vmem:[%s17075_s1 + $0x840] sm:$0xff]  }
0x233e   : > { %v7019_v11 = vmul.f32 0.16666667, %v7016_v20  ;;  %v7021_v49 = vmul.f32 0.16666667, %v7018_v10  ;;  %v7017_v57 = vmin.f32 %v7014_v55, 6.0  ;;  %v13560_v36 = vld [vmem:[%s17075_s1 + $0x800] sm:$0xff]  }
0x233f   : > { %v13561_v20 = vld [vmem:[%s17075_s1 + $0x878] sm:$0xff]  }
0x2340   : > { %v7024_v51 = vmul.f32 %v7021_v49, %v16096_v13  ;;  %v7020_v42 = vmul.f32 0.16666667, %v7017_v57  ;;  %v7022_v37 = vmul.f32 %v7019_v11, %v16080_v47  ;;  %v11724_v13 = vcombine.low %v7296_v14, %v7296_v14  ;;  %v13562_v10 = vld [vmem:[%s17075_s1 + $0x838] sm:$0xff]   ;;  %v7298_v57 = vld [vmem:[#allocation2 + $0x2d0] sm:$0x11] }
0x2341   : > { %v13563_v55 = vld [vmem:[%s17075_s1 + $0x7f8] sm:$0xff]   ;;  %v7468_v14 = vld [vmem:[#allocation2 + $0x2f0] sm:$0xff] }
0x2342   : > { %v7070_v19 = vpack.c.bf16 %v7024_v51, %v7024_v51  ;;  %v7023_v22 = vmul.f32 %v7020_v42, %v16084_v34  ;;  %v7068_v12 = vpack.c.bf16 %v7022_v37, %v7022_v37  ;;  %v7364_v47 = vsel %vm474_vm3, %v11724_v13, 0  ;;  %v16279_v11 = vld [vmem:[#allocation2 + $0x3c0] sm:$0x77]  ;;  %v7299_v51 = vld [vmem:[#allocation2 + $0x2d8] sm:$0x1] }
0x2343   : > { %v7370_v34 = vsel %vm474_vm3, %v13530_v5, 0  ;;  %v11768_v49 = vcombine.high %v16279_v11, %v16279_v11  ;;  %v7301_v42 = vunpack.c.l.bf16 %v7298_v57  ;;  %v7303_v37 = vunpack.c.l.bf16 %v7299_v51  ;;  %v7469_v13 = vld [vmem:[#allocation2 + $0x2f8] sm:$0xf] }
0x2344   : > { %13110 = vmatmul.mubr.msk.bf16.vlgmr.msra.gmra.mxu0 %vm6730_vm9, %v7070_v19  ;;  %v7069_v29 = vpack.c.bf16 %v7023_v22, %v7023_v22  ;;  %v7302_v19 = vunpack.c.h.bf16 %v7298_v57 }
0x2345   : > { %7404 = vmatprep.mubr.bf16.mxu0 %v14097_v30  ;;  %7381 = vmatpush1.bf16.msra.mxu0 %v7364_v47 }
0x2346   : > { %7233 = vmatprep.mubr.bf16.mxu1 %v7069_v29  ;;  %7382 = vmatprep.subr.bf16.mxu0 %v13533_v50  ;;  %v7470_v50 = vld [vmem:[#allocation2 + $0x310] sm:$0x11] }
0x2347   : > { %7234 = vmatmul.mubr.bf16.vlgmr.msra.gmra.mxu1 %v7068_v12 }
0x2348   : > { %13121 = vmatprep.mubr.msk.bf16.mxu1 %vm14096_vm6, %v14095_v27  ;;  %13114 = vmatpush3.bf16.msra.mxu1 %v7370_v34 }
0x2349   : > { %13115 = vmatprep.subr.bf16.mxu1 %v14095_v27  ;;  %7383 = vmatpush1.bf16.msra.mxu0 %v13531_v24 }
0x234a   : > { %7384 = vmatprep.subr.bf16.mxu0 %v13537_v61 }
0x234c   : > { %13116 = vmatpush3.bf16.msra.mxu1 %v13534_v0  ;;  %v7471_v0 = vld [vmem:[#allocation2 + $0x318] sm:$0x1] }
0x234d   : > { %13117 = vmatprep.subr.bf16.mxu1 %v14095_v27  ;;  %7385 = vmatpush1.bf16.msra.mxu0 %v13535_v46  ;;  %v7472_v46 = vunpack.c.l.bf16 %v7468_v14 }
0x234e   : > { %7386 = vmatprep.subr.bf16.mxu0 %v13541_v28 }
0x2350   : > { %13118 = vmatpush3.bf16.msra.mxu1 %v13538_v56  ;;  %v7474_v56 = vunpack.c.l.bf16 %v7469_v13 }
0x2351   : > { %13119 = vmatprep.subr.bf16.mxu1 %v14095_v27  ;;  %7387 = vmatpush1.bf16.msra.mxu0 %v13539_v39 }
0x2352   : > { %12366 = vmatprep.subr.bf16.mxu0 %v13543_v2  ;;  %v7488_v2 = vunpack.c.h.bf16 %v7470_v50 }
0x2354   : > { %13120 = vmatpush3.bf16.msra.mxu1 %v13542_v6 }
0x2355   : > { %13125 = vmatprep.subr.bf16.mxu1 %v14095_v27 }
0x2404   : > { %v7275_v58 = vpop.f32.mrf.mxu0 }
0x2406   : > { %v13111_v9 = vpop.f32.mrf.mxu0 }
0x2407   : > { %v12349_v54 = vpop.f32.mrf.mxu1  ;;  %v7487_v9 = vunpack.c.l.bf16 %v7470_v50 }
0x2408   : > { %v7278_v45 = vpop.f32.mrf.mxu0 }
0x2409   : > { %v12350_v23 = vpop.f32.mrf.mxu1 }
0x240a   : > { %v12351_v1 = vadd.f32 %v12350_v23, %v12349_v54  ;;  %v13112_v8 = vpop.f32.mrf.mxu0  ;;  %v7489_v54 = vunpack.c.l.bf16 %v7471_v0 }
0x240b   : > { %v12352_v17 = vpop.f32.mrf.mxu1 }
0x240c   : > { %v7236_v63 = vadd.f32 %v12351_v1, %v7071_v26  ;;  %v7473_v17 = vunpack.c.h.bf16 %v7468_v14 }
0x240d   : > { %v12353_v15 = vpop.f32.mrf.mxu1 }
0x240e   : > { %v7276_v33 = vadd.f32 %v7275_v58, %v7236_v63  ;;  %v7478_v63 = vrot.slane %v7472_v46, 4  ;;  %v7480_v15 = vrot.slane %v7474_v56, 4  ;;  %v13570_v46 = vld [vmem:[#allocation2 + $0x3a8] ss:$16 sps:$4 sm:$0xff]   ;;  %v13573_v56 = vld [vmem:[#allocation2 + $0x384] ss:$16 sps:$4 sm:$0xff]  }
0x2410   : > { %v7281_v21 = vadd.f32 %v7276_v33, %v15990_v3  ;;  %v13545_v3 = vld [vmem:[%s17075_s1 + $0x868] sm:$0xff]  }
0x2412   : > { %v7300_v32 = vpack.c.bf16 %v7281_v21, %v7281_v21  ;;  %7283 = vst.msk [vmem:[%s17067_s11] sm:$0x1] %vm7282_vm11, %v7281_v21  ;;  %s13943_s11 = scalar_lea.vmem %s13942_s19, 128 }
0x2413   : > { %p13945_p12 = scmp.lt.s32.totalorder %s13943_s11, %s13937_s18 }
0x2414   : > { %11728 = vmatmul.mubr.msk.bf16.vlgmr.msra.gmra.mxu0 %vm6374_vm8, %v7300_v32  ;;  %13122 = vmatmul.mubr.msk.bf16.vlgmr.msra.gmra.mxu1 %vm6374_vm8, %v7300_v32 }
0x2415   : > { %13135 = vmatprep.mubr.msk.bf16.mxu1 %vm14096_vm6, %v14095_v27  ;;  %12367 = vmatpush3.bf16.msra.mxu0 %v13544_v44  ;;  %v7493_v44 = vrot.slane %v7487_v9, 1  ;;  %v13581_v9 = vld [vmem:[#allocation2 + $0x344] ss:$16 sps:$4 sm:$0xff]   ;;  %p13946_p13 = por %p13945_p12, %p13944_p11 }
0x2416   : > { %12368 = vmatprep.subr.bf16.mxu0 %v13545_v3  ;;  %13126 = vmatpush3.bf16.msra.mxu1 %v13549_v59  ;;  %v7495_v3 = vrot.slane %v7489_v54, 1  ;;  %v7479_v59 = vrot.slane %v7473_v17, 4  ;;  %v13579_v54 = vld [vmem:[#allocation2 + $0x340] ss:$16 sps:$4 sm:$0xff]  }
0x2417   : > { %13127 = vmatprep.subr.bf16.mxu1 %v14095_v27  ;;  %p13947_p0 = pnand %p13946_p13, %p13940_p10 }
0x2419   : > { %12369 = vmatpush3.bf16.msra.mxu0 %v13546_v41 }
0x241a   : > { %12370 = vmatprep.subr.bf16.mxu0 %v13547_v18  ;;  %13128 = vmatpush3.bf16.msra.mxu1 %v13552_v43 }
0x241b   : > { %13129 = vmatprep.subr.bf16.mxu1 %v14095_v27 }
0x241d   : > { %12371 = vmatpush3.bf16.msra.mxu0 %v13548_v62 }
0x241e   : > { %12372 = vmatprep.subr.bf16.mxu0 %v13550_v60  ;;  %13130 = vmatpush3.bf16.msra.mxu1 %v13555_v35 }
0x241f   : > { %13131 = vmatprep.subr.bf16.mxu1 %v14095_v27 }
0x2421   : > { %12373 = vmatpush3.bf16.msra.mxu0 %v13551_v40 }
0x2422   : > { %12374 = vmatprep.subr.bf16.mxu0 %v13553_v31  ;;  %13132 = vmatpush3.bf16.msra.mxu1 %v13558_v53  ;;  %v7494_v31 = vrot.slane %v7488_v2, 1 }
0x2423   : > { %13133 = vmatprep.subr.bf16.mxu1 %v14095_v27 }
0x2425   : > { %12375 = vmatpush3.bf16.msra.mxu0 %v13554_v52 }
0x2426   : > { %12376 = vmatprep.subr.bf16.mxu0 %v13556_v16  ;;  %13134 = vmatpush3.bf16.msra.mxu1 %v13561_v20 }
0x2427   : > { %11770 = vmatprep.subr.msk.bf16.mxu1 %vm3698_vm13, %v11768_v49 }
0x2429   : > { %12377 = vmatpush3.bf16.msra.mxu0 %v13557_v4 }
0x242a   : > { %12378 = vmatprep.subr.bf16.mxu0 %v13559_v48 }
0x242d   : > { %12379 = vmatpush3.bf16.msra.mxu0 %v13560_v36 }
0x242e   : > { %12380 = vmatprep.subr.bf16.mxu0 %v13562_v10 }
0x2431   : > { %12381 = vmatpush3.bf16.msra.mxu0 %v13563_v55 }
0x2432   : > { %13139 = vmatprep.subr.bf16.mxu0 %v14095_v27 }
0x24d4   : > { %v7406_v22 = vpop.f32.mrf.mxu0  ;;  %v7447_v29 = vpop.f32.mrf.mxu1 }
0x24d5   : > { %v7407_v12 = vadd.f32 %v7406_v22, %v7301_v42  ;;  %v7448_v25 = vadd.f32 %v7447_v29, %v7303_v37  ;;  %v16286_v22 = vld [vmem:[#allocation2 + $0x3c8] sm:$0x7] }
0x24d6   : > { %v7408_v5 = vpop.f32.mrf.mxu0  ;;  %v13123_v47 = vpop.f32.mrf.mxu1 }
0x24d7   : > { %v7453_v34 = vadd.f32 3.0, %v7407_v12  ;;  %v7455_v24 = vadd.f32 3.0, %v7448_v25  ;;  %v7409_v61 = vadd.f32 %v7408_v5, %v7302_v19  ;;  %v11767_v19 = vcombine.low %v16279_v11, %v16279_v11 }
0x24d8   : > { %v7410_v28 = vpop.f32.mrf.mxu0  ;;  %v7450_v39 = vpop.f32.mrf.mxu1 }
0x24d9   : > { %v7456_v6 = vmax.f32 %v7453_v34, 0.0  ;;  %v7458_v58 = vmax.f32 %v7455_v24, 0.0  ;;  %v7454_v38 = vadd.f32 3.0, %v7409_v61  ;;  %v7904_v47 = vsel %vm3698_vm13, %v11767_v19, 0  ;;  %v13569_v34 = vld [vmem:[#allocation2 + $0x3a4] ss:$16 sps:$4 sm:$0xff]  }
0x24da   : > { %v7411_v45 = vpop.f32.mrf.mxu0  ;;  %v13124_v26 = vpop.f32.mrf.mxu1  ;;  %v13571_v28 = vld [vmem:[#allocation2 + $0x380] ss:$16 sps:$4 sm:$0xff]   ;;  %v13574_v39 = vld [vmem:[#allocation2 + $0x388] ss:$16 sps:$4 sm:$0xff]  }
0x24db   : > { %v7459_v23 = vmin.f32 %v7456_v6, 6.0  ;;  %v7461_v1 = vmin.f32 %v7458_v58, 6.0  ;;  %v7457_v8 = vmax.f32 %v7454_v38, 0.0  ;;  %v13577_v6 = vld [vmem:[#allocation2 + $0x364] ss:$16 sps:$4 sm:$0xff]  }
0x24dc   : > { %v13575_v58 = vld [vmem:[#allocation2 + $0x360] ss:$16 sps:$4 sm:$0xff]   ;;  %v13578_v38 = vld [vmem:[#allocation2 + $0x368] ss:$16 sps:$4 sm:$0xff]   ;;  %v13585_v26 = vld [vmem:[#allocation2 + $0x324] ss:$16 sps:$4 sm:$0xff]  }
0x24dd   : > { %v7462_v33 = vmul.f32 %v7459_v23, %v7407_v12  ;;  %v7464_v21 = vmul.f32 %v7461_v1, %v7448_v25  ;;  %v7460_v32 = vmin.f32 %v7457_v8, 6.0  ;;  %v11769_v25 = vcombine.low %v16286_v22, %v16286_v22  ;;  %v13582_v45 = vld [vmem:[#allocation2 + $0x348] ss:$16 sps:$4 sm:$0xff]   ;;  %v13583_v23 = vld [vmem:[#allocation2 + $0x320] ss:$16 sps:$4 sm:$0xff]  }
0x24de   : > { %v13586_v1 = vld [vmem:[#allocation2 + $0x328] ss:$16 sps:$4 sm:$0xff]   ;;  %v13605_v19 = vld [vmem:[%s17075_s1 + $0x928] sm:$0xff]  }
0x24df   : > { %v7465_v41 = vmul.f32 0.16666667, %v7462_v33  ;;  %v7467_v18 = vmul.f32 0.16666667, %v7464_v21  ;;  %v7463_v62 = vmul.f32 %v7460_v32, %v7409_v61  ;;  %v7910_v0 = vsel %vm3698_vm13, %v11769_v25, 0  ;;  %v13587_v8 = vld [vmem:[%s17075_s1 + $0x920] sm:$0xff]  }
0x24e0   : > { %v13567_v61 = vld [vmem:[#allocation2 + $0x3a0] ss:$16 sps:$4 sm:$0xff]  }
0x24e1   : > { %v7484_v60 = vmul.f32 %v7478_v63, %v7465_v41  ;;  %v7486_v40 = vmul.f32 %v7480_v15, %v7467_v18  ;;  %v7466_v43 = vmul.f32 0.16666667, %v7463_v62  ;;  %v7559_v63 = vld [vmem:[%s17075_s1 + $0x8a0] sm:$0x1]  ;;  %v13607_v25 = vld [vmem:[%s17075_s1 + $0x8a8] sm:$0xff]  }
0x24e2   : > { %v7588_v32 = vunpack.c.l.bf16 %v7559_v63 }
0x24e3   : > { %v7499_v52 = vadd.f32 %v7493_v44, %v7484_v60  ;;  %v7501_v35 = vadd.f32 %v7495_v3, %v7486_v40  ;;  %v7485_v16 = vmul.f32 %v7479_v59, %v7466_v43  ;;  %v13588_v40 = vld [vmem:[%s17075_s1 + $0x8e0] sm:$0xff]   ;;  %v13593_v43 = vld [vmem:[%s17075_s1 + $0x948] sm:$0xff]  }
0x24e5   : > { %v7502_v4 = vadd.f32 3.0, %v7499_v52  ;;  %v7504_v53 = vadd.f32 3.0, %v7501_v35  ;;  %v7500_v48 = vadd.f32 %v7494_v31, %v7485_v16  ;;  %v13591_v16 = vld [vmem:[%s17075_s1 + $0x910] sm:$0xff]  }
0x24e7   : > { %v7505_v36 = vmax.f32 %v7502_v4, 0.0  ;;  %v7507_v20 = vmax.f32 %v7504_v53, 0.0  ;;  %v7503_v10 = vadd.f32 3.0, %v7500_v48  ;;  %v13592_v4 = vld [vmem:[%s17075_s1 + $0x8d0] sm:$0xff]   ;;  %v13594_v53 = vld [vmem:[%s17075_s1 + $0x908] sm:$0xff]  }
0x24e9   : > { %v7508_v55 = vmin.f32 %v7505_v36, 6.0  ;;  %v7510_v49 = vmin.f32 %v7507_v20, 6.0  ;;  %v7506_v57 = vmax.f32 %v7503_v10, 0.0  ;;  %v13596_v36 = vld [vmem:[%s17075_s1 + $0x940] sm:$0xff]  }
0x24ea   : > { %v13597_v20 = vld [vmem:[%s17075_s1 + $0x900] sm:$0xff]  }
0x24eb   : > { %v7511_v51 = vmul.f32 %v7508_v55, %v7499_v52  ;;  %v7513_v42 = vmul.f32 %v7510_v49, %v7501_v35  ;;  %v7509_v37 = vmin.f32 %v7506_v57, 6.0  ;;  %v13589_v52 = vld [vmem:[%s17075_s1 + $0x918] sm:$0xff]   ;;  %v13598_v10 = vld [vmem:[%s17075_s1 + $0x8c0] sm:$0xff]  }
0x24ec   : > { %v13590_v35 = vld [vmem:[%s17075_s1 + $0x8d8] sm:$0xff]  }
0x24ed   : > { %v16288_v29 = vmul.f32 0.16666667, %v7513_v42  ;;  %v7512_v12 = vmul.f32 %v7509_v37, %v7500_v48  ;;  %v16290_v14 = vmul.f32 0.16666667, %v7511_v51  ;;  %v13595_v48 = vld [vmem:[%s17075_s1 + $0x8c8] sm:$0xff]   ;;  %v13599_v55 = vld [vmem:[%s17075_s1 + $0x938] sm:$0xff]  }
0x24ee   : > { %v13600_v49 = vld [vmem:[%s17075_s1 + $0x8f8] sm:$0xff]   ;;  %v13602_v51 = vld [vmem:[%s17075_s1 + $0x930] sm:$0xff]  }
0x24ef   : > { %v7587_v13 = vpack.c.bf16 %v16288_v29, %v16288_v29  ;;  %v16296_v5 = vmul.f32 0.16666667, %v7512_v12  ;;  %v7585_v24 = vpack.c.bf16 %v16290_v14, %v16290_v14  ;;  %v13601_v57 = vld [vmem:[%s17075_s1 + $0x8b8] sm:$0xff]   ;;  %v13603_v42 = vld [vmem:[%s17075_s1 + $0x8f0] sm:$0xff]   ;;  %v13606_v12 = vld [vmem:[%s17075_s1 + $0x8e8] sm:$0xff]  }
0x24f0   : > { %v13604_v37 = vld [vmem:[%s17075_s1 + $0x8b0] sm:$0xff]  }
0x24f1   : > { %13136 = vmatmul.mubr.msk.bf16.vlgmr.msra.gmra.mxu1 %vm6730_vm9, %v7587_v13  ;;  %v7586_v50 = vpack.c.bf16 %v16296_v5, %v16296_v5  ;;  %v13610_v13 = vld [vmem:[#allocation2 + $0x464] ss:$16 sps:$4 sm:$0xff]  }
0x24f2   : > { %7917 = vmatpush1.bf16.msra.mxu1 %v7904_v47  ;;  %7944 = vmatprep.mubr.bf16.mxu1 %v14097_v30  ;;  %v13613_v47 = vld [vmem:[#allocation2 + $0x46c] ss:$16 sps:$4 sm:$0xff]  }
0x24f3   : > { %7750 = vmatprep.mubr.bf16.mxu0 %v7586_v50  ;;  %7918 = vmatprep.subr.bf16.mxu1 %v13569_v34  ;;  %v7802_v34 = vunpack.c.l.bf16 %v16286_v22  ;;  %v7801_v50 = vunpack.c.h.bf16 %v16279_v11 }
0x24f4   : > { %7751 = vmatmul.mubr.bf16.vlgmr.msra.gmra.mxu0 %v7585_v24 }
0x24f5   : > { %13140 = vmatpush3.bf16.msra.mxu0 %v7910_v0  ;;  %13151 = vmatprep.mubr.msk.bf16.mxu0 %vm14096_vm6, %v14095_v27  ;;  %v7896_v0 = vrot.slane %v7802_v34, 4 }
0x24f6   : > { %13141 = vmatprep.subr.bf16.mxu0 %v14095_v27  ;;  %7919 = vmatpush1.bf16.msra.mxu1 %v13567_v61  ;;  %v7895_v61 = vrot.slane %v7801_v50, 4 }
0x24f7   : > { %7920 = vmatprep.subr.bf16.mxu1 %v13573_v56 }
0x24f9   : > { %13142 = vmatpush3.bf16.msra.mxu0 %v13570_v46 }
0x24fa   : > { %13143 = vmatprep.subr.bf16.mxu0 %v14095_v27  ;;  %7921 = vmatpush1.bf16.msra.mxu1 %v13571_v28 }
0x24fb   : > { %7922 = vmatprep.subr.bf16.mxu1 %v13577_v6 }
0x24fd   : > { %13144 = vmatpush3.bf16.msra.mxu0 %v13574_v39 }
0x24fe   : > { %13145 = vmatprep.subr.bf16.mxu0 %v14095_v27  ;;  %7923 = vmatpush1.bf16.msra.mxu1 %v13575_v58 }
0x24ff   : > { %7924 = vmatprep.subr.bf16.mxu1 %v13581_v9 }
0x2501   : > { %13146 = vmatpush3.bf16.msra.mxu0 %v13578_v38 }
0x2502   : > { %13147 = vmatprep.subr.bf16.mxu0 %v14095_v27  ;;  %7925 = vmatpush1.bf16.msra.mxu1 %v13579_v54 }
0x2503   : > { %7926 = vmatprep.subr.bf16.mxu1 %v13585_v26 }
0x2505   : > { %13148 = vmatpush3.bf16.msra.mxu0 %v13582_v45 }
0x2506   : > { %13149 = vmatprep.subr.bf16.mxu0 %v14095_v27  ;;  %7927 = vmatpush1.bf16.msra.mxu1 %v13583_v23 }
0x2507   : > { %12401 = vmatprep.subr.bf16.mxu1 %v13587_v8 }
0x2509   : > { %13150 = vmatpush3.bf16.msra.mxu0 %v13586_v1 }
0x250a   : > { %13155 = vmatprep.subr.bf16.mxu0 %v14095_v27 }
0x25b1   : > { %v7792_v17 = vpop.f32.mrf.mxu1 }
0x25b3   : > { %v13137_v15 = vpop.f32.mrf.mxu1 }
0x25b4   : > { %v12382_v33 = vpop.f32.mrf.mxu0 }
0x25b5   : > { %v7795_v21 = vpop.f32.mrf.mxu1 }
0x25b6   : > { %v12383_v2 = vpop.f32.mrf.mxu0 }
0x25b7   : > { %v12384_v44 = vadd.f32 %v12383_v2, %v12382_v33  ;;  %v13138_v3 = vpop.f32.mrf.mxu1 }
0x25b8   : > { %v12385_v41 = vpop.f32.mrf.mxu0 }
0x25b9   : > { %v7753_v18 = vadd.f32 %v12384_v44, %v7588_v32  ;;  %v13608_v41 = vld [vmem:[#allocation2 + $0x460] ss:$16 sps:$4 sm:$0xff]  }
0x25ba   : > { %v12386_v62 = vpop.f32.mrf.mxu0 }
0x25bb   : > { %v7793_v59 = vadd.f32 %v7792_v17, %v7753_v18 }
0x25bd   : > { %v7798_v60 = vmax.f32 %v7793_v59, 0.0  ;;  %v13616_v59 = vld [vmem:[#allocation2 + $0x444] ss:$16 sps:$4 sm:$0xff]  }
0x25bf   : > { %v7799_v31 = vpack.c.bf16 %v7798_v60, %v7798_v60 }
0x25c1   : > { %11771 = vmatmul.mubr.msk.bf16.vlgmr.msra.gmra.mxu1 %vm6916_vm10, %v7799_v31  ;;  %13152 = vmatmul.mubr.msk.bf16.vlgmr.msra.gmra.mxu0 %vm6916_vm10, %v7799_v31  ;;  %v13614_v31 = vld [vmem:[#allocation2 + $0x440] ss:$16 sps:$4 sm:$0xff]  }
0x25c2   : > { %12402 = vmatpush3.bf16.msra.mxu1 %v13588_v40  ;;  %13156 = vmatpush3.bf16.msra.mxu0 %v13593_v43  ;;  %v13611_v40 = vld [vmem:[#allocation2 + $0x468] ss:$16 sps:$4 sm:$0xff]  }
0x25c3   : > { %12403 = vmatprep.subr.bf16.mxu1 %v13589_v52  ;;  %13157 = vmatprep.subr.bf16.mxu0 %v14095_v27  ;;  %v13619_v52 = vld [vmem:[#allocation2 + $0x44c] ss:$16 sps:$4 sm:$0xff]  }
0x25c4   : > { %13165 = vmatprep.mubr.msk.bf16.mxu0 %vm14096_vm6, %v14095_v27 }
0x25c6   : > { %12404 = vmatpush3.bf16.msra.mxu1 %v13590_v35  ;;  %13158 = vmatpush3.bf16.msra.mxu0 %v13596_v36  ;;  %v13620_v35 = vld [vmem:[#allocation2 + $0x420] ss:$16 sps:$4 sm:$0xff]   ;;  %v13629_v36 = vld [vmem:[#allocation2 + $0x408] ss:$16 sps:$4 sm:$0xff]  }
0x25c7   : > { %12405 = vmatprep.subr.bf16.mxu1 %v13591_v16  ;;  %13159 = vmatprep.subr.bf16.mxu0 %v14095_v27  ;;  %v13623_v16 = vld [vmem:[#allocation2 + $0x428] ss:$16 sps:$4 sm:$0xff]  }
0x25ca   : > { %12406 = vmatpush3.bf16.msra.mxu1 %v13592_v4  ;;  %13160 = vmatpush3.bf16.msra.mxu0 %v13599_v55  ;;  %v13628_v4 = vld [vmem:[#allocation2 + $0x404] ss:$16 sps:$4 sm:$0xff]   ;;  %v13632_v55 = vld [vmem:[#allocation2 + $0x3e0] ss:$16 sps:$4 sm:$0xff]  }
0x25cb   : > { %12407 = vmatprep.subr.bf16.mxu1 %v13594_v53  ;;  %13161 = vmatprep.subr.bf16.mxu0 %v14095_v27  ;;  %v13631_v53 = vld [vmem:[#allocation2 + $0x40c] ss:$16 sps:$4 sm:$0xff]  }
0x25ce   : > { %12408 = vmatpush3.bf16.msra.mxu1 %v13595_v48  ;;  %13162 = vmatpush3.bf16.msra.mxu0 %v13602_v51  ;;  %v13626_v48 = vld [vmem:[#allocation2 + $0x400] ss:$16 sps:$4 sm:$0xff]   ;;  %v8050_v51 = vld [vmem:[%s17075_s1 + $0x950] sm:$0x1] }
0x25cf   : > { %12409 = vmatprep.subr.bf16.mxu1 %v13597_v20  ;;  %13163 = vmatprep.subr.bf16.mxu0 %v14095_v27  ;;  %v7800_v27 = vunpack.c.l.bf16 %v16279_v11  ;;  %v13634_v20 = vld [vmem:[#allocation2 + $0x3e4] ss:$16 sps:$4 sm:$0xff]  }
0x25d1   : > { %v7894_v24 = vrot.slane %v7800_v27, 4 }
0x25d2   : > { %12410 = vmatpush3.bf16.msra.mxu1 %v13598_v10  ;;  %13164 = vmatpush3.bf16.msra.mxu0 %v13605_v19  ;;  %v13637_v10 = vld [vmem:[#allocation2 + $0x3ec] ss:$16 sps:$4 sm:$0xff]  }
0x25d3   : > { %12411 = vmatprep.subr.bf16.mxu1 %v13600_v49  ;;  %8400 = vmatprep.subr.bf16.mxu0 %v13610_v13  ;;  %v13635_v49 = vld [vmem:[#allocation2 + $0x3e8] ss:$16 sps:$4 sm:$0xff]  }
0x25d6   : > { %12412 = vmatpush3.bf16.msra.mxu1 %v13601_v57 }
0x25d7   : > { %12413 = vmatprep.subr.bf16.mxu1 %v13603_v42 }
0x25da   : > { %12414 = vmatpush3.bf16.msra.mxu1 %v13604_v37 }
0x25db   : > { %12415 = vmatprep.subr.bf16.mxu1 %v13606_v12  ;;  %v8054_v12 = vunpack.c.l.bf16 %v8050_v51  ;;  %v8498_v51 = vld [vmem:[#allocation2 + $0x4d0] sm:$0x11] }
0x25de   : > { %12416 = vmatpush3.bf16.msra.mxu1 %v13607_v25 }
0x25df   : > { %8441 = vmatprep.subr.bf16.mxu1 %v13613_v47 }
0x2681   : > { %v7946_v46 = vpop.f32.mrf.mxu1  ;;  %v7987_v56 = vpop.f32.mrf.mxu0 }
0x2682   : > { %v7947_v28 = vadd.f32 %v7946_v46, %v7894_v24  ;;  %v7988_v39 = vadd.f32 %v7987_v56, %v7896_v0  ;;  %v13638_v0 = vld [vmem:[%s17075_s1 + $0xa10] sm:$0xff]   ;;  %v13639_v46 = vld [vmem:[%s17075_s1 + $0xa08] sm:$0xff]   ;;  %v13640_v56 = vld [vmem:[%s17075_s1 + $0xa00] sm:$0xff]  }
0x2683   : > { %v7948_v6 = vpop.f32.mrf.mxu1  ;;  %v13153_v58 = vpop.f32.mrf.mxu0 }
0x2684   : > { %v7993_v38 = vadd.f32 3.0, %v7947_v28  ;;  %v7995_v9 = vadd.f32 3.0, %v7988_v39  ;;  %v7949_v54 = vadd.f32 %v7948_v6, %v7895_v61  ;;  %v13641_v28 = vld [vmem:[%s17075_s1 + $0x9f8] sm:$0xff]   ;;  %v13642_v39 = vld [vmem:[%s17075_s1 + $0x9f0] sm:$0xff]   ;;  %v13643_v6 = vld [vmem:[%s17075_s1 + $0x9e8] sm:$0xff]  }
0x2685   : > { %v7950_v45 = vpop.f32.mrf.mxu1  ;;  %v7990_v26 = vpop.f32.mrf.mxu0  ;;  %v13644_v58 = vld [vmem:[%s17075_s1 + $0x9d0] sm:$0xff]  }
0x2686   : > { %v7996_v23 = vmax.f32 %v7993_v38, 0.0  ;;  %v7998_v1 = vmax.f32 %v7995_v9, 0.0  ;;  %v7994_v8 = vadd.f32 3.0, %v7949_v54  ;;  %v13645_v38 = vld [vmem:[%s17075_s1 + $0x990] sm:$0xff]   ;;  %v13646_v9 = vld [vmem:[%s17075_s1 + $0x9e0] sm:$0xff]   ;;  %v13647_v54 = vld [vmem:[%s17075_s1 + $0x9c8] sm:$0xff]  }
0x2687   : > { %v7951_v22 = vpop.f32.mrf.mxu1  ;;  %v13154_v17 = vpop.f32.mrf.mxu0  ;;  %v13648_v45 = vld [vmem:[%s17075_s1 + $0x988] sm:$0xff]   ;;  %v13649_v26 = vld [vmem:[%s17075_s1 + $0x9d8] sm:$0xff]  }
0x2688   : > { %v7999_v11 = vmin.f32 %v7996_v23, 6.0  ;;  %v8001_v63 = vmin.f32 %v7998_v1, 6.0  ;;  %v7997_v15 = vmax.f32 %v7994_v8, 0.0  ;;  %v13650_v23 = vld [vmem:[%s17075_s1 + $0x9c0] sm:$0xff]   ;;  %v13653_v22 = vld [vmem:[%s17075_s1 + $0x9b8] sm:$0xff]  }
0x2689   : > { %v13651_v1 = vld [vmem:[%s17075_s1 + $0x980] sm:$0xff]   ;;  %v13654_v17 = vld [vmem:[%s17075_s1 + $0x978] sm:$0xff]  }
0x268a   : > { %v8002_v33 = vmul.f32 0.16666667, %v7999_v11  ;;  %v8004_v21 = vmul.f32 0.16666667, %v8001_v63  ;;  %v8000_v32 = vmin.f32 %v7997_v15, 6.0  ;;  %v13652_v8 = vld [vmem:[%s17075_s1 + $0xa40] sm:$0xff]  }
0x268b   : > { %v13655_v11 = vld [vmem:[%s17075_s1 + $0xa38] sm:$0xff]   ;;  %v13656_v63 = vld [vmem:[%s17075_s1 + $0x9b0] sm:$0xff]  }
0x268c   : > { %v8007_v2 = vmul.f32 %v8004_v21, %v16288_v29  ;;  %v8003_v44 = vmul.f32 0.16666667, %v8000_v32  ;;  %v8005_v3 = vmul.f32 %v8002_v33, %v16290_v14  ;;  %v13617_v29 = vld [vmem:[#allocation2 + $0x448] ss:$16 sps:$4 sm:$0xff]   ;;  %v13622_v14 = vld [vmem:[#allocation2 + $0x424] ss:$16 sps:$4 sm:$0xff]  }
0x268d   : > { %v13657_v15 = vld [vmem:[%s17075_s1 + $0x970] sm:$0xff]   ;;  %v13659_v21 = vld [vmem:[%s17075_s1 + $0x9a8] sm:$0xff]  }
0x268e   : > { %v8053_v18 = vpack.c.bf16 %v8007_v2, %v8007_v2  ;;  %v8006_v62 = vmul.f32 %v8003_v44, %v16296_v5  ;;  %v8051_v43 = vpack.c.bf16 %v8005_v3, %v8005_v3  ;;  %v13625_v5 = vld [vmem:[#allocation2 + $0x42c] ss:$16 sps:$4 sm:$0xff]   ;;  %v13660_v32 = vld [vmem:[%s17075_s1 + $0x968] sm:$0xff]  }
0x268f   : > { %v13658_v33 = vld [vmem:[%s17075_s1 + $0xa30] sm:$0xff]   ;;  %v13661_v2 = vld [vmem:[%s17075_s1 + $0xa28] sm:$0xff]   ;;  %v13662_v44 = vld [vmem:[%s17075_s1 + $0x9a0] sm:$0xff]  }
0x2690   : > { %13166 = vmatmul.mubr.msk.bf16.vlgmr.msra.gmra.mxu0 %vm6730_vm9, %v8053_v18  ;;  %v8052_v60 = vpack.c.bf16 %v8006_v62, %v8006_v62  ;;  %v13663_v3 = vld [vmem:[%s17075_s1 + $0x960] sm:$0xff]   ;;  %v13665_v18 = vld [vmem:[%s17075_s1 + $0x998] sm:$0xff]  }
0x2691   : > { %8401 = vmatpush1.bf16.msra.mxu0 %v13608_v41  ;;  %8426 = vmatprep.mubr.bf16.mxu0 %v14097_v30  ;;  %v13664_v41 = vld [vmem:[%s17075_s1 + $0xa20] sm:$0xff]   ;;  %v13666_v62 = vld [vmem:[%s17075_s1 + $0x958] sm:$0xff]  }
0x2692   : > { %8216 = vmatprep.mubr.bf16.mxu1 %v8052_v60  ;;  %8402 = vmatprep.subr.bf16.mxu0 %v13616_v59  ;;  %v13667_v59 = vld [vmem:[%s17075_s1 + $0xa18] sm:$0xff]  }
0x2693   : > { %8217 = vmatmul.mubr.bf16.vlgmr.msra.gmra.mxu1 %v8051_v43  ;;  %v16510_v60 = vld [vmem:[#allocation2 + $0x5c0] sm:$0xff] }
0x2694   : > { %8442 = vmatpush1.bf16.msra.mxu1 %v13611_v40  ;;  %8467 = vmatprep.mubr.bf16.mxu1 %v14097_v30  ;;  %v16512_v40 = vld [vmem:[#allocation2 + $0x5c8] sm:$0xff]  ;;  %v11877_v43 = vcombine.high %v16510_v60, %v16510_v60 }
0x2695   : > { %8443 = vmatprep.subr.bf16.mxu1 %v13619_v52  ;;  %8403 = vmatpush1.bf16.msra.mxu0 %v13614_v31  ;;  %v11879_v31 = vcombine.high %v16512_v40, %v16512_v40  ;;  %v8284_v52 = vld [vmem:[#allocation2 + $0x480] sm:$0x11] }
0x2696   : > { %8404 = vmatprep.subr.bf16.mxu0 %v13622_v14  ;;  %v8287_v14 = vunpack.c.l.bf16 %v8284_v52 }
0x2698   : > { %8444 = vmatpush1.bf16.msra.mxu1 %v13617_v29  ;;  %v8285_v29 = vld [vmem:[#allocation2 + $0x488] sm:$0x11] }
0x2699   : > { %8445 = vmatprep.subr.bf16.mxu1 %v13625_v5  ;;  %8405 = vmatpush1.bf16.msra.mxu0 %v13620_v35  ;;  %v8289_v5 = vunpack.c.l.bf16 %v8285_v29  ;;  %v8288_v35 = vunpack.c.h.bf16 %v8284_v52 }
0x269a   : > { %8406 = vmatprep.subr.bf16.mxu0 %v13628_v4 }
0x269c   : > { %8446 = vmatpush1.bf16.msra.mxu1 %v13623_v16  ;;  %v8290_v16 = vunpack.c.h.bf16 %v8285_v29 }
0x269d   : > { %8447 = vmatprep.subr.bf16.mxu1 %v13631_v53  ;;  %8407 = vmatpush1.bf16.msra.mxu0 %v13626_v48 }
0x269e   : > { %8408 = vmatprep.subr.bf16.mxu0 %v13634_v20 }
0x26a0   : > { %8448 = vmatpush1.bf16.msra.mxu1 %v13629_v36  ;;  %v8496_v36 = vld [vmem:[#allocation2 + $0x4b0] sm:$0xff] }
0x26a1   : > { %8449 = vmatprep.subr.bf16.mxu1 %v13637_v10  ;;  %8409 = vmatpush1.bf16.msra.mxu0 %v13632_v55  ;;  %v8497_v10 = vld [vmem:[#allocation2 + $0x4b8] sm:$0xff] }
0x26a2   : > { %12429 = vmatprep.subr.bf16.mxu0 %v13644_v58 }
0x26a4   : > { %8450 = vmatpush1.bf16.msra.mxu1 %v13635_v49 }
0x26a5   : > { %8885 = vmatprep.subr.bf16.mxu1 %v14097_v30 }
0x2750   : > { %v8258_v57 = vpop.f32.mrf.mxu0 }
0x2752   : > { %v13167_v42 = vpop.f32.mrf.mxu0 }
0x2753   : > { %v12417_v37 = vpop.f32.mrf.mxu1 }
0x2754   : > { %v8261_v19 = vpop.f32.mrf.mxu0 }
0x2755   : > { %v12418_v25 = vpop.f32.mrf.mxu1 }
0x2756   : > { %v12419_v13 = vadd.f32 %v12418_v25, %v12417_v37  ;;  %v13168_v47 = vpop.f32.mrf.mxu0  ;;  %v8499_v37 = vld [vmem:[#allocation2 + $0x4d8] sm:$0x11]  ;;  %v8500_v25 = vunpack.c.l.bf16 %v8496_v36 }
0x2757   : > { %v12420_v27 = vpop.f32.mrf.mxu1 }
0x2758   : > { %v8219_v34 = vadd.f32 %v12419_v13, %v8054_v12  ;;  %v8502_v13 = vunpack.c.l.bf16 %v8497_v10 }
0x2759   : > { %v12421_v50 = vpop.f32.mrf.mxu1 }
0x275a   : > { %v16401_v24 = vadd.f32 %v8258_v57, %v8219_v34 }
0x275c   : > { %v8286_v61 = vpack.c.bf16 %v16401_v24, %v16401_v24 }
0x275e   : > { %11815 = vmatmul.mubr.msk.bf16.vlgmr.msra.gmra.mxu0 %vm6730_vm9, %v8286_v61  ;;  %11816 = vmatmul.mubr.msk.bf16.vlgmr.msra.gmra.mxu1 %vm6730_vm9, %v8286_v61 }
0x275f   : > { %8886 = vmatpush1.bf16.msra.mxu1 %v13638_v0  ;;  %12430 = vmatpush3.bf16.msra.mxu0 %v13645_v38 }
0x2760   : > { %8887 = vmatprep.subr.bf16.mxu1 %v14097_v30  ;;  %12431 = vmatprep.subr.bf16.mxu0 %v13647_v54 }
0x2763   : > { %8888 = vmatpush1.bf16.msra.mxu1 %v13639_v46  ;;  %12432 = vmatpush3.bf16.msra.mxu0 %v13648_v45  ;;  %v8520_v46 = vunpack.c.l.bf16 %v8498_v51 }
0x2764   : > { %8889 = vmatprep.subr.bf16.mxu1 %v14097_v30  ;;  %12433 = vmatprep.subr.bf16.mxu0 %v13650_v23  ;;  %v8510_v23 = vrot.slane %v8502_v13, 4 }
0x2767   : > { %8890 = vmatpush1.bf16.msra.mxu1 %v13640_v56  ;;  %12434 = vmatpush3.bf16.msra.mxu0 %v13651_v1  ;;  %v8522_v56 = vunpack.c.l.bf16 %v8499_v37  ;;  %v8521_v1 = vunpack.c.h.bf16 %v8498_v51 }
0x2768   : > { %8891 = vmatprep.subr.bf16.mxu1 %v14097_v30  ;;  %12435 = vmatprep.subr.bf16.mxu0 %v13653_v22 }
0x276b   : > { %8892 = vmatpush1.bf16.msra.mxu1 %v13641_v28  ;;  %12436 = vmatpush3.bf16.msra.mxu0 %v13654_v17  ;;  %v8501_v28 = vunpack.c.h.bf16 %v8496_v36 }
0x276c   : > { %8893 = vmatprep.subr.bf16.mxu1 %v14097_v30  ;;  %12437 = vmatprep.subr.bf16.mxu0 %v13656_v63 }
0x276f   : > { %8894 = vmatpush1.bf16.msra.mxu1 %v13642_v39  ;;  %12438 = vmatpush3.bf16.msra.mxu0 %v13657_v15  ;;  %v8503_v39 = vunpack.c.h.bf16 %v8497_v10  ;;  %v8528_v15 = vrot.slane %v8520_v46, 1 }
0x2770   : > { %8895 = vmatprep.subr.bf16.mxu1 %v14097_v30  ;;  %12439 = vmatprep.subr.bf16.mxu0 %v13659_v21  ;;  %v8509_v21 = vrot.slane %v8501_v28, 4 }
0x2773   : > { %8896 = vmatpush1.bf16.msra.mxu1 %v13643_v6  ;;  %12440 = vmatpush3.bf16.msra.mxu0 %v13660_v32  ;;  %v8511_v32 = vrot.slane %v8503_v39, 4 }
0x2774   : > { %8897 = vmatprep.subr.bf16.mxu1 %v14097_v30  ;;  %12441 = vmatprep.subr.bf16.mxu0 %v13662_v44 }
0x2777   : > { %8898 = vmatpush1.bf16.msra.mxu1 %v13646_v9  ;;  %12442 = vmatpush3.bf16.msra.mxu0 %v13663_v3 }
0x2778   : > { %8899 = vmatprep.subr.bf16.mxu1 %v14097_v30  ;;  %12443 = vmatprep.subr.bf16.mxu0 %v13665_v18  ;;  %v8529_v18 = vrot.slane %v8521_v1, 1  ;;  %v13681_v1 = vld [vmem:[#allocation2 + $0x588] ss:$16 sps:$4 sm:$0xff]  }
0x277b   : > { %8900 = vmatpush1.bf16.msra.mxu1 %v13649_v26  ;;  %12444 = vmatpush3.bf16.msra.mxu0 %v13666_v62  ;;  %v8508_v26 = vrot.slane %v8500_v25, 4 }
0x277c   : > { %8905 = vmatprep.subr.bf16.mxu1 %v14097_v30  ;;  %11880 = vmatprep.subr.msk.bf16.mxu0 %vm474_vm3, %v11877_v43 }
0x277f   : > { %8906 = vmatpush2.bf16.msra.mxu1 %v13652_v8  ;;  %v8523_v8 = vunpack.c.h.bf16 %v8499_v37 }
0x2780   : > { %8907 = vmatprep.subr.bf16.mxu1 %v14097_v30 }
0x2781   : > { %v8531_v62 = vrot.slane %v8523_v8, 1  ;;  %v13686_v8 = vld [vmem:[#allocation2 + $0x564] ss:$16 sps:$4 sm:$0xff]  }
0x2783   : > { %8908 = vmatpush2.bf16.msra.mxu1 %v13655_v11 }
0x2784   : > { %8909 = vmatprep.subr.bf16.mxu1 %v14097_v30 }
0x2787   : > { %8910 = vmatpush2.bf16.msra.mxu1 %v13658_v33  ;;  %v8530_v33 = vrot.slane %v8522_v56, 1 }
0x2788   : > { %8911 = vmatprep.subr.bf16.mxu1 %v14097_v30 }
0x278b   : > { %8912 = vmatpush2.bf16.msra.mxu1 %v13661_v2 }
0x278c   : > { %8913 = vmatprep.subr.bf16.mxu1 %v14097_v30 }
0x278f   : > { %8914 = vmatpush2.bf16.msra.mxu1 %v13664_v41 }
0x2790   : > { %8915 = vmatprep.subr.bf16.mxu1 %v14097_v30 }
0x2793   : > { %8916 = vmatpush2.bf16.msra.mxu1 %v13667_v59 }
0x2794   : > { %11882 = vmatprep.subr.msk.bf16.mxu1 %vm474_vm3, %v11879_v31 }
0x281e   : > { %v8428_v4 = vpop.f32.mrf.mxu0  ;;  %v8469_v53 = vpop.f32.mrf.mxu1 }
0x281f   : > { %v8429_v48 = vadd.f32 %v8428_v4, %v8287_v14  ;;  %v8470_v20 = vadd.f32 %v8469_v53, %v8289_v5 }
0x2820   : > { %v8430_v55 = vpop.f32.mrf.mxu0  ;;  %v8471_v49 = vpop.f32.mrf.mxu1 }
0x2821   : > { %v8476_v57 = vadd.f32 3.0, %v8429_v48  ;;  %v8478_v42 = vadd.f32 3.0, %v8470_v20  ;;  %v8431_v19 = vadd.f32 %v8430_v55, %v8288_v35  ;;  %v8472_v12 = vadd.f32 %v8471_v49, %v8290_v16 }
0x2822   : > { %v8432_v47 = vpop.f32.mrf.mxu0  ;;  %v8473_v27 = vpop.f32.mrf.mxu1 }
0x2823   : > { %v8480_v34 = vmax.f32 %v8476_v57, 0.0  ;;  %v8482_v50 = vmax.f32 %v8478_v42, 0.0  ;;  %v8477_v0 = vadd.f32 3.0, %v8431_v19  ;;  %v8479_v61 = vadd.f32 3.0, %v8472_v12 }
0x2824   : > { %v8433_v6 = vpop.f32.mrf.mxu0  ;;  %v8474_v58 = vpop.f32.mrf.mxu1 }
0x2825   : > { %v8484_v38 = vmin.f32 %v8480_v34, 6.0  ;;  %v8486_v9 = vmin.f32 %v8482_v50, 6.0  ;;  %v8481_v54 = vmax.f32 %v8477_v0, 0.0  ;;  %v8483_v45 = vmax.f32 %v8479_v61, 0.0  ;;  %v13674_v58 = vld [vmem:[#allocation2 + $0x5a4] ss:$16 sps:$4 sm:$0xff]  }
0x2826   : > { %v11876_v50 = vcombine.low %v16510_v60, %v16510_v60  ;;  %v11878_v0 = vcombine.low %v16512_v40, %v16512_v40 }
0x2827   : > { %v8488_v22 = vmul.f32 %v8484_v38, %v8429_v48  ;;  %v8490_v17 = vmul.f32 %v8486_v9, %v8470_v20  ;;  %v8485_v11 = vmin.f32 %v8481_v54, 6.0  ;;  %v8487_v63 = vmin.f32 %v8483_v45, 6.0  ;;  %v13677_v38 = vld [vmem:[#allocation2 + $0x5ac] ss:$16 sps:$4 sm:$0xff]   ;;  %v13672_v9 = vld [vmem:[#allocation2 + $0x5a0] ss:$16 sps:$4 sm:$0xff]  }
0x2828   : > { %v9085_v60 = vsel %vm474_vm3, %v11876_v50, 0  ;;  %v9091_v40 = vsel %vm474_vm3, %v11878_v0, 0  ;;  %v13675_v54 = vld [vmem:[#allocation2 + $0x5a8] ss:$16 sps:$4 sm:$0xff]   ;;  %v13680_v45 = vld [vmem:[#allocation2 + $0x584] ss:$16 sps:$4 sm:$0xff]  }
0x2829   : > { %v8492_v2 = vmul.f32 0.16666667, %v8488_v22  ;;  %v8494_v44 = vmul.f32 0.16666667, %v8490_v17  ;;  %v8489_v3 = vmul.f32 %v8485_v11, %v8431_v19  ;;  %v8491_v41 = vmul.f32 %v8487_v63, %v8472_v12  ;;  %v13689_v22 = vld [vmem:[#allocation2 + $0x56c] ss:$16 sps:$4 sm:$0xff]  }
0x282a   : > { %v13684_v17 = vld [vmem:[#allocation2 + $0x560] ss:$16 sps:$4 sm:$0xff]   ;;  %v13687_v11 = vld [vmem:[#allocation2 + $0x568] ss:$16 sps:$4 sm:$0xff]   ;;  %v13692_v63 = vld [vmem:[#allocation2 + $0x544] ss:$16 sps:$4 sm:$0xff]  }
0x282b   : > { %v8516_v59 = vmul.f32 %v8508_v26, %v8492_v2  ;;  %v8518_v43 = vmul.f32 %v8510_v23, %v8494_v44  ;;  %v8493_v31 = vmul.f32 0.16666667, %v8489_v3  ;;  %v8495_v52 = vmul.f32 0.16666667, %v8491_v41  ;;  %v13683_v26 = vld [vmem:[#allocation2 + $0x58c] ss:$16 sps:$4 sm:$0xff]  }
0x282c   : > { %v13678_v23 = vld [vmem:[#allocation2 + $0x580] ss:$16 sps:$4 sm:$0xff]   ;;  %v13701_v2 = vld [vmem:[#allocation2 + $0x52c] ss:$16 sps:$4 sm:$0xff]   ;;  %v13699_v3 = vld [vmem:[#allocation2 + $0x528] ss:$16 sps:$4 sm:$0xff]  }
0x282d   : > { %v8536_v29 = vadd.f32 %v8528_v15, %v8516_v59  ;;  %v8538_v14 = vadd.f32 %v8530_v33, %v8518_v43  ;;  %v8517_v5 = vmul.f32 %v8509_v21, %v8493_v31  ;;  %v8519_v35 = vmul.f32 %v8511_v32, %v8495_v52  ;;  %v13695_v15 = vld [vmem:[#allocation2 + $0x54c] ss:$16 sps:$4 sm:$0xff]   ;;  %v13690_v33 = vld [vmem:[#allocation2 + $0x540] ss:$16 sps:$4 sm:$0xff]   ;;  %v13693_v21 = vld [vmem:[#allocation2 + $0x548] ss:$16 sps:$4 sm:$0xff]  }
0x282e   : > { %v13698_v32 = vld [vmem:[#allocation2 + $0x524] ss:$16 sps:$4 sm:$0xff]   ;;  %v13696_v44 = vld [vmem:[#allocation2 + $0x520] ss:$16 sps:$4 sm:$0xff]   ;;  %v13705_v59 = vld [vmem:[#allocation2 + $0x508] ss:$16 sps:$4 sm:$0xff]  }
0x282f   : > { %v8540_v16 = vadd.f32 3.0, %v8536_v29  ;;  %v8542_v4 = vadd.f32 3.0, %v8538_v14  ;;  %v8537_v53 = vadd.f32 %v8529_v18, %v8517_v5  ;;  %v8539_v48 = vadd.f32 %v8531_v62, %v8519_v35  ;;  %v13704_v41 = vld [vmem:[#allocation2 + $0x504] ss:$16 sps:$4 sm:$0xff]   ;;  %v13707_v18 = vld [vmem:[#allocation2 + $0x50c] ss:$16 sps:$4 sm:$0xff]  }
0x2830   : > { %v13702_v62 = vld [vmem:[#allocation2 + $0x500] ss:$16 sps:$4 sm:$0xff]   ;;  %v13710_v43 = vld [vmem:[#allocation2 + $0x4e4] ss:$16 sps:$4 sm:$0xff]   ;;  %v13713_v31 = vld [vmem:[#allocation2 + $0x4ec] ss:$16 sps:$4 sm:$0xff]  }
0x2831   : > { %v8544_v36 = vmax.f32 %v8540_v16, 0.0  ;;  %v8546_v20 = vmax.f32 %v8542_v4, 0.0  ;;  %v8541_v10 = vadd.f32 3.0, %v8537_v53  ;;  %v8543_v55 = vadd.f32 3.0, %v8539_v48  ;;  %v13708_v52 = vld [vmem:[#allocation2 + $0x4e0] ss:$16 sps:$4 sm:$0xff]  }
0x2832   : > { %v8620_v5 = vld [vmem:[%s17075_s1 + $0xa48] sm:$0x1]  ;;  %v13726_v50 = vld [vmem:[%s17075_s1 + $0xab8] sm:$0xff]  }
0x2833   : > { %v8548_v49 = vmin.f32 %v8544_v36, 6.0  ;;  %v8550_v57 = vmin.f32 %v8546_v20, 6.0  ;;  %v8547_v51 = vmax.f32 %v8543_v55, 0.0  ;;  %v8545_v42 = vmax.f32 %v8541_v10, 0.0  ;;  %v13716_v0 = vld [vmem:[%s17075_s1 + $0xaf8] sm:$0xff]  }
0x2834   : > { %v8661_v4 = vunpack.c.l.bf16 %v8620_v5 }
0x2835   : > { %v8552_v37 = vmul.f32 %v8548_v49, %v8536_v29  ;;  %v8554_v19 = vmul.f32 %v8550_v57, %v8538_v14  ;;  %v8551_v12 = vmin.f32 %v8547_v51, 6.0  ;;  %v8549_v25 = vmin.f32 %v8545_v42, 6.0  ;;  %v13711_v29 = vld [vmem:[#allocation2 + $0x4e8] ss:$16 sps:$4 sm:$0xff]   ;;  %v13720_v14 = vld [vmem:[%s17075_s1 + $0xac8] sm:$0xff]  }
0x2837   : > { %v8555_v13 = vmul.f32 %v8551_v12, %v8539_v48  ;;  %v8553_v47 = vmul.f32 %v8549_v25, %v8537_v53  ;;  %v16520_v27 = vmul.f32 0.16666667, %v8552_v37  ;;  %v16522_v34 = vmul.f32 0.16666667, %v8554_v19  ;;  %v13714_v37 = vld [vmem:[%s17075_s1 + $0xb08] sm:$0xff]   ;;  %v13723_v25 = vld [vmem:[%s17075_s1 + $0xac0] sm:$0xff]  }
0x2838   : > { %v13721_v19 = vld [vmem:[%s17075_s1 + $0xa88] sm:$0xff]  }
0x2839   : > { %v16528_v61 = vmul.f32 0.16666667, %v8553_v47  ;;  %v16530_v46 = vmul.f32 0.16666667, %v8555_v13  ;;  %v8657_v39 = vpack.c.bf16 %v16520_v27, %v16520_v27  ;;  %v8659_v6 = vpack.c.bf16 %v16522_v34, %v16522_v34  ;;  %v13715_v13 = vld [vmem:[%s17075_s1 + $0xb00] sm:$0xff]  }
0x283a   : > { %v13724_v47 = vld [vmem:[%s17075_s1 + $0xa80] sm:$0xff]  }
0x283b   : > { %v8658_v56 = vpack.c.bf16 %v16528_v61, %v16528_v61  ;;  %v8660_v28 = vpack.c.bf16 %v16530_v46, %v16530_v46 }
0x283d   : > { %8877 = vmatprep.mubr.bf16.mxu0 %v8658_v56  ;;  %11847 = vmatprep.mubr.msk.bf16.mxu1 %vm5487_vm5, %v8660_v28  ;;  %v13727_v56 = vld [vmem:[%s17075_s1 + $0xa78] sm:$0xff]   ;;  %v13729_v28 = vld [vmem:[%s17075_s1 + $0xab0] sm:$0xff]  }
0x283e   : > { %8878 = vmatmul.mubr.bf16.vlgmr.msra.gmra.mxu0 %v8657_v39  ;;  %8918 = vmatmul.mubr.bf16.vlgmr.msra.gmra.mxu1 %v8659_v6  ;;  %v13717_v39 = vld [vmem:[%s17075_s1 + $0xaf0] sm:$0xff]  }
0x283f   : > { %9097 = vmatpush1.bf16.msra.mxu0 %v9085_v60  ;;  %9138 = vmatpush1.bf16.msra.mxu1 %v9091_v40  ;;  %v13730_v6 = vld [vmem:[%s17075_s1 + $0xa70] sm:$0xff]   ;;  %v13718_v60 = vld [vmem:[%s17075_s1 + $0xae8] sm:$0xff]   ;;  %v13719_v40 = vld [vmem:[%s17075_s1 + $0xae0] sm:$0xff]  }
0x2840   : > { %9098 = vmatprep.subr.bf16.mxu0 %v13674_v58  ;;  %9139 = vmatprep.subr.bf16.mxu1 %v13677_v38  ;;  %v13722_v58 = vld [vmem:[%s17075_s1 + $0xad8] sm:$0xff]   ;;  %v13725_v38 = vld [vmem:[%s17075_s1 + $0xad0] sm:$0xff]  }
0x2841   : > { %9128 = vmatprep.mubr.bf16.mxu0 %v14097_v30  ;;  %9169 = vmatprep.mubr.bf16.mxu1 %v14097_v30 }
0x2843   : > { %9099 = vmatpush1.bf16.msra.mxu0 %v13672_v9  ;;  %9140 = vmatpush1.bf16.msra.mxu1 %v13675_v54  ;;  %v13728_v9 = vld [vmem:[%s17075_s1 + $0xb38] sm:$0xff]   ;;  %v13731_v54 = vld [vmem:[%s17075_s1 + $0xb30] sm:$0xff]  }
0x2844   : > { %9100 = vmatprep.subr.bf16.mxu0 %v13680_v45  ;;  %9141 = vmatprep.subr.bf16.mxu1 %v13683_v26  ;;  %v13732_v45 = vld [vmem:[%s17075_s1 + $0xaa8] sm:$0xff]  }
0x2845   : > { %v13733_v26 = vld [vmem:[%s17075_s1 + $0xa68] sm:$0xff]  }
0x2847   : > { %9101 = vmatpush1.bf16.msra.mxu0 %v13678_v23  ;;  %9142 = vmatpush1.bf16.msra.mxu1 %v13681_v1  ;;  %v13734_v23 = vld [vmem:[%s17075_s1 + $0xb28] sm:$0xff]   ;;  %v13735_v1 = vld [vmem:[%s17075_s1 + $0xaa0] sm:$0xff]  }
0x2848   : > { %9102 = vmatprep.subr.bf16.mxu0 %v13686_v8  ;;  %9143 = vmatprep.subr.bf16.mxu1 %v13689_v22  ;;  %v13736_v8 = vld [vmem:[%s17075_s1 + $0xa60] sm:$0xff]  }
0x2849   : > { %v13737_v22 = vld [vmem:[%s17075_s1 + $0xb20] sm:$0xff]  }
0x284b   : > { %9103 = vmatpush1.bf16.msra.mxu0 %v13684_v17  ;;  %9144 = vmatpush1.bf16.msra.mxu1 %v13687_v11  ;;  %v13738_v17 = vld [vmem:[%s17075_s1 + $0xa98] sm:$0xff]  }
0x284c   : > { %9104 = vmatprep.subr.bf16.mxu0 %v13692_v63  ;;  %9145 = vmatprep.subr.bf16.mxu1 %v13695_v15  ;;  %v13739_v11 = vld [vmem:[%s17075_s1 + $0xa58] sm:$0xff]   ;;  %v13741_v15 = vld [vmem:[%s17075_s1 + $0xa90] sm:$0xff]  }
0x284d   : > { %v13740_v63 = vld [vmem:[%s17075_s1 + $0xb18] sm:$0xff]  }
0x284f   : > { %9105 = vmatpush1.bf16.msra.mxu0 %v13690_v33  ;;  %9146 = vmatpush1.bf16.msra.mxu1 %v13693_v21  ;;  %v13742_v33 = vld [vmem:[%s17075_s1 + $0xa50] sm:$0xff]  }
0x2850   : > { %9106 = vmatprep.subr.bf16.mxu0 %v13698_v32  ;;  %9147 = vmatprep.subr.bf16.mxu1 %v13701_v2  ;;  %v13743_v21 = vld [vmem:[%s17075_s1 + $0xb10] sm:$0xff]   ;;  %v13746_v32 = vld [vmem:[#allocation2 + $0x664] ss:$16 sps:$4 sm:$0xff]  }
0x2851   : > { %v8651_v2 = vld [vmem:[#allocation2 + $0x5d0] sm:$0x11] }
0x2853   : > { %9107 = vmatpush1.bf16.msra.mxu0 %v13696_v44  ;;  %9148 = vmatpush1.bf16.msra.mxu1 %v13699_v3  ;;  %v8652_v44 = vld [vmem:[#allocation2 + $0x5d8] sm:$0x11]  ;;  %v8927_v3 = vunpack.c.l.bf16 %v8651_v2 }
0x2854   : > { %9108 = vmatprep.subr.bf16.mxu0 %v13704_v41  ;;  %9149 = vmatprep.subr.bf16.mxu1 %v13707_v18  ;;  %v8929_v41 = vunpack.c.l.bf16 %v8652_v44  ;;  %v8928_v18 = vunpack.c.h.bf16 %v8651_v2 }
0x2857   : > { %9109 = vmatpush1.bf16.msra.mxu0 %v13702_v62  ;;  %9150 = vmatpush1.bf16.msra.mxu1 %v13705_v59  ;;  %v8930_v62 = vunpack.c.h.bf16 %v8652_v44 }
0x2858   : > { %9110 = vmatprep.subr.bf16.mxu0 %v13710_v43  ;;  %9151 = vmatprep.subr.bf16.mxu1 %v13713_v31 }
0x285b   : > { %9111 = vmatpush1.bf16.msra.mxu0 %v13708_v52  ;;  %9152 = vmatpush1.bf16.msra.mxu1 %v13711_v29 }
0x285c   : > { %9487 = vmatprep.subr.bf16.mxu1 %v14097_v30  ;;  %12451 = vmatprep.subr.bf16.mxu0 %v13720_v14 }
0x28fe   : > { %v12445_v35 = vpop.f32.mrf.mxu0  ;;  %v8919_v16 = vpop.f32.mrf.mxu1 }
0x2900   : > { %v12446_v53 = vpop.f32.mrf.mxu0  ;;  %v8921_v48 = vpop.f32.mrf.mxu1 }
0x2901   : > { %v12447_v36 = vadd.f32 %v12446_v53, %v12445_v35 }
0x2902   : > { %v12448_v20 = vpop.f32.mrf.mxu0  ;;  %v8922_v10 = vpop.f32.mrf.mxu1 }
0x2903   : > { %v8880_v55 = vadd.f32 %v12447_v36, %v8661_v4 }
0x2904   : > { %v12449_v49 = vpop.f32.mrf.mxu0  ;;  %v8923_v57 = vpop.f32.mrf.mxu1 }
0x2905   : > { %v8920_v51 = vadd.f32 %v8919_v16, %v8880_v55 }
0x2907   : > { %v8925_v42 = vmax.f32 %v8920_v51, 0.0 }
0x2909   : > { %v8926_v12 = vpack.c.bf16 %v8925_v42, %v8925_v42 }
0x290b   : > { %11881 = vmatmul.mubr.msk.bf16.vlgmr.msra.gmra.mxu0 %vm5104_vm2, %v8926_v12  ;;  %11883 = vmatmul.mubr.msk.bf16.vlgmr.msra.gmra.mxu1 %vm5104_vm2, %v8926_v12 }
0x290c   : > { %9488 = vmatpush1.bf16.msra.mxu1 %v13714_v37  ;;  %12452 = vmatpush3.bf16.msra.mxu0 %v13721_v19 }
0x290d   : > { %9489 = vmatprep.subr.bf16.mxu1 %v14097_v30  ;;  %12453 = vmatprep.subr.bf16.mxu0 %v13723_v25 }
0x2910   : > { %9490 = vmatpush1.bf16.msra.mxu1 %v13715_v13  ;;  %12454 = vmatpush3.bf16.msra.mxu0 %v13724_v47 }
0x2911   : > { %9491 = vmatprep.subr.bf16.mxu1 %v14097_v30  ;;  %12455 = vmatprep.subr.bf16.mxu0 %v13726_v50 }
0x2914   : > { %9492 = vmatpush1.bf16.msra.mxu1 %v13716_v0  ;;  %12456 = vmatpush3.bf16.msra.mxu0 %v13727_v56 }
0x2915   : > { %9493 = vmatprep.subr.bf16.mxu1 %v14097_v30  ;;  %12457 = vmatprep.subr.bf16.mxu0 %v13729_v28 }
0x2918   : > { %9494 = vmatpush1.bf16.msra.mxu1 %v13717_v39  ;;  %12458 = vmatpush3.bf16.msra.mxu0 %v13730_v6 }
0x2919   : > { %9495 = vmatprep.subr.bf16.mxu1 %v14097_v30  ;;  %12459 = vmatprep.subr.bf16.mxu0 %v13732_v45  ;;  %v13747_v45 = vld [vmem:[#allocation2 + $0x640] ss:$16 sps:$4 sm:$0xff]  }
0x291c   : > { %9496 = vmatpush1.bf16.msra.mxu1 %v13718_v60  ;;  %12460 = vmatpush3.bf16.msra.mxu0 %v13733_v26  ;;  %v13758_v26 = vld [vmem:[#allocation2 + $0x5e4] ss:$16 sps:$4 sm:$0xff]  }
0x291d   : > { %9497 = vmatprep.subr.bf16.mxu1 %v14097_v30  ;;  %12461 = vmatprep.subr.bf16.mxu0 %v13735_v1  ;;  %v13761_v1 = vld [vmem:[#allocation2 + $0x66c] ss:$16 sps:$4 sm:$0xff]  }
0x2920   : > { %9498 = vmatpush1.bf16.msra.mxu1 %v13719_v40  ;;  %12462 = vmatpush3.bf16.msra.mxu0 %v13736_v8  ;;  %v13774_v8 = vld [vmem:[%s17075_s1 + $0xc00] sm:$0xff]  }
0x2921   : > { %9499 = vmatprep.subr.bf16.mxu1 %v14097_v30  ;;  %12463 = vmatprep.subr.bf16.mxu0 %v13738_v17 }
0x2924   : > { %9500 = vmatpush1.bf16.msra.mxu1 %v13722_v58  ;;  %12464 = vmatpush3.bf16.msra.mxu0 %v13739_v11  ;;  %v13744_v58 = vld [vmem:[#allocation2 + $0x660] ss:$16 sps:$4 sm:$0xff]  }
0x2925   : > { %9501 = vmatprep.subr.bf16.mxu1 %v14097_v30  ;;  %12465 = vmatprep.subr.bf16.mxu0 %v13741_v15 }
0x2928   : > { %9502 = vmatpush1.bf16.msra.mxu1 %v13725_v38  ;;  %12466 = vmatpush3.bf16.msra.mxu0 %v13742_v33 }
0x2929   : > { %9507 = vmatprep.subr.bf16.mxu1 %v14097_v30  ;;  %9664 = vmatprep.subr.bf16.mxu0 %v13746_v32 }
0x292c   : > { %9508 = vmatpush2.bf16.msra.mxu1 %v13728_v9 }
0x292d   : > { %9509 = vmatprep.subr.bf16.mxu1 %v14097_v30 }
0x2930   : > { %9510 = vmatpush2.bf16.msra.mxu1 %v13731_v54  ;;  %v13749_v54 = vld [vmem:[#allocation2 + $0x644] ss:$16 sps:$4 sm:$0xff]  }
0x2931   : > { %9511 = vmatprep.subr.bf16.mxu1 %v14097_v30 }
0x2934   : > { %9512 = vmatpush2.bf16.msra.mxu1 %v13734_v23  ;;  %v13756_v23 = vld [vmem:[#allocation2 + $0x5e0] ss:$16 sps:$4 sm:$0xff]  }
0x2935   : > { %9513 = vmatprep.subr.bf16.mxu1 %v14097_v30 }
0x2938   : > { %9514 = vmatpush2.bf16.msra.mxu1 %v13737_v22  ;;  %v9258_v22 = vld [vmem:[%s17075_s1 + $0xb40] sm:$0x1] }
0x2939   : > { %9515 = vmatprep.subr.bf16.mxu1 %v14097_v30 }
0x293c   : > { %9516 = vmatpush2.bf16.msra.mxu1 %v13740_v63  ;;  %v9263_v63 = vunpack.c.l.bf16 %v9258_v22 }
0x293d   : > { %9517 = vmatprep.subr.bf16.mxu1 %v14097_v30 }
0x2940   : > { %9518 = vmatpush2.bf16.msra.mxu1 %v13743_v21 }
0x2941   : > { %10149 = vmatprep.subr.bf16.mxu1 %v14097_v30 }
0x29cb   : > { %v9130_v59 = vpop.f32.mrf.mxu0  ;;  %v9171_v43 = vpop.f32.mrf.mxu1 }
0x29cc   : > { %v9131_v31 = vadd.f32 %v9130_v59, %v8927_v3  ;;  %v9172_v52 = vadd.f32 %v9171_v43, %v8929_v41  ;;  %v13759_v59 = vld [vmem:[#allocation2 + $0x668] ss:$16 sps:$4 sm:$0xff]  }
0x29cd   : > { %v9132_v29 = vpop.f32.mrf.mxu0  ;;  %v9173_v14 = vpop.f32.mrf.mxu1 }
0x29ce   : > { %v9178_v5 = vadd.f32 3.0, %v9131_v31  ;;  %v9180_v35 = vadd.f32 3.0, %v9172_v52  ;;  %v9133_v16 = vadd.f32 %v9132_v29, %v8928_v18  ;;  %v9174_v4 = vadd.f32 %v9173_v14, %v8930_v62  ;;  %v13764_v31 = vld [vmem:[#allocation2 + $0x64c] ss:$16 sps:$4 sm:$0xff]   ;;  %v13762_v52 = vld [vmem:[#allocation2 + $0x648] ss:$16 sps:$4 sm:$0xff]  }
0x29cf   : > { %v9134_v53 = vpop.f32.mrf.mxu0  ;;  %v9175_v48 = vpop.f32.mrf.mxu1  ;;  %v13767_v29 = vld [vmem:[#allocation2 + $0x62c] ss:$16 sps:$4 sm:$0xff]   ;;  %v13765_v14 = vld [vmem:[#allocation2 + $0x628] ss:$16 sps:$4 sm:$0xff]  }
0x29d0   : > { %v9182_v36 = vmax.f32 %v9178_v5, 0.0  ;;  %v9184_v20 = vmax.f32 %v9180_v35, 0.0  ;;  %v9179_v10 = vadd.f32 3.0, %v9133_v16  ;;  %v9181_v55 = vadd.f32 3.0, %v9174_v4  ;;  %v13770_v5 = vld [vmem:[#allocation2 + $0x60c] ss:$16 sps:$4 sm:$0xff]  }
0x29d1   : > { %v9135_v49 = vpop.f32.mrf.mxu0  ;;  %v9176_v57 = vpop.f32.mrf.mxu1  ;;  %v13773_v35 = vld [vmem:[#allocation2 + $0x5ec] ss:$16 sps:$4 sm:$0xff]   ;;  %v13771_v16 = vld [vmem:[#allocation2 + $0x5e8] ss:$16 sps:$4 sm:$0xff]   ;;  %v13776_v53 = vld [vmem:[%s17075_s1 + $0xbf8] sm:$0xff]  }
0x29d2   : > { %v9186_v51 = vmin.f32 %v9182_v36, 6.0  ;;  %v9188_v42 = vmin.f32 %v9184_v20, 6.0  ;;  %v9183_v37 = vmax.f32 %v9179_v10, 0.0  ;;  %v9185_v19 = vmax.f32 %v9181_v55, 0.0  ;;  %v13775_v4 = vld [vmem:[%s17075_s1 + $0xbc0] sm:$0xff]   ;;  %v13778_v36 = vld [vmem:[%s17075_s1 + $0xbb8] sm:$0xff]  }
0x29d3   : > { %v13777_v48 = vld [vmem:[%s17075_s1 + $0xb80] sm:$0xff]   ;;  %v13779_v20 = vld [vmem:[%s17075_s1 + $0xbf0] sm:$0xff]   ;;  %v13780_v10 = vld [vmem:[%s17075_s1 + $0xb78] sm:$0xff]  }
0x29d4   : > { %v9190_v12 = vmul.f32 0.16666667, %v9186_v51  ;;  %v9192_v25 = vmul.f32 0.16666667, %v9188_v42  ;;  %v9187_v13 = vmin.f32 %v9183_v37, 6.0  ;;  %v9189_v47 = vmin.f32 %v9185_v19, 6.0 }
0x29d5   : > { %v13781_v55 = vld [vmem:[%s17075_s1 + $0xbb0] sm:$0xff]   ;;  %v13782_v49 = vld [vmem:[%s17075_s1 + $0xbe8] sm:$0xff]   ;;  %v13785_v42 = vld [vmem:[%s17075_s1 + $0xbe0] sm:$0xff]  }
0x29d6   : > { %v9191_v50 = vmul.f32 0.16666667, %v9187_v13  ;;  %v9193_v0 = vmul.f32 0.16666667, %v9189_v47  ;;  %v9194_v56 = vmul.f32 %v9190_v12, %v16520_v27  ;;  %v9196_v28 = vmul.f32 %v9192_v25, %v16522_v34  ;;  %v13752_v27 = vld [vmem:[#allocation2 + $0x624] ss:$16 sps:$4 sm:$0xff]  }
0x29d7   : > { %v13750_v34 = vld [vmem:[#allocation2 + $0x620] ss:$16 sps:$4 sm:$0xff]   ;;  %v13783_v57 = vld [vmem:[%s17075_s1 + $0xb70] sm:$0xff]   ;;  %v13787_v19 = vld [vmem:[%s17075_s1 + $0xba0] sm:$0xff]  }
0x29d8   : > { %v9197_v39 = vmul.f32 %v9193_v0, %v16530_v46  ;;  %v9195_v6 = vmul.f32 %v9191_v50, %v16528_v61  ;;  %v9259_v38 = vpack.c.bf16 %v9194_v56, %v9194_v56  ;;  %v9261_v9 = vpack.c.bf16 %v9196_v28, %v9196_v28  ;;  %v13755_v61 = vld [vmem:[#allocation2 + $0x604] ss:$16 sps:$4 sm:$0xff]   ;;  %v13753_v46 = vld [vmem:[#allocation2 + $0x600] ss:$16 sps:$4 sm:$0xff]   ;;  %v13789_v25 = vld [vmem:[%s17075_s1 + $0xb60] sm:$0xff]  }
0x29d9   : > { %v13784_v51 = vld [vmem:[%s17075_s1 + $0xba8] sm:$0xff]   ;;  %v13788_v12 = vld [vmem:[%s17075_s1 + $0xbd8] sm:$0xff]   ;;  %v13791_v47 = vld [vmem:[%s17075_s1 + $0xbd0] sm:$0xff]  }
0x29da   : > { %v9262_v60 = vpack.c.bf16 %v9197_v39, %v9197_v39  ;;  %v9260_v40 = vpack.c.bf16 %v9195_v6, %v9195_v6  ;;  %v13786_v37 = vld [vmem:[%s17075_s1 + $0xb68] sm:$0xff]   ;;  %v13790_v13 = vld [vmem:[%s17075_s1 + $0xb98] sm:$0xff]   ;;  %v13793_v0 = vld [vmem:[%s17075_s1 + $0xb90] sm:$0xff]  }
0x29db   : > { %v13792_v50 = vld [vmem:[%s17075_s1 + $0xb58] sm:$0xff]   ;;  %v13794_v56 = vld [vmem:[%s17075_s1 + $0xbc8] sm:$0xff]   ;;  %v13795_v28 = vld [vmem:[%s17075_s1 + $0xb50] sm:$0xff]  }
0x29dc   : > { %9479 = vmatprep.mubr.bf16.mxu0 %v9260_v40  ;;  %11914 = vmatprep.mubr.msk.bf16.mxu1 %vm5487_vm5, %v9262_v60  ;;  %v13796_v39 = vld [vmem:[%s17075_s1 + $0xb88] sm:$0xff]   ;;  %v13797_v6 = vld [vmem:[%s17075_s1 + $0xc30] sm:$0xff]  }
0x29dd   : > { %9480 = vmatmul.mubr.bf16.vlgmr.msra.gmra.mxu0 %v9259_v38  ;;  %9520 = vmatmul.mubr.bf16.vlgmr.msra.gmra.mxu1 %v9261_v9  ;;  %v13798_v60 = vld [vmem:[%s17075_s1 + $0xb48] sm:$0xff]   ;;  %v13801_v38 = vld [vmem:[%s17075_s1 + $0xc18] sm:$0xff]   ;;  %v13802_v9 = vld [vmem:[%s17075_s1 + $0xc10] sm:$0xff]  }
0x29de   : > { %9665 = vmatpush1.bf16.msra.mxu0 %v13744_v58  ;;  %9690 = vmatprep.mubr.bf16.mxu0 %v14097_v30  ;;  %v13799_v40 = vld [vmem:[%s17075_s1 + $0xc28] sm:$0xff]   ;;  %v13800_v58 = vld [vmem:[%s17075_s1 + $0xc20] sm:$0xff]  }
0x29df   : > { %9666 = vmatprep.subr.bf16.mxu0 %v13749_v54  ;;  %10150 = vmatpush1.bf16.msra.mxu1 %v13774_v8  ;;  %v13803_v54 = vld [vmem:[%s17075_s1 + $0xc08] sm:$0xff]  }
0x29e0   : > { %10151 = vmatprep.subr.bf16.mxu1 %v14097_v30 }
0x29e2   : > { %9667 = vmatpush1.bf16.msra.mxu0 %v13747_v45  ;;  %v16775_v45 = vld [vmem:[#allocation2 + $0x7c0] sm:$0xff] }
0x29e3   : > { %9668 = vmatprep.subr.bf16.mxu0 %v13752_v27  ;;  %10152 = vmatpush1.bf16.msra.mxu1 %v13776_v53  ;;  %v11997_v27 = vcombine.high %v16775_v45, %v16775_v45 }
0x29e4   : > { %10153 = vmatprep.subr.bf16.mxu1 %v14097_v30 }
0x29e6   : > { %9669 = vmatpush1.bf16.msra.mxu0 %v13750_v34  ;;  %v9548_v34 = vld [vmem:[#allocation2 + $0x680] sm:$0x11] }
0x29e7   : > { %9670 = vmatprep.subr.bf16.mxu0 %v13755_v61  ;;  %10154 = vmatpush1.bf16.msra.mxu1 %v13779_v20  ;;  %v9551_v61 = vunpack.c.l.bf16 %v9548_v34 }
0x29e8   : > { %10155 = vmatprep.subr.bf16.mxu1 %v14097_v30 }
0x29ea   : > { %9671 = vmatpush1.bf16.msra.mxu0 %v13753_v46  ;;  %v9552_v46 = vunpack.c.h.bf16 %v9548_v34 }
0x29eb   : > { %9672 = vmatprep.subr.bf16.mxu0 %v13758_v26  ;;  %10156 = vmatpush1.bf16.msra.mxu1 %v13782_v49 }
0x29ec   : > { %10157 = vmatprep.subr.bf16.mxu1 %v14097_v30 }
0x29ee   : > { %9673 = vmatpush1.bf16.msra.mxu0 %v13756_v23 }
0x29ef   : > { %9705 = vmatprep.subr.bf16.mxu0 %v13761_v1  ;;  %10158 = vmatpush1.bf16.msra.mxu1 %v13785_v42  ;;  %v9760_v1 = vld [vmem:[#allocation2 + $0x6b0] sm:$0xff] }
0x29f0   : > { %10159 = vmatprep.subr.bf16.mxu1 %v14097_v30 }
0x29f3   : > { %10160 = vmatpush1.bf16.msra.mxu1 %v13788_v12 }
0x29f4   : > { %10161 = vmatprep.subr.bf16.mxu1 %v14097_v30 }
0x29f7   : > { %10162 = vmatpush1.bf16.msra.mxu1 %v13791_v47 }
0x29f8   : > { %10163 = vmatprep.subr.bf16.mxu1 %v14097_v30 }
0x29fb   : > { %10164 = vmatpush1.bf16.msra.mxu1 %v13794_v56 }
0x29fc   : > { %10169 = vmatprep.subr.bf16.mxu1 %v14097_v30 }
0x29ff   : > { %10170 = vmatpush2.bf16.msra.mxu1 %v13797_v6 }
0x2a00   : > { %10171 = vmatprep.subr.bf16.mxu1 %v14097_v30 }
0x2a03   : > { %10172 = vmatpush2.bf16.msra.mxu1 %v13799_v40 }
0x2a04   : > { %10173 = vmatprep.subr.bf16.mxu1 %v14097_v30 }
0x2a07   : > { %10174 = vmatpush2.bf16.msra.mxu1 %v13800_v58 }
0x2a08   : > { %10175 = vmatprep.subr.bf16.mxu1 %v14097_v30 }
0x2a0b   : > { %10176 = vmatpush2.bf16.msra.mxu1 %v13801_v38 }
0x2a0c   : > { %10177 = vmatprep.subr.bf16.mxu1 %v14097_v30 }
0x2a0f   : > { %10178 = vmatpush2.bf16.msra.mxu1 %v13802_v9 }
0x2a10   : > { %10179 = vmatprep.subr.bf16.mxu1 %v14097_v30 }
0x2a13   : > { %10180 = vmatpush2.bf16.msra.mxu1 %v13803_v54  ;;  %v11996_v54 = vcombine.low %v16775_v45, %v16775_v45 }
0x2a9d   : > { %v12467_v17 = vpop.f32.mrf.mxu0  ;;  %v9521_v11 = vpop.f32.mrf.mxu1 }
0x2a9f   : > { %v12468_v15 = vpop.f32.mrf.mxu0  ;;  %v9523_v33 = vpop.f32.mrf.mxu1 }
0x2aa0   : > { %v12469_v21 = vadd.f32 %v12468_v15, %v12467_v17  ;;  %v9764_v33 = vunpack.c.l.bf16 %v9760_v1 }
0x2aa1   : > { %v12470_v32 = vpop.f32.mrf.mxu0  ;;  %v9524_v2 = vpop.f32.mrf.mxu1 }
0x2aa2   : > { %v9482_v44 = vadd.f32 %v12469_v21, %v9263_v63 }
0x2aa3   : > { %v12471_v3 = vpop.f32.mrf.mxu0  ;;  %v9525_v41 = vpop.f32.mrf.mxu1 }
0x2aa4   : > { %v9522_v18 = vadd.f32 %v9521_v11, %v9482_v44  ;;  %v9762_v11 = vld [vmem:[#allocation2 + $0x6d0] sm:$0x11]  ;;  %v9765_v41 = vunpack.c.h.bf16 %v9760_v1 }
0x2aa5   : > { %v9784_v44 = vunpack.c.l.bf16 %v9762_v11 }
0x2aa6   : > { %v16669_v62 = vadd.f32 %v9522_v18, %v16401_v24  ;;  %v13768_v24 = vld [vmem:[#allocation2 + $0x608] ss:$16 sps:$4 sm:$0xff]  }
0x2aa8   : > { %v9550_v43 = vpack.c.bf16 %v16669_v62, %v16669_v62 }
0x2aaa   : > { %11935 = vmatmul.mubr.msk.bf16.vlgmr.msra.gmra.mxu0 %vm6730_vm9, %v9550_v43 }
0x2aab   : > { %9706 = vmatpush1.bf16.msra.mxu0 %v13759_v59  ;;  %9731 = vmatprep.mubr.bf16.mxu0 %v14097_v30  ;;  %v9772_v59 = vrot.slane %v9764_v33, 4 }
0x2aac   : > { %9707 = vmatprep.subr.bf16.mxu0 %v13764_v31  ;;  %v9785_v31 = vunpack.c.h.bf16 %v9762_v11  ;;  %v10349_v11 = vsel %vm474_vm3, %v11996_v54, 0 }
0x2aaf   : > { %9708 = vmatpush1.bf16.msra.mxu0 %v13762_v52 }
0x2ab0   : > { %9709 = vmatprep.subr.bf16.mxu0 %v13767_v29  ;;  %v9792_v29 = vrot.slane %v9784_v44, 1 }
0x2ab3   : > { %9710 = vmatpush1.bf16.msra.mxu0 %v13765_v14 }
0x2ab4   : > { %9711 = vmatprep.subr.bf16.mxu0 %v13770_v5  ;;  %v9773_v5 = vrot.slane %v9765_v41, 4 }
0x2ab7   : > { %9712 = vmatpush1.bf16.msra.mxu0 %v13768_v24 }
0x2ab8   : > { %9713 = vmatprep.subr.bf16.mxu0 %v13773_v35 }
0x2abb   : > { %9714 = vmatpush1.bf16.msra.mxu0 %v13771_v16  ;;  %v9793_v16 = vrot.slane %v9785_v31, 1 }
0x2abc   : > { %12473 = vmatprep.subr.bf16.mxu0 %v13775_v4  ;;  %v9549_v4 = vld [vmem:[#allocation2 + $0x688] sm:$0x11] }
0x2abe   : > { %11936 = vmatmul.mubr.msk.bf16.vlgmr.msra.gmra.mxu0 %vm6730_vm9, %v9550_v43 }
0x2abf   : > { %12474 = vmatpush3.bf16.msra.mxu0 %v13777_v48 }
0x2ac0   : > { %12475 = vmatprep.subr.bf16.mxu0 %v13778_v36 }
0x2ac3   : > { %12476 = vmatpush3.bf16.msra.mxu0 %v13780_v10  ;;  %v9553_v10 = vunpack.c.l.bf16 %v9549_v4 }
0x2ac4   : > { %12477 = vmatprep.subr.bf16.mxu0 %v13781_v55 }
0x2ac7   : > { %12478 = vmatpush3.bf16.msra.mxu0 %v13783_v57  ;;  %v9554_v57 = vunpack.c.h.bf16 %v9549_v4 }
0x2ac8   : > { %12479 = vmatprep.subr.bf16.mxu0 %v13784_v51 }
0x2acb   : > { %12480 = vmatpush3.bf16.msra.mxu0 %v13786_v37 }
0x2acc   : > { %12481 = vmatprep.subr.bf16.mxu0 %v13787_v19  ;;  %v9761_v19 = vld [vmem:[#allocation2 + $0x6b8] sm:$0xff] }
0x2acf   : > { %12482 = vmatpush3.bf16.msra.mxu0 %v13789_v25 }
0x2ad0   : > { %12483 = vmatprep.subr.bf16.mxu0 %v13790_v13 }
0x2ad3   : > { %12484 = vmatpush3.bf16.msra.mxu0 %v13792_v50  ;;  %v9763_v50 = vld [vmem:[#allocation2 + $0x6d8] sm:$0x11] }
0x2ad4   : > { %12485 = vmatprep.subr.bf16.mxu0 %v13793_v0  ;;  %v9786_v38 = vunpack.c.l.bf16 %v9763_v50 }
0x2ad6   : > { %v9794_v45 = vrot.slane %v9786_v38, 1 }
0x2ad7   : > { %12486 = vmatpush3.bf16.msra.mxu0 %v13795_v28  ;;  %v9766_v28 = vunpack.c.l.bf16 %v9761_v19 }
0x2ad8   : > { %12487 = vmatprep.subr.bf16.mxu0 %v13796_v39 }
0x2adb   : > { %12488 = vmatpush3.bf16.msra.mxu0 %v13798_v60 }
0x2adc   : > { %12000 = vmatprep.subr.msk.bf16.mxu0 %vm474_vm3, %v11997_v27 }
0x2b6a   : > { %v9692_v26 = vpop.f32.mrf.mxu0 }
0x2b6b   : > { %v9693_v23 = vadd.f32 %v9692_v26, %v9551_v61  ;;  %v9767_v61 = vunpack.c.h.bf16 %v9761_v19  ;;  %v9774_v26 = vrot.slane %v9766_v28, 4  ;;  %v13821_v19 = vld [vmem:[#allocation2 + $0x700] ss:$16 sps:$4 sm:$0xff]   ;;  %v13853_v28 = vld [vmem:[%s17075_s1 + $0xc70] sm:$0xff]  }
0x2b6c   : > { %v9694_v8 = vpop.f32.mrf.mxu0 }
0x2b6d   : > { %v9740_v22 = vadd.f32 3.0, %v9693_v23  ;;  %v9695_v17 = vadd.f32 %v9694_v8, %v9552_v46  ;;  %v9787_v8 = vunpack.c.h.bf16 %v9763_v50  ;;  %v13850_v50 = vld [vmem:[%s17075_s1 + $0xcb8] sm:$0xff]  }
0x2b6e   : > { %v9696_v63 = vpop.f32.mrf.mxu0  ;;  %12495 = vmatprep.subr.bf16.mxu1 %v13850_v50  ;;  %v13876_v50 = vld [vmem:[%s17075_s1 + $0xd18] sm:$0xff]  }
0x2b6f   : > { %v9744_v15 = vmax.f32 %v9740_v22, 0.0  ;;  %v9741_v21 = vadd.f32 3.0, %v9695_v17  ;;  %v13808_v63 = vld [vmem:[#allocation2 + $0x7a4] ss:$16 sps:$4 sm:$0xff]   ;;  %v9795_v44 = vrot.slane %v9787_v8, 1 }
0x2b70   : > { %v9697_v32 = vpop.f32.mrf.mxu0 }
0x2b71   : > { %v9748_v2 = vmin.f32 %v9744_v15, 6.0  ;;  %v9745_v3 = vmax.f32 %v9741_v21, 0.0  ;;  %v9775_v21 = vrot.slane %v9767_v61, 4 }
0x2b73   : > { %v9752_v18 = vmul.f32 %v9748_v2, %v9693_v23  ;;  %v9749_v43 = vmin.f32 %v9745_v3, 6.0  ;;  %v13806_v3 = vld [vmem:[#allocation2 + $0x7a0] ss:$16 sps:$4 sm:$0xff]  }
0x2b75   : > { %v9756_v52 = vmul.f32 0.16666667, %v9752_v18  ;;  %v9753_v14 = vmul.f32 %v9749_v43, %v9695_v17 }
0x2b77   : > { %v9780_v24 = vmul.f32 %v9772_v59, %v9756_v52  ;;  %v9757_v35 = vmul.f32 0.16666667, %v9753_v14 }
0x2b79   : > { %v9800_v53 = vadd.f32 %v9792_v29, %v9780_v24  ;;  %v9781_v48 = vmul.f32 %v9773_v5, %v9757_v35 }
0x2b7b   : > { %v9804_v36 = vadd.f32 3.0, %v9800_v53  ;;  %v9801_v20 = vadd.f32 %v9793_v16, %v9781_v48 }
0x2b7d   : > { %v9808_v55 = vmax.f32 %v9804_v36, 0.0  ;;  %v9805_v49 = vadd.f32 3.0, %v9801_v20  ;;  %v13809_v36 = vld [vmem:[#allocation2 + $0x780] ss:$16 sps:$4 sm:$0xff]  }
0x2b7e   : > { %v9733_v51 = vpop.f32.mrf.mxu0 }
0x2b7f   : > { %v9812_v42 = vmin.f32 %v9808_v55, 6.0  ;;  %v9734_v37 = vadd.f32 %v9733_v51, %v9553_v10  ;;  %v9809_v12 = vmax.f32 %v9805_v49, 0.0  ;;  %v13812_v10 = vld [vmem:[#allocation2 + $0x760] ss:$16 sps:$4 sm:$0xff]   ;;  %v13814_v55 = vld [vmem:[#allocation2 + $0x764] ss:$16 sps:$4 sm:$0xff]  }
0x2b80   : > { %v9735_v25 = vpop.f32.mrf.mxu0  ;;  %v13817_v49 = vld [vmem:[#allocation2 + $0x744] ss:$16 sps:$4 sm:$0xff]  }
0x2b81   : > { %v9816_v13 = vmul.f32 %v9812_v42, %v9800_v53  ;;  %v9742_v47 = vadd.f32 3.0, %v9734_v37  ;;  %v9736_v0 = vadd.f32 %v9735_v25, %v9554_v57  ;;  %v9813_v56 = vmin.f32 %v9809_v12, 6.0  ;;  %v13815_v57 = vld [vmem:[#allocation2 + $0x740] ss:$16 sps:$4 sm:$0xff]   ;;  %v13820_v51 = vld [vmem:[#allocation2 + $0x724] ss:$16 sps:$4 sm:$0xff]  }
0x2b82   : > { %v9737_v39 = vpop.f32.mrf.mxu0  ;;  %v13818_v42 = vld [vmem:[#allocation2 + $0x720] ss:$16 sps:$4 sm:$0xff]   ;;  %v13826_v12 = vld [vmem:[#allocation2 + $0x6e4] ss:$16 sps:$4 sm:$0xff]  }
0x2b83   : > { %v9746_v6 = vmax.f32 %v9742_v47, 0.0  ;;  %v9743_v60 = vadd.f32 3.0, %v9736_v0  ;;  %v9817_v40 = vmul.f32 %v9813_v56, %v9801_v20  ;;  %v16780_v58 = vmul.f32 0.16666667, %v9816_v13  ;;  %v13811_v20 = vld [vmem:[#allocation2 + $0x784] ss:$16 sps:$4 sm:$0xff]  }
0x2b84   : > { %v9738_v9 = vpop.f32.mrf.mxu0  ;;  %v13824_v25 = vld [vmem:[#allocation2 + $0x6e0] ss:$16 sps:$4 sm:$0xff]   ;;  %v9914_v13 = vld [vmem:[#allocation2 + $0x7c8] sm:$0xff]  ;;  %v13852_v56 = vld [vmem:[%s17075_s1 + $0xcb0] sm:$0xff]  }
0x2b85   : > { %v9750_v27 = vmin.f32 %v9746_v6, 6.0  ;;  %v9747_v34 = vmax.f32 %v9743_v60, 0.0  ;;  %v16784_v46 = vmul.f32 0.16666667, %v9817_v40  ;;  %v9921_v17 = vpack.c.bf16 %v16780_v58, %v16780_v58  ;;  %v13854_v39 = vld [vmem:[%s17075_s1 + $0xca8] sm:$0xff]   ;;  %v13857_v60 = vld [vmem:[%s17075_s1 + $0xca0] sm:$0xff]  }
0x2b86   : > { %v11999_v47 = vcombine.high %v9914_v13, %v9914_v13  ;;  %v13856_v6 = vld [vmem:[%s17075_s1 + $0xc68] sm:$0xff]   ;;  %v13859_v40 = vld [vmem:[%s17075_s1 + $0xc60] sm:$0xff]  }
0x2b87   : > { %v9754_v23 = vmul.f32 %v9750_v27, %v9734_v37  ;;  %v9751_v1 = vmin.f32 %v9747_v34, 6.0  ;;  %v9922_v22 = vpack.c.bf16 %v16784_v46, %v16784_v46  ;;  %v13823_v37 = vld [vmem:[#allocation2 + $0x704] ss:$16 sps:$4 sm:$0xff]   ;;  %v9884_v34 = vld [vmem:[%s17075_s1 + $0xc38] sm:$0x1] }
0x2b89   : > { %v9758_v15 = vmul.f32 0.16666667, %v9754_v23  ;;  %v9755_v33 = vmul.f32 %v9751_v1, %v9736_v0  ;;  %10141 = vmatprep.mubr.bf16.mxu0 %v9922_v22  ;;  %v13851_v0 = vld [vmem:[%s17075_s1 + $0xc78] sm:$0xff]   ;;  %v11998_v22 = vcombine.low %v9914_v13, %v9914_v13  ;;  %v13874_v13 = vld [vmem:[%s17075_s1 + $0xd28] sm:$0xff]  }
0x2b8a   : > { %10142 = vmatmul.mubr.bf16.vlgmr.msra.gmra.mxu0 %v9921_v17 }
0x2b8b   : > { %v9782_v32 = vmul.f32 %v9774_v26, %v9758_v15  ;;  %v9759_v2 = vmul.f32 0.16666667, %v9755_v33  ;;  %10361 = vmatpush1.bf16.msra.mxu0 %v10349_v11  ;;  %10392 = vmatprep.mubr.bf16.mxu0 %v14097_v30  ;;  %v9925_v26 = vunpack.c.l.bf16 %v9884_v34  ;;  %v13831_v33 = vld [vmem:[#allocation2 + $0x7ac] ss:$16 sps:$4 sm:$0xff]  }
0x2b8c   : > { %10362 = vmatprep.subr.bf16.mxu0 %v13808_v63 }
0x2b8d   : > { %v9802_v41 = vadd.f32 %v9794_v45, %v9782_v32  ;;  %v9783_v18 = vmul.f32 %v9775_v21, %v9759_v2  ;;  %v10355_v45 = vsel %vm474_vm3, %v11998_v22, 0  ;;  %v13829_v32 = vld [vmem:[#allocation2 + $0x7a8] ss:$16 sps:$4 sm:$0xff]   ;;  %v13834_v2 = vld [vmem:[#allocation2 + $0x78c] ss:$16 sps:$4 sm:$0xff]  }
0x2b8f   : > { %v9806_v59 = vadd.f32 3.0, %v9802_v41  ;;  %v9803_v43 = vadd.f32 %v9795_v44, %v9783_v18  ;;  %10363 = vmatpush1.bf16.msra.mxu0 %v13806_v3  ;;  %v13832_v44 = vld [vmem:[#allocation2 + $0x788] ss:$16 sps:$4 sm:$0xff]   ;;  %v13837_v3 = vld [vmem:[#allocation2 + $0x76c] ss:$16 sps:$4 sm:$0xff]  }
0x2b90   : > { %10364 = vmatprep.subr.bf16.mxu0 %v13811_v20  ;;  %v13840_v18 = vld [vmem:[#allocation2 + $0x74c] ss:$16 sps:$4 sm:$0xff]  }
0x2b91   : > { %v9810_v31 = vmax.f32 %v9806_v59, 0.0  ;;  %v9807_v52 = vadd.f32 3.0, %v9803_v43  ;;  %v13838_v59 = vld [vmem:[#allocation2 + $0x748] ss:$16 sps:$4 sm:$0xff]  }
0x2b92   : > { %v13863_v20 = vld [vmem:[%s17075_s1 + $0xc90] sm:$0xff]  }
0x2b93   : > { %v9814_v29 = vmin.f32 %v9810_v31, 6.0  ;;  %v9811_v14 = vmax.f32 %v9807_v52, 0.0  ;;  %10365 = vmatpush1.bf16.msra.mxu0 %v13809_v36  ;;  %v13841_v31 = vld [vmem:[#allocation2 + $0x728] ss:$16 sps:$4 sm:$0xff]   ;;  %v13846_v52 = vld [vmem:[#allocation2 + $0x70c] ss:$16 sps:$4 sm:$0xff]  }
0x2b94   : > { %10366 = vmatprep.subr.bf16.mxu0 %v13814_v55  ;;  %v13862_v36 = vld [vmem:[%s17075_s1 + $0xc58] sm:$0xff]   ;;  %v13865_v55 = vld [vmem:[%s17075_s1 + $0xc50] sm:$0xff]  }
0x2b95   : > { %v9818_v5 = vmul.f32 %v9814_v29, %v9802_v41  ;;  %v9815_v24 = vmin.f32 %v9811_v14, 6.0  ;;  %v13835_v41 = vld [vmem:[#allocation2 + $0x768] ss:$16 sps:$4 sm:$0xff]   ;;  %v13849_v14 = vld [vmem:[#allocation2 + $0x6ec] ss:$16 sps:$4 sm:$0xff]  }
0x2b96   : > { %v13844_v29 = vld [vmem:[#allocation2 + $0x708] ss:$16 sps:$4 sm:$0xff]  }
0x2b97   : > { %v9819_v35 = vmul.f32 %v9815_v24, %v9803_v43  ;;  %v16792_v16 = vmul.f32 0.16666667, %v9818_v5  ;;  %10367 = vmatpush1.bf16.msra.mxu0 %v13812_v10  ;;  %v13843_v43 = vld [vmem:[#allocation2 + $0x72c] ss:$16 sps:$4 sm:$0xff]   ;;  %v13847_v5 = vld [vmem:[#allocation2 + $0x6e8] ss:$16 sps:$4 sm:$0xff]  }
0x2b98   : > { %10368 = vmatprep.subr.bf16.mxu0 %v13817_v49  ;;  %v13855_v24 = vld [vmem:[%s17075_s1 + $0xcf8] sm:$0xff]   ;;  %v13864_v10 = vld [vmem:[%s17075_s1 + $0xce0] sm:$0xff]   ;;  %v13866_v49 = vld [vmem:[%s17075_s1 + $0xc88] sm:$0xff]  }
0x2b99   : > { %v16794_v4 = vmul.f32 0.16666667, %v9819_v35  ;;  %v9923_v48 = vpack.c.bf16 %v16792_v16, %v16792_v16  ;;  %v13858_v35 = vld [vmem:[%s17075_s1 + $0xcf0] sm:$0xff]  }
0x2b9b   : > { %v9924_v53 = vpack.c.bf16 %v16794_v4, %v16794_v4  ;;  %10369 = vmatpush1.bf16.msra.mxu0 %v13815_v57  ;;  %v13867_v57 = vld [vmem:[%s17075_s1 + $0xcd8] sm:$0xff]  }
0x2b9c   : > { %10370 = vmatprep.subr.bf16.mxu0 %v13820_v51  ;;  %v13868_v51 = vld [vmem:[%s17075_s1 + $0xc48] sm:$0xff]  }
0x2b9d   : > { %11967 = vmatprep.mubr.msk.bf16.mxu1 %vm5487_vm5, %v9924_v53  ;;  %v13860_v53 = vld [vmem:[%s17075_s1 + $0xc98] sm:$0xff]  }
0x2b9e   : > { %10182 = vmatmul.mubr.bf16.vlgmr.msra.gmra.mxu1 %v9923_v48  ;;  %v13861_v48 = vld [vmem:[%s17075_s1 + $0xce8] sm:$0xff]  }
0x2b9f   : > { %10371 = vmatpush1.bf16.msra.mxu0 %v13818_v42  ;;  %12496 = vmatpush3.bf16.msra.mxu1 %v13851_v0  ;;  %v13869_v42 = vld [vmem:[%s17075_s1 + $0xc80] sm:$0xff]   ;;  %v13877_v0 = vld [vmem:[%s17075_s1 + $0xd10] sm:$0xff]  }
0x2ba0   : > { %10372 = vmatprep.subr.bf16.mxu0 %v13823_v37  ;;  %12497 = vmatprep.subr.bf16.mxu1 %v13852_v56  ;;  %v13870_v37 = vld [vmem:[%s17075_s1 + $0xcd0] sm:$0xff]   ;;  %v13878_v56 = vld [vmem:[%s17075_s1 + $0xd08] sm:$0xff]  }
0x2ba3   : > { %10373 = vmatpush1.bf16.msra.mxu0 %v13821_v19  ;;  %12498 = vmatpush3.bf16.msra.mxu1 %v13853_v28  ;;  %v13871_v19 = vld [vmem:[%s17075_s1 + $0xc40] sm:$0xff]  }
0x2ba4   : > { %10374 = vmatprep.subr.bf16.mxu0 %v13826_v12  ;;  %12499 = vmatprep.subr.bf16.mxu1 %v13854_v39  ;;  %v13872_v12 = vld [vmem:[%s17075_s1 + $0xcc8] sm:$0xff]   ;;  %v13879_v28 = vld [vmem:[%s17075_s1 + $0xd00] sm:$0xff]  }
0x2ba5   : > { %v9915_v39 = vld [vmem:[#allocation2 + $0x7d0] sm:$0x11] }
0x2ba7   : > { %10375 = vmatpush1.bf16.msra.mxu0 %v13824_v25  ;;  %12500 = vmatpush3.bf16.msra.mxu1 %v13856_v6  ;;  %v13873_v25 = vld [vmem:[%s17075_s1 + $0xcc0] sm:$0xff]   ;;  %v10191_v6 = vunpack.c.l.bf16 %v9915_v39 }
0x2ba8   : > { %12002 = vmatprep.subr.msk.bf16.mxu0 %vm474_vm3, %v11999_v47  ;;  %12501 = vmatprep.subr.bf16.mxu1 %v13857_v60  ;;  %v13875_v47 = vld [vmem:[%s17075_s1 + $0xd20] sm:$0xff]   ;;  %v10192_v60 = vunpack.c.h.bf16 %v9915_v39 }
0x2bab   : > { %12502 = vmatpush3.bf16.msra.mxu1 %v13859_v40 }
0x2bac   : > { %12503 = vmatprep.subr.bf16.mxu1 %v13860_v53 }
0x2baf   : > { %12504 = vmatpush3.bf16.msra.mxu1 %v13862_v36 }
0x2bb0   : > { %12505 = vmatprep.subr.bf16.mxu1 %v13863_v20  ;;  %v13880_v20 = vld [vmem:[#allocation2 + $0x860] ss:$16 sps:$4 sm:$0xff]  }
0x2bb3   : > { %12506 = vmatpush3.bf16.msra.mxu1 %v13865_v55  ;;  %v13885_v55 = vld [vmem:[#allocation2 + $0x844] ss:$16 sps:$4 sm:$0xff]  }
0x2bb4   : > { %12507 = vmatprep.subr.bf16.mxu1 %v13866_v49  ;;  %v13883_v49 = vld [vmem:[#allocation2 + $0x840] ss:$16 sps:$4 sm:$0xff]  }
0x2bb7   : > { %12508 = vmatpush3.bf16.msra.mxu1 %v13868_v51  ;;  %v13886_v51 = vld [vmem:[#allocation2 + $0x820] ss:$16 sps:$4 sm:$0xff]  }
0x2bb8   : > { %12509 = vmatprep.subr.bf16.mxu1 %v13869_v42  ;;  %v13891_v42 = vld [vmem:[#allocation2 + $0x804] ss:$16 sps:$4 sm:$0xff]  }
0x2bbb   : > { %12510 = vmatpush3.bf16.msra.mxu1 %v13871_v19  ;;  %v13897_v19 = vld [vmem:[#allocation2 + $0x86c] ss:$16 sps:$4 sm:$0xff]  }
0x2c4a   : > { %v12489_v38 = vpop.f32.mrf.mxu0 }
0x2c4c   : > { %v12490_v9 = vpop.f32.mrf.mxu0 }
0x2c4d   : > { %v12491_v61 = vadd.f32 %v12490_v9, %v12489_v38 }
0x2c4e   : > { %v12492_v54 = vpop.f32.mrf.mxu0 }
0x2c4f   : > { %v10144_v23 = vadd.f32 %v12491_v61, %v9925_v26 }
0x2c50   : > { %v12493_v27 = vpop.f32.mrf.mxu0 }
0x2c5e   : > { %v10183_v1 = vpop.f32.mrf.mxu1 }
0x2c5f   : > { %v10184_v8 = vadd.f32 %v10183_v1, %v10144_v23 }
0x2c60   : > { %v10185_v17 = vpop.f32.mrf.mxu1 }
0x2c61   : > { %v10189_v11 = vmax.f32 %v10184_v8, 0.0 }
0x2c62   : > { %v10186_v63 = vpop.f32.mrf.mxu1 }
0x2c63   : > { %v10190_v15 = vpack.c.bf16 %v10189_v11, %v10189_v11 }
0x2c64   : > { %v10187_v21 = vpop.f32.mrf.mxu1 }
0x2c65   : > { %12001 = vmatmul.mubr.msk.bf16.vlgmr.msra.gmra.mxu0 %vm5104_vm2, %v10190_v15  ;;  %v9916_v21 = vld [vmem:[#allocation2 + $0x7d8] sm:$0x11] }
0x2c66   : > { %10402 = vmatpush1.bf16.msra.mxu0 %v10355_v45  ;;  %10433 = vmatprep.mubr.bf16.mxu0 %v14097_v30 }
0x2c67   : > { %10403 = vmatprep.subr.bf16.mxu0 %v13831_v33 }
0x2c6a   : > { %10404 = vmatpush1.bf16.msra.mxu0 %v13829_v32  ;;  %v10193_v32 = vunpack.c.l.bf16 %v9916_v21 }
0x2c6b   : > { %10405 = vmatprep.subr.bf16.mxu0 %v13834_v2  ;;  %v10194_v2 = vunpack.c.h.bf16 %v9916_v21 }
0x2c6e   : > { %10406 = vmatpush1.bf16.msra.mxu0 %v13832_v44 }
0x2c6f   : > { %10407 = vmatprep.subr.bf16.mxu0 %v13837_v3 }
0x2c72   : > { %10408 = vmatpush1.bf16.msra.mxu0 %v13835_v41 }
0x2c73   : > { %10409 = vmatprep.subr.bf16.mxu0 %v13840_v18 }
0x2c76   : > { %10410 = vmatpush1.bf16.msra.mxu0 %v13838_v59 }
0x2c77   : > { %10411 = vmatprep.subr.bf16.mxu0 %v13843_v43 }
0x2c7a   : > { %10412 = vmatpush1.bf16.msra.mxu0 %v13841_v31 }
0x2c7b   : > { %10413 = vmatprep.subr.bf16.mxu0 %v13846_v52 }
0x2c7e   : > { %10414 = vmatpush1.bf16.msra.mxu0 %v13844_v29 }
0x2c7f   : > { %10415 = vmatprep.subr.bf16.mxu0 %v13849_v14 }
0x2c82   : > { %10416 = vmatpush1.bf16.msra.mxu0 %v13847_v5 }
0x2c83   : > { %10751 = vmatprep.subr.bf16.mxu0 %v14097_v30 }
0x2c85   : > { %12003 = vmatmul.mubr.msk.bf16.vlgmr.msra.gmra.mxu0 %vm5104_vm2, %v10190_v15 }
0x2c86   : > { %10752 = vmatpush1.bf16.msra.mxu0 %v13855_v24 }
0x2c87   : > { %10753 = vmatprep.subr.bf16.mxu0 %v14097_v30 }
0x2c8a   : > { %10754 = vmatpush1.bf16.msra.mxu0 %v13858_v35 }
0x2c8b   : > { %10755 = vmatprep.subr.bf16.mxu0 %v14097_v30 }
0x2c8e   : > { %10756 = vmatpush1.bf16.msra.mxu0 %v13861_v48 }
0x2c8f   : > { %10757 = vmatprep.subr.bf16.mxu0 %v14097_v30 }
0x2c92   : > { %10758 = vmatpush1.bf16.msra.mxu0 %v13864_v10  ;;  %v13882_v10 = vld [vmem:[#allocation2 + $0x864] ss:$16 sps:$4 sm:$0xff]  }
0x2c93   : > { %10759 = vmatprep.subr.bf16.mxu0 %v14097_v30  ;;  %10928 = vmatprep.subr.bf16.mxu1 %v13882_v10 }
0x2c96   : > { %10760 = vmatpush1.bf16.msra.mxu0 %v13867_v57  ;;  %v13888_v57 = vld [vmem:[#allocation2 + $0x824] ss:$16 sps:$4 sm:$0xff]  }
0x2c97   : > { %10761 = vmatprep.subr.bf16.mxu0 %v14097_v30 }
0x2c9a   : > { %10762 = vmatpush1.bf16.msra.mxu0 %v13870_v37  ;;  %v13892_v37 = vld [vmem:[#allocation2 + $0x7e0] ss:$16 sps:$4 sm:$0xff]  }
0x2c9b   : > { %10763 = vmatprep.subr.bf16.mxu0 %v14097_v30 }
0x2c9e   : > { %10764 = vmatpush1.bf16.msra.mxu0 %v13872_v12 }
0x2c9f   : > { %10765 = vmatprep.subr.bf16.mxu0 %v14097_v30 }
0x2ca2   : > { %10766 = vmatpush1.bf16.msra.mxu0 %v13873_v25 }
0x2ca3   : > { %10771 = vmatprep.subr.bf16.mxu0 %v14097_v30 }
0x2ca6   : > { %10772 = vmatpush2.bf16.msra.mxu0 %v13874_v13 }
0x2ca7   : > { %10773 = vmatprep.subr.bf16.mxu0 %v14097_v30 }
0x2caa   : > { %10774 = vmatpush2.bf16.msra.mxu0 %v13875_v47 }
0x2cab   : > { %10775 = vmatprep.subr.bf16.mxu0 %v14097_v30 }
0x2cae   : > { %10776 = vmatpush2.bf16.msra.mxu0 %v13876_v50  ;;  %v10522_v50 = vld [vmem:[%s17075_s1 + $0xd30] sm:$0x1] }
0x2caf   : > { %10777 = vmatprep.subr.bf16.mxu0 %v14097_v30 }
0x2cb2   : > { %10778 = vmatpush2.bf16.msra.mxu0 %v13877_v0 }
0x2cb3   : > { %10779 = vmatprep.subr.bf16.mxu0 %v14097_v30 }
0x2cb6   : > { %10780 = vmatpush2.bf16.msra.mxu0 %v13878_v56  ;;  %v10527_v56 = vunpack.c.l.bf16 %v10522_v50 }
0x2cb7   : > { %10781 = vmatprep.subr.bf16.mxu0 %v14097_v30 }
0x2cba   : > { %10782 = vmatpush2.bf16.msra.mxu0 %v13879_v28 }
0x2d25   : > { %v10394_v40 = vpop.f32.mrf.mxu0 }
0x2d26   : > { %v10395_v38 = vadd.f32 %v10394_v40, %v10191_v6 }
0x2d27   : > { %v10396_v9 = vpop.f32.mrf.mxu0 }
0x2d28   : > { %v10442_v54 = vadd.f32 3.0, %v10395_v38  ;;  %v10397_v27 = vadd.f32 %v10396_v9, %v10192_v60  ;;  %v13895_v9 = vld [vmem:[#allocation2 + $0x868] ss:$16 sps:$4 sm:$0xff]  }
0x2d29   : > { %v10398_v34 = vpop.f32.mrf.mxu0 }
0x2d2a   : > { %v10446_v61 = vmax.f32 %v10442_v54, 0.0  ;;  %v10443_v26 = vadd.f32 3.0, %v10397_v27  ;;  %v13900_v27 = vld [vmem:[#allocation2 + $0x84c] ss:$16 sps:$4 sm:$0xff]  }
0x2d2b   : > { %v10399_v23 = vpop.f32.mrf.mxu0 }
0x2d2c   : > { %v10450_v1 = vmin.f32 %v10446_v61, 6.0  ;;  %v10447_v8 = vmax.f32 %v10443_v26, 0.0  ;;  %v13898_v61 = vld [vmem:[#allocation2 + $0x848] ss:$16 sps:$4 sm:$0xff]   ;;  %v13903_v26 = vld [vmem:[#allocation2 + $0x82c] ss:$16 sps:$4 sm:$0xff]  }
0x2d2d   : > { %v13901_v23 = vld [vmem:[#allocation2 + $0x828] ss:$16 sps:$4 sm:$0xff]  }
0x2d2e   : > { %v10454_v22 = vmul.f32 0.16666667, %v10450_v1  ;;  %v10451_v17 = vmin.f32 %v10447_v8, 6.0  ;;  %v13904_v1 = vld [vmem:[#allocation2 + $0x808] ss:$16 sps:$4 sm:$0xff]  }
0x2d2f   : > { %v13909_v8 = vld [vmem:[#allocation2 + $0x7ec] ss:$16 sps:$4 sm:$0xff]  }
0x2d30   : > { %v10455_v11 = vmul.f32 0.16666667, %v10451_v17  ;;  %v10458_v63 = vmul.f32 %v10454_v22, %v16780_v58  ;;  %v13907_v22 = vld [vmem:[#allocation2 + $0x7e8] ss:$16 sps:$4 sm:$0xff]  }
0x2d32   : > { %v10459_v15 = vmul.f32 %v10455_v11, %v16784_v46  ;;  %v10523_v33 = vpack.c.bf16 %v10458_v63, %v10458_v63 }
0x2d34   : > { %v10524_v45 = vpack.c.bf16 %v10459_v15, %v10459_v15 }
0x2d36   : > { %10743 = vmatprep.mubr.bf16.mxu1 %v10524_v45 }
0x2d37   : > { %10744 = vmatmul.mubr.bf16.vlgmr.msra.gmra.mxu1 %v10523_v33 }
0x2d38   : > { %10954 = vmatprep.mubr.bf16.mxu1 %v14097_v30  ;;  %10929 = vmatpush1.bf16.msra.mxu1 %v13880_v20 }
0x2d39   : > { %10930 = vmatprep.subr.bf16.mxu1 %v13885_v55 }
0x2d3c   : > { %10931 = vmatpush1.bf16.msra.mxu1 %v13883_v49 }
0x2d3d   : > { %10932 = vmatprep.subr.bf16.mxu1 %v13888_v57 }
0x2d40   : > { %10933 = vmatpush1.bf16.msra.mxu1 %v13886_v51 }
0x2d41   : > { %10934 = vmatprep.subr.bf16.mxu1 %v13891_v42 }
0x2d45   : > { %v10435_v44 = vpop.f32.mrf.mxu0 }
0x2d46   : > { %v10436_v3 = vadd.f32 %v10435_v44, %v10193_v32 }
0x2d47   : > { %v10437_v41 = vpop.f32.mrf.mxu0 }
0x2d48   : > { %v10444_v18 = vadd.f32 3.0, %v10436_v3  ;;  %v10438_v59 = vadd.f32 %v10437_v41, %v10194_v2 }
0x2d49   : > { %v10439_v43 = vpop.f32.mrf.mxu0 }
0x2d4a   : > { %v10448_v31 = vmax.f32 %v10444_v18, 0.0  ;;  %v10445_v52 = vadd.f32 3.0, %v10438_v59 }
0x2d4b   : > { %v10440_v58 = vpop.f32.mrf.mxu0 }
0x2d4c   : > { %v10452_v29 = vmin.f32 %v10448_v31, 6.0  ;;  %v10449_v46 = vmax.f32 %v10445_v52, 0.0 }
0x2d4e   : > { %v10456_v14 = vmul.f32 0.16666667, %v10452_v29  ;;  %v10453_v5 = vmin.f32 %v10449_v46, 6.0 }
0x2d50   : > { %v10457_v24 = vmul.f32 0.16666667, %v10453_v5  ;;  %v10460_v35 = vmul.f32 %v10456_v14, %v16792_v16  ;;  %v13889_v16 = vld [vmem:[#allocation2 + $0x800] ss:$16 sps:$4 sm:$0xff]  }
0x2d51   : > { %10935 = vmatpush1.bf16.msra.mxu1 %v13889_v16 }
0x2d52   : > { %v10461_v53 = vmul.f32 %v10457_v24, %v16794_v4  ;;  %v10525_v36 = vpack.c.bf16 %v10460_v35, %v10460_v35  ;;  %v13894_v4 = vld [vmem:[#allocation2 + $0x7e4] ss:$16 sps:$4 sm:$0xff]  }
0x2d53   : > { %10936 = vmatprep.subr.bf16.mxu1 %v13894_v4 }
0x2d54   : > { %v10526_v48 = vpack.c.bf16 %v10461_v53, %v10461_v53 }
0x2d55   : > { %10937 = vmatpush1.bf16.msra.mxu1 %v13892_v37 }
0x2d56   : > { %12034 = vmatprep.mubr.msk.bf16.mxu0 %vm5487_vm5, %v10526_v48  ;;  %10969 = vmatprep.subr.bf16.mxu1 %v13897_v19 }
0x2d57   : > { %10784 = vmatmul.mubr.bf16.vlgmr.msra.gmra.mxu0 %v10525_v36 }
0x2df7   : > { %v12511_v12 = vpop.f32.mrf.mxu1 }
0x2df9   : > { %v12512_v25 = vpop.f32.mrf.mxu1 }
0x2dfa   : > { %v12513_v0 = vadd.f32 %v12512_v25, %v12511_v12 }
0x2dfb   : > { %v12514_v13 = vpop.f32.mrf.mxu1 }
0x2dfc   : > { %v10746_v28 = vadd.f32 %v12513_v0, %v10527_v56 }
0x2dfd   : > { %v12515_v47 = vpop.f32.mrf.mxu1 }
0x2e17   : > { %v10785_v39 = vpop.f32.mrf.mxu0 }
0x2e18   : > { %v10786_v6 = vadd.f32 %v10785_v39, %v10746_v28 }
0x2e19   : > { %v10787_v60 = vpop.f32.mrf.mxu0 }
0x2e1a   : > { %v10791_v40 = vadd.f32 %v10786_v6, %v16669_v62  ;;  %v13906_v62 = vld [vmem:[#allocation2 + $0x80c] ss:$16 sps:$4 sm:$0xff]  }
0x2e1b   : > { %v10788_v38 = vpop.f32.mrf.mxu0 }
0x2e1c   : > { %v10814_v54 = vpack.c.bf16 %v10791_v40, %v10791_v40 }
0x2e1d   : > { %v10789_v34 = vpop.f32.mrf.mxu0 }
0x2e1e   : > { %12055 = vmatmul.mubr.msk.bf16.vlgmr.msra.gmra.mxu1 %vm6730_vm9, %v10814_v54 }
0x2e1f   : > { %10970 = vmatpush1.bf16.msra.mxu1 %v13895_v9  ;;  %10995 = vmatprep.mubr.bf16.mxu1 %v14097_v30 }
0x2e20   : > { %10971 = vmatprep.subr.bf16.mxu1 %v13900_v27 }
0x2e23   : > { %10972 = vmatpush1.bf16.msra.mxu1 %v13898_v61 }
0x2e24   : > { %10973 = vmatprep.subr.bf16.mxu1 %v13903_v26 }
0x2e27   : > { %10974 = vmatpush1.bf16.msra.mxu1 %v13901_v23 }
0x2e28   : > { %10975 = vmatprep.subr.bf16.mxu1 %v13906_v62 }
0x2e2b   : > { %10976 = vmatpush1.bf16.msra.mxu1 %v13904_v1 }
0x2e2c   : > { %10977 = vmatprep.subr.bf16.mxu1 %v13909_v8 }
0x2e2f   : > { %10978 = vmatpush1.bf16.msra.mxu1 %v13907_v22 }
0x2e32   : > { %12056 = vmatmul.mubr.msk.bf16.vlgmr.msra.gmra.mxu1 %vm6730_vm9, %v10814_v54 }
0x2e33   : > { %13950 = shalt.err (!%p13947_p0)
}
0x2e34   : > { %s13951_s20 = scalar_lea.hbm %s16933_s12, 64  ;;  %s13955_s10 = scalar_lea.hbm %s17055_s4, 128 }
0x2e35   : > { %p13952_p1 = scmp.ne.s32.totalorder %s16933_s12, %s13951_s20  ;;  %p13956_p4 = scmp.lt.s32.totalorder %s16933_s12, %s17055_s4 }
0x2e36   : > { %p13957_p7 = scmp.lt.s32.totalorder %s13955_s10, %s13951_s20 }
0x2e37   : > { %p13953_p2 = pnand %p13952_p1, %p14179_p5 }
0x2e38   : > { %p13958_p6 = por %p13957_p7, %p13956_p4 }
0x2e39   : > { %p13954_p3 = pneg %p13953_p2 }
0x2e3b   : > { %p13959_p8 = pnand %p13958_p6, %p13954_p3 }
0x2e3d   : > { %13962 = shalt.err (!%p13959_p8)
}
0x2e3e   : > { %13177 = dma.vmem_to_hbm [thread:$0]  (%p14179_p5), %s11103_s13, 64, %s16933_s12, %s16937_s17  }
0x2e3f   : > { %s16959_s18 = scalar_lea.hbm %s17054_s3, %s12069_s15  ;;  %s11086_s9 = sshll.u32 %s15105_s16, 4  ;;  %s16962_s9 = int_to_ptr.vmem [resolvable:$true] %s11086_s9 }
0x2e40   : > { %s12063_s20 = sshll.u32 %s14160_s25, 4  ;;  %s11059_s29 = scalar_lea.sflag [#allocation4], %s15100_s14 }
0x2e41   : > { %s13963_s26 = scalar_lea.vmem %s16962_s9, 256  ;;  %s14099_s10 = smov [#allocation5]  }
0x2e42   : > { %p13964_p9 = scmp.ne.s32.totalorder %s16962_s9, %s13963_s26  ;;  %s13967_s12 = sshll.u32 %s14099_s10, 4  ;;  %s13968_s12 = int_to_ptr.vmem [resolvable:$false] %s13967_s12 }
0x2e43   : > { %s13969_s13 = scalar_lea.vmem %s13968_s12, 512  ;;  %p13970_p12 = scmp.lt.s32.totalorder %s16962_s9, %s13968_s12 }
0x2e44   : > { %p13965_p10 = pnand %p13964_p9, %p14179_p5  ;;  %p13971_p13 = scmp.lt.s32.totalorder %s13969_s13, %s13963_s26 }
0x2e46   : > { %p13966_p11 = pneg %p13965_p10  ;;  %p13972_p0 = por %p13971_p13, %p13970_p12 }
0x2e48   : > { %p13973_p1 = pnand %p13972_p0, %p13966_p11 }
0x2e4a   : > { %13976 = shalt.err (!%p13973_p1)
}
0x2e4b   : > { %s13977_s16 = scalar_lea.hbm %s16959_s18, 256  ;;  %s13981_s19 = scalar_lea.hbm %s17054_s3, 512 }
0x2e4c   : > { %p13978_p2 = scmp.ne.s32.totalorder %s16959_s18, %s13977_s16  ;;  %p13982_p7 = scmp.lt.s32.totalorder %s16959_s18, %s17054_s3 }
0x2e4d   : > { %p13983_p6 = scmp.lt.s32.totalorder %s13981_s19, %s13977_s16 }
0x2e4e   : > { %p13979_p3 = pnand %p13978_p2, %p14179_p5 }
0x2e4f   : > { %p13984_p8 = por %p13983_p6, %p13982_p7 }
0x2e50   : > { %p13980_p4 = pneg %p13979_p3 }
0x2e52   : > { %p13985_p9 = pnand %p13984_p8, %p13980_p4 }
0x2e54   : > { %13988 = shalt.err (!%p13985_p9)
}
0x2e55   : > { %s14100_s26 = smov 128   ;;  %s14101_s12 = smov 8  }
0x2e56   : > { %13176 = dma.vmem_to_hbm [thread:$0]  (%p14179_p5), %s16962_s9, 256, %s16959_s18, %s11059_s29, %s14100_s26, %s14100_s26, %s14101_s12  }
0x2e57   : > { %s11113_s16 = scalar_lea.hbm %s17056_s5, %s12063_s20  ;;  %s17082_s28 = scalar_lea.vmem [#allocation8], %s15100_s14 }
0x2e58   : > { %s11115_s19 = sshll.u32 %s17082_s28, 4  ;;  %s14102_s10 = smov [#allocation8]   ;;  %s11116_s19 = int_to_ptr.vmem [resolvable:$true] %s11115_s19 }
0x2e59   : > { %s13989_s11 = scalar_lea.vmem %s11116_s19, 16  ;;  %s13993_s0 = sshll.u32 %s14102_s10, 4  ;;  %s13994_s0 = int_to_ptr.vmem [resolvable:$false] %s13993_s0 }
0x2e5a   : > { %p13990_p10 = scmp.ne.s32.totalorder %s11116_s19, %s13989_s11  ;;  %s13995_s1 = scalar_lea.vmem %s13994_s0, 32 }
0x2e5b   : > { %p13996_p13 = scmp.lt.s32.totalorder %s11116_s19, %s13994_s0  ;;  %p13997_p0 = scmp.lt.s32.totalorder %s13995_s1, %s13989_s11 }
0x2e5c   : > { %p13991_p11 = pnand %p13990_p10, %p14179_p5 }
0x2e5d   : > { %p13998_p1 = por %p13997_p0, %p13996_p13 }
0x2e5e   : > { %p13992_p12 = pneg %p13991_p11 }
0x2e60   : > { %p13999_p2 = pnand %p13998_p1, %p13992_p12 }
0x2e62   : > { %14002 = shalt.err (!%p13999_p2)
}
0x2e63   : > { %s14003_s18 = scalar_lea.hbm %s11113_s16, 16  ;;  %s14007_s29 = scalar_lea.hbm %s17056_s5, 32 }
0x2e64   : > { %p14004_p3 = scmp.ne.s32.totalorder %s11113_s16, %s14003_s18  ;;  %p14008_p6 = scmp.lt.s32.totalorder %s11113_s16, %s17056_s5 }
0x2e65   : > { %p14009_p8 = scmp.lt.s32.totalorder %s14007_s29, %s14003_s18 }
0x2e66   : > { %p14005_p4 = pnand %p14004_p3, %p14179_p5 }
0x2e67   : > { %p14010_p9 = por %p14009_p8, %p14008_p6 }
0x2e68   : > { %p14006_p7 = pneg %p14005_p4 }
0x2e6a   : > { %p14011_p10 = pnand %p14010_p9, %p14006_p7 }
0x2e6c   : > { %14014 = shalt.err (!%p14011_p10)
}
0x2e6d   : > { %13178 = dma.vmem_to_hbm [thread:$0]  (%p14179_p5), %s11116_s19, 16, %s11113_s16, %s16937_s17   ;;  %v10812_v11 = vld [vmem:[#allocation2 + $0x880] sm:$0x11]  ;;  %v10813_v44 = vld [vmem:[#allocation2 + $0x888] sm:$0x11]  ;;  %v17084_v50 = vlaneseq }
0x2e6e   : > { %v10816_v15 = vunpack.c.h.bf16 %v10812_v11  ;;  %v10815_v33 = vunpack.c.l.bf16 %v10812_v11  ;;  %v10817_v18 = vunpack.c.l.bf16 %v10813_v44  ;;  %v10818_v43 = vunpack.c.h.bf16 %v10813_v44  ;;  %s17083_s0 = sshll.u32 %s15100_s14, 2  ;;  %s17085_s13 = sshll.u32 %s14160_s25, 6 }
0x2e6f   : > { %s286_s1 = scalar_lea.vmem [#allocation9], %s17083_s0  ;;  %vm11055_vm3 = vcmp.lt.s32.totalorder %v17084_v50, 480  ;;  %s11127_s28 = scalar_lea.hbm %s17057_s6, %s17085_s13 }
0x2e70   : > { %s11129_s17 = sshll.u32 %s286_s1, 4  ;;  %s11073_s19 = scalar_lea.sflag [#allocation10], %s15100_s14  ;;  %s11130_s17 = int_to_ptr.vmem [resolvable:$true] %s11129_s17 }
0x2e71   : > { %s14015_s11 = scalar_lea.vmem %s11130_s17, 64  ;;  %s14103_s10 = smov [#allocation9]  }
0x2e72   : > { %p14016_p11 = scmp.ne.s32.totalorder %s11130_s17, %s14015_s11  ;;  %s14019_s18 = sshll.u32 %s14103_s10, 4  ;;  %s14020_s18 = int_to_ptr.vmem [resolvable:$false] %s14019_s18 }
0x2e73   : > { %s14021_s9 = scalar_lea.vmem %s14020_s18, 128  ;;  %p14022_p0 = scmp.lt.s32.totalorder %s11130_s17, %s14020_s18 }
0x2e74   : > { %p14017_p12 = pnand %p14016_p11, %p14179_p5  ;;  %p14023_p1 = scmp.lt.s32.totalorder %s14021_s9, %s14015_s11 }
0x2e76   : > { %p14018_p13 = pneg %p14017_p12  ;;  %p14024_p2 = por %p14023_p1, %p14022_p0 }
0x2e78   : > { %p14025_p3 = pnand %p14024_p2, %p14018_p13 }
0x2ede   : > { %v10956_v30 = vpop.f32.mrf.mxu1 }
0x2edf   : > { %v10957_v32 = vadd.f32 %v10956_v30, %v10815_v33 }
0x2ee0   : > { %v10958_v17 = vpop.f32.mrf.mxu1 }
0x2ee1   : > { %v10959_v21 = vadd.f32 %v10958_v17, %v10816_v15  ;;  %v11004_v3 = vadd.f32 3.0, %v10957_v32 }
0x2ee2   : > { %v10960_v63 = vpop.f32.mrf.mxu1 }
0x2ee3   : > { %v11005_v2 = vadd.f32 3.0, %v10959_v21  ;;  %v11008_v59 = vmax.f32 %v11004_v3, 0.0 }
0x2ee4   : > { %v10961_v45 = vpop.f32.mrf.mxu1 }
0x2ee5   : > { %v11009_v41 = vmax.f32 %v11005_v2, 0.0  ;;  %v11012_v46 = vmin.f32 %v11008_v59, 6.0 }
0x2ee7   : > { %v11013_v52 = vmin.f32 %v11009_v41, 6.0  ;;  %v11016_v20 = vmul.f32 %v11012_v46, %v10957_v32 }
0x2ee9   : > { %v11017_v35 = vmul.f32 %v11013_v52, %v10959_v21  ;;  %v11020_v42 = vmul.f32 0.16666667, %v11016_v20 }
0x2eeb   : > { %v11021_v49 = vmul.f32 0.16666667, %v11017_v35 }
0x2eed   : > { %v11028_v4 = vcombine.low %v11020_v42, %v11021_v49 }
0x2eef   : > { %v11036_v25 = vrot.slane %v11028_v4, %v17079_v7 }
0x2ef2   : > { %v10997_v31 = vpop.f32.mrf.mxu1 }
0x2ef3   : > { %v10998_v58 = vadd.f32 %v10997_v31, %v10817_v18 }
0x2ef4   : > { %v10999_v29 = vpop.f32.mrf.mxu1 }
0x2ef5   : > { %v11006_v14 = vadd.f32 3.0, %v10998_v58  ;;  %v11000_v5 = vadd.f32 %v10999_v29, %v10818_v43 }
0x2ef6   : > { %v11001_v24 = vpop.f32.mrf.mxu1 }
0x2ef7   : > { %v11010_v53 = vmax.f32 %v11006_v14, 0.0  ;;  %v11007_v48 = vadd.f32 3.0, %v11000_v5 }
0x2ef8   : > { %v11002_v36 = vpop.f32.mrf.mxu1 }
0x2ef9   : > { %v11014_v10 = vmin.f32 %v11010_v53, 6.0  ;;  %v11011_v55 = vmax.f32 %v11007_v48, 0.0 }
0x2efb   : > { %v11018_v57 = vmul.f32 %v11014_v10, %v10998_v58  ;;  %v11015_v51 = vmin.f32 %v11011_v55, 6.0 }
0x2efd   : > { %v11019_v16 = vmul.f32 %v11015_v51, %v11000_v5  ;;  %v11022_v37 = vmul.f32 0.16666667, %v11018_v57 }
0x2eff   : > { %v11023_v19 = vmul.f32 0.16666667, %v11019_v16 }
0x2f01   : > { %v11029_v12 = vcombine.low %v11022_v37, %v11023_v19 }
0x2f03   : > { %v11043_v13 = vrot.slane %v11029_v12, %v17079_v7 }
0x2f05   : > { %v11044_v47 = vcombine.low %v11036_v25, %v11043_v13 }
0x2f07   : > { %v11051_v0 = vrot.slane %v11044_v47, %v17079_v7 }
0x2f09   : > { %11057 = vst.msk [vmem:[%s286_s1] sm:$0xf] %vm11055_vm3, %v11051_v0 }
0x2f0a   : > { %14028 = shalt.err (!%p14025_p3)
}
0x2f0b   : > { %s14029_s25 = scalar_lea.hbm %s11127_s28, 64  ;;  %s14033_s29 = scalar_lea.hbm %s17057_s6, 128 }
0x2f0c   : > { %p14030_p4 = scmp.ne.s32.totalorder %s11127_s28, %s14029_s25  ;;  %p14034_p8 = scmp.lt.s32.totalorder %s11127_s28, %s17057_s6 }
0x2f0d   : > { %p14035_p9 = scmp.lt.s32.totalorder %s14033_s29, %s14029_s25 }
0x2f0e   : > { %p14031_p7 = pnand %p14030_p4, %p14179_p5 }
0x2f0f   : > { %p14036_p10 = por %p14035_p9, %p14034_p8 }
0x2f10   : > { %p14032_p6 = pneg %p14031_p7 }
0x2f12   : > { %p14037_p11 = pnand %p14036_p10, %p14032_p6 }
0x2f14   : > { %14040 = shalt.err (!%p14037_p11)
}
0x2f15   : > { %13179 = dma.vmem_to_hbm [thread:$0]  (%p14179_p5), %s11130_s17, 64, %s11127_s28, %s11073_s19  }
0x2f16 PF: > { %p13203_p12 = scmp.ge.s32.totalorder %s14087_s24, 2  ;;  %s11141_s0 = sand.u32 1, %s14075_s21  }
0x2f17   : > { %p17086_p13 = scmp.ne.s32.totalorder %s17072_s8, 0  ;;  %s11142_s1 = scalar_lea.sflag [#allocation4], %s11141_s0 }
0x2f19   : > { %p13189_p0 = pnand %p13203_p12, %p17086_p13 }
0x2f1b   : > { %p13190_p1 = pneg %p13189_p0 }
0x2f1d   : > { %14062 = dma.done.wait (%p13190_p1), %s11142_s1, 256  }
0x2f1e   : > { %14064 = vsyncadd (%p13190_p1), %s11142_s1, 4294967040  ;;  %s17087_s13 = sadd.s32 4294967294, %s14087_s24  }
0x2f1f   : > { %s11150_s15 = sand.u32 1, %s17087_s13  }
0x2f20   : > { %s11151_s16 = scalar_lea.sflag [#allocation7], %s11150_s15 }
0x2f21   : > { %14066 = dma.done.wait (%p13190_p1), %s11151_s16, 80  }
0x2f22   : > { %14068 = vsyncadd (%p13190_p1), %s11151_s16, 4294967216  ;;  %s11168_s7 = scalar_lea.sflag [#allocation10], %s11141_s0 }
0x2f23   : > { %14070 = dma.done.wait (%p13190_p1), %s11168_s7, 64  }
0x2f24   : > { %14072 = vsyncadd (%p13190_p1), %s11168_s7, 4294967232  ;;  %p24_p5 = scmp.ge.s32.totalorder %s14164_s27, 4   ;;  %s17088_s21 = smov %s14079_s22 }
0x2f25   : > { %s17089_s22 = smov %s14083_s23  ;;  %s17090_s23 = smov %s14177_s30 }
0x2f26   : > { %s17091_s24 = smov %s14164_s27  ;;  %26 = sbr.rel (!%p24_p5) target bundleno = 11 (0xb), region = 121 }
0x2f2b   :  { %11173 = vsyncpa [#allocation3], 1 }
0x2f2c   :  { %11175 = vsyncpa [#allocation3 + $0x1], 1 }
0x2f2d   :  { %11176 = vsyncpa [#allocation4], 1 }
0x2f2e   :  { %11178 = vsyncpa [#allocation4 + $0x1], 1 }
0x2f2f   :  { %11179 = vsyncpa [#allocation7], 1 }
0x2f30   :  { %11181 = vsyncpa [#allocation7 + $0x1], 1 }
0x2f31   :  { %11182 = vsyncpa [#allocation10], 1 }
0x2f32   :  { %11184 = vsyncpa [#allocation10 + $0x1], 1 }

</bundles_post_ra>
